<compile_context>
chip_gen: v6e
topology: v6e:2x2x1
jax: 0.10.0
libtpu: 0.0.40
codegen_flags: <defaults>
</compile_context>

<pallas_src>
import math
import functools

import numpy as np
import jax
import jax.numpy as jnp
from jax.experimental import pallas as pl
from jax.experimental.pallas import tpu as pltpu

# ------------------------- small-config (consistent with SiT.__init__) ----------
INPUT_SIZE = 16          # H = W
PATCH = 2
IN_CH = 4
HIDDEN = 32
DEPTH = 2
NUM_HEADS = 4
MLP_RATIO = 4.0
NUM_CLASSES = 10
CLASS_DROPOUT = 0.1      # > 0 -> embedding table has NUM_CLASSES + 1 rows
LEARN_SIGMA = True
OUT_CH = IN_CH * 2 if LEARN_SIGMA else IN_CH
FREQ_EMB = 256
MLP_HIDDEN = int(HIDDEN * MLP_RATIO)
HEAD_DIM = HIDDEN // NUM_HEADS
P_OUT = PATCH * PATCH * OUT_CH

MXU_DTYPE = jnp.bfloat16   # matmul-operand dtype (f32 accumulation; VPU math stays f32)


# ------------------------------ fused Pallas kernel -------------------------------
def _sit_fused_kernel(xp_ref, tf_ref, ye_ref, pos_ref,
                      pe_w_ref, t_w1_ref, t_w2_ref,
                      ada_w_ref, qkv_w_ref, proj_w_ref, fc1_w_ref, fc2_w_ref,
                      f_ada_w_ref, f_lin_w_ref, bias_ref, out_ref,
                      *, nb, tokens, depth, bias_off):
    """One grid step == `nb` batch elements merged into nb*tokens rows; all in VMEM."""
    D = HIDDEN
    HD = HEAD_DIM
    M = nb * tokens

    def bias(name):
        off, n = bias_off[name]                  # static python ints
        return bias_ref[:, off:off + n]          # (1, n) f32

    def mm(x, w, b, act="none"):
        """x: f32 (R,K); w: bf16 (K,N); b: f32 (1,N).  f32 accumulate on the MXU."""
        acc = jnp.dot(x.astype(MXU_DTYPE), w, preferred_element_type=jnp.float32)
        acc = acc + b
        if act == "silu":
            acc = acc * jax.nn.sigmoid(acc)
        elif act == "gelu_tanh":
            c0 = math.sqrt(2.0 / math.pi)
            acc = 0.5 * acc * (1.0 + jnp.tanh(c0 * (acc + 0.044715 * acc * acc * acc)))
        return acc

    def bc_rows(v):
        """Broadcast per-batch conditioning (nb, K) -> merged rows (M, K)."""
        K = v.shape[-1]
        if nb == 1:
            return jnp.broadcast_to(v, (tokens, K))
        return jnp.broadcast_to(v[:, None, :], (nb, tokens, K)).reshape(M, K)

    def ln_mod(x, shift, scale):
        """LayerNorm(eps=1e-6, no affine) + adaLN modulate (row-wise, batches don't mix)."""
        mean = jnp.mean(x, axis=-1, keepdims=True)
        var = jnp.mean(jnp.square(x - mean), axis=-1, keepdims=True)
        xn = (x - mean) * jax.lax.rsqrt(var + 1e-6)
        return xn * (1.0 + scale) + shift

    # ---- conditioning: timestep-embed MLP + label embedding, then SiLU(c) ----
    tf = tf_ref[...].reshape(nb, FREQ_EMB)
    t_h = mm(tf, t_w1_ref[...], bias("t1"), act="silu")        # (nb, D)
    t_emb = mm(t_h, t_w2_ref[...], bias("t2"))                  # (nb, D)
    c = t_emb + ye_ref[...].reshape(nb, D)                      # (nb, D)
    c_silu = c * jax.nn.sigmoid(c)

    # ---- patch embed (conv-as-matmul) + fixed sincos pos embed (pre-tiled) ----
    x = mm(xp_ref[...], pe_w_ref[...], bias("pe")) + pos_ref[...]   # (M, D)

    # ---- transformer blocks (unrolled; DEPTH is small and static) ----
    for d in range(depth):
        mod = mm(c_silu, ada_w_ref[d], bias(f"ada{d}"))         # (nb, 6D)
        sh_msa = bc_rows(mod[:, 0 * D:1 * D])
        sc_msa = bc_rows(mod[:, 1 * D:2 * D])
        g_msa = bc_rows(mod[:, 2 * D:3 * D])
        sh_mlp = bc_rows(mod[:, 3 * D:4 * D])
        sc_mlp = bc_rows(mod[:, 4 * D:5 * D])
        g_mlp = bc_rows(mod[:, 5 * D:6 * D])

        # --- attention branch (q-scale already folded into qkv_w / qkv_b) ---
        xm = ln_mod(x, sh_msa, sc_msa)
        qkv = mm(xm, qkv_w_ref[d], bias(f"qkv{d}"))             # (M, 3D): [q|k|v], head-contig
        attn_rows = []
        for b in range(nb):                                     # attention never mixes batches
            r0 = b * tokens
            heads = []
            for h in range(NUM_HEADS):
                q = qkv[r0:r0 + tokens, h * HD:(h + 1) * HD].astype(MXU_DTYPE)
                k = qkv[r0:r0 + tokens, D + h * HD:D + (h + 1) * HD].astype(MXU_DTYPE)
                v = qkv[r0:r0 + tokens, 2 * D + h * HD:2 * D + (h + 1) * HD].astype(MXU_DTYPE)
                # 'td,sd->ts' — contract last dims, no materialized transpose
                s = jax.lax.dot_general(q, k, (((1,), (1,)), ((), ())),
                                        preferred_element_type=jnp.float32)
                s = s - jnp.max(s, axis=-1, keepdims=True)
                p = jnp.exp(s)
                # deferred normalization: matmul the unnormalized probs, scale the (T,HD) output
                o = jnp.dot(p.astype(MXU_DTYPE), v, preferred_element_type=jnp.float32)
                o = o * pl.reciprocal(jnp.sum(p, axis=-1, keepdims=True), approx=True)
                heads.append(o)
            attn_rows.append(jnp.concatenate(heads, axis=-1))   # (tokens, D)
        attn_in = attn_rows[0] if nb == 1 else jnp.concatenate(attn_rows, axis=0)
        attn = mm(attn_in, proj_w_ref[d], bias(f"proj{d}"))     # (M, D)
        x = x + g_msa * attn

        # --- MLP branch (tanh-GELU fused into fc1 epilogue) ---
        xm2 = ln_mod(x, sh_mlp, sc_mlp)
        h1 = mm(xm2, fc1_w_ref[d], bias(f"fc1{d}"), act="gelu_tanh")   # (M, MLP_HIDDEN)
        x = x + g_mlp * mm(h1, fc2_w_ref[d], bias(f"fc2{d}"))

    # ---- final layer: adaLN modulate + linear to patch pixels ----
    fmod = mm(c_silu, f_ada_w_ref[...], bias("f_ada"))          # (nb, 2D)
    xn = ln_mod(x, bc_rows(fmod[:, :D]), bc_rows(fmod[:, D:]))
    out_ref[...] = mm(xn, f_lin_w_ref[...], bias("f_lin")).astype(out_ref.dtype)
    # TODO(synk): output last dim is P_OUT=32 (<128 lanes -> masked stores); only 8/16 KiB of
    # writeback total, so the lane-dense transposed-layout rewrite is left for a future pass.


def _pack_biases(named):
    """Pack all bias vectors into one f32 slab; each slot starts on a 128-lane boundary."""
    offs = {}
    chunks = []
    cur = 0
    for name, vec in named:
        v = jnp.asarray(vec, jnp.float32).reshape(-1)
        n = int(v.shape[0])
        pad = (-n) % 128
        if pad:
            v = jnp.concatenate([v, jnp.zeros((pad,), jnp.float32)])
        offs[name] = (cur, n)
        chunks.append(v)
        cur += n + pad
    return jnp.concatenate(chunks).reshape(1, cur), offs


def fused_sit_pallas(params, xp, t_freq, y_emb):
    """xp: (B,T,C*p*p) f32, t_freq: (B,1,FREQ_EMB) f32, y_emb: (B,1,D) f32 -> (B,T,P_OUT)."""
    B, T, Kp = xp.shape
    D = HIDDEN

    # Batches per grid step: merge everything into one step on single-TC chips (v5e/v6e);
    # keep a 2-step "parallel" grid on v7x so both TensorCores get one batch element.
    kind = ""
    try:
        kind = jax.devices()[0].device_kind.lower()
    except Exception:
        pass
    num_steps = 2 if ("v7" in kind and B % 2 == 0) else 1
    nb = B // num_steps
    M = nb * T

    def wc(w):                     # bf16 MXU operands; f32 master params kept outside
        return jnp.asarray(w, jnp.float32).astype(MXU_DTYPE)

    # fold the attention scale into the q columns of qkv weight/bias (host side, free)
    qscale = jnp.concatenate([jnp.full((D,), HEAD_DIM ** -0.5, jnp.float32),
                              jnp.ones((2 * D,), jnp.float32)])

    blocks = params["blocks"]
    ada_w = jnp.stack([wc(pb["ada_w"]) for pb in blocks])              # (DEPTH, D, 6D)
    qkv_w = jnp.stack([wc(pb["qkv_w"] * qscale[None, :]) for pb in blocks])
    proj_w = jnp.stack([wc(pb["proj_w"]) for pb in blocks])
    fc1_w = jnp.stack([wc(pb["fc1_w"]) for pb in blocks])
    fc2_w = jnp.stack([wc(pb["fc2_w"]) for pb in blocks])

    named_biases = [("pe", params["pe_b"]), ("t1", params["t_b1"]), ("t2", params["t_b2"]),
                    ("f_ada", params["f_ada_b"]), ("f_lin", params["f_lin_b"])]
    for d, pb in enumerate(blocks):
        named_biases += [(f"ada{d}", pb["ada_b"]),
                         (f"qkv{d}", pb["qkv_b"] * qscale),
                         (f"proj{d}", pb["proj_b"]),
                         (f"fc1{d}", pb["fc1_b"]),
                         (f"fc2{d}", pb["fc2_b"])]
    bias_slab, bias_off = _pack_biases(named_biases)

    pos_tiled = jnp.tile(params["pos_embed"].astype(jnp.float32), (nb, 1))   # (M, D)
    xp2 = xp.reshape(B * T, Kp)                                              # rows batch-major

    inputs = [xp2, t_freq, y_emb, pos_tiled,
              wc(params["pe_w"]), wc(params["t_w1"]), wc(params["t_w2"]),
              ada_w, qkv_w, proj_w, fc1_w, fc2_w,
              wc(params["f_ada_w"]), wc(params["f_lin_w"]), bias_slab]

    def full_spec(a):              # shared weight/bias: full array, VMEM-resident
        nd = a.ndim
        return pl.BlockSpec(tuple(a.shape), lambda i, _nd=nd: (0,) * _nd)

    in_specs = [
        pl.BlockSpec((M, Kp), lambda i: (i, 0)),                 # xp rows for this step
        pl.BlockSpec((nb, 1, FREQ_EMB), lambda i: (i, 0, 0)),    # timestep features
        pl.BlockSpec((nb, 1, D), lambda i: (i, 0, 0)),           # label embeddings
    ] + [full_spec(a) for a in inputs[3:]]

    out2 = pl.pallas_call(
        functools.partial(_sit_fused_kernel, nb=nb, tokens=T, depth=DEPTH,
                          bias_off=bias_off),
        out_shape=jax.ShapeDtypeStruct((B * T, P_OUT), jnp.float32),
        grid=(num_steps,),
        in_specs=in_specs,
        out_specs=pl.BlockSpec((M, P_OUT), lambda i: (i, 0)),
        compiler_params=pltpu.CompilerParams(dimension_semantics=("parallel",)),
    )(*inputs)
    return out2.reshape(B, T, P_OUT)


# ------------------------------ reference helpers (numpy / JAX glue) ------------
def get_1d_sincos_pos_embed_from_grid(embed_dim, pos):
    assert embed_dim % 2 == 0
    omega = np.arange(embed_dim // 2, dtype=np.float64)
    omega /= embed_dim / 2.0
    omega = 1.0 / 10000 ** omega
    pos = pos.reshape(-1)
    out = np.einsum('m,d->md', pos, omega)
    emb_sin = np.sin(out)
    emb_cos = np.cos(out)
    return np.concatenate([emb_sin, emb_cos], axis=1)


def get_2d_sincos_pos_embed_from_grid(embed_dim, grid):
    assert embed_dim % 2 == 0
    emb_h = get_1d_sincos_pos_embed_from_grid(embed_dim // 2, grid[0])
    emb_w = get_1d_sincos_pos_embed_from_grid(embed_dim // 2, grid[1])
    return np.concatenate([emb_h, emb_w], axis=1)


def get_2d_sincos_pos_embed(embed_dim, grid_size):
    grid_h = np.arange(grid_size, dtype=np.float32)
    grid_w = np.arange(grid_size, dtype=np.float32)
    grid = np.meshgrid(grid_w, grid_h)
    grid = np.stack(grid, axis=0)
    grid = grid.reshape([2, 1, grid_size, grid_size])
    return get_2d_sincos_pos_embed_from_grid(embed_dim, grid)


def timestep_embedding(t, dim, max_period=10000):
    half = dim // 2
    freqs = jnp.exp(-math.log(max_period) *
                    jnp.arange(half, dtype=jnp.float32) / half)
    args = t[:, None].astype(jnp.float32) * freqs[None]
    return jnp.concatenate([jnp.cos(args), jnp.sin(args)], axis=-1)  # dim is even here


# ------------------------------ parameters --------------------------------------
def _w(key, shape, std=0.02):
    return (std * jax.random.normal(key, shape)).astype(jnp.float32)


def init_params(key):
    ks = iter(jax.random.split(key, 64))
    D = HIDDEN
    params = {
        # patch embedding (Conv2d k=p, s=p == matmul on flattened (C, p, p) patches)
        "pe_w": _w(next(ks), (IN_CH * PATCH * PATCH, D)),
        "pe_b": jnp.zeros((D,), jnp.float32),
        # timestep embedder MLP
        "t_w1": _w(next(ks), (FREQ_EMB, D)),
        "t_b1": jnp.zeros((D,), jnp.float32),
        "t_w2": _w(next(ks), (D, D)),
        "t_b2": jnp.zeros((D,), jnp.float32),
        # label embedder (num_classes + 1 cfg row since dropout_prob > 0)
        "y_table": _w(next(ks), (NUM_CLASSES + 1, D)),
        # final layer
        "f_ada_w": _w(next(ks), (D, 2 * D)),
        "f_ada_b": jnp.zeros((2 * D,), jnp.float32),
        "f_lin_w": _w(next(ks), (D, P_OUT)),
        "f_lin_b": jnp.zeros((P_OUT,), jnp.float32),
        # fixed sincos pos-embed
        "pos_embed": jnp.asarray(
            get_2d_sincos_pos_embed(D, INPUT_SIZE // PATCH), jnp.float32),
    }
    blocks = []
    for _ in range(DEPTH):
        blocks.append({
            "ada_w": _w(next(ks), (D, 6 * D)),
            "ada_b": jnp.zeros((6 * D,), jnp.float32),
            "qkv_w": _w(next(ks), (D, 3 * D)),
            "qkv_b": jnp.zeros((3 * D,), jnp.float32),
            "proj_w": _w(next(ks), (D, D)),
            "proj_b": jnp.zeros((D,), jnp.float32),
            "fc1_w": _w(next(ks), (D, MLP_HIDDEN)),
            "fc1_b": jnp.zeros((MLP_HIDDEN,), jnp.float32),
            "fc2_w": _w(next(ks), (MLP_HIDDEN, D)),
            "fc2_b": jnp.zeros((D,), jnp.float32),
        })
    params["blocks"] = blocks
    return params


# ------------------------------ model forward ------------------------------------
def sit_forward(params, x, t, y):
    """x: (B, C, H, W) f32, t: (B,) f32, y: (B,) int32.  Eval mode (no label dropout)."""
    B, C, H, W = x.shape
    p = PATCH
    gh, gw = H // p, W // p
    T = gh * gw

    # layout glue (outside the kernel): extract (C, p, p) patches in conv-weight order
    xp = x.reshape(B, C, gh, p, gw, p)
    xp = jnp.transpose(xp, (0, 2, 4, 1, 3, 5)).reshape(B, T, C * p * p)

    # conditioning inputs: sinusoidal timestep features + label-embedding gather
    t_freq = timestep_embedding(t, FREQ_EMB).reshape(B, 1, FREQ_EMB)
    y_emb = params["y_table"][y].reshape(B, 1, HIDDEN)   # eval: no classifier-free drop

    # everything else (patch embed -> blocks -> final layer) runs in ONE fused kernel
    out = fused_sit_pallas(params, xp, t_freq, y_emb)     # (B, T, p*p*OUT_CH)

    # unpatchify: (B, T, p*p*Cout) -> (B, Cout, H, W)
    out = out.reshape(B, gh, gw, p, p, OUT_CH)
    out = jnp.transpose(out, (0, 5, 1, 3, 2, 4))          # nhwpqc -> nchpwq
    imgs = out.reshape(B, OUT_CH, gh * p, gw * p)
    if LEARN_SIGMA:
        imgs = imgs[:, : OUT_CH // 2]
    zs = []            # encoder_depth = [] -> no projector outputs
    cls_output = None  # use_cls_token = False
    return imgs, zs, cls_output
    # TODO(synk): bicubic pos-embed interpolation branch unused (input grid == stored grid)


# ------------------------------ main ---------------------------------------------
if __name__ == "__main__":
    key = jax.random.PRNGKey(0)
    kp, kx, kt, ky = jax.random.split(key, 4)

    params = init_params(kp)
    B = 2
    x = jax.random.normal(kx, (B, IN_CH, INPUT_SIZE, INPUT_SIZE), jnp.float32)
    t = jax.random.uniform(kt, (B,), jnp.float32) * 1000.0
    y = jax.random.randint(ky, (B,), 0, NUM_CLASSES)

    fwd = jax.jit(sit_forward)
    imgs, zs, cls_out = fwd(params, x, t, y)
    imgs = jax.block_until_ready(imgs)

    assert imgs.shape == (B, IN_CH, INPUT_SIZE, INPUT_SIZE)
    assert bool(jnp.all(jnp.isfinite(imgs)))
    print("KERNEL_OK")
</pallas_src>

<mosaic_0001>
module attributes {stable_mosaic.version = 11 : i64} {
  func.func @_sit_fused_kernel(%arg0: i32, %arg1: memref<128x16xf32, #tpu.memory_space<vmem>>, %arg2: memref<2x1x256xf32, #tpu.memory_space<vmem>>, %arg3: memref<2x1x32xf32, #tpu.memory_space<vmem>>, %arg4: memref<128x32xf32, #tpu.memory_space<vmem>>, %arg5: memref<16x32xbf16, #tpu.memory_space<vmem>>, %arg6: memref<256x32xbf16, #tpu.memory_space<vmem>>, %arg7: memref<32x32xbf16, #tpu.memory_space<vmem>>, %arg8: memref<2x32x192xbf16, #tpu.memory_space<vmem>>, %arg9: memref<2x32x96xbf16, #tpu.memory_space<vmem>>, %arg10: memref<2x32x32xbf16, #tpu.memory_space<vmem>>, %arg11: memref<2x32x128xbf16, #tpu.memory_space<vmem>>, %arg12: memref<2x128x32xbf16, #tpu.memory_space<vmem>>, %arg13: memref<32x64xbf16, #tpu.memory_space<vmem>>, %arg14: memref<32x32xbf16, #tpu.memory_space<vmem>>, %arg15: memref<1x2176xf32, #tpu.memory_space<vmem>>, %arg16: memref<128x32xf32, #tpu.memory_space<vmem>>) attributes {dimension_semantics = [#tpu.dimension_semantics<parallel>], iteration_bounds = array<i64: 1>, scalar_prefetch = 0 : i64, scratch_operands = 0 : i64, tpu.core_type = #tpu.core_type<tc>, window_params = [{transform_indices = @transform_0, window_bounds = array<i64: 128, 16>}, {transform_indices = @transform_1, window_bounds = array<i64: 2, 1, 256>}, {transform_indices = @transform_2, window_bounds = array<i64: 2, 1, 32>}, {pipeline_mode = #tpu.pipeline_mode<synchronous>, transform_indices = @transform_3, window_bounds = array<i64: 128, 32>}, {pipeline_mode = #tpu.pipeline_mode<synchronous>, transform_indices = @transform_4, window_bounds = array<i64: 16, 32>}, {pipeline_mode = #tpu.pipeline_mode<synchronous>, transform_indices = @transform_5, window_bounds = array<i64: 256, 32>}, {pipeline_mode = #tpu.pipeline_mode<synchronous>, transform_indices = @transform_6, window_bounds = array<i64: 32, 32>}, {pipeline_mode = #tpu.pipeline_mode<synchronous>, transform_indices = @transform_7, window_bounds = array<i64: 2, 32, 192>}, {pipeline_mode = #tpu.pipeline_mode<synchronous>, transform_indices = @transform_8, window_bounds = array<i64: 2, 32, 96>}, {pipeline_mode = #tpu.pipeline_mode<synchronous>, transform_indices = @transform_9, window_bounds = array<i64: 2, 32, 32>}, {pipeline_mode = #tpu.pipeline_mode<synchronous>, transform_indices = @transform_10, window_bounds = array<i64: 2, 32, 128>}, {pipeline_mode = #tpu.pipeline_mode<synchronous>, transform_indices = @transform_11, window_bounds = array<i64: 2, 128, 32>}, {pipeline_mode = #tpu.pipeline_mode<synchronous>, transform_indices = @transform_12, window_bounds = array<i64: 32, 64>}, {pipeline_mode = #tpu.pipeline_mode<synchronous>, transform_indices = @transform_13, window_bounds = array<i64: 32, 32>}, {pipeline_mode = #tpu.pipeline_mode<synchronous>, transform_indices = @transform_14, window_bounds = array<i64: 1, 2176>}, {transform_indices = @transform_15, window_bounds = array<i64: 128, 32>}]} {
    %c0 = arith.constant 0 : index
    %c0_0 = arith.constant 0 : index
    %c0_1 = arith.constant 0 : index
    %0 = vector.load %arg2[%c0, %c0_0, %c0_1] : memref<2x1x256xf32, #tpu.memory_space<vmem>>, vector<2x1x256xf32>
    %1 = vector.shape_cast %0 : vector<2x1x256xf32> to vector<2x256xf32>
    %c0_2 = arith.constant 0 : index
    %c0_3 = arith.constant 0 : index
    %2 = vector.load %arg6[%c0_2, %c0_3] : memref<256x32xbf16, #tpu.memory_space<vmem>>, vector<256x32xbf16>
    %c0_4 = arith.constant 0 : index
    %c128 = arith.constant 128 : index
    %3 = vector.load %arg15[%c0_4, %c128] : memref<1x2176xf32, #tpu.memory_space<vmem>>, vector<1x32xf32>
    %4 = arith.truncf %1 : vector<2x256xf32> to vector<2x256xbf16>
    %cst = arith.constant dense<0.000000e+00> : vector<2x32xf32>
    %5 = tpu.matmul %4, %2, %cst {dimension_numbers = #tpu.dot_dimension_numbers<[1], [0], [0], [1], [0, 0, 1, 1], [], []>} : vector<2x256xbf16>, vector<256x32xbf16>, vector<2x32xf32> -> vector<2x32xf32>
    %6 = vector.broadcast %3 : vector<1x32xf32> to vector<2x32xf32>
    %7 = arith.addf %5, %6 : vector<2x32xf32>
    %8 = arith.negf %7 : vector<2x32xf32>
    %9 = math.exp %8 : vector<2x32xf32>
    %cst_5 = arith.constant 1.000000e+00 : f32
    %10 = vector.broadcast %cst_5 : f32 to vector<2x32xf32>
    %11 = arith.addf %10, %9 : vector<2x32xf32>
    %12 = arith.divf %10, %11 : vector<2x32xf32>
    %13 = arith.mulf %7, %12 : vector<2x32xf32>
    %c0_6 = arith.constant 0 : index
    %c0_7 = arith.constant 0 : index
    %14 = vector.load %arg7[%c0_6, %c0_7] : memref<32x32xbf16, #tpu.memory_space<vmem>>, vector<32x32xbf16>
    %c0_8 = arith.constant 0 : index
    %c256 = arith.constant 256 : index
    %15 = vector.load %arg15[%c0_8, %c256] : memref<1x2176xf32, #tpu.memory_space<vmem>>, vector<1x32xf32>
    %16 = arith.truncf %13 : vector<2x32xf32> to vector<2x32xbf16>
    %cst_9 = arith.constant dense<0.000000e+00> : vector<2x32xf32>
    %17 = tpu.matmul %16, %14, %cst_9 {dimension_numbers = #tpu.dot_dimension_numbers<[1], [0], [0], [1], [0, 0, 1, 1], [], []>} : vector<2x32xbf16>, vector<32x32xbf16>, vector<2x32xf32> -> vector<2x32xf32>
    %18 = vector.broadcast %15 : vector<1x32xf32> to vector<2x32xf32>
    %19 = arith.addf %17, %18 : vector<2x32xf32>
    %c0_10 = arith.constant 0 : index
    %c0_11 = arith.constant 0 : index
    %c0_12 = arith.constant 0 : index
    %20 = vector.load %arg3[%c0_10, %c0_11, %c0_12] : memref<2x1x32xf32, #tpu.memory_space<vmem>>, vector<2x1x32xf32>
    %21 = vector.shape_cast %20 : vector<2x1x32xf32> to vector<2x32xf32>
    %22 = arith.addf %19, %21 : vector<2x32xf32>
    %23 = arith.negf %22 : vector<2x32xf32>
    %24 = math.exp %23 : vector<2x32xf32>
    %cst_13 = arith.constant 1.000000e+00 : f32
    %25 = vector.broadcast %cst_13 : f32 to vector<2x32xf32>
    %26 = arith.addf %25, %24 : vector<2x32xf32>
    %27 = arith.divf %25, %26 : vector<2x32xf32>
    %28 = arith.mulf %22, %27 : vector<2x32xf32>
    %c0_14 = arith.constant 0 : index
    %c0_15 = arith.constant 0 : index
    %29 = vector.load %arg1[%c0_14, %c0_15] : memref<128x16xf32, #tpu.memory_space<vmem>>, vector<128x16xf32>
    %c0_16 = arith.constant 0 : index
    %c0_17 = arith.constant 0 : index
    %30 = vector.load %arg5[%c0_16, %c0_17] : memref<16x32xbf16, #tpu.memory_space<vmem>>, vector<16x32xbf16>
    %c0_18 = arith.constant 0 : index
    %c0_19 = arith.constant 0 : index
    %31 = vector.load %arg15[%c0_18, %c0_19] : memref<1x2176xf32, #tpu.memory_space<vmem>>, vector<1x32xf32>
    %32 = arith.truncf %29 : vector<128x16xf32> to vector<128x16xbf16>
    %cst_20 = arith.constant dense<0.000000e+00> : vector<128x32xf32>
    %33 = tpu.matmul %32, %30, %cst_20 {dimension_numbers = #tpu.dot_dimension_numbers<[1], [0], [0], [1], [0, 0, 1, 1], [], []>} : vector<128x16xbf16>, vector<16x32xbf16>, vector<128x32xf32> -> vector<128x32xf32>
    %34 = vector.broadcast %31 : vector<1x32xf32> to vector<128x32xf32>
    %35 = arith.addf %33, %34 : vector<128x32xf32>
    %c0_21 = arith.constant 0 : index
    %c0_22 = arith.constant 0 : index
    %36 = vector.load %arg4[%c0_21, %c0_22] : memref<128x32xf32, #tpu.memory_space<vmem>>, vector<128x32xf32>
    %37 = arith.addf %35, %36 : vector<128x32xf32>
    %c0_23 = arith.constant 0 : index
    %c0_24 = arith.constant 0 : index
    %c0_25 = arith.constant 0 : index
    %38 = vector.load %arg8[%c0_23, %c0_24, %c0_25] : memref<2x32x192xbf16, #tpu.memory_space<vmem>>, vector<1x32x192xbf16>
    %39 = vector.shape_cast %38 : vector<1x32x192xbf16> to vector<32x192xbf16>
    %c0_26 = arith.constant 0 : index
    %c640 = arith.constant 640 : index
    %40 = vector.load %arg15[%c0_26, %c640] : memref<1x2176xf32, #tpu.memory_space<vmem>>, vector<1x192xf32>
    %41 = arith.truncf %28 : vector<2x32xf32> to vector<2x32xbf16>
    %cst_27 = arith.constant dense<0.000000e+00> : vector<2x192xf32>
    %42 = tpu.matmul %41, %39, %cst_27 {dimension_numbers = #tpu.dot_dimension_numbers<[1], [0], [0], [1], [0, 0, 1, 1], [], []>} : vector<2x32xbf16>, vector<32x192xbf16>, vector<2x192xf32> -> vector<2x192xf32>
    %43 = vector.broadcast %40 : vector<1x192xf32> to vector<2x192xf32>
    %44 = arith.addf %42, %43 : vector<2x192xf32>
    %45 = vector.extract_strided_slice %44 {offsets = [0, 0], sizes = [2, 32], strides = [1, 1]} : vector<2x192xf32> to vector<2x32xf32>
    %46 = vector.shape_cast %45 : vector<2x32xf32> to vector<2x1x32xf32>
    %47 = vector.shape_cast %46 : vector<2x1x32xf32> to vector<2x1x32xf32>
    %48 = vector.broadcast %47 : vector<2x1x32xf32> to vector<2x64x32xf32>
    %49 = vector.shape_cast %48 : vector<2x64x32xf32> to vector<128x32xf32>
    %50 = vector.extract_strided_slice %44 {offsets = [0, 32], sizes = [2, 32], strides = [1, 1]} : vector<2x192xf32> to vector<2x32xf32>
    %51 = vector.shape_cast %50 : vector<2x32xf32> to vector<2x1x32xf32>
    %52 = vector.shape_cast %51 : vector<2x1x32xf32> to vector<2x1x32xf32>
    %53 = vector.broadcast %52 : vector<2x1x32xf32> to vector<2x64x32xf32>
    %54 = vector.shape_cast %53 : vector<2x64x32xf32> to vector<128x32xf32>
    %55 = vector.extract_strided_slice %44 {offsets = [0, 64], sizes = [2, 32], strides = [1, 1]} : vector<2x192xf32> to vector<2x32xf32>
    %56 = vector.shape_cast %55 : vector<2x32xf32> to vector<2x1x32xf32>
    %57 = vector.shape_cast %56 : vector<2x1x32xf32> to vector<2x1x32xf32>
    %58 = vector.broadcast %57 : vector<2x1x32xf32> to vector<2x64x32xf32>
    %59 = vector.shape_cast %58 : vector<2x64x32xf32> to vector<128x32xf32>
    %60 = vector.extract_strided_slice %44 {offsets = [0, 96], sizes = [2, 32], strides = [1, 1]} : vector<2x192xf32> to vector<2x32xf32>
    %61 = vector.shape_cast %60 : vector<2x32xf32> to vector<2x1x32xf32>
    %62 = vector.shape_cast %61 : vector<2x1x32xf32> to vector<2x1x32xf32>
    %63 = vector.broadcast %62 : vector<2x1x32xf32> to vector<2x64x32xf32>
    %64 = vector.shape_cast %63 : vector<2x64x32xf32> to vector<128x32xf32>
    %65 = vector.extract_strided_slice %44 {offsets = [0, 128], sizes = [2, 32], strides = [1, 1]} : vector<2x192xf32> to vector<2x32xf32>
    %66 = vector.shape_cast %65 : vector<2x32xf32> to vector<2x1x32xf32>
    %67 = vector.shape_cast %66 : vector<2x1x32xf32> to vector<2x1x32xf32>
    %68 = vector.broadcast %67 : vector<2x1x32xf32> to vector<2x64x32xf32>
    %69 = vector.shape_cast %68 : vector<2x64x32xf32> to vector<128x32xf32>
    %70 = vector.extract_strided_slice %44 {offsets = [0, 160], sizes = [2, 32], strides = [1, 1]} : vector<2x192xf32> to vector<2x32xf32>
    %71 = vector.shape_cast %70 : vector<2x32xf32> to vector<2x1x32xf32>
    %72 = vector.shape_cast %71 : vector<2x1x32xf32> to vector<2x1x32xf32>
    %73 = vector.broadcast %72 : vector<2x1x32xf32> to vector<2x64x32xf32>
    %74 = vector.shape_cast %73 : vector<2x64x32xf32> to vector<128x32xf32>
    %cst_28 = arith.constant dense<0.000000e+00> : vector<128xf32>
    %75 = vector.multi_reduction <add>, %37, %cst_28 [1] : vector<128x32xf32> to vector<128xf32>
    %76 = vector.shape_cast %75 : vector<128xf32> to vector<128x1xf32>
    %cst_29 = arith.constant 3.200000e+01 : f32
    %77 = vector.broadcast %cst_29 : f32 to vector<128x1xf32>
    %78 = arith.divf %76, %77 : vector<128x1xf32>
    %79 = vector.broadcast %78 : vector<128x1xf32> to vector<128x32xf32>
    %80 = arith.subf %37, %79 : vector<128x32xf32>
    %81 = arith.mulf %80, %80 : vector<128x32xf32>
    %cst_30 = arith.constant dense<0.000000e+00> : vector<128xf32>
    %82 = vector.multi_reduction <add>, %81, %cst_30 [1] : vector<128x32xf32> to vector<128xf32>
    %83 = vector.shape_cast %82 : vector<128xf32> to vector<128x1xf32>
    %cst_31 = arith.constant 3.200000e+01 : f32
    %84 = vector.broadcast %cst_31 : f32 to vector<128x1xf32>
    %85 = arith.divf %83, %84 : vector<128x1xf32>
    %86 = vector.broadcast %78 : vector<128x1xf32> to vector<128x32xf32>
    %87 = arith.subf %37, %86 : vector<128x32xf32>
    %cst_32 = arith.constant 9.99999997E-7 : f32
    %88 = vector.broadcast %cst_32 : f32 to vector<128x1xf32>
    %89 = arith.addf %85, %88 : vector<128x1xf32>
    %90 = math.rsqrt %89 : vector<128x1xf32>
    %91 = vector.broadcast %90 : vector<128x1xf32> to vector<128x32xf32>
    %92 = arith.mulf %87, %91 : vector<128x32xf32>
    %cst_33 = arith.constant 1.000000e+00 : f32
    %93 = vector.broadcast %cst_33 : f32 to vector<128x32xf32>
    %94 = arith.addf %93, %54 : vector<128x32xf32>
    %95 = arith.mulf %92, %94 : vector<128x32xf32>
    %96 = arith.addf %95, %49 : vector<128x32xf32>
    %c0_34 = arith.constant 0 : index
    %c0_35 = arith.constant 0 : index
    %c0_36 = arith.constant 0 : index
    %97 = vector.load %arg9[%c0_34, %c0_35, %c0_36] : memref<2x32x96xbf16, #tpu.memory_space<vmem>>, vector<1x32x96xbf16>
    %98 = vector.shape_cast %97 : vector<1x32x96xbf16> to vector<32x96xbf16>
    %c0_37 = arith.constant 0 : index
    %c896 = arith.constant 896 : index
    %99 = vector.load %arg15[%c0_37, %c896] : memref<1x2176xf32, #tpu.memory_space<vmem>>, vector<1x96xf32>
    %100 = arith.truncf %96 : vector<128x32xf32> to vector<128x32xbf16>
    %cst_38 = arith.constant dense<0.000000e+00> : vector<128x96xf32>
    %101 = tpu.matmul %100, %98, %cst_38 {dimension_numbers = #tpu.dot_dimension_numbers<[1], [0], [0], [1], [0, 0, 1, 1], [], []>} : vector<128x32xbf16>, vector<32x96xbf16>, vector<128x96xf32> -> vector<128x96xf32>
    %102 = vector.broadcast %99 : vector<1x96xf32> to vector<128x96xf32>
    %103 = arith.addf %101, %102 : vector<128x96xf32>
    %104 = vector.extract_strided_slice %103 {offsets = [0, 0], sizes = [64, 8], strides = [1, 1]} : vector<128x96xf32> to vector<64x8xf32>
    %105 = arith.truncf %104 : vector<64x8xf32> to vector<64x8xbf16>
    %106 = vector.extract_strided_slice %103 {offsets = [0, 32], sizes = [64, 8], strides = [1, 1]} : vector<128x96xf32> to vector<64x8xf32>
    %107 = arith.truncf %106 : vector<64x8xf32> to vector<64x8xbf16>
    %108 = vector.extract_strided_slice %103 {offsets = [0, 64], sizes = [64, 8], strides = [1, 1]} : vector<128x96xf32> to vector<64x8xf32>
    %109 = arith.truncf %108 : vector<64x8xf32> to vector<64x8xbf16>
    %cst_39 = arith.constant dense<0.000000e+00> : vector<64x64xf32>
    %110 = tpu.matmul %105, %107, %cst_39 {dimension_numbers = #tpu.dot_dimension_numbers<[1], [1], [0], [0], [0, 0, 1, 0], [], []>} : vector<64x8xbf16>, vector<64x8xbf16>, vector<64x64xf32> -> vector<64x64xf32>
    %cst_40 = arith.constant dense<0xFF800000> : vector<64xf32>
    %111 = vector.multi_reduction <maximumf>, %110, %cst_40 [1] : vector<64x64xf32> to vector<64xf32>
    %112 = vector.shape_cast %111 : vector<64xf32> to vector<64x1xf32>
    %113 = vector.broadcast %112 : vector<64x1xf32> to vector<64x64xf32>
    %114 = arith.subf %110, %113 : vector<64x64xf32>
    %115 = math.exp %114 : vector<64x64xf32>
    %116 = arith.truncf %115 : vector<64x64xf32> to vector<64x64xbf16>
    %cst_41 = arith.constant dense<0.000000e+00> : vector<64x8xf32>
    %117 = tpu.matmul %116, %109, %cst_41 {dimension_numbers = #tpu.dot_dimension_numbers<[1], [0], [0], [1], [0, 0, 1, 1], [], []>} : vector<64x64xbf16>, vector<64x8xbf16>, vector<64x8xf32> -> vector<64x8xf32>
    %cst_42 = arith.constant dense<0.000000e+00> : vector<64xf32>
    %118 = vector.multi_reduction <add>, %115, %cst_42 [1] : vector<64x64xf32> to vector<64xf32>
    %119 = vector.shape_cast %118 : vector<64xf32> to vector<64x1xf32>
    %120 = tpu.reciprocal %119 {approx = true} : vector<64x1xf32> -> vector<64x1xf32>
    %121 = vector.broadcast %120 : vector<64x1xf32> to vector<64x8xf32>
    %122 = arith.mulf %117, %121 : vector<64x8xf32>
    %123 = vector.extract_strided_slice %103 {offsets = [0, 8], sizes = [64, 8], strides = [1, 1]} : vector<128x96xf32> to vector<64x8xf32>
    %124 = arith.truncf %123 : vector<64x8xf32> to vector<64x8xbf16>
    %125 = vector.extract_strided_slice %103 {offsets = [0, 40], sizes = [64, 8], strides = [1, 1]} : vector<128x96xf32> to vector<64x8xf32>
    %126 = arith.truncf %125 : vector<64x8xf32> to vector<64x8xbf16>
    %127 = vector.extract_strided_slice %103 {offsets = [0, 72], sizes = [64, 8], strides = [1, 1]} : vector<128x96xf32> to vector<64x8xf32>
    %128 = arith.truncf %127 : vector<64x8xf32> to vector<64x8xbf16>
    %cst_43 = arith.constant dense<0.000000e+00> : vector<64x64xf32>
    %129 = tpu.matmul %124, %126, %cst_43 {dimension_numbers = #tpu.dot_dimension_numbers<[1], [1], [0], [0], [0, 0, 1, 0], [], []>} : vector<64x8xbf16>, vector<64x8xbf16>, vector<64x64xf32> -> vector<64x64xf32>
    %cst_44 = arith.constant dense<0xFF800000> : vector<64xf32>
    %130 = vector.multi_reduction <maximumf>, %129, %cst_44 [1] : vector<64x64xf32> to vector<64xf32>
    %131 = vector.shape_cast %130 : vector<64xf32> to vector<64x1xf32>
    %132 = vector.broadcast %131 : vector<64x1xf32> to vector<64x64xf32>
    %133 = arith.subf %129, %132 : vector<64x64xf32>
    %134 = math.exp %133 : vector<64x64xf32>
    %135 = arith.truncf %134 : vector<64x64xf32> to vector<64x64xbf16>
    %cst_45 = arith.constant dense<0.000000e+00> : vector<64x8xf32>
    %136 = tpu.matmul %135, %128, %cst_45 {dimension_numbers = #tpu.dot_dimension_numbers<[1], [0], [0], [1], [0, 0, 1, 1], [], []>} : vector<64x64xbf16>, vector<64x8xbf16>, vector<64x8xf32> -> vector<64x8xf32>
    %cst_46 = arith.constant dense<0.000000e+00> : vector<64xf32>
    %137 = vector.multi_reduction <add>, %134, %cst_46 [1] : vector<64x64xf32> to vector<64xf32>
    %138 = vector.shape_cast %137 : vector<64xf32> to vector<64x1xf32>
    %139 = tpu.reciprocal %138 {approx = true} : vector<64x1xf32> -> vector<64x1xf32>
    %140 = vector.broadcast %139 : vector<64x1xf32> to vector<64x8xf32>
    %141 = arith.mulf %136, %140 : vector<64x8xf32>
    %142 = vector.extract_strided_slice %103 {offsets = [0, 16], sizes = [64, 8], strides = [1, 1]} : vector<128x96xf32> to vector<64x8xf32>
    %143 = arith.truncf %142 : vector<64x8xf32> to vector<64x8xbf16>
    %144 = vector.extract_strided_slice %103 {offsets = [0, 48], sizes = [64, 8], strides = [1, 1]} : vector<128x96xf32> to vector<64x8xf32>
    %145 = arith.truncf %144 : vector<64x8xf32> to vector<64x8xbf16>
    %146 = vector.extract_strided_slice %103 {offsets = [0, 80], sizes = [64, 8], strides = [1, 1]} : vector<128x96xf32> to vector<64x8xf32>
    %147 = arith.truncf %146 : vector<64x8xf32> to vector<64x8xbf16>
    %cst_47 = arith.constant dense<0.000000e+00> : vector<64x64xf32>
    %148 = tpu.matmul %143, %145, %cst_47 {dimension_numbers = #tpu.dot_dimension_numbers<[1], [1], [0], [0], [0, 0, 1, 0], [], []>} : vector<64x8xbf16>, vector<64x8xbf16>, vector<64x64xf32> -> vector<64x64xf32>
    %cst_48 = arith.constant dense<0xFF800000> : vector<64xf32>
    %149 = vector.multi_reduction <maximumf>, %148, %cst_48 [1] : vector<64x64xf32> to vector<64xf32>
    %150 = vector.shape_cast %149 : vector<64xf32> to vector<64x1xf32>
    %151 = vector.broadcast %150 : vector<64x1xf32> to vector<64x64xf32>
    %152 = arith.subf %148, %151 : vector<64x64xf32>
    %153 = math.exp %152 : vector<64x64xf32>
    %154 = arith.truncf %153 : vector<64x64xf32> to vector<64x64xbf16>
    %cst_49 = arith.constant dense<0.000000e+00> : vector<64x8xf32>
    %155 = tpu.matmul %154, %147, %cst_49 {dimension_numbers = #tpu.dot_dimension_numbers<[1], [0], [0], [1], [0, 0, 1, 1], [], []>} : vector<64x64xbf16>, vector<64x8xbf16>, vector<64x8xf32> -> vector<64x8xf32>
    %cst_50 = arith.constant dense<0.000000e+00> : vector<64xf32>
    %156 = vector.multi_reduction <add>, %153, %cst_50 [1] : vector<64x64xf32> to vector<64xf32>
    %157 = vector.shape_cast %156 : vector<64xf32> to vector<64x1xf32>
    %158 = tpu.reciprocal %157 {approx = true} : vector<64x1xf32> -> vector<64x1xf32>
    %159 = vector.broadcast %158 : vector<64x1xf32> to vector<64x8xf32>
    %160 = arith.mulf %155, %159 : vector<64x8xf32>
    %161 = vector.extract_strided_slice %103 {offsets = [0, 24], sizes = [64, 8], strides = [1, 1]} : vector<128x96xf32> to vector<64x8xf32>
    %162 = arith.truncf %161 : vector<64x8xf32> to vector<64x8xbf16>
    %163 = vector.extract_strided_slice %103 {offsets = [0, 56], sizes = [64, 8], strides = [1, 1]} : vector<128x96xf32> to vector<64x8xf32>
    %164 = arith.truncf %163 : vector<64x8xf32> to vector<64x8xbf16>
    %165 = vector.extract_strided_slice %103 {offsets = [0, 88], sizes = [64, 8], strides = [1, 1]} : vector<128x96xf32> to vector<64x8xf32>
    %166 = arith.truncf %165 : vector<64x8xf32> to vector<64x8xbf16>
    %cst_51 = arith.constant dense<0.000000e+00> : vector<64x64xf32>
    %167 = tpu.matmul %162, %164, %cst_51 {dimension_numbers = #tpu.dot_dimension_numbers<[1], [1], [0], [0], [0, 0, 1, 0], [], []>} : vector<64x8xbf16>, vector<64x8xbf16>, vector<64x64xf32> -> vector<64x64xf32>
    %cst_52 = arith.constant dense<0xFF800000> : vector<64xf32>
    %168 = vector.multi_reduction <maximumf>, %167, %cst_52 [1] : vector<64x64xf32> to vector<64xf32>
    %169 = vector.shape_cast %168 : vector<64xf32> to vector<64x1xf32>
    %170 = vector.broadcast %169 : vector<64x1xf32> to vector<64x64xf32>
    %171 = arith.subf %167, %170 : vector<64x64xf32>
    %172 = math.exp %171 : vector<64x64xf32>
    %173 = arith.truncf %172 : vector<64x64xf32> to vector<64x64xbf16>
    %cst_53 = arith.constant dense<0.000000e+00> : vector<64x8xf32>
    %174 = tpu.matmul %173, %166, %cst_53 {dimension_numbers = #tpu.dot_dimension_numbers<[1], [0], [0], [1], [0, 0, 1, 1], [], []>} : vector<64x64xbf16>, vector<64x8xbf16>, vector<64x8xf32> -> vector<64x8xf32>
    %cst_54 = arith.constant dense<0.000000e+00> : vector<64xf32>
    %175 = vector.multi_reduction <add>, %172, %cst_54 [1] : vector<64x64xf32> to vector<64xf32>
    %176 = vector.shape_cast %175 : vector<64xf32> to vector<64x1xf32>
    %177 = tpu.reciprocal %176 {approx = true} : vector<64x1xf32> -> vector<64x1xf32>
    %178 = vector.broadcast %177 : vector<64x1xf32> to vector<64x8xf32>
    %179 = arith.mulf %174, %178 : vector<64x8xf32>
    %180 = tpu.concatenate %122, %141, %160, %179 in 1 : vector<64x8xf32>, vector<64x8xf32>, vector<64x8xf32>, vector<64x8xf32> -> vector<64x32xf32>
    %181 = vector.extract_strided_slice %103 {offsets = [64, 0], sizes = [64, 8], strides = [1, 1]} : vector<128x96xf32> to vector<64x8xf32>
    %182 = arith.truncf %181 : vector<64x8xf32> to vector<64x8xbf16>
    %183 = vector.extract_strided_slice %103 {offsets = [64, 32], sizes = [64, 8], strides = [1, 1]} : vector<128x96xf32> to vector<64x8xf32>
    %184 = arith.truncf %183 : vector<64x8xf32> to vector<64x8xbf16>
    %185 = vector.extract_strided_slice %103 {offsets = [64, 64], sizes = [64, 8], strides = [1, 1]} : vector<128x96xf32> to vector<64x8xf32>
    %186 = arith.truncf %185 : vector<64x8xf32> to vector<64x8xbf16>
    %cst_55 = arith.constant dense<0.000000e+00> : vector<64x64xf32>
    %187 = tpu.matmul %182, %184, %cst_55 {dimension_numbers = #tpu.dot_dimension_numbers<[1], [1], [0], [0], [0, 0, 1, 0], [], []>} : vector<64x8xbf16>, vector<64x8xbf16>, vector<64x64xf32> -> vector<64x64xf32>
    %cst_56 = arith.constant dense<0xFF800000> : vector<64xf32>
    %188 = vector.multi_reduction <maximumf>, %187, %cst_56 [1] : vector<64x64xf32> to vector<64xf32>
    %189 = vector.shape_cast %188 : vector<64xf32> to vector<64x1xf32>
    %190 = vector.broadcast %189 : vector<64x1xf32> to vector<64x64xf32>
    %191 = arith.subf %187, %190 : vector<64x64xf32>
    %192 = math.exp %191 : vector<64x64xf32>
    %193 = arith.truncf %192 : vector<64x64xf32> to vector<64x64xbf16>
    %cst_57 = arith.constant dense<0.000000e+00> : vector<64x8xf32>
    %194 = tpu.matmul %193, %186, %cst_57 {dimension_numbers = #tpu.dot_dimension_numbers<[1], [0], [0], [1], [0, 0, 1, 1], [], []>} : vector<64x64xbf16>, vector<64x8xbf16>, vector<64x8xf32> -> vector<64x8xf32>
    %cst_58 = arith.constant dense<0.000000e+00> : vector<64xf32>
    %195 = vector.multi_reduction <add>, %192, %cst_58 [1] : vector<64x64xf32> to vector<64xf32>
    %196 = vector.shape_cast %195 : vector<64xf32> to vector<64x1xf32>
    %197 = tpu.reciprocal %196 {approx = true} : vector<64x1xf32> -> vector<64x1xf32>
    %198 = vector.broadcast %197 : vector<64x1xf32> to vector<64x8xf32>
    %199 = arith.mulf %194, %198 : vector<64x8xf32>
    %200 = vector.extract_strided_slice %103 {offsets = [64, 8], sizes = [64, 8], strides = [1, 1]} : vector<128x96xf32> to vector<64x8xf32>
    %201 = arith.truncf %200 : vector<64x8xf32> to vector<64x8xbf16>
    %202 = vector.extract_strided_slice %103 {offsets = [64, 40], sizes = [64, 8], strides = [1, 1]} : vector<128x96xf32> to vector<64x8xf32>
    %203 = arith.truncf %202 : vector<64x8xf32> to vector<64x8xbf16>
    %204 = vector.extract_strided_slice %103 {offsets = [64, 72], sizes = [64, 8], strides = [1, 1]} : vector<128x96xf32> to vector<64x8xf32>
    %205 = arith.truncf %204 : vector<64x8xf32> to vector<64x8xbf16>
    %cst_59 = arith.constant dense<0.000000e+00> : vector<64x64xf32>
    %206 = tpu.matmul %201, %203, %cst_59 {dimension_numbers = #tpu.dot_dimension_numbers<[1], [1], [0], [0], [0, 0, 1, 0], [], []>} : vector<64x8xbf16>, vector<64x8xbf16>, vector<64x64xf32> -> vector<64x64xf32>
    %cst_60 = arith.constant dense<0xFF800000> : vector<64xf32>
    %207 = vector.multi_reduction <maximumf>, %206, %cst_60 [1] : vector<64x64xf32> to vector<64xf32>
    %208 = vector.shape_cast %207 : vector<64xf32> to vector<64x1xf32>
    %209 = vector.broadcast %208 : vector<64x1xf32> to vector<64x64xf32>
    %210 = arith.subf %206, %209 : vector<64x64xf32>
    %211 = math.exp %210 : vector<64x64xf32>
    %212 = arith.truncf %211 : vector<64x64xf32> to vector<64x64xbf16>
    %cst_61 = arith.constant dense<0.000000e+00> : vector<64x8xf32>
    %213 = tpu.matmul %212, %205, %cst_61 {dimension_numbers = #tpu.dot_dimension_numbers<[1], [0], [0], [1], [0, 0, 1, 1], [], []>} : vector<64x64xbf16>, vector<64x8xbf16>, vector<64x8xf32> -> vector<64x8xf32>
    %cst_62 = arith.constant dense<0.000000e+00> : vector<64xf32>
    %214 = vector.multi_reduction <add>, %211, %cst_62 [1] : vector<64x64xf32> to vector<64xf32>
    %215 = vector.shape_cast %214 : vector<64xf32> to vector<64x1xf32>
    %216 = tpu.reciprocal %215 {approx = true} : vector<64x1xf32> -> vector<64x1xf32>
    %217 = vector.broadcast %216 : vector<64x1xf32> to vector<64x8xf32>
    %218 = arith.mulf %213, %217 : vector<64x8xf32>
    %219 = vector.extract_strided_slice %103 {offsets = [64, 16], sizes = [64, 8], strides = [1, 1]} : vector<128x96xf32> to vector<64x8xf32>
    %220 = arith.truncf %219 : vector<64x8xf32> to vector<64x8xbf16>
    %221 = vector.extract_strided_slice %103 {offsets = [64, 48], sizes = [64, 8], strides = [1, 1]} : vector<128x96xf32> to vector<64x8xf32>
    %222 = arith.truncf %221 : vector<64x8xf32> to vector<64x8xbf16>
    %223 = vector.extract_strided_slice %103 {offsets = [64, 80], sizes = [64, 8], strides = [1, 1]} : vector<128x96xf32> to vector<64x8xf32>
    %224 = arith.truncf %223 : vector<64x8xf32> to vector<64x8xbf16>
    %cst_63 = arith.constant dense<0.000000e+00> : vector<64x64xf32>
    %225 = tpu.matmul %220, %222, %cst_63 {dimension_numbers = #tpu.dot_dimension_numbers<[1], [1], [0], [0], [0, 0, 1, 0], [], []>} : vector<64x8xbf16>, vector<64x8xbf16>, vector<64x64xf32> -> vector<64x64xf32>
    %cst_64 = arith.constant dense<0xFF800000> : vector<64xf32>
    %226 = vector.multi_reduction <maximumf>, %225, %cst_64 [1] : vector<64x64xf32> to vector<64xf32>
    %227 = vector.shape_cast %226 : vector<64xf32> to vector<64x1xf32>
    %228 = vector.broadcast %227 : vector<64x1xf32> to vector<64x64xf32>
    %229 = arith.subf %225, %228 : vector<64x64xf32>
    %230 = math.exp %229 : vector<64x64xf32>
    %231 = arith.truncf %230 : vector<64x64xf32> to vector<64x64xbf16>
    %cst_65 = arith.constant dense<0.000000e+00> : vector<64x8xf32>
    %232 = tpu.matmul %231, %224, %cst_65 {dimension_numbers = #tpu.dot_dimension_numbers<[1], [0], [0], [1], [0, 0, 1, 1], [], []>} : vector<64x64xbf16>, vector<64x8xbf16>, vector<64x8xf32> -> vector<64x8xf32>
    %cst_66 = arith.constant dense<0.000000e+00> : vector<64xf32>
    %233 = vector.multi_reduction <add>, %230, %cst_66 [1] : vector<64x64xf32> to vector<64xf32>
    %234 = vector.shape_cast %233 : vector<64xf32> to vector<64x1xf32>
    %235 = tpu.reciprocal %234 {approx = true} : vector<64x1xf32> -> vector<64x1xf32>
    %236 = vector.broadcast %235 : vector<64x1xf32> to vector<64x8xf32>
    %237 = arith.mulf %232, %236 : vector<64x8xf32>
    %238 = vector.extract_strided_slice %103 {offsets = [64, 24], sizes = [64, 8], strides = [1, 1]} : vector<128x96xf32> to vector<64x8xf32>
    %239 = arith.truncf %238 : vector<64x8xf32> to vector<64x8xbf16>
    %240 = vector.extract_strided_slice %103 {offsets = [64, 56], sizes = [64, 8], strides = [1, 1]} : vector<128x96xf32> to vector<64x8xf32>
    %241 = arith.truncf %240 : vector<64x8xf32> to vector<64x8xbf16>
    %242 = vector.extract_strided_slice %103 {offsets = [64, 88], sizes = [64, 8], strides = [1, 1]} : vector<128x96xf32> to vector<64x8xf32>
    %243 = arith.truncf %242 : vector<64x8xf32> to vector<64x8xbf16>
    %cst_67 = arith.constant dense<0.000000e+00> : vector<64x64xf32>
    %244 = tpu.matmul %239, %241, %cst_67 {dimension_numbers = #tpu.dot_dimension_numbers<[1], [1], [0], [0], [0, 0, 1, 0], [], []>} : vector<64x8xbf16>, vector<64x8xbf16>, vector<64x64xf32> -> vector<64x64xf32>
    %cst_68 = arith.constant dense<0xFF800000> : vector<64xf32>
    %245 = vector.multi_reduction <maximumf>, %244, %cst_68 [1] : vector<64x64xf32> to vector<64xf32>
    %246 = vector.shape_cast %245 : vector<64xf32> to vector<64x1xf32>
    %247 = vector.broadcast %246 : vector<64x1xf32> to vector<64x64xf32>
    %248 = arith.subf %244, %247 : vector<64x64xf32>
    %249 = math.exp %248 : vector<64x64xf32>
    %250 = arith.truncf %249 : vector<64x64xf32> to vector<64x64xbf16>
    %cst_69 = arith.constant dense<0.000000e+00> : vector<64x8xf32>
    %251 = tpu.matmul %250, %243, %cst_69 {dimension_numbers = #tpu.dot_dimension_numbers<[1], [0], [0], [1], [0, 0, 1, 1], [], []>} : vector<64x64xbf16>, vector<64x8xbf16>, vector<64x8xf32> -> vector<64x8xf32>
    %cst_70 = arith.constant dense<0.000000e+00> : vector<64xf32>
    %252 = vector.multi_reduction <add>, %249, %cst_70 [1] : vector<64x64xf32> to vector<64xf32>
    %253 = vector.shape_cast %252 : vector<64xf32> to vector<64x1xf32>
    %254 = tpu.reciprocal %253 {approx = true} : vector<64x1xf32> -> vector<64x1xf32>
    %255 = vector.broadcast %254 : vector<64x1xf32> to vector<64x8xf32>
    %256 = arith.mulf %251, %255 : vector<64x8xf32>
    %257 = tpu.concatenate %199, %218, %237, %256 in 1 : vector<64x8xf32>, vector<64x8xf32>, vector<64x8xf32>, vector<64x8xf32> -> vector<64x32xf32>
    %258 = tpu.concatenate %180, %257 in 0 : vector<64x32xf32>, vector<64x32xf32> -> vector<128x32xf32>
    %c0_71 = arith.constant 0 : index
    %c0_72 = arith.constant 0 : index
    %c0_73 = arith.constant 0 : index
    %259 = vector.load %arg10[%c0_71, %c0_72, %c0_73] : memref<2x32x32xbf16, #tpu.memory_space<vmem>>, vector<1x32x32xbf16>
    %260 = vector.shape_cast %259 : vector<1x32x32xbf16> to vector<32x32xbf16>
    %c0_74 = arith.constant 0 : index
    %c1024 = arith.constant 1024 : index
    %261 = vector.load %arg15[%c0_74, %c1024] : memref<1x2176xf32, #tpu.memory_space<vmem>>, vector<1x32xf32>
    %262 = arith.truncf %258 : vector<128x32xf32> to vector<128x32xbf16>
    %cst_75 = arith.constant dense<0.000000e+00> : vector<128x32xf32>
    %263 = tpu.matmul %262, %260, %cst_75 {dimension_numbers = #tpu.dot_dimension_numbers<[1], [0], [0], [1], [0, 0, 1, 1], [], []>} : vector<128x32xbf16>, vector<32x32xbf16>, vector<128x32xf32> -> vector<128x32xf32>
    %264 = vector.broadcast %261 : vector<1x32xf32> to vector<128x32xf32>
    %265 = arith.addf %263, %264 : vector<128x32xf32>
    %266 = arith.mulf %59, %265 : vector<128x32xf32>
    %267 = arith.addf %37, %266 : vector<128x32xf32>
    %cst_76 = arith.constant dense<0.000000e+00> : vector<128xf32>
    %268 = vector.multi_reduction <add>, %267, %cst_76 [1] : vector<128x32xf32> to vector<128xf32>
    %269 = vector.shape_cast %268 : vector<128xf32> to vector<128x1xf32>
    %cst_77 = arith.constant 3.200000e+01 : f32
    %270 = vector.broadcast %cst_77 : f32 to vector<128x1xf32>
    %271 = arith.divf %269, %270 : vector<128x1xf32>
    %272 = vector.broadcast %271 : vector<128x1xf32> to vector<128x32xf32>
    %273 = arith.subf %267, %272 : vector<128x32xf32>
    %274 = arith.mulf %273, %273 : vector<128x32xf32>
    %cst_78 = arith.constant dense<0.000000e+00> : vector<128xf32>
    %275 = vector.multi_reduction <add>, %274, %cst_78 [1] : vector<128x32xf32> to vector<128xf32>
    %276 = vector.shape_cast %275 : vector<128xf32> to vector<128x1xf32>
    %cst_79 = arith.constant 3.200000e+01 : f32
    %277 = vector.broadcast %cst_79 : f32 to vector<128x1xf32>
    %278 = arith.divf %276, %277 : vector<128x1xf32>
    %279 = vector.broadcast %271 : vector<128x1xf32> to vector<128x32xf32>
    %280 = arith.subf %267, %279 : vector<128x32xf32>
    %cst_80 = arith.constant 9.99999997E-7 : f32
    %281 = vector.broadcast %cst_80 : f32 to vector<128x1xf32>
    %282 = arith.addf %278, %281 : vector<128x1xf32>
    %283 = math.rsqrt %282 : vector<128x1xf32>
    %284 = vector.broadcast %283 : vector<128x1xf32> to vector<128x32xf32>
    %285 = arith.mulf %280, %284 : vector<128x32xf32>
    %cst_81 = arith.constant 1.000000e+00 : f32
    %286 = vector.broadcast %cst_81 : f32 to vector<128x32xf32>
    %287 = arith.addf %286, %69 : vector<128x32xf32>
    %288 = arith.mulf %285, %287 : vector<128x32xf32>
    %289 = arith.addf %288, %64 : vector<128x32xf32>
    %c0_82 = arith.constant 0 : index
    %c0_83 = arith.constant 0 : index
    %c0_84 = arith.constant 0 : index
    %290 = vector.load %arg11[%c0_82, %c0_83, %c0_84] : memref<2x32x128xbf16, #tpu.memory_space<vmem>>, vector<1x32x128xbf16>
    %291 = vector.shape_cast %290 : vector<1x32x128xbf16> to vector<32x128xbf16>
    %c0_85 = arith.constant 0 : index
    %c1152 = arith.constant 1152 : index
    %292 = vector.load %arg15[%c0_85, %c1152] : memref<1x2176xf32, #tpu.memory_space<vmem>>, vector<1x128xf32>
    %293 = arith.truncf %289 : vector<128x32xf32> to vector<128x32xbf16>
    %cst_86 = arith.constant dense<0.000000e+00> : vector<128x128xf32>
    %294 = tpu.matmul %293, %291, %cst_86 {dimension_numbers = #tpu.dot_dimension_numbers<[1], [0], [0], [1], [0, 0, 1, 1], [], []>} : vector<128x32xbf16>, vector<32x128xbf16>, vector<128x128xf32> -> vector<128x128xf32>
    %295 = vector.broadcast %292 : vector<1x128xf32> to vector<128x128xf32>
    %296 = arith.addf %294, %295 : vector<128x128xf32>
    %cst_87 = arith.constant 5.000000e-01 : f32
    %297 = vector.broadcast %cst_87 : f32 to vector<128x128xf32>
    %298 = arith.mulf %297, %296 : vector<128x128xf32>
    %cst_88 = arith.constant 4.471500e-02 : f32
    %299 = vector.broadcast %cst_88 : f32 to vector<128x128xf32>
    %300 = arith.mulf %299, %296 : vector<128x128xf32>
    %301 = arith.mulf %300, %296 : vector<128x128xf32>
    %302 = arith.mulf %301, %296 : vector<128x128xf32>
    %303 = arith.addf %296, %302 : vector<128x128xf32>
    %cst_89 = arith.constant 0.797884583 : f32
    %304 = vector.broadcast %cst_89 : f32 to vector<128x128xf32>
    %305 = arith.mulf %304, %303 : vector<128x128xf32>
    %306 = math.tanh %305 : vector<128x128xf32>
    %cst_90 = arith.constant 1.000000e+00 : f32
    %307 = vector.broadcast %cst_90 : f32 to vector<128x128xf32>
    %308 = arith.addf %307, %306 : vector<128x128xf32>
    %309 = arith.mulf %298, %308 : vector<128x128xf32>
    %c0_91 = arith.constant 0 : index
    %c0_92 = arith.constant 0 : index
    %c0_93 = arith.constant 0 : index
    %310 = vector.load %arg12[%c0_91, %c0_92, %c0_93] : memref<2x128x32xbf16, #tpu.memory_space<vmem>>, vector<1x128x32xbf16>
    %311 = vector.shape_cast %310 : vector<1x128x32xbf16> to vector<128x32xbf16>
    %c0_94 = arith.constant 0 : index
    %c1280 = arith.constant 1280 : index
    %312 = vector.load %arg15[%c0_94, %c1280] : memref<1x2176xf32, #tpu.memory_space<vmem>>, vector<1x32xf32>
    %313 = arith.truncf %309 : vector<128x128xf32> to vector<128x128xbf16>
    %cst_95 = arith.constant dense<0.000000e+00> : vector<128x32xf32>
    %314 = tpu.matmul %313, %311, %cst_95 {dimension_numbers = #tpu.dot_dimension_numbers<[1], [0], [0], [1], [0, 0, 1, 1], [], []>} : vector<128x128xbf16>, vector<128x32xbf16>, vector<128x32xf32> -> vector<128x32xf32>
    %315 = vector.broadcast %312 : vector<1x32xf32> to vector<128x32xf32>
    %316 = arith.addf %314, %315 : vector<128x32xf32>
    %317 = arith.mulf %74, %316 : vector<128x32xf32>
    %318 = arith.addf %267, %317 : vector<128x32xf32>
    %c1 = arith.constant 1 : index
    %c0_96 = arith.constant 0 : index
    %c0_97 = arith.constant 0 : index
    %319 = vector.load %arg8[%c1, %c0_96, %c0_97] : memref<2x32x192xbf16, #tpu.memory_space<vmem>>, vector<1x32x192xbf16>
    %320 = vector.shape_cast %319 : vector<1x32x192xbf16> to vector<32x192xbf16>
    %c0_98 = arith.constant 0 : index
    %c1408 = arith.constant 1408 : index
    %321 = vector.load %arg15[%c0_98, %c1408] : memref<1x2176xf32, #tpu.memory_space<vmem>>, vector<1x192xf32>
    %322 = arith.truncf %28 : vector<2x32xf32> to vector<2x32xbf16>
    %cst_99 = arith.constant dense<0.000000e+00> : vector<2x192xf32>
    %323 = tpu.matmul %322, %320, %cst_99 {dimension_numbers = #tpu.dot_dimension_numbers<[1], [0], [0], [1], [0, 0, 1, 1], [], []>} : vector<2x32xbf16>, vector<32x192xbf16>, vector<2x192xf32> -> vector<2x192xf32>
    %324 = vector.broadcast %321 : vector<1x192xf32> to vector<2x192xf32>
    %325 = arith.addf %323, %324 : vector<2x192xf32>
    %326 = vector.extract_strided_slice %325 {offsets = [0, 0], sizes = [2, 32], strides = [1, 1]} : vector<2x192xf32> to vector<2x32xf32>
    %327 = vector.shape_cast %326 : vector<2x32xf32> to vector<2x1x32xf32>
    %328 = vector.shape_cast %327 : vector<2x1x32xf32> to vector<2x1x32xf32>
    %329 = vector.broadcast %328 : vector<2x1x32xf32> to vector<2x64x32xf32>
    %330 = vector.shape_cast %329 : vector<2x64x32xf32> to vector<128x32xf32>
    %331 = vector.extract_strided_slice %325 {offsets = [0, 32], sizes = [2, 32], strides = [1, 1]} : vector<2x192xf32> to vector<2x32xf32>
    %332 = vector.shape_cast %331 : vector<2x32xf32> to vector<2x1x32xf32>
    %333 = vector.shape_cast %332 : vector<2x1x32xf32> to vector<2x1x32xf32>
    %334 = vector.broadcast %333 : vector<2x1x32xf32> to vector<2x64x32xf32>
    %335 = vector.shape_cast %334 : vector<2x64x32xf32> to vector<128x32xf32>
    %336 = vector.extract_strided_slice %325 {offsets = [0, 64], sizes = [2, 32], strides = [1, 1]} : vector<2x192xf32> to vector<2x32xf32>
    %337 = vector.shape_cast %336 : vector<2x32xf32> to vector<2x1x32xf32>
    %338 = vector.shape_cast %337 : vector<2x1x32xf32> to vector<2x1x32xf32>
    %339 = vector.broadcast %338 : vector<2x1x32xf32> to vector<2x64x32xf32>
    %340 = vector.shape_cast %339 : vector<2x64x32xf32> to vector<128x32xf32>
    %341 = vector.extract_strided_slice %325 {offsets = [0, 96], sizes = [2, 32], strides = [1, 1]} : vector<2x192xf32> to vector<2x32xf32>
    %342 = vector.shape_cast %341 : vector<2x32xf32> to vector<2x1x32xf32>
    %343 = vector.shape_cast %342 : vector<2x1x32xf32> to vector<2x1x32xf32>
    %344 = vector.broadcast %343 : vector<2x1x32xf32> to vector<2x64x32xf32>
    %345 = vector.shape_cast %344 : vector<2x64x32xf32> to vector<128x32xf32>
    %346 = vector.extract_strided_slice %325 {offsets = [0, 128], sizes = [2, 32], strides = [1, 1]} : vector<2x192xf32> to vector<2x32xf32>
    %347 = vector.shape_cast %346 : vector<2x32xf32> to vector<2x1x32xf32>
    %348 = vector.shape_cast %347 : vector<2x1x32xf32> to vector<2x1x32xf32>
    %349 = vector.broadcast %348 : vector<2x1x32xf32> to vector<2x64x32xf32>
    %350 = vector.shape_cast %349 : vector<2x64x32xf32> to vector<128x32xf32>
    %351 = vector.extract_strided_slice %325 {offsets = [0, 160], sizes = [2, 32], strides = [1, 1]} : vector<2x192xf32> to vector<2x32xf32>
    %352 = vector.shape_cast %351 : vector<2x32xf32> to vector<2x1x32xf32>
    %353 = vector.shape_cast %352 : vector<2x1x32xf32> to vector<2x1x32xf32>
    %354 = vector.broadcast %353 : vector<2x1x32xf32> to vector<2x64x32xf32>
    %355 = vector.shape_cast %354 : vector<2x64x32xf32> to vector<128x32xf32>
    %cst_100 = arith.constant dense<0.000000e+00> : vector<128xf32>
    %356 = vector.multi_reduction <add>, %318, %cst_100 [1] : vector<128x32xf32> to vector<128xf32>
    %357 = vector.shape_cast %356 : vector<128xf32> to vector<128x1xf32>
    %cst_101 = arith.constant 3.200000e+01 : f32
    %358 = vector.broadcast %cst_101 : f32 to vector<128x1xf32>
    %359 = arith.divf %357, %358 : vector<128x1xf32>
    %360 = vector.broadcast %359 : vector<128x1xf32> to vector<128x32xf32>
    %361 = arith.subf %318, %360 : vector<128x32xf32>
    %362 = arith.mulf %361, %361 : vector<128x32xf32>
    %cst_102 = arith.constant dense<0.000000e+00> : vector<128xf32>
    %363 = vector.multi_reduction <add>, %362, %cst_102 [1] : vector<128x32xf32> to vector<128xf32>
    %364 = vector.shape_cast %363 : vector<128xf32> to vector<128x1xf32>
    %cst_103 = arith.constant 3.200000e+01 : f32
    %365 = vector.broadcast %cst_103 : f32 to vector<128x1xf32>
    %366 = arith.divf %364, %365 : vector<128x1xf32>
    %367 = vector.broadcast %359 : vector<128x1xf32> to vector<128x32xf32>
    %368 = arith.subf %318, %367 : vector<128x32xf32>
    %cst_104 = arith.constant 9.99999997E-7 : f32
    %369 = vector.broadcast %cst_104 : f32 to vector<128x1xf32>
    %370 = arith.addf %366, %369 : vector<128x1xf32>
    %371 = math.rsqrt %370 : vector<128x1xf32>
    %372 = vector.broadcast %371 : vector<128x1xf32> to vector<128x32xf32>
    %373 = arith.mulf %368, %372 : vector<128x32xf32>
    %cst_105 = arith.constant 1.000000e+00 : f32
    %374 = vector.broadcast %cst_105 : f32 to vector<128x32xf32>
    %375 = arith.addf %374, %335 : vector<128x32xf32>
    %376 = arith.mulf %373, %375 : vector<128x32xf32>
    %377 = arith.addf %376, %330 : vector<128x32xf32>
    %c1_106 = arith.constant 1 : index
    %c0_107 = arith.constant 0 : index
    %c0_108 = arith.constant 0 : index
    %378 = vector.load %arg9[%c1_106, %c0_107, %c0_108] : memref<2x32x96xbf16, #tpu.memory_space<vmem>>, vector<1x32x96xbf16>
    %379 = vector.shape_cast %378 : vector<1x32x96xbf16> to vector<32x96xbf16>
    %c0_109 = arith.constant 0 : index
    %c1664 = arith.constant 1664 : index
    %380 = vector.load %arg15[%c0_109, %c1664] : memref<1x2176xf32, #tpu.memory_space<vmem>>, vector<1x96xf32>
    %381 = arith.truncf %377 : vector<128x32xf32> to vector<128x32xbf16>
    %cst_110 = arith.constant dense<0.000000e+00> : vector<128x96xf32>
    %382 = tpu.matmul %381, %379, %cst_110 {dimension_numbers = #tpu.dot_dimension_numbers<[1], [0], [0], [1], [0, 0, 1, 1], [], []>} : vector<128x32xbf16>, vector<32x96xbf16>, vector<128x96xf32> -> vector<128x96xf32>
    %383 = vector.broadcast %380 : vector<1x96xf32> to vector<128x96xf32>
    %384 = arith.addf %382, %383 : vector<128x96xf32>
    %385 = vector.extract_strided_slice %384 {offsets = [0, 0], sizes = [64, 8], strides = [1, 1]} : vector<128x96xf32> to vector<64x8xf32>
    %386 = arith.truncf %385 : vector<64x8xf32> to vector<64x8xbf16>
    %387 = vector.extract_strided_slice %384 {offsets = [0, 32], sizes = [64, 8], strides = [1, 1]} : vector<128x96xf32> to vector<64x8xf32>
    %388 = arith.truncf %387 : vector<64x8xf32> to vector<64x8xbf16>
    %389 = vector.extract_strided_slice %384 {offsets = [0, 64], sizes = [64, 8], strides = [1, 1]} : vector<128x96xf32> to vector<64x8xf32>
    %390 = arith.truncf %389 : vector<64x8xf32> to vector<64x8xbf16>
    %cst_111 = arith.constant dense<0.000000e+00> : vector<64x64xf32>
    %391 = tpu.matmul %386, %388, %cst_111 {dimension_numbers = #tpu.dot_dimension_numbers<[1], [1], [0], [0], [0, 0, 1, 0], [], []>} : vector<64x8xbf16>, vector<64x8xbf16>, vector<64x64xf32> -> vector<64x64xf32>
    %cst_112 = arith.constant dense<0xFF800000> : vector<64xf32>
    %392 = vector.multi_reduction <maximumf>, %391, %cst_112 [1] : vector<64x64xf32> to vector<64xf32>
    %393 = vector.shape_cast %392 : vector<64xf32> to vector<64x1xf32>
    %394 = vector.broadcast %393 : vector<64x1xf32> to vector<64x64xf32>
    %395 = arith.subf %391, %394 : vector<64x64xf32>
    %396 = math.exp %395 : vector<64x64xf32>
    %397 = arith.truncf %396 : vector<64x64xf32> to vector<64x64xbf16>
    %cst_113 = arith.constant dense<0.000000e+00> : vector<64x8xf32>
    %398 = tpu.matmul %397, %390, %cst_113 {dimension_numbers = #tpu.dot_dimension_numbers<[1], [0], [0], [1], [0, 0, 1, 1], [], []>} : vector<64x64xbf16>, vector<64x8xbf16>, vector<64x8xf32> -> vector<64x8xf32>
    %cst_114 = arith.constant dense<0.000000e+00> : vector<64xf32>
    %399 = vector.multi_reduction <add>, %396, %cst_114 [1] : vector<64x64xf32> to vector<64xf32>
    %400 = vector.shape_cast %399 : vector<64xf32> to vector<64x1xf32>
    %401 = tpu.reciprocal %400 {approx = true} : vector<64x1xf32> -> vector<64x1xf32>
    %402 = vector.broadcast %401 : vector<64x1xf32> to vector<64x8xf32>
    %403 = arith.mulf %398, %402 : vector<64x8xf32>
    %404 = vector.extract_strided_slice %384 {offsets = [0, 8], sizes = [64, 8], strides = [1, 1]} : vector<128x96xf32> to vector<64x8xf32>
    %405 = arith.truncf %404 : vector<64x8xf32> to vector<64x8xbf16>
    %406 = vector.extract_strided_slice %384 {offsets = [0, 40], sizes = [64, 8], strides = [1, 1]} : vector<128x96xf32> to vector<64x8xf32>
    %407 = arith.truncf %406 : vector<64x8xf32> to vector<64x8xbf16>
    %408 = vector.extract_strided_slice %384 {offsets = [0, 72], sizes = [64, 8], strides = [1, 1]} : vector<128x96xf32> to vector<64x8xf32>
    %409 = arith.truncf %408 : vector<64x8xf32> to vector<64x8xbf16>
    %cst_115 = arith.constant dense<0.000000e+00> : vector<64x64xf32>
    %410 = tpu.matmul %405, %407, %cst_115 {dimension_numbers = #tpu.dot_dimension_numbers<[1], [1], [0], [0], [0, 0, 1, 0], [], []>} : vector<64x8xbf16>, vector<64x8xbf16>, vector<64x64xf32> -> vector<64x64xf32>
    %cst_116 = arith.constant dense<0xFF800000> : vector<64xf32>
    %411 = vector.multi_reduction <maximumf>, %410, %cst_116 [1] : vector<64x64xf32> to vector<64xf32>
    %412 = vector.shape_cast %411 : vector<64xf32> to vector<64x1xf32>
    %413 = vector.broadcast %412 : vector<64x1xf32> to vector<64x64xf32>
    %414 = arith.subf %410, %413 : vector<64x64xf32>
    %415 = math.exp %414 : vector<64x64xf32>
    %416 = arith.truncf %415 : vector<64x64xf32> to vector<64x64xbf16>
    %cst_117 = arith.constant dense<0.000000e+00> : vector<64x8xf32>
    %417 = tpu.matmul %416, %409, %cst_117 {dimension_numbers = #tpu.dot_dimension_numbers<[1], [0], [0], [1], [0, 0, 1, 1], [], []>} : vector<64x64xbf16>, vector<64x8xbf16>, vector<64x8xf32> -> vector<64x8xf32>
    %cst_118 = arith.constant dense<0.000000e+00> : vector<64xf32>
    %418 = vector.multi_reduction <add>, %415, %cst_118 [1] : vector<64x64xf32> to vector<64xf32>
    %419 = vector.shape_cast %418 : vector<64xf32> to vector<64x1xf32>
    %420 = tpu.reciprocal %419 {approx = true} : vector<64x1xf32> -> vector<64x1xf32>
    %421 = vector.broadcast %420 : vector<64x1xf32> to vector<64x8xf32>
    %422 = arith.mulf %417, %421 : vector<64x8xf32>
    %423 = vector.extract_strided_slice %384 {offsets = [0, 16], sizes = [64, 8], strides = [1, 1]} : vector<128x96xf32> to vector<64x8xf32>
    %424 = arith.truncf %423 : vector<64x8xf32> to vector<64x8xbf16>
    %425 = vector.extract_strided_slice %384 {offsets = [0, 48], sizes = [64, 8], strides = [1, 1]} : vector<128x96xf32> to vector<64x8xf32>
    %426 = arith.truncf %425 : vector<64x8xf32> to vector<64x8xbf16>
    %427 = vector.extract_strided_slice %384 {offsets = [0, 80], sizes = [64, 8], strides = [1, 1]} : vector<128x96xf32> to vector<64x8xf32>
    %428 = arith.truncf %427 : vector<64x8xf32> to vector<64x8xbf16>
    %cst_119 = arith.constant dense<0.000000e+00> : vector<64x64xf32>
    %429 = tpu.matmul %424, %426, %cst_119 {dimension_numbers = #tpu.dot_dimension_numbers<[1], [1], [0], [0], [0, 0, 1, 0], [], []>} : vector<64x8xbf16>, vector<64x8xbf16>, vector<64x64xf32> -> vector<64x64xf32>
    %cst_120 = arith.constant dense<0xFF800000> : vector<64xf32>
    %430 = vector.multi_reduction <maximumf>, %429, %cst_120 [1] : vector<64x64xf32> to vector<64xf32>
    %431 = vector.shape_cast %430 : vector<64xf32> to vector<64x1xf32>
    %432 = vector.broadcast %431 : vector<64x1xf32> to vector<64x64xf32>
    %433 = arith.subf %429, %432 : vector<64x64xf32>
    %434 = math.exp %433 : vector<64x64xf32>
    %435 = arith.truncf %434 : vector<64x64xf32> to vector<64x64xbf16>
    %cst_121 = arith.constant dense<0.000000e+00> : vector<64x8xf32>
    %436 = tpu.matmul %435, %428, %cst_121 {dimension_numbers = #tpu.dot_dimension_numbers<[1], [0], [0], [1], [0, 0, 1, 1], [], []>} : vector<64x64xbf16>, vector<64x8xbf16>, vector<64x8xf32> -> vector<64x8xf32>
    %cst_122 = arith.constant dense<0.000000e+00> : vector<64xf32>
    %437 = vector.multi_reduction <add>, %434, %cst_122 [1] : vector<64x64xf32> to vector<64xf32>
    %438 = vector.shape_cast %437 : vector<64xf32> to vector<64x1xf32>
    %439 = tpu.reciprocal %438 {approx = true} : vector<64x1xf32> -> vector<64x1xf32>
    %440 = vector.broadcast %439 : vector<64x1xf32> to vector<64x8xf32>
    %441 = arith.mulf %436, %440 : vector<64x8xf32>
    %442 = vector.extract_strided_slice %384 {offsets = [0, 24], sizes = [64, 8], strides = [1, 1]} : vector<128x96xf32> to vector<64x8xf32>
    %443 = arith.truncf %442 : vector<64x8xf32> to vector<64x8xbf16>
    %444 = vector.extract_strided_slice %384 {offsets = [0, 56], sizes = [64, 8], strides = [1, 1]} : vector<128x96xf32> to vector<64x8xf32>
    %445 = arith.truncf %444 : vector<64x8xf32> to vector<64x8xbf16>
    %446 = vector.extract_strided_slice %384 {offsets = [0, 88], sizes = [64, 8], strides = [1, 1]} : vector<128x96xf32> to vector<64x8xf32>
    %447 = arith.truncf %446 : vector<64x8xf32> to vector<64x8xbf16>
    %cst_123 = arith.constant dense<0.000000e+00> : vector<64x64xf32>
    %448 = tpu.matmul %443, %445, %cst_123 {dimension_numbers = #tpu.dot_dimension_numbers<[1], [1], [0], [0], [0, 0, 1, 0], [], []>} : vector<64x8xbf16>, vector<64x8xbf16>, vector<64x64xf32> -> vector<64x64xf32>
    %cst_124 = arith.constant dense<0xFF800000> : vector<64xf32>
    %449 = vector.multi_reduction <maximumf>, %448, %cst_124 [1] : vector<64x64xf32> to vector<64xf32>
    %450 = vector.shape_cast %449 : vector<64xf32> to vector<64x1xf32>
    %451 = vector.broadcast %450 : vector<64x1xf32> to vector<64x64xf32>
    %452 = arith.subf %448, %451 : vector<64x64xf32>
    %453 = math.exp %452 : vector<64x64xf32>
    %454 = arith.truncf %453 : vector<64x64xf32> to vector<64x64xbf16>
    %cst_125 = arith.constant dense<0.000000e+00> : vector<64x8xf32>
    %455 = tpu.matmul %454, %447, %cst_125 {dimension_numbers = #tpu.dot_dimension_numbers<[1], [0], [0], [1], [0, 0, 1, 1], [], []>} : vector<64x64xbf16>, vector<64x8xbf16>, vector<64x8xf32> -> vector<64x8xf32>
    %cst_126 = arith.constant dense<0.000000e+00> : vector<64xf32>
    %456 = vector.multi_reduction <add>, %453, %cst_126 [1] : vector<64x64xf32> to vector<64xf32>
    %457 = vector.shape_cast %456 : vector<64xf32> to vector<64x1xf32>
    %458 = tpu.reciprocal %457 {approx = true} : vector<64x1xf32> -> vector<64x1xf32>
    %459 = vector.broadcast %458 : vector<64x1xf32> to vector<64x8xf32>
    %460 = arith.mulf %455, %459 : vector<64x8xf32>
    %461 = tpu.concatenate %403, %422, %441, %460 in 1 : vector<64x8xf32>, vector<64x8xf32>, vector<64x8xf32>, vector<64x8xf32> -> vector<64x32xf32>
    %462 = vector.extract_strided_slice %384 {offsets = [64, 0], sizes = [64, 8], strides = [1, 1]} : vector<128x96xf32> to vector<64x8xf32>
    %463 = arith.truncf %462 : vector<64x8xf32> to vector<64x8xbf16>
    %464 = vector.extract_strided_slice %384 {offsets = [64, 32], sizes = [64, 8], strides = [1, 1]} : vector<128x96xf32> to vector<64x8xf32>
    %465 = arith.truncf %464 : vector<64x8xf32> to vector<64x8xbf16>
    %466 = vector.extract_strided_slice %384 {offsets = [64, 64], sizes = [64, 8], strides = [1, 1]} : vector<128x96xf32> to vector<64x8xf32>
    %467 = arith.truncf %466 : vector<64x8xf32> to vector<64x8xbf16>
    %cst_127 = arith.constant dense<0.000000e+00> : vector<64x64xf32>
    %468 = tpu.matmul %463, %465, %cst_127 {dimension_numbers = #tpu.dot_dimension_numbers<[1], [1], [0], [0], [0, 0, 1, 0], [], []>} : vector<64x8xbf16>, vector<64x8xbf16>, vector<64x64xf32> -> vector<64x64xf32>
    %cst_128 = arith.constant dense<0xFF800000> : vector<64xf32>
    %469 = vector.multi_reduction <maximumf>, %468, %cst_128 [1] : vector<64x64xf32> to vector<64xf32>
    %470 = vector.shape_cast %469 : vector<64xf32> to vector<64x1xf32>
    %471 = vector.broadcast %470 : vector<64x1xf32> to vector<64x64xf32>
    %472 = arith.subf %468, %471 : vector<64x64xf32>
    %473 = math.exp %472 : vector<64x64xf32>
    %474 = arith.truncf %473 : vector<64x64xf32> to vector<64x64xbf16>
    %cst_129 = arith.constant dense<0.000000e+00> : vector<64x8xf32>
    %475 = tpu.matmul %474, %467, %cst_129 {dimension_numbers = #tpu.dot_dimension_numbers<[1], [0], [0], [1], [0, 0, 1, 1], [], []>} : vector<64x64xbf16>, vector<64x8xbf16>, vector<64x8xf32> -> vector<64x8xf32>
    %cst_130 = arith.constant dense<0.000000e+00> : vector<64xf32>
    %476 = vector.multi_reduction <add>, %473, %cst_130 [1] : vector<64x64xf32> to vector<64xf32>
    %477 = vector.shape_cast %476 : vector<64xf32> to vector<64x1xf32>
    %478 = tpu.reciprocal %477 {approx = true} : vector<64x1xf32> -> vector<64x1xf32>
    %479 = vector.broadcast %478 : vector<64x1xf32> to vector<64x8xf32>
    %480 = arith.mulf %475, %479 : vector<64x8xf32>
    %481 = vector.extract_strided_slice %384 {offsets = [64, 8], sizes = [64, 8], strides = [1, 1]} : vector<128x96xf32> to vector<64x8xf32>
    %482 = arith.truncf %481 : vector<64x8xf32> to vector<64x8xbf16>
    %483 = vector.extract_strided_slice %384 {offsets = [64, 40], sizes = [64, 8], strides = [1, 1]} : vector<128x96xf32> to vector<64x8xf32>
    %484 = arith.truncf %483 : vector<64x8xf32> to vector<64x8xbf16>
    %485 = vector.extract_strided_slice %384 {offsets = [64, 72], sizes = [64, 8], strides = [1, 1]} : vector<128x96xf32> to vector<64x8xf32>
    %486 = arith.truncf %485 : vector<64x8xf32> to vector<64x8xbf16>
    %cst_131 = arith.constant dense<0.000000e+00> : vector<64x64xf32>
    %487 = tpu.matmul %482, %484, %cst_131 {dimension_numbers = #tpu.dot_dimension_numbers<[1], [1], [0], [0], [0, 0, 1, 0], [], []>} : vector<64x8xbf16>, vector<64x8xbf16>, vector<64x64xf32> -> vector<64x64xf32>
    %cst_132 = arith.constant dense<0xFF800000> : vector<64xf32>
    %488 = vector.multi_reduction <maximumf>, %487, %cst_132 [1] : vector<64x64xf32> to vector<64xf32>
    %489 = vector.shape_cast %488 : vector<64xf32> to vector<64x1xf32>
    %490 = vector.broadcast %489 : vector<64x1xf32> to vector<64x64xf32>
    %491 = arith.subf %487, %490 : vector<64x64xf32>
    %492 = math.exp %491 : vector<64x64xf32>
    %493 = arith.truncf %492 : vector<64x64xf32> to vector<64x64xbf16>
    %cst_133 = arith.constant dense<0.000000e+00> : vector<64x8xf32>
    %494 = tpu.matmul %493, %486, %cst_133 {dimension_numbers = #tpu.dot_dimension_numbers<[1], [0], [0], [1], [0, 0, 1, 1], [], []>} : vector<64x64xbf16>, vector<64x8xbf16>, vector<64x8xf32> -> vector<64x8xf32>
    %cst_134 = arith.constant dense<0.000000e+00> : vector<64xf32>
    %495 = vector.multi_reduction <add>, %492, %cst_134 [1] : vector<64x64xf32> to vector<64xf32>
    %496 = vector.shape_cast %495 : vector<64xf32> to vector<64x1xf32>
    %497 = tpu.reciprocal %496 {approx = true} : vector<64x1xf32> -> vector<64x1xf32>
    %498 = vector.broadcast %497 : vector<64x1xf32> to vector<64x8xf32>
    %499 = arith.mulf %494, %498 : vector<64x8xf32>
    %500 = vector.extract_strided_slice %384 {offsets = [64, 16], sizes = [64, 8], strides = [1, 1]} : vector<128x96xf32> to vector<64x8xf32>
    %501 = arith.truncf %500 : vector<64x8xf32> to vector<64x8xbf16>
    %502 = vector.extract_strided_slice %384 {offsets = [64, 48], sizes = [64, 8], strides = [1, 1]} : vector<128x96xf32> to vector<64x8xf32>
    %503 = arith.truncf %502 : vector<64x8xf32> to vector<64x8xbf16>
    %504 = vector.extract_strided_slice %384 {offsets = [64, 80], sizes = [64, 8], strides = [1, 1]} : vector<128x96xf32> to vector<64x8xf32>
    %505 = arith.truncf %504 : vector<64x8xf32> to vector<64x8xbf16>
    %cst_135 = arith.constant dense<0.000000e+00> : vector<64x64xf32>
    %506 = tpu.matmul %501, %503, %cst_135 {dimension_numbers = #tpu.dot_dimension_numbers<[1], [1], [0], [0], [0, 0, 1, 0], [], []>} : vector<64x8xbf16>, vector<64x8xbf16>, vector<64x64xf32> -> vector<64x64xf32>
    %cst_136 = arith.constant dense<0xFF800000> : vector<64xf32>
    %507 = vector.multi_reduction <maximumf>, %506, %cst_136 [1] : vector<64x64xf32> to vector<64xf32>
    %508 = vector.shape_cast %507 : vector<64xf32> to vector<64x1xf32>
    %509 = vector.broadcast %508 : vector<64x1xf32> to vector<64x64xf32>
    %510 = arith.subf %506, %509 : vector<64x64xf32>
    %511 = math.exp %510 : vector<64x64xf32>
    %512 = arith.truncf %511 : vector<64x64xf32> to vector<64x64xbf16>
    %cst_137 = arith.constant dense<0.000000e+00> : vector<64x8xf32>
    %513 = tpu.matmul %512, %505, %cst_137 {dimension_numbers = #tpu.dot_dimension_numbers<[1], [0], [0], [1], [0, 0, 1, 1], [], []>} : vector<64x64xbf16>, vector<64x8xbf16>, vector<64x8xf32> -> vector<64x8xf32>
    %cst_138 = arith.constant dense<0.000000e+00> : vector<64xf32>
    %514 = vector.multi_reduction <add>, %511, %cst_138 [1] : vector<64x64xf32> to vector<64xf32>
    %515 = vector.shape_cast %514 : vector<64xf32> to vector<64x1xf32>
    %516 = tpu.reciprocal %515 {approx = true} : vector<64x1xf32> -> vector<64x1xf32>
    %517 = vector.broadcast %516 : vector<64x1xf32> to vector<64x8xf32>
    %518 = arith.mulf %513, %517 : vector<64x8xf32>
    %519 = vector.extract_strided_slice %384 {offsets = [64, 24], sizes = [64, 8], strides = [1, 1]} : vector<128x96xf32> to vector<64x8xf32>
    %520 = arith.truncf %519 : vector<64x8xf32> to vector<64x8xbf16>
    %521 = vector.extract_strided_slice %384 {offsets = [64, 56], sizes = [64, 8], strides = [1, 1]} : vector<128x96xf32> to vector<64x8xf32>
    %522 = arith.truncf %521 : vector<64x8xf32> to vector<64x8xbf16>
    %523 = vector.extract_strided_slice %384 {offsets = [64, 88], sizes = [64, 8], strides = [1, 1]} : vector<128x96xf32> to vector<64x8xf32>
    %524 = arith.truncf %523 : vector<64x8xf32> to vector<64x8xbf16>
    %cst_139 = arith.constant dense<0.000000e+00> : vector<64x64xf32>
    %525 = tpu.matmul %520, %522, %cst_139 {dimension_numbers = #tpu.dot_dimension_numbers<[1], [1], [0], [0], [0, 0, 1, 0], [], []>} : vector<64x8xbf16>, vector<64x8xbf16>, vector<64x64xf32> -> vector<64x64xf32>
    %cst_140 = arith.constant dense<0xFF800000> : vector<64xf32>
    %526 = vector.multi_reduction <maximumf>, %525, %cst_140 [1] : vector<64x64xf32> to vector<64xf32>
    %527 = vector.shape_cast %526 : vector<64xf32> to vector<64x1xf32>
    %528 = vector.broadcast %527 : vector<64x1xf32> to vector<64x64xf32>
    %529 = arith.subf %525, %528 : vector<64x64xf32>
    %530 = math.exp %529 : vector<64x64xf32>
    %531 = arith.truncf %530 : vector<64x64xf32> to vector<64x64xbf16>
    %cst_141 = arith.constant dense<0.000000e+00> : vector<64x8xf32>
    %532 = tpu.matmul %531, %524, %cst_141 {dimension_numbers = #tpu.dot_dimension_numbers<[1], [0], [0], [1], [0, 0, 1, 1], [], []>} : vector<64x64xbf16>, vector<64x8xbf16>, vector<64x8xf32> -> vector<64x8xf32>
    %cst_142 = arith.constant dense<0.000000e+00> : vector<64xf32>
    %533 = vector.multi_reduction <add>, %530, %cst_142 [1] : vector<64x64xf32> to vector<64xf32>
    %534 = vector.shape_cast %533 : vector<64xf32> to vector<64x1xf32>
    %535 = tpu.reciprocal %534 {approx = true} : vector<64x1xf32> -> vector<64x1xf32>
    %536 = vector.broadcast %535 : vector<64x1xf32> to vector<64x8xf32>
    %537 = arith.mulf %532, %536 : vector<64x8xf32>
    %538 = tpu.concatenate %480, %499, %518, %537 in 1 : vector<64x8xf32>, vector<64x8xf32>, vector<64x8xf32>, vector<64x8xf32> -> vector<64x32xf32>
    %539 = tpu.concatenate %461, %538 in 0 : vector<64x32xf32>, vector<64x32xf32> -> vector<128x32xf32>
    %c1_143 = arith.constant 1 : index
    %c0_144 = arith.constant 0 : index
    %c0_145 = arith.constant 0 : index
    %540 = vector.load %arg10[%c1_143, %c0_144, %c0_145] : memref<2x32x32xbf16, #tpu.memory_space<vmem>>, vector<1x32x32xbf16>
    %541 = vector.shape_cast %540 : vector<1x32x32xbf16> to vector<32x32xbf16>
    %c0_146 = arith.constant 0 : index
    %c1792 = arith.constant 1792 : index
    %542 = vector.load %arg15[%c0_146, %c1792] : memref<1x2176xf32, #tpu.memory_space<vmem>>, vector<1x32xf32>
    %543 = arith.truncf %539 : vector<128x32xf32> to vector<128x32xbf16>
    %cst_147 = arith.constant dense<0.000000e+00> : vector<128x32xf32>
    %544 = tpu.matmul %543, %541, %cst_147 {dimension_numbers = #tpu.dot_dimension_numbers<[1], [0], [0], [1], [0, 0, 1, 1], [], []>} : vector<128x32xbf16>, vector<32x32xbf16>, vector<128x32xf32> -> vector<128x32xf32>
    %545 = vector.broadcast %542 : vector<1x32xf32> to vector<128x32xf32>
    %546 = arith.addf %544, %545 : vector<128x32xf32>
    %547 = arith.mulf %340, %546 : vector<128x32xf32>
    %548 = arith.addf %318, %547 : vector<128x32xf32>
    %cst_148 = arith.constant dense<0.000000e+00> : vector<128xf32>
    %549 = vector.multi_reduction <add>, %548, %cst_148 [1] : vector<128x32xf32> to vector<128xf32>
    %550 = vector.shape_cast %549 : vector<128xf32> to vector<128x1xf32>
    %cst_149 = arith.constant 3.200000e+01 : f32
    %551 = vector.broadcast %cst_149 : f32 to vector<128x1xf32>
    %552 = arith.divf %550, %551 : vector<128x1xf32>
    %553 = vector.broadcast %552 : vector<128x1xf32> to vector<128x32xf32>
    %554 = arith.subf %548, %553 : vector<128x32xf32>
    %555 = arith.mulf %554, %554 : vector<128x32xf32>
    %cst_150 = arith.constant dense<0.000000e+00> : vector<128xf32>
    %556 = vector.multi_reduction <add>, %555, %cst_150 [1] : vector<128x32xf32> to vector<128xf32>
    %557 = vector.shape_cast %556 : vector<128xf32> to vector<128x1xf32>
    %cst_151 = arith.constant 3.200000e+01 : f32
    %558 = vector.broadcast %cst_151 : f32 to vector<128x1xf32>
    %559 = arith.divf %557, %558 : vector<128x1xf32>
    %560 = vector.broadcast %552 : vector<128x1xf32> to vector<128x32xf32>
    %561 = arith.subf %548, %560 : vector<128x32xf32>
    %cst_152 = arith.constant 9.99999997E-7 : f32
    %562 = vector.broadcast %cst_152 : f32 to vector<128x1xf32>
    %563 = arith.addf %559, %562 : vector<128x1xf32>
    %564 = math.rsqrt %563 : vector<128x1xf32>
    %565 = vector.broadcast %564 : vector<128x1xf32> to vector<128x32xf32>
    %566 = arith.mulf %561, %565 : vector<128x32xf32>
    %cst_153 = arith.constant 1.000000e+00 : f32
    %567 = vector.broadcast %cst_153 : f32 to vector<128x32xf32>
    %568 = arith.addf %567, %350 : vector<128x32xf32>
    %569 = arith.mulf %566, %568 : vector<128x32xf32>
    %570 = arith.addf %569, %345 : vector<128x32xf32>
    %c1_154 = arith.constant 1 : index
    %c0_155 = arith.constant 0 : index
    %c0_156 = arith.constant 0 : index
    %571 = vector.load %arg11[%c1_154, %c0_155, %c0_156] : memref<2x32x128xbf16, #tpu.memory_space<vmem>>, vector<1x32x128xbf16>
    %572 = vector.shape_cast %571 : vector<1x32x128xbf16> to vector<32x128xbf16>
    %c0_157 = arith.constant 0 : index
    %c1920 = arith.constant 1920 : index
    %573 = vector.load %arg15[%c0_157, %c1920] : memref<1x2176xf32, #tpu.memory_space<vmem>>, vector<1x128xf32>
    %574 = arith.truncf %570 : vector<128x32xf32> to vector<128x32xbf16>
    %cst_158 = arith.constant dense<0.000000e+00> : vector<128x128xf32>
    %575 = tpu.matmul %574, %572, %cst_158 {dimension_numbers = #tpu.dot_dimension_numbers<[1], [0], [0], [1], [0, 0, 1, 1], [], []>} : vector<128x32xbf16>, vector<32x128xbf16>, vector<128x128xf32> -> vector<128x128xf32>
    %576 = vector.broadcast %573 : vector<1x128xf32> to vector<128x128xf32>
    %577 = arith.addf %575, %576 : vector<128x128xf32>
    %cst_159 = arith.constant 5.000000e-01 : f32
    %578 = vector.broadcast %cst_159 : f32 to vector<128x128xf32>
    %579 = arith.mulf %578, %577 : vector<128x128xf32>
    %cst_160 = arith.constant 4.471500e-02 : f32
    %580 = vector.broadcast %cst_160 : f32 to vector<128x128xf32>
    %581 = arith.mulf %580, %577 : vector<128x128xf32>
    %582 = arith.mulf %581, %577 : vector<128x128xf32>
    %583 = arith.mulf %582, %577 : vector<128x128xf32>
    %584 = arith.addf %577, %583 : vector<128x128xf32>
    %cst_161 = arith.constant 0.797884583 : f32
    %585 = vector.broadcast %cst_161 : f32 to vector<128x128xf32>
    %586 = arith.mulf %585, %584 : vector<128x128xf32>
    %587 = math.tanh %586 : vector<128x128xf32>
    %cst_162 = arith.constant 1.000000e+00 : f32
    %588 = vector.broadcast %cst_162 : f32 to vector<128x128xf32>
    %589 = arith.addf %588, %587 : vector<128x128xf32>
    %590 = arith.mulf %579, %589 : vector<128x128xf32>
    %c1_163 = arith.constant 1 : index
    %c0_164 = arith.constant 0 : index
    %c0_165 = arith.constant 0 : index
    %591 = vector.load %arg12[%c1_163, %c0_164, %c0_165] : memref<2x128x32xbf16, #tpu.memory_space<vmem>>, vector<1x128x32xbf16>
    %592 = vector.shape_cast %591 : vector<1x128x32xbf16> to vector<128x32xbf16>
    %c0_166 = arith.constant 0 : index
    %c2048 = arith.constant 2048 : index
    %593 = vector.load %arg15[%c0_166, %c2048] : memref<1x2176xf32, #tpu.memory_space<vmem>>, vector<1x32xf32>
    %594 = arith.truncf %590 : vector<128x128xf32> to vector<128x128xbf16>
    %cst_167 = arith.constant dense<0.000000e+00> : vector<128x32xf32>
    %595 = tpu.matmul %594, %592, %cst_167 {dimension_numbers = #tpu.dot_dimension_numbers<[1], [0], [0], [1], [0, 0, 1, 1], [], []>} : vector<128x128xbf16>, vector<128x32xbf16>, vector<128x32xf32> -> vector<128x32xf32>
    %596 = vector.broadcast %593 : vector<1x32xf32> to vector<128x32xf32>
    %597 = arith.addf %595, %596 : vector<128x32xf32>
    %598 = arith.mulf %355, %597 : vector<128x32xf32>
    %599 = arith.addf %548, %598 : vector<128x32xf32>
    %c0_168 = arith.constant 0 : index
    %c0_169 = arith.constant 0 : index
    %600 = vector.load %arg13[%c0_168, %c0_169] : memref<32x64xbf16, #tpu.memory_space<vmem>>, vector<32x64xbf16>
    %c0_170 = arith.constant 0 : index
    %c384 = arith.constant 384 : index
    %601 = vector.load %arg15[%c0_170, %c384] : memref<1x2176xf32, #tpu.memory_space<vmem>>, vector<1x64xf32>
    %602 = arith.truncf %28 : vector<2x32xf32> to vector<2x32xbf16>
    %cst_171 = arith.constant dense<0.000000e+00> : vector<2x64xf32>
    %603 = tpu.matmul %602, %600, %cst_171 {dimension_numbers = #tpu.dot_dimension_numbers<[1], [0], [0], [1], [0, 0, 1, 1], [], []>} : vector<2x32xbf16>, vector<32x64xbf16>, vector<2x64xf32> -> vector<2x64xf32>
    %604 = vector.broadcast %601 : vector<1x64xf32> to vector<2x64xf32>
    %605 = arith.addf %603, %604 : vector<2x64xf32>
    %606 = vector.extract_strided_slice %605 {offsets = [0, 0], sizes = [2, 32], strides = [1, 1]} : vector<2x64xf32> to vector<2x32xf32>
    %607 = vector.shape_cast %606 : vector<2x32xf32> to vector<2x1x32xf32>
    %608 = vector.shape_cast %607 : vector<2x1x32xf32> to vector<2x1x32xf32>
    %609 = vector.broadcast %608 : vector<2x1x32xf32> to vector<2x64x32xf32>
    %610 = vector.shape_cast %609 : vector<2x64x32xf32> to vector<128x32xf32>
    %611 = vector.extract_strided_slice %605 {offsets = [0, 32], sizes = [2, 32], strides = [1, 1]} : vector<2x64xf32> to vector<2x32xf32>
    %612 = vector.shape_cast %611 : vector<2x32xf32> to vector<2x1x32xf32>
    %613 = vector.shape_cast %612 : vector<2x1x32xf32> to vector<2x1x32xf32>
    %614 = vector.broadcast %613 : vector<2x1x32xf32> to vector<2x64x32xf32>
    %615 = vector.shape_cast %614 : vector<2x64x32xf32> to vector<128x32xf32>
    %cst_172 = arith.constant dense<0.000000e+00> : vector<128xf32>
    %616 = vector.multi_reduction <add>, %599, %cst_172 [1] : vector<128x32xf32> to vector<128xf32>
    %617 = vector.shape_cast %616 : vector<128xf32> to vector<128x1xf32>
    %cst_173 = arith.constant 3.200000e+01 : f32
    %618 = vector.broadcast %cst_173 : f32 to vector<128x1xf32>
    %619 = arith.divf %617, %618 : vector<128x1xf32>
    %620 = vector.broadcast %619 : vector<128x1xf32> to vector<128x32xf32>
    %621 = arith.subf %599, %620 : vector<128x32xf32>
    %622 = arith.mulf %621, %621 : vector<128x32xf32>
    %cst_174 = arith.constant dense<0.000000e+00> : vector<128xf32>
    %623 = vector.multi_reduction <add>, %622, %cst_174 [1] : vector<128x32xf32> to vector<128xf32>
    %624 = vector.shape_cast %623 : vector<128xf32> to vector<128x1xf32>
    %cst_175 = arith.constant 3.200000e+01 : f32
    %625 = vector.broadcast %cst_175 : f32 to vector<128x1xf32>
    %626 = arith.divf %624, %625 : vector<128x1xf32>
    %627 = vector.broadcast %619 : vector<128x1xf32> to vector<128x32xf32>
    %628 = arith.subf %599, %627 : vector<128x32xf32>
    %cst_176 = arith.constant 9.99999997E-7 : f32
    %629 = vector.broadcast %cst_176 : f32 to vector<128x1xf32>
    %630 = arith.addf %626, %629 : vector<128x1xf32>
    %631 = math.rsqrt %630 : vector<128x1xf32>
    %632 = vector.broadcast %631 : vector<128x1xf32> to vector<128x32xf32>
    %633 = arith.mulf %628, %632 : vector<128x32xf32>
    %cst_177 = arith.constant 1.000000e+00 : f32
    %634 = vector.broadcast %cst_177 : f32 to vector<128x32xf32>
    %635 = arith.addf %634, %615 : vector<128x32xf32>
    %636 = arith.mulf %633, %635 : vector<128x32xf32>
    %637 = arith.addf %636, %610 : vector<128x32xf32>
    %c0_178 = arith.constant 0 : index
    %c0_179 = arith.constant 0 : index
    %638 = vector.load %arg14[%c0_178, %c0_179] : memref<32x32xbf16, #tpu.memory_space<vmem>>, vector<32x32xbf16>
    %c0_180 = arith.constant 0 : index
    %c512 = arith.constant 512 : index
    %639 = vector.load %arg15[%c0_180, %c512] : memref<1x2176xf32, #tpu.memory_space<vmem>>, vector<1x32xf32>
    %640 = arith.truncf %637 : vector<128x32xf32> to vector<128x32xbf16>
    %cst_181 = arith.constant dense<0.000000e+00> : vector<128x32xf32>
    %641 = tpu.matmul %640, %638, %cst_181 {dimension_numbers = #tpu.dot_dimension_numbers<[1], [0], [0], [1], [0, 0, 1, 1], [], []>} : vector<128x32xbf16>, vector<32x32xbf16>, vector<128x32xf32> -> vector<128x32xf32>
    %642 = vector.broadcast %639 : vector<1x32xf32> to vector<128x32xf32>
    %643 = arith.addf %641, %642 : vector<128x32xf32>
    %c0_182 = arith.constant 0 : index
    %c0_183 = arith.constant 0 : index
    %644 = vector.load %arg16[%c0_182, %c0_183] : memref<128x32xf32, #tpu.memory_space<vmem>>, vector<128x32xf32>
    tpu.vector_store %arg16[%c0_182, %c0_183], %643 {strides = array<i32>} : memref<128x32xf32, #tpu.memory_space<vmem>>, vector<128x32xf32>,
    return
  }
  func.func @transform_0(%arg0: i32) -> (i32, i32) {
    %c0_i32 = arith.constant 0 : i32
    %c0_i32_0 = arith.constant 0 : i32
    return %arg0, %c0_i32 : i32, i32
  }
  func.func @transform_1(%arg0: i32) -> (i32, i32, i32) {
    %c0_i32 = arith.constant 0 : i32
    %c0_i32_0 = arith.constant 0 : i32
    %c0_i32_1 = arith.constant 0 : i32
    return %arg0, %c0_i32, %c0_i32_0 : i32, i32, i32
  }
  func.func @transform_2(%arg0: i32) -> (i32, i32, i32) {
    %c0_i32 = arith.constant 0 : i32
    %c0_i32_0 = arith.constant 0 : i32
    %c0_i32_1 = arith.constant 0 : i32
    return %arg0, %c0_i32, %c0_i32_0 : i32, i32, i32
  }
  func.func @transform_3(%arg0: i32) -> (i32, i32) {
    %c0_i32 = arith.constant 0 : i32
    %c0_i32_0 = arith.constant 0 : i32
    %c0_i32_1 = arith.constant 0 : i32
    return %c0_i32, %c0_i32_0 : i32, i32
  }
  func.func @transform_4(%arg0: i32) -> (i32, i32) {
    %c0_i32 = arith.constant 0 : i32
    %c0_i32_0 = arith.constant 0 : i32
    %c0_i32_1 = arith.constant 0 : i32
    return %c0_i32, %c0_i32_0 : i32, i32
  }
  func.func @transform_5(%arg0: i32) -> (i32, i32) {
    %c0_i32 = arith.constant 0 : i32
    %c0_i32_0 = arith.constant 0 : i32
    %c0_i32_1 = arith.constant 0 : i32
    return %c0_i32, %c0_i32_0 : i32, i32
  }
  func.func @transform_6(%arg0: i32) -> (i32, i32) {
    %c0_i32 = arith.constant 0 : i32
    %c0_i32_0 = arith.constant 0 : i32
    %c0_i32_1 = arith.constant 0 : i32
    return %c0_i32, %c0_i32_0 : i32, i32
  }
  func.func @transform_7(%arg0: i32) -> (i32, i32, i32) {
    %c0_i32 = arith.constant 0 : i32
    %c0_i32_0 = arith.constant 0 : i32
    %c0_i32_1 = arith.constant 0 : i32
    %c0_i32_2 = arith.constant 0 : i32
    return %c0_i32, %c0_i32_0, %c0_i32_1 : i32, i32, i32
  }
  func.func @transform_8(%arg0: i32) -> (i32, i32, i32) {
    %c0_i32 = arith.constant 0 : i32
    %c0_i32_0 = arith.constant 0 : i32
    %c0_i32_1 = arith.constant 0 : i32
    %c0_i32_2 = arith.constant 0 : i32
    return %c0_i32, %c0_i32_0, %c0_i32_1 : i32, i32, i32
  }
  func.func @transform_9(%arg0: i32) -> (i32, i32, i32) {
    %c0_i32 = arith.constant 0 : i32
    %c0_i32_0 = arith.constant 0 : i32
    %c0_i32_1 = arith.constant 0 : i32
    %c0_i32_2 = arith.constant 0 : i32
    return %c0_i32, %c0_i32_0, %c0_i32_1 : i32, i32, i32
  }
  func.func @transform_10(%arg0: i32) -> (i32, i32, i32) {
    %c0_i32 = arith.constant 0 : i32
    %c0_i32_0 = arith.constant 0 : i32
    %c0_i32_1 = arith.constant 0 : i32
    %c0_i32_2 = arith.constant 0 : i32
    return %c0_i32, %c0_i32_0, %c0_i32_1 : i32, i32, i32
  }
  func.func @transform_11(%arg0: i32) -> (i32, i32, i32) {
    %c0_i32 = arith.constant 0 : i32
    %c0_i32_0 = arith.constant 0 : i32
    %c0_i32_1 = arith.constant 0 : i32
    %c0_i32_2 = arith.constant 0 : i32
    return %c0_i32, %c0_i32_0, %c0_i32_1 : i32, i32, i32
  }
  func.func @transform_12(%arg0: i32) -> (i32, i32) {
    %c0_i32 = arith.constant 0 : i32
    %c0_i32_0 = arith.constant 0 : i32
    %c0_i32_1 = arith.constant 0 : i32
    return %c0_i32, %c0_i32_0 : i32, i32
  }
  func.func @transform_13(%arg0: i32) -> (i32, i32) {
    %c0_i32 = arith.constant 0 : i32
    %c0_i32_0 = arith.constant 0 : i32
    %c0_i32_1 = arith.constant 0 : i32
    return %c0_i32, %c0_i32_0 : i32, i32
  }
  func.func @transform_14(%arg0: i32) -> (i32, i32) {
    %c0_i32 = arith.constant 0 : i32
    %c0_i32_0 = arith.constant 0 : i32
    %c0_i32_1 = arith.constant 0 : i32
    return %c0_i32, %c0_i32_0 : i32, i32
  }
  func.func @transform_15(%arg0: i32) -> (i32, i32) {
    %c0_i32 = arith.constant 0 : i32
    %c0_i32_0 = arith.constant 0 : i32
    return %arg0, %c0_i32 : i32, i32
  }
}

</mosaic_0001>

<bundles_post_ra>
// kernel: sit_forward.1
= control target key start
LH: loop header
LB: loop body
LE: loop exit
PB: predicated region body
PF: predicated region fallthrough
CT: control target
= control target key end

     0   :  { %v88_v5 = vlaneseq  ;;  %vm127_vm0 = vcmask 1041409   ;;  %v16867_v41 = vmov 0.0   ;;  %vm12216_vm1 = vmmov 0   ;;  %s12219_s16 = smov 96   ;;  %s12221_s19 = smov 80   ;;  %s16851_s5 = inlined_call_operand.vmem [shape: bf16[256,32], index: 5, kind: input, shape index: {}]   ;;  %s16852_s1 = inlined_call_operand.vmem [shape: f32[2,1,256], index: 1, kind: input, shape index: {}]   ;;  %s16853_s6 = inlined_call_operand.vmem [shape: bf16[32,32], index: 6, kind: input, shape index: {}]   ;;  %s16854_s4 = inlined_call_operand.vmem [shape: bf16[16,32], index: 4, kind: input, shape index: {}]   ;;  %s16855_s14 = inlined_call_operand.vmem [shape: f32[1,2176], index: 14, kind: input, shape index: {}]   ;;  %s16856_s0 = inlined_call_operand.vmem [shape: f32[128,16], index: 0, kind: input, shape index: {}]   ;;  %s16857_s7 = inlined_call_operand.vmem [shape: bf16[2,32,192], index: 7, kind: input, shape index: {}]   ;;  %s16858_s2 = inlined_call_operand.vmem [shape: f32[2,1,32], index: 2, kind: input, shape index: {}]   ;;  %s16859_s3 = inlined_call_operand.vmem [shape: f32[128,32], index: 3, kind: input, shape index: {}]   ;;  %s16860_s8 = inlined_call_operand.vmem [shape: bf16[2,32,96], index: 8, kind: input, shape index: {}]   ;;  %s16861_s9 = inlined_call_operand.vmem [shape: bf16[2,32,32], index: 9, kind: input, shape index: {}]   ;;  %s16862_s10 = inlined_call_operand.vmem [shape: bf16[2,32,128], index: 10, kind: input, shape index: {}]   ;;  %s16863_s11 = inlined_call_operand.vmem [shape: bf16[2,128,32], index: 11, kind: input, shape index: {}]   ;;  %s16864_s12 = inlined_call_operand.vmem [shape: bf16[32,64], index: 12, kind: input, shape index: {}]   ;;  %s16865_s13 = inlined_call_operand.vmem [shape: bf16[32,32], index: 13, kind: input, shape index: {}]   ;;  %s16866_s15 = inlined_call_operand.vmem [shape: f32[128,32], index: 15, kind: output, shape index: {}]  }
   0x1   :  { %v11406_v0 = vld [vmem:[%s16851_s5 + $0x78] sm:$0xff]   ;;  %v11408_v2 = vld [vmem:[%s16851_s5 + $0x70] sm:$0xff]   ;;  %v11410_v4 = vld [vmem:[%s16851_s5 + $0x68] sm:$0xff]   ;;  %10325 = vmatprep.subr.bf16.mxu1 %v16867_v41  ;;  %10329 = vmatprep.mubr.msk.bf16.mxu1 %vm12216_vm1, %v16867_v41  ;;  %vm302_vm2 = vcmask 261120   ;;  %vm413_vm3 = vcmask 130048   ;;  %vm1133_vm4 = vcmask 64512  }
   0x2   :  { %v11407_v1 = vld [vmem:[%s16851_s5 + $0x38] sm:$0xff]   ;;  %9930 = vmatprep.subr.bf16.mxu0 %v11406_v0  ;;  %v11409_v3 = vld [vmem:[%s16851_s5 + $0x30] sm:$0xff]   ;;  %v11411_v6 = vld [vmem:[%s16851_s5 + $0x28] sm:$0xff]   ;;  %v12335_v8 = vshrl.u32 %v88_v5, 7  ;;  %s12222_s20 = smov 120   ;;  %s12223_s21 = smov 112  }
   0x3   :  { %9931 = vmatpush3.bf16.msra.mxu0 %v11407_v1  ;;  %v11412_v7 = vld [vmem:[%s16851_s5 + $0x60] sm:$0xff]   ;;  %v11414_v10 = vld [vmem:[%s16851_s5 + $0x58] sm:$0xff]   ;;  %v11416_v14 = vld [vmem:[%s16851_s5 + $0x50] sm:$0xff]   ;;  %s12224_s22 = smov 64   ;;  %s12225_s23 = smov 56   ;;  %vm1223_vm5 = vcmask 523264  }
   0x4   :  { %9932 = vmatprep.subr.bf16.mxu0 %v11408_v2  ;;  %v11413_v9 = vld [vmem:[%s16851_s5 + $0x20] sm:$0xff]   ;;  %v12344_v11 = vsub.s32 0, %v12335_v8  ;;  %v12347_v12 = vsub.s32 1, %v12335_v8  ;;  %v11415_v13 = vld [vmem:[%s16851_s5 + $0x18] sm:$0xff]   ;;  %v11417_v21 = vld [vmem:[%s16851_s5 + $0x10] sm:$0xff]   ;;  %s12226_s24 = smov 48  }
   0x5   :  { %v51_v15 = vld [vmem:[%s16852_s1] sm:$0x3]  ;;  %v52_v16 = vld [vmem:[%s16852_s1 + $0x2] sm:$0x3]  ;;  %v11418_v26 = vld [vmem:[%s16851_s5 + $0x48] sm:$0xff]   ;;  %s12227_s25 = smov 72  }
   0x6   :  { %16939 = vst [vmem:[#allocation2_spill] sm:$0xff] %v12344_v11  ;;  %16940 = vst [vmem:[#allocation3_spill] sm:$0xff] %v12347_v12  ;;  %v91_v17 = vrot.slane %v51_v15, %v12344_v11  ;;  %v95_v18 = vrot.slane %v51_v15, %v12347_v12  ;;  %v99_v19 = vrot.slane %v52_v16, %v12344_v11  ;;  %v11419_v30 = vld [vmem:[%s16851_s5 + $0x8] sm:$0xff]   ;;  %v11420_v34 = vld [vmem:[%s16851_s5 + $0x40] sm:$0xff]   ;;  %s12228_s26 = smov 104   ;;  %s12230_s29 = smov 8  }
   0x7   :  { %9933 = vmatpush3.bf16.msra.mxu0 %v11409_v3  ;;  %v103_v20 = vrot.slane %v52_v16, %v12347_v12  ;;  %v11421_v37 = vld [vmem:[%s16851_s5] sm:$0xff]   ;;  %v11422_v40 = vld [vmem:[%s16853_s6 + $0x8] sm:$0xff]   ;;  %v376_v60 = vld [vmem:[%s16856_s0 + $0x10] sm:$0xff]  ;;  %s12229_s5 = smov 40   ;;  %s16906_s30 = smov 24   ;;  %vm2375_vm6 = vcmask 195584  }
   0x8   :  { %9934 = vmatprep.subr.bf16.mxu0 %v11410_v4  ;;  %v108_v22 = vpack.c.bf16 %v91_v17, %v91_v17  ;;  %v109_v23 = vpack.c.bf16 %v95_v18, %v95_v18  ;;  %v110_v24 = vpack.c.bf16 %v99_v19, %v99_v19  ;;  %10326 = vmatpush3.bf16.msra.mxu1 %v11422_v40  ;;  %v11423_v42 = vld [vmem:[%s16853_s6] sm:$0xff]   ;;  %v375_v55 = vld [vmem:[%s16856_s0 + $0x8] sm:$0xff]  ;;  %v377_v61 = vld [vmem:[%s16856_s0 + $0x18] sm:$0xff]  ;;  %s12231_s6 = smov 16   ;;  %s12233_s1 = smov 32  }
   0x9   :  { %v111_v25 = vpack.c.bf16 %v103_v20, %v103_v20  ;;  %10327 = vmatprep.subr.bf16.mxu1 %v16867_v41  ;;  %v11424_v43 = vld [vmem:[%s16854_s4] sm:$0xff]   ;;  %v379_v63 = vld [vmem:[%s16856_s0 + $0x28] sm:$0xff]  ;;  %v394_v0 = vpack.c.bf16 %v377_v61, %v376_v60  ;;  %v380_v2 = vld [vmem:[%s16856_s0 + $0x30] sm:$0xff] }
   0xa   :  { %v123_v27 = vunpack.c.l.b16 %v109_v23  ;;  %v124_v29 = vunpack.c.l.b16 %v110_v24  ;;  %v122_v32 = vunpack.c.l.b16 %v108_v22  ;;  %v9628_v45 = vld [vmem:[%s16855_s14 + $0x1] ss:$0 sm:$0xff]  ;;  %v381_v3 = vld [vmem:[%s16856_s0 + $0x38] sm:$0xff]  ;;  %v383_v5 = vld [vmem:[%s16856_s0 + $0x48] sm:$0xff]  ;;  %v16869_v24 = vmov 0  }
   0xb   :  { %9935 = vmatpush3.bf16.msra.mxu0 %v11411_v6  ;;  %v125_v28 = vunpack.c.l.b16 %v111_v25  ;;  %v374_v54 = vld [vmem:[%s16856_s0] sm:$0xff]  ;;  %v396_v6 = vpack.c.bf16 %v381_v3, %v380_v2  ;;  %v388_v17 = vld [vmem:[%s16856_s0 + $0x70] sm:$0xff]  ;;  %v389_v18 = vld [vmem:[%s16856_s0 + $0x78] sm:$0xff]  ;;  %v12218_v25 = vmov 1966171168  }
   0xc   :  { %9936 = vmatprep.subr.bf16.mxu0 %v11412_v7  ;;  %v126_v33 = vrot.slane %v124_v29, 7  ;;  %10328 = vmatpush3.bf16.msra.mxu1 %v11423_v42  ;;  %v393_v58 = vpack.c.bf16 %v375_v55, %v374_v54  ;;  %v378_v62 = vld [vmem:[%s16856_s0 + $0x20] sm:$0xff]  ;;  %v400_v19 = vpack.c.bf16 %v389_v18, %v388_v17  ;;  %v11427_v20 = vld [vmem:[%s16857_s7 + $0x14] ss:$8 sps:$4 sm:$0xff]  }
   0xd   :  { %v129_v31 = vrot.slane %v125_v28, 7  ;;  %10333 = vmatprep.subr.bf16.mxu1 %v11424_v43  ;;  %v395_v1 = vpack.c.bf16 %v379_v63, %v378_v62  ;;  %v382_v4 = vld [vmem:[%s16856_s0 + $0x40] sm:$0xff] }
   0xe   :  { %v128_v38 = vsel %vm127_vm0, %v126_v33, %v122_v32  ;;  %v397_v7 = vpack.c.bf16 %v383_v5, %v382_v4  ;;  %v11430_v22 = vld [vmem:[%s16857_s7 + $0x4] ss:$8 sps:$4 sm:$0xff]   ;;  %v11428_v23 = vld [vmem:[%s16857_s7] ss:$8 sps:$4 sm:$0xff]  }
   0xf   :  { %9937 = vmatpush3.bf16.msra.mxu0 %v11413_v9  ;;  %v130_v35 = vsel %vm127_vm0, %v129_v31, %v123_v27  ;;  %v131_v39 = vpack.c.b16 %v128_v38, %v128_v38  ;;  %v384_v9 = vld [vmem:[%s16856_s0 + $0x50] sm:$0xff]  ;;  %v346_v28 = vld [vmem:[%s16858_s2] sm:$0x1]  ;;  %v347_v29 = vld [vmem:[%s16858_s2 + $0x1] sm:$0x1]  ;;  %s12220_s2 = smov 88  }
  0x10   :  { %9938 = vmatprep.subr.bf16.mxu0 %v11414_v10  ;;  %v132_v36 = vpack.c.b16 %v130_v35, %v130_v35  ;;  %v385_v10 = vld [vmem:[%s16856_s0 + $0x58] sm:$0xff]  ;;  %v350_v31 = vcombine.low %v346_v28, %v347_v29  ;;  %v9646_v33 = vld [vmem:[%s16855_s14 + $0x2] ss:$0 sm:$0xff] }
  0x11   :  { %v398_v15 = vpack.c.bf16 %v385_v10, %v384_v9  ;;  %v539_v2 = vld [vmem:[%s16859_s3 + $0x20] sm:$0xff] }
  0x12   :  { %263 = vmatprep.mubr.bf16.mxu0 %v132_v36 }
  0x13   :  { %9939 = vmatpush3.bf16.msra.mxu0 %v11415_v13  ;;  %v386_v13 = vld [vmem:[%s16856_s0 + $0x60] sm:$0xff] }
  0x14   :  { %9940 = vmatprep.subr.bf16.mxu0 %v11416_v14  ;;  %v387_v14 = vld [vmem:[%s16856_s0 + $0x68] sm:$0xff] }
  0x15   :  { %v399_v16 = vpack.c.bf16 %v387_v14, %v386_v13  ;;  %v542_v14 = vld [vmem:[%s16859_s3 + $0x38] sm:$0xff] }
  0x17   :  { %9941 = vmatpush3.bf16.msra.mxu0 %v11417_v21  ;;  %v11425_v21 = vld [vmem:[%s16857_s7 + $0x10] ss:$8 sps:$4 sm:$0xff]  }
  0x18   :  { %9942 = vmatprep.subr.bf16.mxu0 %v11418_v26  ;;  %v352_v26 = vunpack.c.l.s4 %v12218_v25 }
  0x1a   :  { %v353_v27 = vunpack.c.0.s8 %v352_v26 }
  0x1b   :  { %9943 = vmatpush3.bf16.msra.mxu0 %v11419_v30 }
  0x1c   :  { %9944 = vmatprep.subr.bf16.mxu0 %v11420_v34  ;;  %v12473_v30 = vsub.s32 %v353_v27, %v12335_v8  ;;  %v12483_v8 = vld [vmem:[%s16855_s14] ss:$0 sm:$0xff] }
  0x1e   :  { %16941 = vst [vmem:[#allocation4_spill] sm:$0xff] %v12473_v30  ;;  %v357_v32 = vrot.slane %v350_v31, %v12473_v30 }
  0x1f   :  { %9945 = vmatpush3.bf16.msra.mxu0 %v11421_v37 }
  0x20   :  { %619 = vmatprep.subr.bf16.mxu0 %v11427_v20  ;;  %v364_v34 = vrot.slane %v357_v32, %v12473_v30 }
  0x22   :  { %264 = vmatmul.mubr.bf16.vlgmr.msra.gmra.mxu0 %v131_v39 }
  0x23   :  { %620 = vmatpush1.bf16.msra.mxu0 %v11425_v21  ;;  %639 = vmatprep.mubr.bf16.mxu0 %v16869_v24 }
  0x24   :  { %621 = vmatprep.subr.bf16.mxu0 %v11430_v22 }
  0x27   :  { %622 = vmatpush1.bf16.msra.mxu0 %v11428_v23 }
  0xe2   :  { %v9946_v44 = vpop.f32.mrf.mxu0 }
  0xe4   :  { %v9947_v46 = vpop.f32.mrf.mxu0 }
  0xe5   :  { %v9948_v47 = vadd.f32 %v9947_v46, %v9946_v44  ;;  %v537_v44 = vld [vmem:[%s16859_s3 + $0x10] sm:$0xff] }
  0xe6   :  { %v9949_v48 = vpop.f32.mrf.mxu0 }
  0xe7   :  { %v266_v49 = vadd.f32 %v9948_v47, %v9628_v45  ;;  %v535_v47 = vld [vmem:[%s16859_s3] sm:$0xff] }
  0xe8   :  { %v9950_v50 = vpop.f32.mrf.mxu0 }
  0xe9   :  { %v9645_v51 = vmul.f32 -1.442695, %v266_v49 }
  0xeb   :  { %11469 = vpow2.f32 %v9645_v51  ;;  %v538_v51 = vld [vmem:[%s16859_s3 + $0x18] sm:$0xff] }
  0xf8   :  { %v11470_v52 = vpop.eup %11469 }
  0xf9   :  { %v274_v53 = vadd.f32 1.0, %v11470_v52 }
  0xfb   :  { %11471 = vrcp.f32 %v274_v53 }
 0x108   :  { %v11472_v56 = vpop.eup %11471 }
 0x109   :  { %v277_v57 = vmul.f32 %v11472_v56, %v266_v49  ;;  %v536_v56 = vld [vmem:[%s16859_s3 + $0x8] sm:$0xff] }
 0x10b   :  { %v283_v59 = vpack.c.bf16 %v277_v57, %v277_v57 }
 0x10d   :  { %10330 = vmatmul.mubr.msk.bf16.vlgmr.msra.gmra.mxu1 %vm302_vm2, %v283_v59 }
 0x10e   :  { %10334 = vmatpush3.bf16.msra.mxu1 %v11424_v43  ;;  %10335 = vmatprep.mubr.msk.bf16.mxu1 %vm413_vm3, %v393_v58 }
 0x115   :  { %10336 = vmatmul.mubr.msk.bf16.vlgmr.msra.gmra.mxu1 %vm413_vm3, %v394_v0  ;;  %v541_v0 = vld [vmem:[%s16859_s3 + $0x30] sm:$0xff] }
 0x116   :  { %10339 = vmatprep.mubr.msk.bf16.mxu1 %vm413_vm3, %v395_v1 }
 0x11d   :  { %10340 = vmatmul.mubr.msk.bf16.gmra.mxu1 %vm413_vm3, %v396_v6 }
 0x11e   :  { %10343 = vmatprep.mubr.msk.bf16.mxu1 %vm413_vm3, %v397_v7 }
 0x125   :  { %10344 = vmatmul.mubr.msk.bf16.gmra.mxu1 %vm413_vm3, %v398_v15 }
 0x126   :  { %10347 = vmatprep.mubr.msk.bf16.mxu1 %vm413_vm3, %v399_v16  ;;  %v540_v16 = vld [vmem:[%s16859_s3 + $0x28] sm:$0xff] }
 0x12d   :  { %10348 = vmatmul.mubr.msk.bf16.gmra.mxu1 %vm413_vm3, %v400_v19 }
 0x1cd   :  { %v340_v35 = vpop.f32.mrf.mxu1 }
 0x1ce   :  { %v341_v36 = vadd.f32 %v9646_v33, %v340_v35 }
 0x1cf   :  { %v10331_v37 = vpop.f32.mrf.mxu1 }
 0x1d0   :  { %v366_v38 = vadd.f32 %v364_v34, %v341_v36 }
 0x1d1   :  { %v343_v39 = vpop.f32.mrf.mxu1 }
 0x1d2   :  { %v9650_v40 = vmul.f32 -1.442695, %v366_v38 }
 0x1d3   :  { %v10332_v42 = vpop.f32.mrf.mxu1 }
 0x1d4   :  { %11473 = vpow2.f32 %v9650_v40 }
 0x1d5   :  { %v10337_v43 = vpop.f32.mrf.mxu1 }
 0x1d6   :  { %v481_v45 = vadd.f32 %v10337_v43, %v12483_v8 }
 0x1d7   :  { %v472_v46 = vpop.f32.mrf.mxu1 }
 0x1d8   :  { %v12492_v48 = vadd.f32 %v537_v44, %v481_v45  ;;  %v473_v49 = vadd.f32 %v12483_v8, %v472_v46 }
 0x1d9   :  { %v10338_v50 = vpop.f32.mrf.mxu1 }
 0x1da   :  { %16942 = vst [vmem:[#allocation5_spill] sm:$0xff] %v12492_v48  ;;  %v12498_v52 = vadd.f32 %v535_v47, %v473_v49  ;;  %v484_v53 = vadd.f32 %v10338_v50, %v12483_v8  ;;  %v720_v54 = vsel %vm302_vm2, %v12492_v48, 0.0 }
 0x1db   :  { %721 = vadd.xlane.f32.xlu1 %v720_v54  ;;  %v475_v55 = vpop.f32.mrf.mxu1 }
 0x1dc   :  { %16943 = vst [vmem:[#allocation6_spill] sm:$0xff] %v12498_v52  ;;  %v12506_v57 = vadd.f32 %v538_v51, %v484_v53  ;;  %v476_v58 = vadd.f32 %v12483_v8, %v475_v55  ;;  %v714_v59 = vsel %vm302_vm2, %v12498_v52, 0.0 }
 0x1dd   :  { %v10341_v60 = vpop.f32.mrf.mxu1  ;;  %715 = vadd.xlane.f32.xlu0 %v714_v59 }
 0x1de   :  { %16944 = vst [vmem:[#allocation7_spill] sm:$0xff] %v12506_v57  ;;  %v12511_v61 = vadd.f32 %v536_v56, %v476_v58  ;;  %v497_v62 = vadd.f32 %v10341_v60, %v12483_v8  ;;  %v723_v63 = vsel %vm302_vm2, %v12506_v57, 0.0 }
 0x1df   :  { %724 = vadd.xlane.f32.xlu1 %v723_v63  ;;  %v488_v1 = vpop.f32.mrf.mxu1 }
 0x1e0   :  { %16945 = vst [vmem:[#allocation8_spill] sm:$0xff] %v12511_v61  ;;  %v489_v3 = vadd.f32 %v12483_v8, %v488_v1  ;;  %v717_v4 = vsel %vm302_vm2, %v12511_v61, 0.0  ;;  %v12525_v9 = vadd.f32 %v541_v0, %v497_v62 }
 0x1e1   :  { %v11474_v5 = vpop.eup %11473  ;;  %v10342_v6 = vpop.f32.mrf.mxu1  ;;  %718 = vadd.xlane.f32.xlu0 %v717_v4 }
 0x1e2   :  { %v370_v7 = vadd.f32 1.0, %v11474_v5  ;;  %16946 = vst [vmem:[#allocation9_spill] sm:$0xff] %v12525_v9  ;;  %v12527_v10 = vadd.f32 %v539_v2, %v489_v3  ;;  %v500_v13 = vadd.f32 %v10342_v6, %v12483_v8  ;;  %v732_v21 = vsel %vm302_vm2, %v12525_v9, 0.0 }
 0x1e3   :  { %v491_v15 = vpop.f32.mrf.mxu1 }
 0x1e4   :  { %16947 = vst [vmem:[#allocation10_spill] sm:$0xff] %v12527_v10  ;;  %11475 = vrcp.f32 %v370_v7  ;;  %v492_v17 = vadd.f32 %v12483_v8, %v491_v15  ;;  %v726_v18 = vsel %vm302_vm2, %v12527_v10, 0.0  ;;  %v12539_v19 = vadd.f32 %v542_v14, %v500_v13  ;;  %v543_v15 = vld [vmem:[%s16859_s3 + $0x40] sm:$0xff] }
 0x1e5   :  { %727 = vadd.xlane.f32.xlu0 %v726_v18  ;;  %v10345_v28 = vpop.f32.mrf.mxu1 }
 0x1e6   :  { %16948 = vst [vmem:[#allocation11_spill] sm:$0xff] %v12539_v19  ;;  %v12541_v20 = vadd.f32 %v540_v16, %v492_v17  ;;  %v735_v23 = vsel %vm302_vm2, %v12539_v19, 0.0 }
 0x1e7   :  { %v504_v29 = vpop.f32.mrf.mxu1 }
 0x1e8   :  { %16949 = vst [vmem:[#allocation12_spill] sm:$0xff] %v12541_v20  ;;  %v729_v22 = vsel %vm302_vm2, %v12541_v20, 0.0  ;;  %v505_v14 = vadd.f32 %v12483_v8, %v504_v29 }
 0x1e9   :  { %730 = vadd.xlane.f32.xlu1 %v729_v22  ;;  %733 = vadd.xlane.f32.xlu0 %v732_v21  ;;  %v12553_v31 = vpop.f32.mrf.mxu1 }
 0x1ea   :  { %v12606_v22 = vadd.f32 %v543_v15, %v505_v14 }
 0x1eb   :  { %v507_v32 = vpop.f32.mrf.mxu1 }
 0x1ec   :  { %16951 = vst [vmem:[#allocation14_spill] sm:$0xff] %v12606_v22 }
 0x1ed   :  { %736 = vadd.xlane.f32.xlu1 %v735_v23  ;;  %v10349_v33 = vpop.f32.mrf.mxu1 }
 0x1ee   :  { %v12556_v34 = vadd.f32 %v10349_v33, %v12483_v8 }
 0x1f1   :  { %v11476_v25 = vpop.eup %11475 }
 0x1f2   :  { %v373_v26 = vmul.f32 %v11476_v25, %v366_v38  ;;  %v508_v25 = vadd.f32 %v12483_v8, %v507_v32  ;;  %v545_v32 = vld [vmem:[%s16859_s3 + $0x50] sm:$0xff] }
 0x1f4   :  { %v12549_v27 = vpack.c.bf16 %v373_v26, %v373_v26  ;;  %v544_v26 = vld [vmem:[%s16859_s3 + $0x48] sm:$0xff] }
 0x1f6   :  { %16950 = vst [vmem:[#allocation13_spill] sm:$0xff] %v12549_v27  ;;  %9665 = vmatmul.mubr.msk.bf16.vlgmr.msra.gmra.mxu0 %vm302_vm2, %v12549_v27 }
 0x264   :  { %v722_v35 = vpop.xlane.xlu1 %721 }
 0x265   :  { %v765_v36 = vmul.f32 0.03125, %v722_v35  ;;  %v513_v35 = vadd.f32 %v10345_v28, %v12483_v8  ;;  %v546_v28 = vld [vmem:[%s16859_s3 + $0x58] sm:$0xff] }
 0x266   :  { %v716_v37 = vpop.xlane.xlu0 %715 }
 0x267   :  { %v12559_v39 = vsub.f32 %v12492_v48, %v765_v36  ;;  %v763_v38 = vmul.f32 0.03125, %v716_v37  ;;  %v12617_v36 = vadd.f32 %v544_v26, %v508_v25  ;;  %v738_v37 = vsel %vm302_vm2, %v12606_v22, 0.0 }
 0x268   :  { %v725_v40 = vpop.xlane.xlu1 %724 }
 0x269   :  { %v12562_v42 = vsub.f32 %v12498_v52, %v763_v38  ;;  %v766_v43 = vmul.f32 0.03125, %v725_v40  ;;  %v797_v44 = vmul.f32 %v12559_v39, %v12559_v39  ;;  %16952 = vst [vmem:[#allocation15_spill] sm:$0xff] %v12617_v36  ;;  %v520_v38 = vpop.f32.mrf.mxu1  ;;  %v12624_v40 = vadd.f32 %v545_v32, %v513_v35 }
 0x26a   :  { %v719_v45 = vpop.xlane.xlu0 %718 }
 0x26b   :  { %v764_v46 = vmul.f32 0.03125, %v719_v45  ;;  %v817_v47 = vsel %vm302_vm2, %v797_v44, 0.0  ;;  %v795_v49 = vmul.f32 %v12562_v42, %v12562_v42  ;;  %v12570_v50 = vsub.f32 %v12506_v57, %v766_v43  ;;  %16953 = vst [vmem:[#allocation16_spill] sm:$0xff] %v12624_v40  ;;  %v10350_v45 = vpop.f32.mrf.mxu1 }
 0x26c   :  { %818 = vadd.xlane.f32.xlu0 %v817_v47  ;;  %v516_v43 = vadd.f32 %v12553_v31, %v12483_v8  ;;  %v741_v44 = vsel %vm302_vm2, %v12617_v36, 0.0  ;;  %v744_v47 = vsel %vm302_vm2, %v12624_v40, 0.0  ;;  %v547_v31 = vld [vmem:[%s16859_s3 + $0x60] sm:$0xff] }
 0x26d   :  { %v12573_v51 = vsub.f32 %v12511_v61, %v764_v46  ;;  %v811_v54 = vsel %vm302_vm2, %v795_v49, 0.0  ;;  %v798_v59 = vmul.f32 %v12570_v50, %v12570_v50  ;;  %v521_v49 = vadd.f32 %v12483_v8, %v520_v38 }
 0x26e   :  { %v728_v53 = vpop.xlane.xlu0 %727  ;;  %v12633_v46 = vadd.f32 %v546_v28, %v516_v43 }
 0x26f   :  { %v796_v55 = vmul.f32 %v12573_v51, %v12573_v51  ;;  %v767_v56 = vmul.f32 0.03125, %v728_v53  ;;  %v820_v4 = vsel %vm302_vm2, %v798_v59, 0.0  ;;  %v523_v53 = vpop.f32.mrf.mxu1  ;;  %v532_v59 = vadd.f32 %v10350_v45, %v12483_v8 }
 0x270   :  { %812 = vadd.xlane.f32.xlu0 %v811_v54  ;;  %16954 = vst [vmem:[#allocation17_spill] sm:$0xff] %v12633_v46  ;;  %v12641_v54 = vadd.f32 %v547_v31, %v521_v49 }
 0x271   :  { %v814_v58 = vsel %vm302_vm2, %v796_v55, 0.0  ;;  %v12582_v1 = vsub.f32 %v12527_v10, %v767_v56  ;;  %v747_v55 = vsel %vm302_vm2, %v12633_v46, 0.0  ;;  %v524_v56 = vadd.f32 %v12483_v8, %v523_v53  ;;  %v11431_v8 = vld [vmem:[%s16860_s8 + $0x8] sm:$0xff]  }
 0x272   :  { %v731_v60 = vpop.xlane.xlu1 %730  ;;  %815 = vadd.xlane.f32.xlu1 %v814_v58  ;;  %v734_v62 = vpop.xlane.xlu0 %733  ;;  %16955 = vst [vmem:[#allocation18_spill] sm:$0xff] %v12641_v54  ;;  %v548_v58 = vld [vmem:[%s16859_s3 + $0x68] sm:$0xff]  ;;  %10351 = vmatprep.subr.bf16.mxu0 %v11431_v8 }
 0x273   :  { %v768_v63 = vmul.f32 0.03125, %v731_v60  ;;  %v769_v0 = vmul.f32 0.03125, %v734_v62  ;;  %v799_v21 = vmul.f32 %v12582_v1, %v12582_v1  ;;  %v12650_v60 = vadd.f32 %v548_v58, %v524_v56  ;;  %10352 = vmatpush3.bf16.msra.mxu0 %v11431_v8 }
 0x274   :  { %v750_v62 = vsel %vm302_vm2, %v12641_v54, 0.0 }
 0x275   :  { %v12585_v2 = vsub.f32 %v12541_v20, %v768_v63  ;;  %v12588_v3 = vsub.f32 %v12525_v9, %v769_v0  ;;  %v823_v33 = vsel %vm302_vm2, %v799_v21, 0.0  ;;  %16956 = vst [vmem:[#allocation19_spill] sm:$0xff] %v12650_v60  ;;  %v550_v63 = vld [vmem:[%s16859_s3 + $0x78] sm:$0xff] }
 0x276   :  { %v737_v5 = vpop.xlane.xlu1 %736  ;;  %821 = vadd.xlane.f32.xlu1 %v820_v4  ;;  %v12657_v0 = vadd.f32 %v550_v63, %v532_v59  ;;  %v753_v4 = vsel %vm302_vm2, %v12650_v60, 0.0 }
 0x277   :  { %v770_v6 = vmul.f32 0.03125, %v737_v5  ;;  %v800_v7 = vmul.f32 %v12585_v2, %v12585_v2  ;;  %v801_v13 = vmul.f32 %v12588_v3, %v12588_v3 }
 0x278   :  { %16957 = vst [vmem:[#allocation20_spill] sm:$0xff] %v12657_v0  ;;  %v759_v5 = vsel %vm302_vm2, %v12657_v0, 0.0 }
 0x279   :  { %v12600_v16 = vsub.f32 %v12539_v19, %v770_v6  ;;  %v826_v17 = vsel %vm302_vm2, %v800_v7, 0.0  ;;  %v829_v18 = vsel %vm302_vm2, %v801_v13, 0.0  ;;  %v571_v6 = vld [vmem:[%s16855_s14 + $0x5] sm:$0x3] }
 0x27a   :  { %827 = vadd.xlane.f32.xlu1 %v826_v17  ;;  %830 = vadd.xlane.f32.xlu0 %v829_v18  ;;  %v577_v7 = vrot.slane %v571_v6, %v12344_v11  ;;  %v11432_v13 = vld [vmem:[%s16860_s8] sm:$0xff]   ;;  %v581_v14 = vrot.slane %v571_v6, %v12347_v12 }
 0x27b   :  { %v802_v23 = vmul.f32 %v12600_v16, %v12600_v16  ;;  %10353 = vmatprep.subr.bf16.mxu0 %v11432_v13 }
 0x27c   :  { %10354 = vmatpush3.bf16.msra.mxu0 %v11432_v13 }
 0x27d   :  { %v832_v29 = vsel %vm302_vm2, %v802_v23, 0.0 }
 0x27e   :  { %833 = vadd.xlane.f32.xlu1 %v832_v29  ;;  %824 = vadd.xlane.f32.xlu0 %v823_v33 }
 0x282   :  { %739 = vadd.xlane.f32.xlu1 %v738_v37  ;;  %v549_v37 = vld [vmem:[%s16859_s3 + $0x70] sm:$0xff] }
 0x283   :  { %v12690_v32 = vadd.f32 %v549_v37, %v12556_v34 }
 0x285   :  { %16960 = vst [vmem:[#allocation23_spill] sm:$0xff] %v12690_v32  ;;  %v756_v38 = vsel %vm302_vm2, %v12690_v32, 0.0 }
 0x286   :  { %742 = vadd.xlane.f32.xlu1 %v741_v44 }
 0x28a   :  { %745 = vadd.xlane.f32.xlu1 %v744_v47 }
 0x28e   :  { %748 = vadd.xlane.f32.xlu1 %v747_v55 }
 0x292   :  { %751 = vadd.xlane.f32.xlu1 %v750_v62 }
 0x296   :  { %754 = vadd.xlane.f32.xlu1 %v753_v4 }
 0x29a   :  { %760 = vadd.xlane.f32.xlu1 %v759_v5 }
 0x2b6   :  { %v641_v15 = vpop.f32.mrf.mxu0 }
 0x2b7   :  { %v642_v17 = vadd.f32 %v641_v15, %v577_v7 }
 0x2b8   :  { %v643_v18 = vpop.f32.mrf.mxu0 }
 0x2b9   :  { %v12675_v21 = vrot.slane %v642_v17, %v12473_v30  ;;  %v12677_v23 = vadd.f32 %v643_v18, %v581_v14 }
 0x2ba   :  { %v645_v25 = vpop.f32.mrf.mxu0 }
 0x2bb   :  { %16958 = vst [vmem:[#allocation21_spill] sm:$0xff] %v12677_v23  ;;  %v663_v26 = vrot.slane %v12675_v21, %v12473_v30 }
 0x2bc   :  { %v646_v29 = vpop.f32.mrf.mxu0 }
 0x2bd   :  { %v12682_v33 = vrot.slane %v663_v26, %v12344_v11 }
 0x2bf   :  { %16959 = vst [vmem:[#allocation22_spill] sm:$0xff] %v12682_v33  ;;  %v923_v35 = vadd.f32 1.0, %v12682_v33 }
 0x2c1   :  { %927 = vrot.lane.b32.xlu0 %v923_v35, %s12219_s16 }
 0x2e0   :  { %757 = vadd.xlane.f32.xlu0 %v756_v38 }
 0x2f5   :  { %v819_v47 = vpop.xlane.xlu0 %818 }
 0x2f6   :  { %v861_v6 = vmul.f32 0.03125, %v819_v47 }
 0x2f8   :  { %v877_v29 = vadd.f32 1e-06, %v861_v6 }
 0x2f9   :  { %v813_v53 = vpop.xlane.xlu0 %812 }
 0x2fa   :  { %v859_v14 = vmul.f32 0.03125, %v813_v53  ;;  %11477 = vrsqrt.f32 %v877_v29 }
 0x2fb   :  { %v816_v43 = vpop.xlane.xlu1 %815 }
 0x2fc   :  { %v860_v17 = vmul.f32 0.03125, %v816_v43 }
 0x2ff   :  { %v822_v44 = vpop.xlane.xlu1 %821 }
 0x300   :  { %v862_v35 = vmul.f32 0.03125, %v822_v44 }
 0x303   :  { %v828_v28 = vpop.xlane.xlu1 %827  ;;  %v831_v59 = vpop.xlane.xlu0 %830 }
 0x304   :  { %v864_v37 = vmul.f32 0.03125, %v828_v28 }
 0x307   :  { %v834_v45 = vpop.xlane.xlu1 %833  ;;  %v825_v18 = vpop.xlane.xlu0 %824 }
 0x30b   :  { %v740_v49 = vpop.xlane.xlu1 %739 }
 0x30c   :  { %v771_v31 = vmul.f32 0.03125, %v740_v49  ;;  %v875_v49 = vadd.f32 1e-06, %v859_v14 }
 0x30e   :  { %v12695_v55 = vsub.f32 %v12606_v22, %v771_v31  ;;  %v863_v31 = vmul.f32 0.03125, %v825_v18  ;;  %11479 = vrsqrt.f32 %v875_v49 }
 0x30f   :  { %v743_v56 = vpop.xlane.xlu1 %742 }
 0x310   :  { %v772_v58 = vmul.f32 0.03125, %v743_v56  ;;  %v803_v34 = vmul.f32 %v12695_v55, %v12695_v55  ;;  %v876_v56 = vadd.f32 1e-06, %v860_v17 }
 0x312   :  { %v12700_v62 = vsub.f32 %v12617_v36, %v772_v58  ;;  %v835_v63 = vsel %vm302_vm2, %v803_v34, 0.0  ;;  %v878_v34 = vadd.f32 1e-06, %v862_v35  ;;  %11481 = vrsqrt.f32 %v876_v56 }
 0x313   :  { %836 = vadd.xlane.f32.xlu1 %v835_v63  ;;  %v746_v4 = vpop.xlane.xlu1 %745  ;;  %v880_v63 = vadd.f32 1e-06, %v864_v37 }
 0x314   :  { %v773_v5 = vmul.f32 0.03125, %v746_v4  ;;  %v804_v8 = vmul.f32 %v12700_v62, %v12700_v62  ;;  %v865_v4 = vmul.f32 0.03125, %v831_v59  ;;  %11483 = vrsqrt.f32 %v878_v34 }
 0x315   :  { %11485 = vrsqrt.f32 %v880_v63 }
 0x316   :  { %v12706_v7 = vsub.f32 %v12624_v40, %v773_v5  ;;  %v838_v13 = vsel %vm302_vm2, %v804_v8, 0.0  ;;  %v866_v5 = vmul.f32 0.03125, %v834_v45  ;;  %v879_v8 = vadd.f32 1e-06, %v863_v31 }
 0x317   :  { %839 = vadd.xlane.f32.xlu1 %v838_v13  ;;  %v749_v15 = vpop.xlane.xlu1 %748 }
 0x318   :  { %v774_v25 = vmul.f32 0.03125, %v749_v15  ;;  %v805_v26 = vmul.f32 %v12706_v7, %v12706_v7  ;;  %v881_v15 = vadd.f32 1e-06, %v865_v4  ;;  %v882_v18 = vadd.f32 1e-06, %v866_v5 }
 0x319   :  { %11487 = vrsqrt.f32 %v879_v8 }
 0x31a   :  { %v12712_v38 = vsub.f32 %v12633_v46, %v774_v25  ;;  %v841_v47 = vsel %vm302_vm2, %v805_v26, 0.0  ;;  %11489 = vrsqrt.f32 %v881_v15 }
 0x31b   :  { %842 = vadd.xlane.f32.xlu1 %v841_v47  ;;  %v752_v53 = vpop.xlane.xlu1 %751  ;;  %11491 = vrsqrt.f32 %v882_v18  ;;  %v11478_v47 = vpop.eup %11477 }
 0x31c   :  { %v775_v58 = vmul.f32 0.03125, %v752_v53  ;;  %v806_v43 = vmul.f32 %v12712_v38, %v12712_v38  ;;  %v11480_v31 = vpop.eup %11479  ;;  %v909_v34 = vmul.f32 %v11478_v47, %v12559_v39 }
 0x31d   :  { %v907_v4 = vmul.f32 %v11480_v31, %v12562_v42 }
 0x31e   :  { %v12718_v44 = vsub.f32 %v12641_v54, %v775_v58  ;;  %v844_v28 = vsel %vm302_vm2, %v806_v43, 0.0 }
 0x31f   :  { %845 = vadd.xlane.f32.xlu1 %v844_v28  ;;  %v755_v6 = vpop.xlane.xlu1 %754  ;;  %v11482_v53 = vpop.eup %11481 }
 0x320   :  { %v776_v13 = vmul.f32 0.03125, %v755_v6  ;;  %v807_v14 = vmul.f32 %v12718_v44, %v12718_v44  ;;  %v908_v28 = vmul.f32 %v11482_v53, %v12573_v51 }
 0x321   :  { %v11484_v56 = vpop.eup %11483 }
 0x322   :  { %v12724_v59 = vsub.f32 %v12650_v60, %v776_v13  ;;  %v847_v17 = vsel %vm302_vm2, %v807_v14, 0.0  ;;  %v11486_v58 = vpop.eup %11485  ;;  %v910_v63 = vmul.f32 %v11484_v56, %v12570_v50 }
 0x323   :  { %848 = vadd.xlane.f32.xlu1 %v847_v17  ;;  %v761_v45 = vpop.xlane.xlu1 %760  ;;  %v912_v13 = vmul.f32 %v11486_v58, %v12585_v2 }
 0x324   :  { %v778_v25 = vmul.f32 0.03125, %v761_v45  ;;  %v808_v26 = vmul.f32 %v12724_v59, %v12724_v59 }
 0x326   :  { %v12730_v29 = vsub.f32 %v12657_v0, %v778_v25  ;;  %v850_v35 = vsel %vm302_vm2, %v808_v26, 0.0  ;;  %v11488_v43 = vpop.eup %11487 }
 0x327   :  { %851 = vadd.xlane.f32.xlu1 %v850_v35  ;;  %v11490_v5 = vpop.eup %11489  ;;  %v911_v6 = vmul.f32 %v11488_v43, %v12582_v1 }
 0x328   :  { %v810_v37 = vmul.f32 %v12730_v29, %v12730_v29  ;;  %v11492_v14 = vpop.eup %11491  ;;  %v913_v2 = vmul.f32 %v11490_v5, %v12588_v3 }
 0x32a   :  { %v856_v49 = vsel %vm302_vm2, %v810_v37, 0.0  ;;  %v914_v37 = vmul.f32 %v11492_v14, %v12600_v16 }
 0x32b   :  { %857 = vadd.xlane.f32.xlu0 %v856_v49 }
 0x333   :  { %v928_v8 = vpop.permute.xlu0 %927 }
 0x334   :  { %v933_v15 = vmul.f32 %v928_v8, %v907_v4  ;;  %v934_v17 = vmul.f32 %v928_v8, %v908_v28  ;;  %v935_v18 = vmul.f32 %v928_v8, %v909_v34  ;;  %v936_v45 = vmul.f32 %v928_v8, %v910_v63 }
 0x335   :  { %v937_v25 = vmul.f32 %v928_v8, %v911_v6  ;;  %v938_v26 = vmul.f32 %v928_v8, %v912_v13  ;;  %v939_v31 = vmul.f32 %v928_v8, %v913_v2  ;;  %v940_v53 = vmul.f32 %v928_v8, %v914_v37  ;;  %v12765_v13 = vld [vmem:[%s16855_s14 + $0x7] ss:$0 sm:$0xff] }
 0x336   :  { %v949_v39 = vadd.f32 %v933_v15, %v12682_v33  ;;  %v950_v50 = vadd.f32 %v934_v17, %v12682_v33  ;;  %v951_v42 = vadd.f32 %v935_v18, %v12682_v33  ;;  %v952_v51 = vadd.f32 %v936_v45, %v12682_v33 }
 0x337   :  { %v953_v35 = vadd.f32 %v937_v25, %v12682_v33  ;;  %v954_v1 = vadd.f32 %v938_v26, %v12682_v33  ;;  %v955_v58 = vadd.f32 %v939_v31, %v12682_v33  ;;  %v956_v43 = vadd.f32 %v940_v53, %v12682_v33 }
 0x338   :  { %v970_v47 = vpack.c.bf16 %v950_v50, %v949_v39  ;;  %v971_v49 = vpack.c.bf16 %v952_v51, %v951_v42  ;;  %v656_v15 = vcombine.high %v12675_v21, %v12675_v21 }
 0x339   :  { %v972_v56 = vpack.c.bf16 %v954_v1, %v953_v35  ;;  %v973_v34 = vpack.c.bf16 %v956_v43, %v955_v58 }
 0x33a   :  { %10355 = vmatprep.mubr.msk.bf16.mxu0 %vm302_vm2, %v970_v47  ;;  %v670_v39 = vrot.slane %v656_v15, %v12473_v30 }
 0x33b   :  { %10356 = vmatmul.mubr.msk.bf16.vlgmr.msra.gmra.mxu0 %vm302_vm2, %v971_v49 }
 0x33c   :  { %10359 = vmatprep.mubr.msk.bf16.mxu0 %vm302_vm2, %v972_v56  ;;  %v12779_v35 = vrot.slane %v670_v39, %v12344_v11 }
 0x33e   :  { %16961 = vst [vmem:[#allocation24_spill] sm:$0xff] %v12779_v35  ;;  %v924_v31 = vadd.f32 1.0, %v12779_v35 }
 0x343   :  { %10360 = vmatmul.mubr.msk.bf16.gmra.mxu0 %vm302_vm2, %v973_v34 }
 0x369   :  { %v758_v3 = vpop.xlane.xlu0 %757 }
 0x36a   :  { %v777_v16 = vmul.f32 0.03125, %v758_v3 }
 0x36c   :  { %v12757_v63 = vsub.f32 %v12690_v32, %v777_v16 }
 0x36e   :  { %v809_v4 = vmul.f32 %v12757_v63, %v12757_v63 }
 0x370   :  { %v853_v28 = vsel %vm302_vm2, %v809_v4, 0.0 }
 0x371   :  { %854 = vadd.xlane.f32.xlu1 %v853_v28 }
 0x39c   :  { %v837_v58 = vpop.xlane.xlu1 %836 }
 0x39d   :  { %v867_v4 = vmul.f32 0.03125, %v837_v58 }
 0x3a0   :  { %v840_v43 = vpop.xlane.xlu1 %839 }
 0x3a1   :  { %v868_v28 = vmul.f32 0.03125, %v840_v43 }
 0x3a4   :  { %v843_v34 = vpop.xlane.xlu1 %842 }
 0x3a8   :  { %v846_v3 = vpop.xlane.xlu1 %845 }
 0x3ac   :  { %v849_v16 = vpop.xlane.xlu1 %848 }
 0x3ad   :  { %v871_v15 = vmul.f32 0.03125, %v849_v16 }
 0x3fb   :  { %v10357_v5 = vpop.f32.mrf.mxu0 }
 0x3fc   :  { %v1063_v53 = vadd.f32 %v10357_v5, %v12765_v13  ;;  %v869_v5 = vmul.f32 0.03125, %v843_v34 }
 0x3fd   :  { %v1054_v8 = vpop.f32.mrf.mxu0 }
 0x3fe   :  { %v1055_v17 = vadd.f32 %v12765_v13, %v1054_v8  ;;  %v852_v8 = vpop.xlane.xlu1 %851 }
 0x3ff   :  { %v10358_v6 = vpop.f32.mrf.mxu0 }
 0x400   :  { %v1066_v47 = vadd.f32 %v10358_v6, %v12765_v13  ;;  %v870_v6 = vmul.f32 0.03125, %v846_v3 }
 0x401   :  { %v1057_v14 = vpop.f32.mrf.mxu0 }
 0x402   :  { %v1058_v18 = vadd.f32 %v12765_v13, %v1057_v14  ;;  %v12797_v56 = vpack.c.bf16 %v1066_v47, %v1063_v53  ;;  %v883_v14 = vadd.f32 1e-06, %v867_v4  ;;  %v855_v39 = vpop.xlane.xlu1 %854 }
 0x403   :  { %v10361_v45 = vpop.f32.mrf.mxu0 }
 0x404   :  { %v12771_v25 = vpack.c.bf16 %v1058_v18, %v1055_v17  ;;  %v1079_v42 = vadd.f32 %v10361_v45, %v12765_v13  ;;  %v884_v17 = vadd.f32 1e-06, %v868_v28  ;;  %v872_v18 = vmul.f32 0.03125, %v852_v8  ;;  %v858_v45 = vpop.xlane.xlu0 %857 }
 0x405   :  { %v1070_v26 = vpop.f32.mrf.mxu0  ;;  %11493 = vrsqrt.f32 %v883_v14 }
 0x406   :  { %10379 = vmatprep.mubr.msk.bf16.mxu1 %vm1133_vm4, %v12771_v25  ;;  %v1071_v37 = vadd.f32 %v12765_v13, %v1070_v26  ;;  %v885_v26 = vadd.f32 1e-06, %v869_v5  ;;  %11495 = vrsqrt.f32 %v884_v17 }
 0x407   :  { %v10362_v50 = vpop.f32.mrf.mxu0 }
 0x408   :  { %v1082_v51 = vadd.f32 %v10362_v50, %v12765_v13  ;;  %v886_v50 = vadd.f32 1e-06, %v870_v6  ;;  %11497 = vrsqrt.f32 %v885_v26 }
 0x409   :  { %v1073_v21 = vpop.f32.mrf.mxu0 }
 0x40a   :  { %v12781_v1 = vpack.c.bf16 %v1082_v51, %v1079_v42  ;;  %v1074_v2 = vadd.f32 %v12765_v13, %v1073_v21  ;;  %v887_v42 = vadd.f32 1e-06, %v871_v15  ;;  %v874_v51 = vmul.f32 0.03125, %v858_v45 }
 0x40b   :  { %v888_v21 = vadd.f32 1e-06, %v872_v18  ;;  %11499 = vrsqrt.f32 %v886_v50 }
 0x40c   :  { %1419 = vrot.lane.b32.xlu0 %v12781_v1, %s12220_s2  ;;  %1131 = vrot.lane.b32.xlu1 %v12781_v1, %s12219_s16  ;;  %v12790_v49 = vpack.c.bf16 %v1074_v2, %v1071_v37  ;;  %v873_v2 = vmul.f32 0.03125, %v855_v39  ;;  %11501 = vrsqrt.f32 %v887_v42  ;;  %v890_v37 = vadd.f32 1e-06, %v874_v51 }
 0x40d   :  { %11503 = vrsqrt.f32 %v888_v21 }
 0x40e   :  { %v889_v47 = vadd.f32 1e-06, %v873_v2  ;;  %11505 = vrsqrt.f32 %v890_v37 }
 0x410   :  { %929 = vrot.lane.b32.xlu0 %v924_v31, %s12219_s16  ;;  %1129 = vrot.lane.b32.xlu1 %v12790_v49, %s12219_s16  ;;  %11507 = vrsqrt.f32 %v889_v47 }
 0x412   :  { %v11494_v31 = vpop.eup %11493 }
 0x413   :  { %v11496_v53 = vpop.eup %11495  ;;  %v915_v8 = vmul.f32 %v11494_v31, %v12695_v55 }
 0x414   :  { %1415 = vrot.lane.b32.xlu0 %v12797_v56, %s12220_s2  ;;  %1417 = vrot.lane.b32.xlu1 %v12790_v49, %s12220_s2  ;;  %v916_v6 = vmul.f32 %v11496_v53, %v12700_v62 }
 0x415   :  { %v11498_v58 = vpop.eup %11497 }
 0x416   :  { %v917_v14 = vmul.f32 %v11498_v58, %v12706_v7 }
 0x418   :  { %1413 = vrot.lane.b32.xlu0 %v12771_v25, %s12220_s2  ;;  %1127 = vrot.lane.b32.xlu1 %v12797_v56, %s12219_s16  ;;  %v11500_v43 = vpop.eup %11499 }
 0x419   :  { %v11502_v34 = vpop.eup %11501  ;;  %v918_v45 = vmul.f32 %v11500_v43, %v12712_v38 }
 0x41a   :  { %v11504_v4 = vpop.eup %11503  ;;  %v919_v26 = vmul.f32 %v11502_v34, %v12718_v44 }
 0x41b   :  { %v11506_v15 = vpop.eup %11505  ;;  %v920_v39 = vmul.f32 %v11504_v4, %v12724_v59 }
 0x41c   :  { %1705 = vrot.lane.b32.xlu0 %v12781_v1, %s12221_s19  ;;  %1125 = vrot.lane.b32.xlu1 %v12771_v25, %s12219_s16  ;;  %v922_v38 = vmul.f32 %v11506_v15, %v12730_v29 }
 0x41d   :  { %v11508_v50 = vpop.eup %11507 }
 0x41e   :  { %v921_v43 = vmul.f32 %v11508_v50, %v12757_v63 }
 0x420   :  { %1703 = vrot.lane.b32.xlu0 %v12790_v49, %s12221_s19  ;;  %1405 = vrot.lane.b32.xlu1 %v12771_v25, %s12222_s20 }
 0x424   :  { %1409 = vrot.lane.b32.xlu0 %v12790_v49, %s12222_s20  ;;  %1407 = vrot.lane.b32.xlu1 %v12797_v56, %s12222_s20 }
 0x428   :  { %1699 = vrot.lane.b32.xlu0 %v12771_v25, %s12221_s19  ;;  %1701 = vrot.lane.b32.xlu1 %v12797_v56, %s12221_s19 }
 0x42c   :  { %1693 = vrot.lane.b32.xlu0 %v12797_v56, %s12223_s21  ;;  %1411 = vrot.lane.b32.xlu1 %v12781_v1, %s12222_s20 }
 0x430   :  { %1697 = vrot.lane.b32.xlu0 %v12781_v1, %s12223_s21  ;;  %1691 = vrot.lane.b32.xlu1 %v12771_v25, %s12223_s21 }
 0x434   :  { %1282 = vrot.lane.b32.xlu0 %v12781_v1, %s12224_s22  ;;  %1695 = vrot.lane.b32.xlu1 %v12790_v49, %s12223_s21 }
 0x438   :  { %1278 = vrot.lane.b32.xlu0 %v12797_v56, %s12224_s22  ;;  %1568 = vrot.lane.b32.xlu1 %v12781_v1, %s12225_s23 }
 0x43c   :  { %1276 = vrot.lane.b32.xlu0 %v12771_v25, %s12224_s22  ;;  %1562 = vrot.lane.b32.xlu1 %v12771_v25, %s12225_s23 }
 0x440   :  { %1564 = vrot.lane.b32.xlu0 %v12797_v56, %s12225_s23  ;;  %1854 = vrot.lane.b32.xlu1 %v12781_v1, %s12226_s24 }
 0x444   :  { %1852 = vrot.lane.b32.xlu0 %v12790_v49, %s12226_s24  ;;  %1280 = vrot.lane.b32.xlu1 %v12790_v49, %s12224_s22 }
 0x448   :  { %1566 = vrot.lane.b32.xlu1 %v12790_v49, %s12225_s23 }
 0x47e   :  { %v1132_v3 = vpop.permute.xlu1 %1131  ;;  %v1420_v16 = vpop.permute.xlu0 %1419 }
 0x47f   :  { %11083 = vmatprep.subr.msk.bf16.mxu1 %vm1133_vm4, %v1132_v3  ;;  %11087 = vmatprep.subr.msk.bf16.mxu0 %vm1133_vm4, %v1420_v16  ;;  %v1156_v28 = vsel %vm1133_vm4, %v1132_v3, 0  ;;  %v1443_v5 = vsel %vm1133_vm4, %v1420_v16, 0 }
 0x480   :  { %10372 = vmatpush3.bf16.xpose.msra.mxu1 %v1156_v28  ;;  %10404 = vmatpush3.bf16.xpose.msra.mxu0 %v1443_v5 }
 0x482   :  { %v1130_v17 = vpop.permute.xlu1 %1129  ;;  %v930_v18 = vpop.permute.xlu0 %929 }
 0x483   :  { %11084 = vmatprep.subr.msk.bf16.mxu1 %vm1133_vm4, %v1130_v17  ;;  %v941_v42 = vmul.f32 %v930_v18, %v915_v8  ;;  %v942_v51 = vmul.f32 %v930_v18, %v916_v6  ;;  %v943_v21 = vmul.f32 %v930_v18, %v917_v14  ;;  %v944_v55 = vmul.f32 %v930_v18, %v918_v45 }
 0x484   :  { %v945_v2 = vmul.f32 %v930_v18, %v919_v26  ;;  %v946_v62 = vmul.f32 %v930_v18, %v920_v39  ;;  %v1153_v34 = vsel %vm1133_vm4, %v1130_v17, 0  ;;  %v947_v4 = vmul.f32 %v930_v18, %v921_v43 }
 0x485   :  { %v957_v7 = vadd.f32 %v941_v42, %v12779_v35  ;;  %v958_v37 = vadd.f32 %v942_v51, %v12779_v35  ;;  %v959_v47 = vadd.f32 %v943_v21, %v12779_v35  ;;  %v960_v59 = vadd.f32 %v944_v55, %v12779_v35 }
 0x486   :  { %v1418_v44 = vpop.permute.xlu1 %1417  ;;  %v1416_v31 = vpop.permute.xlu0 %1415  ;;  %v961_v53 = vadd.f32 %v945_v2, %v12779_v35  ;;  %v962_v58 = vadd.f32 %v946_v62, %v12779_v35  ;;  %v948_v28 = vmul.f32 %v930_v18, %v922_v38  ;;  %v963_v6 = vadd.f32 %v947_v4, %v12779_v35 }
 0x487   :  { %11088 = vmatprep.subr.msk.bf16.mxu0 %vm1133_vm4, %v1418_v44  ;;  %v1440_v3 = vsel %vm1133_vm4, %v1418_v44, 0  ;;  %v974_v16 = vpack.c.bf16 %v958_v37, %v957_v7  ;;  %v975_v29 = vpack.c.bf16 %v960_v59, %v959_v47  ;;  %v1437_v45 = vsel %vm1133_vm4, %v1416_v31, 0 }
 0x488   :  { %10374 = vmatpush3.bf16.xpose.msra.mxu1 %v1153_v34  ;;  %10406 = vmatpush3.bf16.xpose.msra.mxu0 %v1440_v3  ;;  %v976_v5 = vpack.c.bf16 %v962_v58, %v961_v53  ;;  %v964_v14 = vadd.f32 %v948_v28, %v12779_v35 }
 0x489   :  { %10363 = vmatprep.mubr.msk.bf16.mxu0 %vm302_vm2, %v974_v16  ;;  %11089 = vmatprep.subr.msk.bf16.mxu0 %vm1133_vm4, %v1416_v31 }
 0x48a   :  { %v1128_v8 = vpop.permute.xlu1 %1127  ;;  %10364 = vmatmul.mubr.msk.bf16.gmra.mxu0 %vm302_vm2, %v975_v29  ;;  %v1414_v63 = vpop.permute.xlu0 %1413  ;;  %v977_v26 = vpack.c.bf16 %v964_v14, %v963_v6 }
 0x48b   :  { %10367 = vmatprep.mubr.msk.bf16.mxu0 %vm302_vm2, %v976_v5  ;;  %11085 = vmatprep.subr.msk.bf16.mxu1 %vm1133_vm4, %v1128_v8  ;;  %v1150_v18 = vsel %vm1133_vm4, %v1128_v8, 0  ;;  %v1434_v55 = vsel %vm1133_vm4, %v1414_v63, 0 }
 0x48e   :  { %v1126_v15 = vpop.permute.xlu1 %1125  ;;  %v1706_v17 = vpop.permute.xlu0 %1705 }
 0x48f   :  { %v1147_v21 = vsel %vm1133_vm4, %v1126_v15, 0  ;;  %v1729_v47 = vsel %vm1133_vm4, %v1706_v17, 0 }
 0x490   :  { %10376 = vmatpush3.bf16.xpose.msra.mxu1 %v1150_v18  ;;  %10408 = vmatpush3.bf16.xpose.msra.mxu0 %v1437_v45 }
 0x491   :  { %11086 = vmatprep.subr.msk.bf16.mxu1 %vm1133_vm4, %v1126_v15  ;;  %11090 = vmatprep.subr.msk.bf16.mxu0 %vm1133_vm4, %v1414_v63 }
 0x492   :  { %v1406_v39 = vpop.permute.xlu1 %1405  ;;  %10368 = vmatmul.mubr.msk.bf16.gmra.mxu0 %vm302_vm2, %v977_v26  ;;  %v1704_v50 = vpop.permute.xlu0 %1703 }
 0x493   :  { %10411 = vmatprep.mubr.msk.bf16.mxu0 %vm1133_vm4, %v1406_v39  ;;  %v1726_v53 = vsel %vm1133_vm4, %v1704_v50, 0 }
 0x496   :  { %v1408_v42 = vpop.permute.xlu1 %1407  ;;  %v1410_v51 = vpop.permute.xlu0 %1409 }
 0x498   :  { %10378 = vmatpush3.bf16.xpose.msra.mxu1 %v1147_v21  ;;  %10410 = vmatpush3.bf16.xpose.msra.mxu0 %v1434_v55 }
 0x499   :  { %11091 = vmatprep.subr.msk.bf16.mxu0 %vm1133_vm4, %v1706_v17 }
 0x49a   :  { %v1702_v2 = vpop.permute.xlu1 %1701  ;;  %v1700_v62 = vpop.permute.xlu0 %1699 }
 0x49b   :  { %v1723_v34 = vsel %vm1133_vm4, %v1702_v2, 0  ;;  %v1720_v4 = vsel %vm1133_vm4, %v1700_v62, 0 }
 0x49e   :  { %v1412_v7 = vpop.permute.xlu1 %1411  ;;  %v1694_v37 = vpop.permute.xlu0 %1693 }
 0x49f   :  { %10380 = vmatmul.mubr.msk.bf16.vlgmr.msra.gmra.mxu1 %vm1133_vm4, %v12797_v56  ;;  %10412 = vmatmul.mubr.msk.bf16.vlgmr.msra.gmra.mxu0 %vm1133_vm4, %v1408_v42 }
 0x4a0   :  { %10383 = vmatprep.mubr.msk.bf16.mxu1 %vm1133_vm4, %v12790_v49  ;;  %10415 = vmatprep.mubr.msk.bf16.mxu0 %vm1133_vm4, %v1410_v51 }
 0x4a1   :  { %10436 = vmatpush3.bf16.xpose.msra.mxu0 %v1729_v47 }
 0x4a2   :  { %11092 = vmatprep.subr.msk.bf16.mxu0 %vm1133_vm4, %v1704_v50  ;;  %v1692_v38 = vpop.permute.xlu1 %1691  ;;  %v1698_v44 = vpop.permute.xlu0 %1697 }
 0x4a6   :  { %v1696_v31 = vpop.permute.xlu1 %1695  ;;  %v1283_v59 = vpop.permute.xlu0 %1282 }
 0x4a7   :  { %10384 = vmatmul.mubr.msk.bf16.gmra.mxu1 %vm1133_vm4, %v12781_v1  ;;  %10387 = vmatprep.subr.bf16.mxu1 %v1283_v59 }
 0x4a8   :  { %10416 = vmatmul.mubr.msk.bf16.gmra.mxu0 %vm1133_vm4, %v1412_v7  ;;  %10388 = vmatpush3.bf16.msra.mxu1 %v1283_v59 }
 0x4a9   :  { %10438 = vmatpush3.bf16.xpose.msra.mxu0 %v1726_v53  ;;  %10443 = vmatprep.mubr.msk.bf16.mxu0 %vm1133_vm4, %v1692_v38 }
 0x4aa   :  { %11093 = vmatprep.subr.msk.bf16.mxu0 %vm1133_vm4, %v1702_v2  ;;  %v12905_v58 = vpop.permute.xlu1 %1568  ;;  %v1279_v16 = vpop.permute.xlu0 %1278 }
 0x4ae   :  { %v12907_v43 = vpop.permute.xlu1 %1562  ;;  %v1277_v28 = vpop.permute.xlu0 %1276 }
 0x4b1   :  { %10440 = vmatpush3.bf16.xpose.msra.mxu0 %v1723_v34 }
 0x4b2   :  { %11094 = vmatprep.subr.msk.bf16.mxu0 %vm1133_vm4, %v1700_v62  ;;  %v12911_v3 = vpop.permute.xlu1 %1854 }
 0x4b6   :  { %v1281_v29 = vpop.permute.xlu1 %1280 }
 0x4b7   :  { %10389 = vmatprep.subr.bf16.mxu1 %v1281_v29 }
 0x4b8   :  { %10390 = vmatpush3.bf16.msra.mxu1 %v1281_v29 }
 0x4b9   :  { %10442 = vmatpush3.bf16.xpose.msra.mxu0 %v1720_v4  ;;  %10391 = vmatprep.subr.bf16.mxu1 %v1279_v16 }
 0x4bc   :  { %10392 = vmatpush3.bf16.msra.mxu1 %v1279_v16 }
 0x4bd   :  { %10393 = vmatprep.subr.bf16.mxu1 %v1277_v28 }
 0x4c0   :  { %10444 = vmatmul.mubr.msk.bf16.vlgmr.msra.gmra.mxu0 %vm1133_vm4, %v1694_v37  ;;  %10394 = vmatpush3.bf16.msra.mxu1 %v1277_v28 }
 0x4c1   :  { %10447 = vmatprep.mubr.msk.bf16.mxu0 %vm1133_vm4, %v1696_v31  ;;  %10419 = vmatprep.subr.bf16.mxu1 %v12905_v58 }
 0x4c8   :  { %10448 = vmatmul.mubr.msk.bf16.gmra.mxu0 %vm1133_vm4, %v1698_v44 }
 0x54a   :  { %v10365_v5 = vpop.f32.mrf.mxu0 }
 0x54b   :  { %v1095_v6 = vadd.f32 %v10365_v5, %v12765_v13 }
 0x54c   :  { %v12918_v8 = vpop.f32.mrf.mxu0 }
 0x54e   :  { %v10366_v63 = vpop.f32.mrf.mxu0 }
 0x54f   :  { %v1098_v14 = vadd.f32 %v10366_v63, %v12765_v13 }
 0x550   :  { %v12922_v15 = vpop.f32.mrf.mxu0 }
 0x551   :  { %v12924_v17 = vpack.c.bf16 %v1098_v14, %v1095_v6 }
 0x552   :  { %v10369_v18 = vpop.f32.mrf.mxu0 }
 0x553   :  { %v1111_v39 = vadd.f32 %v10369_v18, %v12765_v13 }
 0x554   :  { %v12926_v45 = vpop.f32.mrf.mxu0 }
 0x556   :  { %v10370_v26 = vpop.f32.mrf.mxu0 }
 0x557   :  { %v1114_v50 = vadd.f32 %v10370_v26, %v12765_v13 }
 0x558   :  { %v12932_v51 = vpop.f32.mrf.mxu0 }
 0x559   :  { %v12930_v42 = vpack.c.bf16 %v1114_v50, %v1111_v39 }
 0x55f   :  { %v12934_v21 = vpop.f32.mrf.mxu1  ;;  %v12936_v55 = vpop.f32.mrf.mxu0 }
 0x560   :  { %v1230_v2 = vsel %vm1223_vm5, %v12934_v21, -inf  ;;  %v1516_v62 = vsel %vm1223_vm5, %v12936_v55, -inf }
 0x561   :  { %1231 = vmax.xlane.f32.xlu0 %v1230_v2  ;;  %v12942_v7 = vpop.f32.mrf.mxu1  ;;  %1517 = vmax.xlane.f32.xlu1 %v1516_v62  ;;  %v12944_v13 = vpop.f32.mrf.mxu0 }
 0x562   :  { %v1224_v38 = vsel %vm1223_vm5, %v12942_v7, -inf  ;;  %v1510_v34 = vsel %vm1223_vm5, %v12944_v13, -inf }
 0x563   :  { %v12946_v37 = vpop.f32.mrf.mxu1  ;;  %v12948_v47 = vpop.f32.mrf.mxu0 }
 0x564   :  { %v1233_v4 = vsel %vm1223_vm5, %v12946_v37, -inf  ;;  %v1519_v63 = vsel %vm1223_vm5, %v12948_v47, -inf }
 0x565   :  { %v12952_v44 = vpop.f32.mrf.mxu1  ;;  %1225 = vmax.xlane.f32.xlu1 %v1224_v38  ;;  %v12956_v59 = vpop.f32.mrf.mxu0 }
 0x566   :  { %v1227_v31 = vsel %vm1223_vm5, %v12952_v44, -inf  ;;  %v1513_v14 = vsel %vm1223_vm5, %v12956_v59, -inf }
 0x567   :  { %1228 = vmax.xlane.f32.xlu0 %v1227_v31  ;;  %v12958_v53 = vpop.f32.mrf.mxu1 }
 0x568   :  { %v1242_v16 = vsel %vm1223_vm5, %v12958_v53, -inf  ;;  %v12964_v29 = vpop.f32.mrf.mxu0 }
 0x569   :  { %1511 = vmax.xlane.f32.xlu1 %v1510_v34  ;;  %v1528_v28 = vsel %vm1223_vm5, %v12964_v29, -inf  ;;  %v12970_v5 = vpop.f32.mrf.mxu1 }
 0x56a   :  { %v1236_v6 = vsel %vm1223_vm5, %v12970_v5, -inf  ;;  %v12982_v18 = vpop.f32.mrf.mxu0 }
 0x56b   :  { %1243 = vmax.xlane.f32.xlu0 %v1242_v16  ;;  %v12992_v62 = vpop.f32.mrf.mxu1  ;;  %v1522_v38 = vsel %vm1223_vm5, %v12982_v18, -inf }
 0x56c   :  { %v12984_v26 = vpop.f32.mrf.mxu0  ;;  %v1245_v34 = vsel %vm1223_vm5, %v12992_v62, -inf }
 0x56d   :  { %1234 = vmax.xlane.f32.xlu1 %v1233_v4  ;;  %v13000_v16 = vpop.f32.mrf.mxu1  ;;  %v1531_v4 = vsel %vm1223_vm5, %v12984_v26, -inf }
 0x56e   :  { %v12986_v39 = vpop.f32.mrf.mxu0 }
 0x56f   :  { %1529 = vmax.xlane.f32.xlu0 %v1528_v28 }
 0x571   :  { %1520 = vmax.xlane.f32.xlu1 %v1519_v63  ;;  %v1239_v63 = vsel %vm1223_vm5, %v13000_v16, -inf }
 0x573   :  { %1237 = vmax.xlane.f32.xlu0 %v1236_v6 }
 0x575   :  { %1514 = vmax.xlane.f32.xlu1 %v1513_v14 }
 0x580   :  { %v12988_v50 = vpop.f32.mrf.mxu0 }
 0x581   :  { %v1802_v6 = vsel %vm1223_vm5, %v12988_v50, -inf }
 0x582   :  { %v12990_v2 = vpop.f32.mrf.mxu0 }
 0x584   :  { %v12996_v31 = vpop.f32.mrf.mxu0 }
 0x586   :  { %1848 = vrot.lane.b32.xlu1 %v12771_v25, %s12226_s24  ;;  %v13004_v28 = vpop.f32.mrf.mxu0 }
 0x588   :  { %v13010_v14 = vpop.f32.mrf.mxu0 }
 0x589   :  { %1850 = vrot.lane.b32.xlu0 %v12797_v56, %s12226_s24 }
 0x58a   :  { %v13016_v41 = vpop.f32.mrf.mxu0 }
 0x58c   :  { %v13022_v24 = vpop.f32.mrf.mxu0 }
 0x58d   :  { %v1817_v60 = vsel %vm1223_vm5, %v13022_v24, -inf }
 0x5a8   :  { %1523 = vmax.xlane.f32.xlu0 %v1522_v38  ;;  %v1525_v38 = vsel %vm1223_vm5, %v12986_v39, -inf }
 0x5aa   :  { %1246 = vmax.xlane.f32.xlu1 %v1245_v34  ;;  %v1796_v34 = vsel %vm1223_vm5, %v12990_v2, -inf }
 0x5ac   :  { %1532 = vmax.xlane.f32.xlu0 %v1531_v4  ;;  %v1799_v4 = vsel %vm1223_vm5, %v13004_v28, -inf }
 0x5ae   :  { %1240 = vmax.xlane.f32.xlu1 %v1239_v63  ;;  %v1805_v63 = vsel %vm1223_vm5, %v12996_v31, -inf }
 0x5b0   :  { %1803 = vmax.xlane.f32.xlu0 %v1802_v6  ;;  %v1814_v6 = vsel %vm1223_vm5, %v13010_v14, -inf }
 0x5b2   :  { %1526 = vmax.xlane.f32.xlu1 %v1525_v38  ;;  %v13026_v38 = vpop.f32.mrf.mxu0 }
 0x5b3   :  { %v1811_v12 = vsel %vm1223_vm5, %v13026_v38, -inf }
 0x5b4   :  { %1797 = vmax.xlane.f32.xlu0 %v1796_v34  ;;  %v1565_v34 = vpop.permute.xlu0 %1564 }
 0x5b6   :  { %1800 = vmax.xlane.f32.xlu1 %v1799_v4  ;;  %v1567_v4 = vpop.permute.xlu1 %1566 }
 0x5b8   :  { %1806 = vmax.xlane.f32.xlu0 %v1805_v63 }
 0x5bc   :  { %1815 = vmax.xlane.f32.xlu0 %v1814_v6  ;;  %v1808_v6 = vsel %vm1223_vm5, %v13016_v41, -inf }
 0x5c0   :  { %1812 = vmax.xlane.f32.xlu0 %v1811_v12  ;;  %v13042_v12 = vpop.permute.xlu0 %1852 }
 0x5c7   :  { %1991 = vrot.lane.b32.xlu1 %v12781_v1, %s12227_s25 }
 0x5d6   :  { %1989 = vrot.lane.b32.xlu0 %v12790_v49, %s12227_s25 }
 0x5da   :  { %1985 = vrot.lane.b32.xlu0 %v12771_v25, %s12227_s25 }
 0x5de   :  { %1979 = vrot.lane.b32.xlu0 %v12797_v56, %s12228_s26 }
 0x5e2   :  { %1983 = vrot.lane.b32.xlu0 %v12781_v1, %s12228_s26 }
 0x5e6   :  { %2140 = vrot.lane.b32.xlu0 %v12781_v1, %s12229_s5 }
 0x5ea   :  { %v13044_v63 = vpop.xlane.xlu1 %1517  ;;  %v1232_v27 = vpop.xlane.xlu0 %1231 }
 0x5eb   :  { %1809 = vmax.xlane.f32.xlu1 %v1808_v6  ;;  %v1250_v36 = vsub.f32 %v12934_v21, %v1232_v27 }
 0x5ed   :  { %v1260_v35 = vmul.f32 1.442695, %v1250_v36 }
 0x5ee   :  { %v1226_v0 = vpop.xlane.xlu1 %1225 }
 0x5ef   :  { %v1248_v32 = vsub.f32 %v12942_v7, %v1226_v0  ;;  %1818 = vmax.xlane.f32.xlu1 %v1817_v60 }
 0x5f0   :  { %v1229_v54 = vpop.xlane.xlu0 %1228 }
 0x5f1   :  { %v1256_v46 = vmul.f32 1.442695, %v1248_v32  ;;  %v1249_v1 = vsub.f32 %v12952_v44, %v1229_v54 }
 0x5f2   :  { %v1512_v40 = vpop.xlane.xlu1 %1511 }
 0x5f3   :  { %v1258_v22 = vmul.f32 1.442695, %v1249_v1  ;;  %11509 = vpow2.f32 %v1256_v46 }
 0x5f4   :  { %v1244_v46 = vpop.xlane.xlu0 %1243 }
 0x5f5   :  { %11511 = vpow2.f32 %v1258_v22 }
 0x5f6   :  { %v1235_v6 = vpop.xlane.xlu1 %1234  ;;  %11513 = vpow2.f32 %v1260_v35 }
 0x5f7   :  { %v1251_v11 = vsub.f32 %v12946_v37, %v1235_v6  ;;  %v1534_v6 = vsub.f32 %v12944_v13, %v1512_v40  ;;  %v1536_v40 = vsub.f32 %v12936_v55, %v13044_v63 }
 0x5f8   :  { %v1530_v54 = vpop.xlane.xlu0 %1529 }
 0x5f9   :  { %v1262_v23 = vmul.f32 1.442695, %v1251_v11  ;;  %v1540_v55 = vsub.f32 %v12964_v29, %v1530_v54 }
 0x5fb   :  { %11515 = vpow2.f32 %v1262_v23  ;;  %v1521_v23 = vpop.xlane.xlu1 %1520 }
 0x5fc   :  { %v1238_v32 = vpop.xlane.xlu0 %1237 }
 0x5ff   :  { %v1515_v35 = vpop.xlane.xlu1 %1514 }
 0x600   :  { %1987 = vrot.lane.b32.xlu1 %v12797_v56, %s12227_s25  ;;  %v13056_v60 = vpop.eup %11509  ;;  %v13080_v21 = vpop.permute.xlu0 %1850  ;;  %v1535_v37 = vsub.f32 %v12956_v59, %v1515_v35  ;;  %v1537_v35 = vsub.f32 %v12948_v47, %v1521_v23 }
 0x602   :  { %v13058_v0 = vpop.eup %11511 }
 0x603   :  { %v1272_v27 = vpack.c.bf16 %v13058_v0, %v13056_v60  ;;  %v13065_v22 = vpop.eup %11513 }
 0x604   :  { %1977 = vrot.lane.b32.xlu1 %v12771_v25, %s12228_s26 }
 0x605   :  { %10395 = vmatprep.mubr.msk.bf16.mxu1 %vm1223_vm5, %v1272_v27  ;;  %v1544_v27 = vmul.f32 1.442695, %v1535_v37 }
 0x608   :  { %v13067_v11 = vpop.eup %11515  ;;  %1981 = vrot.lane.b32.xlu1 %v12790_v49, %s12228_s26 }
 0x609   :  { %v1273_v36 = vpack.c.bf16 %v13067_v11, %v13065_v22 }
 0x60b   :  { %10396 = vmatmul.mubr.msk.bf16.vlgmr.msra.gmra.mxu1 %vm1223_vm5, %v1273_v36 }
 0x60c   :  { %10420 = vmatpush3.bf16.msra.mxu1 %v12905_v58  ;;  %2138 = vrot.lane.b32.xlu1 %v12790_v49, %s12229_s5  ;;  %v13082_v58 = vpop.permute.xlu1 %1848  ;;  %v1252_v49 = vsub.f32 %v12970_v5, %v1238_v32  ;;  %v1542_v32 = vmul.f32 1.442695, %v1534_v6 }
 0x60d   :  { %10421 = vmatprep.subr.bf16.mxu1 %v1567_v4 }
 0x610   :  { %10422 = vmatpush3.bf16.msra.mxu1 %v1567_v4  ;;  %v1264_v4 = vmul.f32 1.442695, %v1252_v49  ;;  %v1546_v49 = vmul.f32 1.442695, %v1536_v40 }
 0x611   :  { %10423 = vmatprep.subr.bf16.mxu1 %v1565_v34 }
 0x612   :  { %11517 = vpow2.f32 %v1264_v4  ;;  %v1554_v4 = vmul.f32 1.442695, %v1540_v55 }
 0x613   :  { %11519 = vpow2.f32 %v1544_v27 }
 0x614   :  { %10424 = vmatpush3.bf16.msra.mxu1 %v1565_v34 }
 0x615   :  { %10425 = vmatprep.subr.bf16.mxu1 %v12907_v43 }
 0x618   :  { %10426 = vmatpush3.bf16.msra.mxu1 %v12907_v43  ;;  %v1254_v43 = vsub.f32 %v12958_v53, %v1244_v46 }
 0x619   :  { %10451 = vmatprep.subr.bf16.mxu1 %v12911_v3 }
 0x61a   :  { %v1268_v19 = vmul.f32 1.442695, %v1254_v43 }
 0x61f   :  { %v13100_v63 = vpop.eup %11517 }
 0x620   :  { %v13103_v23 = vpop.eup %11519 }
 0x631   :  { %v1524_v7 = vpop.xlane.xlu0 %1523 }
 0x633   :  { %v1247_v44 = vpop.xlane.xlu1 %1246 }
 0x634   :  { %v1255_v34 = vsub.f32 %v12992_v62, %v1247_v44 }
 0x635   :  { %v1533_v1 = vpop.xlane.xlu0 %1532 }
 0x636   :  { %v1270_v36 = vmul.f32 1.442695, %v1255_v34  ;;  %v1541_v47 = vsub.f32 %v12984_v26, %v1533_v1 }
 0x637   :  { %v1241_v30 = vpop.xlane.xlu1 %1240 }
 0x638   :  { %v1253_v20 = vsub.f32 %v13000_v16, %v1241_v30  ;;  %11521 = vpow2.f32 %v1270_v36  ;;  %v1538_v30 = vsub.f32 %v12982_v18, %v1524_v7  ;;  %v1548_v16 = vmul.f32 1.442695, %v1537_v35 }
 0x639   :  { %v1804_v5 = vpop.xlane.xlu0 %1803  ;;  %v1556_v7 = vmul.f32 1.442695, %v1541_v47 }
 0x63a   :  { %v1266_v59 = vmul.f32 1.442695, %v1253_v20  ;;  %v1550_v44 = vmul.f32 1.442695, %v1538_v30 }
 0x63b   :  { %v1527_v62 = vpop.xlane.xlu1 %1526 }
 0x63c   :  { %11523 = vpow2.f32 %v1266_v59  ;;  %v1539_v53 = vsub.f32 %v12986_v39, %v1527_v62 }
 0x63d   :  { %11525 = vpow2.f32 %v1268_v19  ;;  %v1798_v13 = vpop.xlane.xlu0 %1797 }
 0x63e   :  { %11527 = vpow2.f32 %v1542_v32  ;;  %v1552_v46 = vmul.f32 1.442695, %v1539_v53  ;;  %v1820_v18 = vsub.f32 %v12990_v2, %v1798_v13  ;;  %v1822_v32 = vsub.f32 %v12988_v50, %v1804_v5 }
 0x63f   :  { %v1801_v37 = vpop.xlane.xlu1 %1800  ;;  %11529 = vpow2.f32 %v1548_v16 }
 0x640   :  { %11531 = vpow2.f32 %v1552_v46  ;;  %v1821_v39 = vsub.f32 %v13004_v28, %v1801_v37  ;;  %v1828_v29 = vmul.f32 1.442695, %v1820_v18  ;;  %v1832_v53 = vmul.f32 1.442695, %v1822_v32 }
 0x641   :  { %v1807_v20 = vpop.xlane.xlu0 %1806  ;;  %11533 = vpow2.f32 %v1546_v49 }
 0x642   :  { %11535 = vpow2.f32 %v1550_v44  ;;  %v1830_v43 = vmul.f32 1.442695, %v1821_v39  ;;  %v1823_v2 = vsub.f32 %v12996_v31, %v1807_v20 }
 0x643   :  { %11537 = vpow2.f32 %v1556_v7  ;;  %v1992_v18 = vpop.permute.xlu1 %1991 }
 0x644   :  { %11539 = vpow2.f32 %v1830_v43  ;;  %v1834_v35 = vmul.f32 1.442695, %v1823_v2 }
 0x645   :  { %v13098_v19 = vpop.xlane.xlu0 %1815  ;;  %v13105_v34 = vpop.eup %11521  ;;  %11541 = vpow2.f32 %v1554_v4 }
 0x646   :  { %11543 = vpow2.f32 %v1828_v29 }
 0x647   :  { %11545 = vpow2.f32 %v1834_v35 }
 0x648   :  { %11547 = vpow2.f32 %v1832_v53 }
 0x649   :  { %v13107_v26 = vpop.eup %11523  ;;  %v13109_v28 = vpop.xlane.xlu0 %1812 }
 0x64a   :  { %v13111_v1 = vpop.eup %11525  ;;  %v1274_v54 = vpack.c.bf16 %v13107_v26, %v13100_v63  ;;  %v1825_v4 = vsub.f32 %v13026_v38, %v13109_v28 }
 0x64b   :  { %v13115_v6 = vpop.eup %11527  ;;  %v1275_v27 = vpack.c.bf16 %v13105_v34, %v13111_v1 }
 0x64c   :  { %10399 = vmatprep.mubr.msk.bf16.mxu1 %vm1223_vm5, %v1274_v54  ;;  %v1558_v36 = vpack.c.bf16 %v13103_v23, %v13115_v6  ;;  %v13126_v31 = vpop.eup %11529  ;;  %v1838_v29 = vmul.f32 1.442695, %v1825_v4 }
 0x64d   :  { %10400 = vmatmul.mubr.msk.bf16.gmra.mxu1 %vm1223_vm5, %v1275_v27  ;;  %v1990_v59 = vpop.permute.xlu0 %1989  ;;  %v13128_v62 = vpop.eup %11531 }
 0x64e   :  { %10427 = vmatprep.mubr.msk.bf16.mxu1 %vm1223_vm5, %v1558_v36  ;;  %v13130_v13 = vpop.eup %11533  ;;  %v2012_v43 = vsel %vm1133_vm4, %v1990_v59, 0  ;;  %11549 = vpow2.f32 %v1838_v29 }
 0x64f   :  { %v13132_v30 = vpop.eup %11535  ;;  %v1559_v50 = vpack.c.bf16 %v13126_v31, %v13130_v13 }
 0x650   :  { %v1560_v5 = vpack.c.bf16 %v13128_v62, %v13132_v30  ;;  %v13144_v46 = vpop.eup %11537 }
 0x651   :  { %v1986_v40 = vpop.permute.xlu0 %1985  ;;  %v13146_v49 = vpop.eup %11539 }
 0x652   :  { %v13150_v20 = vpop.eup %11541  ;;  %v2006_v28 = vsel %vm1133_vm4, %v1986_v40, 0 }
 0x653   :  { %v13153_v44 = vpop.eup %11543 }
 0x654   :  { %v1844_v47 = vpack.c.bf16 %v13146_v49, %v13153_v44 }
 0x655   :  { %10428 = vmatmul.mubr.msk.bf16.vlgmr.msra.gmra.mxu1 %vm1223_vm5, %v1559_v50  ;;  %v13139_v16 = vpop.permute.xlu0 %1979 }
 0x656   :  { %10452 = vmatpush3.bf16.msra.mxu1 %v12911_v3  ;;  %10431 = vmatprep.mubr.msk.bf16.mxu1 %vm1223_vm5, %v1560_v5  ;;  %v1561_v3 = vpack.c.bf16 %v13144_v46, %v13150_v20 }
 0x657   :  { %10453 = vmatprep.subr.bf16.mxu1 %v13042_v12 }
 0x659   :  { %v13148_v37 = vpop.permute.xlu0 %1983 }
 0x65a   :  { %10454 = vmatpush3.bf16.msra.mxu1 %v13042_v12  ;;  %v13164_v12 = vpop.eup %11545 }
 0x65b   :  { %10455 = vmatprep.subr.bf16.mxu1 %v13080_v21  ;;  %v13166_v55 = vpop.eup %11547 }
 0x65c   :  { %v1845_v7 = vpack.c.bf16 %v13164_v12, %v13166_v55 }
 0x65d   :  { %10432 = vmatmul.mubr.msk.bf16.gmra.mxu1 %vm1223_vm5, %v1561_v3  ;;  %v2141_v39 = vpop.permute.xlu0 %2140 }
 0x65e   :  { %10456 = vmatpush3.bf16.msra.mxu1 %v13080_v21  ;;  %10459 = vmatprep.mubr.msk.bf16.mxu1 %vm1223_vm5, %v1844_v47  ;;  %v2015_v21 = vsel %vm1133_vm4, %v1992_v18, 0 }
 0x65f   :  { %10457 = vmatprep.subr.bf16.mxu1 %v13082_v58  ;;  %10483 = vmatprep.subr.bf16.mxu0 %v2141_v39 }
 0x660   :  { %10484 = vmatpush3.bf16.msra.mxu0 %v2141_v39 }
 0x662   :  { %10458 = vmatpush3.bf16.msra.mxu1 %v13082_v58  ;;  %v1826_v58 = vsub.f32 %v13010_v14, %v13098_v19  ;;  %v13185_v19 = vpop.eup %11549 }
 0x663   :  { %11095 = vmatprep.subr.msk.bf16.mxu1 %vm1133_vm4, %v1992_v18 }
 0x664   :  { %v1840_v36 = vmul.f32 1.442695, %v1826_v58 }
 0x665   :  { %10460 = vmatmul.mubr.msk.bf16.vlgmr.msra.gmra.mxu1 %vm1223_vm5, %v1845_v7 }
 0x666   :  { %10468 = vmatpush3.bf16.xpose.msra.mxu1 %v2015_v21 }
 0x667   :  { %11096 = vmatprep.subr.msk.bf16.mxu1 %vm1133_vm4, %v1990_v59 }
 0x66e   :  { %10470 = vmatpush3.bf16.xpose.msra.mxu1 %v2012_v43 }
 0x674   :  { %v1810_v54 = vpop.xlane.xlu1 %1809 }
 0x675   :  { %v1824_v2 = vsub.f32 %v13016_v41, %v1810_v54 }
 0x677   :  { %v1836_v27 = vmul.f32 1.442695, %v1824_v2 }
 0x678   :  { %v1819_v32 = vpop.xlane.xlu1 %1818 }
 0x679   :  { %11551 = vpow2.f32 %v1836_v27  ;;  %v1827_v35 = vsub.f32 %v13022_v24, %v1819_v32 }
 0x67a   :  { %11553 = vpow2.f32 %v1840_v36 }
 0x67b   :  { %v1842_v53 = vmul.f32 1.442695, %v1827_v35 }
 0x67c   :  { %v1988_v59 = vpop.permute.xlu1 %1987 }
 0x67d   :  { %11555 = vpow2.f32 %v1842_v53  ;;  %11097 = vmatprep.subr.msk.bf16.mxu1 %vm1133_vm4, %v1988_v59  ;;  %v2009_v38 = vsel %vm1133_vm4, %v1988_v59, 0 }
 0x67e   :  { %10472 = vmatpush3.bf16.xpose.msra.mxu1 %v2009_v38 }
 0x67f   :  { %11098 = vmatprep.subr.msk.bf16.mxu1 %vm1133_vm4, %v1986_v40 }
 0x680   :  { %v1978_v14 = vpop.permute.xlu1 %1977 }
 0x684   :  { %v1982_v41 = vpop.permute.xlu1 %1981 }
 0x686   :  { %v13188_v50 = vpop.eup %11551  ;;  %10474 = vmatpush3.bf16.xpose.msra.mxu1 %v2006_v28 }
 0x687   :  { %v1846_v24 = vpack.c.bf16 %v13185_v19, %v13188_v50  ;;  %v13192_v3 = vpop.eup %11553 }
 0x688   :  { %v2139_v5 = vpop.permute.xlu1 %2138 }
 0x689   :  { %10463 = vmatprep.mubr.msk.bf16.mxu1 %vm1223_vm5, %v1846_v24  ;;  %10485 = vmatprep.subr.bf16.mxu0 %v2139_v5 }
 0x68a   :  { %v13195_v47 = vpop.eup %11555  ;;  %10486 = vmatpush3.bf16.msra.mxu0 %v2139_v5 }
 0x68b   :  { %v1847_v39 = vpack.c.bf16 %v13195_v47, %v13192_v3 }
 0x68d   :  { %10464 = vmatmul.mubr.msk.bf16.gmra.mxu1 %vm1223_vm5, %v1847_v39 }
 0x68e   :  { %10475 = vmatprep.mubr.msk.bf16.mxu1 %vm1133_vm4, %v1978_v14 }
 0x695   :  { %10476 = vmatmul.mubr.msk.bf16.vlgmr.msra.gmra.mxu1 %vm1133_vm4, %v13139_v16 }
 0x696   :  { %10479 = vmatprep.mubr.msk.bf16.mxu1 %vm1133_vm4, %v1982_v41 }
 0x69d   :  { %10480 = vmatmul.mubr.msk.bf16.gmra.mxu1 %vm1133_vm4, %v13148_v37 }
 0x6cb   :  { %v13206_v40 = vpop.f32.mrf.mxu1 }
 0x6cc   :  { %16962 = vst [vmem:[#allocation25_spill] sm:$0xff] %v13206_v40 }
 0x6cd   :  { %v13208_v18 = vpop.f32.mrf.mxu1 }
 0x6ce   :  { %16963 = vst [vmem:[#allocation26_spill] sm:$0xff] %v13208_v18 }
 0x6cf   :  { %v13210_v7 = vpop.f32.mrf.mxu1 }
 0x6d0   :  { %16964 = vst [vmem:[#allocation27_spill] sm:$0xff] %v13210_v7 }
 0x6d1   :  { %v13212_v21 = vpop.f32.mrf.mxu1 }
 0x6d2   :  { %16965 = vst [vmem:[#allocation28_spill] sm:$0xff] %v13212_v21 }
 0x70d   :  { %v13214_v43 = vpop.f32.mrf.mxu1 }
 0x70e   :  { %16966 = vst [vmem:[#allocation29_spill] sm:$0xff] %v13214_v43 }
 0x70f   :  { %v13216_v4 = vpop.f32.mrf.mxu1 }
 0x710   :  { %16967 = vst [vmem:[#allocation30_spill] sm:$0xff] %v13216_v4  ;;  %v12213_v4 = vld [vmem:[%s16855_s14 + $0x7] ss:$0 sm:$0xff] }
 0x711   :  { %v13218_v58 = vpop.f32.mrf.mxu1  ;;  %v1103_v7 = vadd.f32 %v12213_v4, %v12926_v45 }
 0x712   :  { %16968 = vst [vmem:[#allocation31_spill] sm:$0xff] %v13218_v58 }
 0x713   :  { %v13220_v16 = vpop.f32.mrf.mxu1 }
 0x714   :  { %16969 = vst [vmem:[#allocation32_spill] sm:$0xff] %v13220_v16  ;;  %v1106_v16 = vadd.f32 %v12213_v4, %v12932_v51 }
 0x715   :  { %v13222_v29 = vpop.f32.mrf.mxu1 }
 0x716   :  { %v13283_v40 = vpack.c.bf16 %v1106_v16, %v1103_v7 }
 0x717   :  { %v13224_v54 = vpop.f32.mrf.mxu1 }
 0x719   :  { %v13226_v37 = vpop.f32.mrf.mxu1 }
 0x71b   :  { %v13228_v2 = vpop.f32.mrf.mxu1 }
 0x71d   :  { %v13230_v27 = vpop.f32.mrf.mxu1 }
 0x71e   :  { %16970 = vst [vmem:[#allocation33_spill] sm:$0xff] %v13230_v27 }
 0x71f   :  { %v13232_v36 = vpop.f32.mrf.mxu1 }
 0x720   :  { %16971 = vst [vmem:[#allocation34_spill] sm:$0xff] %v13232_v36 }
 0x721   :  { %v13234_v32 = vpop.f32.mrf.mxu1 }
 0x722   :  { %16972 = vst [vmem:[#allocation35_spill] sm:$0xff] %v13234_v32 }
 0x723   :  { %v13236_v35 = vpop.f32.mrf.mxu1 }
 0x724   :  { %16973 = vst [vmem:[#allocation36_spill] sm:$0xff] %v13236_v35 }
 0x725   :  { %v13238_v53 = vpop.f32.mrf.mxu1 }
 0x726   :  { %16974 = vst [vmem:[#allocation37_spill] sm:$0xff] %v13238_v53 }
 0x727   :  { %v13240_v59 = vpop.f32.mrf.mxu1 }
 0x729   :  { %v13242_v38 = vpop.f32.mrf.mxu1 }
 0x72a   :  { %16975 = vst [vmem:[#allocation38_spill] sm:$0xff] %v13242_v38 }
 0x72b   :  { %v13244_v14 = vpop.f32.mrf.mxu1 }
 0x74d   :  { %v13246_v41 = vpop.f32.mrf.mxu1 }
 0x74e   :  { %16976 = vst [vmem:[#allocation39_spill] sm:$0xff] %v13246_v41 }
 0x74f   :  { %v13248_v28 = vpop.f32.mrf.mxu1 }
 0x750   :  { %16977 = vst [vmem:[#allocation40_spill] sm:$0xff] %v13248_v28 }
 0x751   :  { %v13250_v24 = vpop.f32.mrf.mxu1 }
 0x752   :  { %16978 = vst [vmem:[#allocation41_spill] sm:$0xff] %v13250_v24 }
 0x753   :  { %v13252_v5 = vpop.f32.mrf.mxu1 }
 0x754   :  { %16979 = vst [vmem:[#allocation42_spill] sm:$0xff] %v13252_v5 }
 0x755   :  { %v10477_v39 = vpop.f32.mrf.mxu1 }
 0x756   :  { %v2088_v10 = vsel %vm1223_vm5, %v10477_v39, -inf }
 0x757   :  { %2089 = vmax.xlane.f32.xlu0 %v2088_v10  ;;  %v2051_v61 = vpop.f32.mrf.mxu1 }
 0x758   :  { %v2082_v9 = vsel %vm1223_vm5, %v2051_v61, -inf }
 0x759   :  { %2083 = vmax.xlane.f32.xlu1 %v2082_v9  ;;  %v10478_v57 = vpop.f32.mrf.mxu1 }
 0x75a   :  { %v2091_v48 = vsel %vm1223_vm5, %v10478_v57, -inf }
 0x75b   :  { %v2054_v52 = vpop.f32.mrf.mxu1 }
 0x75c   :  { %v2085_v33 = vsel %vm1223_vm5, %v2054_v52, -inf }
 0x75d   :  { %2092 = vmax.xlane.f32.xlu1 %v2091_v48  ;;  %2086 = vmax.xlane.f32.xlu0 %v2085_v33  ;;  %v13264_v10 = vpop.f32.mrf.mxu1 }
 0x75e   :  { %v2100_v58 = vsel %vm1223_vm5, %v13264_v10, -inf }
 0x75f   :  { %v13266_v9 = vpop.f32.mrf.mxu1 }
 0x760   :  { %v2094_v33 = vsel %vm1223_vm5, %v13266_v9, -inf }
 0x761   :  { %v13268_v43 = vpop.f32.mrf.mxu1 }
 0x763   :  { %v2070_v48 = vpop.f32.mrf.mxu1 }
 0x76e   :  { %2134 = vrot.lane.b32.xlu1 %v12771_v25, %s12229_s5  ;;  %v2097_v25 = vsel %vm1223_vm5, %v2070_v48, -inf }
 0x772   :  { %2398 = vrot.lane.b32.xlu1 %v12930_v42, %s12219_s16 }
 0x773   :  { %2136 = vrot.lane.b32.xlu0 %v12797_v56, %s12229_s5  ;;  %v2103_v56 = vsel %vm1223_vm5, %v13268_v43, -inf }
 0x792   :  { %2101 = vmax.xlane.f32.xlu0 %v2100_v58  ;;  %v1090_v58 = vadd.f32 %v12213_v4, %v12922_v15 }
 0x796   :  { %2095 = vmax.xlane.f32.xlu1 %v2094_v33  ;;  %2098 = vmax.xlane.f32.xlu0 %v2097_v25  ;;  %v1087_v33 = vadd.f32 %v12213_v4, %v12918_v8 }
 0x798   :  { %v13290_v25 = vpack.c.bf16 %v1090_v58, %v1087_v33 }
 0x79a   :  { %2104 = vmax.xlane.f32.xlu1 %v2103_v56 }
 0x7ab   :  { %2394 = vrot.lane.b32.xlu1 %v12924_v17, %s12219_s16 }
 0x7ac   :  { %2396 = vrot.lane.b32.xlu0 %v13283_v40, %s12219_s16 }
 0x7af   :  { %2545 = vrot.lane.b32.xlu1 %v13283_v40, %s12224_s22 }
 0x7b0   :  { %2392 = vrot.lane.b32.xlu0 %v13290_v25, %s12219_s16 }
 0x7b4   :  { %2547 = vrot.lane.b32.xlu0 %v12930_v42, %s12224_s22 }
 0x7e0   :  { %v2090_v15 = vpop.xlane.xlu0 %2089 }
 0x7e1   :  { %v2108_v45 = vsub.f32 %v10477_v39, %v2090_v15 }
 0x7e2   :  { %v2084_v51 = vpop.xlane.xlu1 %2083 }
 0x7e3   :  { %v2106_v7 = vsub.f32 %v2051_v61, %v2084_v51  ;;  %v2118_v16 = vmul.f32 1.442695, %v2108_v45 }
 0x7e5   :  { %v2114_v8 = vmul.f32 1.442695, %v2106_v7  ;;  %11557 = vpow2.f32 %v2118_v16 }
 0x7e6   :  { %v2093_v4 = vpop.xlane.xlu1 %2092  ;;  %v2087_v56 = vpop.xlane.xlu0 %2086 }
 0x7e7   :  { %v2109_v18 = vsub.f32 %v10478_v57, %v2093_v4  ;;  %v2107_v58 = vsub.f32 %v2054_v52, %v2087_v56  ;;  %11559 = vpow2.f32 %v2114_v8 }
 0x7e9   :  { %v2120_v33 = vmul.f32 1.442695, %v2109_v18  ;;  %v2116_v21 = vmul.f32 1.442695, %v2107_v58 }
 0x7ea   :  { %v2135_v24 = vpop.permute.xlu1 %2134  ;;  %v2137_v41 = vpop.permute.xlu0 %2136 }
 0x7eb   :  { %11561 = vpow2.f32 %v2120_v33  ;;  %10487 = vmatprep.subr.bf16.mxu0 %v2137_v41 }
 0x7ec   :  { %11563 = vpow2.f32 %v2116_v21  ;;  %10488 = vmatpush3.bf16.msra.mxu0 %v2137_v41 }
 0x7ed   :  { %10489 = vmatprep.subr.bf16.mxu0 %v2135_v24 }
 0x7ee   :  { %v2399_v39 = vpop.permute.xlu1 %2398 }
 0x7ef   :  { %v2422_v41 = vsel %vm1133_vm4, %v2399_v39, 0 }
 0x7f0   :  { %10490 = vmatpush3.bf16.msra.mxu0 %v2135_v24 }
 0x7f1   :  { %11099 = vmatprep.subr.msk.bf16.mxu0 %vm1133_vm4, %v2399_v39 }
 0x7f2   :  { %v13299_v61 = vpop.eup %11557 }
 0x7f4   :  { %v13301_v15 = vpop.eup %11559 }
 0x7f8   :  { %v13303_v52 = vpop.eup %11561 }
 0x7f9   :  { %v13305_v57 = vpop.eup %11563  ;;  %v2131_v18 = vpack.c.bf16 %v13303_v52, %v13299_v61 }
 0x7fa   :  { %v2130_v21 = vpack.c.bf16 %v13305_v57, %v13301_v15 }
 0x7fc   :  { %10491 = vmatprep.mubr.msk.bf16.mxu0 %vm1223_vm5, %v2130_v21 }
 0x7fd   :  { %10492 = vmatmul.mubr.msk.bf16.vlgmr.msra.gmra.mxu0 %vm1223_vm5, %v2131_v18 }
 0x7fe   :  { %10500 = vmatpush3.bf16.xpose.msra.mxu0 %v2422_v41 }
 0x81b   :  { %v2102_v24 = vpop.xlane.xlu0 %2101 }
 0x81c   :  { %v2112_v45 = vsub.f32 %v13264_v10, %v2102_v24 }
 0x81e   :  { %v2126_v58 = vmul.f32 1.442695, %v2112_v45 }
 0x81f   :  { %v2096_v51 = vpop.xlane.xlu1 %2095  ;;  %v2099_v7 = vpop.xlane.xlu0 %2098 }
 0x820   :  { %v2110_v16 = vsub.f32 %v13266_v9, %v2096_v51  ;;  %v2111_v8 = vsub.f32 %v2070_v48, %v2099_v7 }
 0x822   :  { %v2122_v4 = vmul.f32 1.442695, %v2110_v16  ;;  %v2124_v56 = vmul.f32 1.442695, %v2111_v8 }
 0x823   :  { %v2105_v33 = vpop.xlane.xlu1 %2104  ;;  %v2397_v32 = vpop.permute.xlu0 %2396 }
 0x824   :  { %11565 = vpow2.f32 %v2122_v4  ;;  %v2113_v21 = vsub.f32 %v13268_v43, %v2105_v33  ;;  %11100 = vmatprep.subr.msk.bf16.mxu0 %vm1133_vm4, %v2397_v32  ;;  %v2419_v39 = vsel %vm1133_vm4, %v2397_v32, 0 }
 0x825   :  { %11567 = vpow2.f32 %v2124_v56  ;;  %10502 = vmatpush3.bf16.xpose.msra.mxu0 %v2419_v39 }
 0x826   :  { %v2128_v10 = vmul.f32 1.442695, %v2113_v21  ;;  %11569 = vpow2.f32 %v2126_v58 }
 0x827   :  { %v2395_v18 = vpop.permute.xlu1 %2394  ;;  %v2393_v41 = vpop.permute.xlu0 %2392 }
 0x828   :  { %11571 = vpow2.f32 %v2128_v10  ;;  %11101 = vmatprep.subr.msk.bf16.mxu0 %vm1133_vm4, %v2395_v18  ;;  %v2416_v48 = vsel %vm1133_vm4, %v2395_v18, 0  ;;  %v2413_v7 = vsel %vm1133_vm4, %v2393_v41, 0 }
 0x82b   :  { %v2548_v9 = vpop.permute.xlu0 %2547  ;;  %v2546_v24 = vpop.permute.xlu1 %2545 }
 0x82c   :  { %10515 = vmatprep.subr.bf16.mxu1 %v2548_v9 }
 0x82d   :  { %10504 = vmatpush3.bf16.xpose.msra.mxu0 %v2416_v48  ;;  %10516 = vmatpush3.bf16.msra.mxu1 %v2548_v9 }
 0x82e   :  { %11102 = vmatprep.subr.msk.bf16.mxu0 %vm1133_vm4, %v2393_v41  ;;  %10517 = vmatprep.subr.bf16.mxu1 %v2546_v24 }
 0x831   :  { %v13322_v43 = vpop.eup %11565  ;;  %10518 = vmatpush3.bf16.msra.mxu1 %v2546_v24 }
 0x832   :  { %v13324_v32 = vpop.eup %11567 }
 0x833   :  { %v2132_v45 = vpack.c.bf16 %v13324_v32, %v13322_v43  ;;  %v13328_v51 = vpop.eup %11569 }
 0x835   :  { %v13331_v16 = vpop.eup %11571  ;;  %10495 = vmatprep.mubr.msk.bf16.mxu0 %vm1223_vm5, %v2132_v45  ;;  %10506 = vmatpush3.bf16.xpose.msra.mxu0 %v2413_v7 }
 0x836   :  { %v2133_v8 = vpack.c.bf16 %v13331_v16, %v13328_v51 }
 0x838   :  { %10496 = vmatmul.mubr.msk.bf16.gmra.mxu0 %vm1223_vm5, %v2133_v8 }
 0x839   :  { %10507 = vmatprep.mubr.msk.bf16.mxu0 %vm1133_vm4, %v13290_v25 }
 0x840   :  { %10508 = vmatmul.mubr.msk.bf16.vlgmr.msra.gmra.mxu0 %vm1133_vm4, %v12924_v17 }
 0x841   :  { %10511 = vmatprep.mubr.msk.bf16.mxu0 %vm1133_vm4, %v13283_v40 }
 0x848   :  { %10512 = vmatmul.mubr.msk.bf16.gmra.mxu0 %vm1133_vm4, %v12930_v42 }
 0x8bd   :  { %v13345_v4 = vpop.f32.mrf.mxu0 }
 0x8be   :  { %16980 = vst [vmem:[#allocation43_spill] sm:$0xff] %v13345_v4 }
 0x8bf   :  { %v13347_v56 = vpop.f32.mrf.mxu0 }
 0x8c0   :  { %16981 = vst [vmem:[#allocation44_spill] sm:$0xff] %v13347_v56 }
 0x8c1   :  { %v13349_v58 = vpop.f32.mrf.mxu0 }
 0x8c2   :  { %16982 = vst [vmem:[#allocation45_spill] sm:$0xff] %v13349_v58 }
 0x8c3   :  { %v13351_v33 = vpop.f32.mrf.mxu0 }
 0x8c4   :  { %16983 = vst [vmem:[#allocation46_spill] sm:$0xff] %v13351_v33 }
 0x8f8   :  { %v13353_v21 = vpop.f32.mrf.mxu0 }
 0x8f9   :  { %16984 = vst [vmem:[#allocation47_spill] sm:$0xff] %v13353_v21 }
 0x8fa   :  { %v13355_v39 = vpop.f32.mrf.mxu0 }
 0x8fb   :  { %16985 = vst [vmem:[#allocation48_spill] sm:$0xff] %v13355_v39 }
 0x8fc   :  { %v13357_v10 = vpop.f32.mrf.mxu0 }
 0x8fd   :  { %16986 = vst [vmem:[#allocation49_spill] sm:$0xff] %v13357_v10 }
 0x8fe   :  { %v13359_v18 = vpop.f32.mrf.mxu0 }
 0x8ff   :  { %16987 = vst [vmem:[#allocation50_spill] sm:$0xff] %v13359_v18 }
 0x900   :  { %v10509_v41 = vpop.f32.mrf.mxu0 }
 0x901   :  { %v2495_v9 = vsel %vm1223_vm5, %v10509_v41, -inf }
 0x902   :  { %2496 = vmax.xlane.f32.xlu0 %v2495_v9  ;;  %v2458_v48 = vpop.f32.mrf.mxu0 }
 0x903   :  { %v2489_v24 = vsel %vm1223_vm5, %v2458_v48, -inf }
 0x904   :  { %2490 = vmax.xlane.f32.xlu1 %v2489_v24  ;;  %v10510_v45 = vpop.f32.mrf.mxu0 }
 0x905   :  { %v2498_v8 = vsel %vm1223_vm5, %v10510_v45, -inf }
 0x906   :  { %v2461_v7 = vpop.f32.mrf.mxu0 }
 0x907   :  { %v2492_v21 = vsel %vm1223_vm5, %v2461_v7, -inf }
 0x908   :  { %2499 = vmax.xlane.f32.xlu1 %v2498_v8  ;;  %2493 = vmax.xlane.f32.xlu0 %v2492_v21  ;;  %v13371_v9 = vpop.f32.mrf.mxu0 }
 0x909   :  { %v2507_v18 = vsel %vm1223_vm5, %v13371_v9, -inf }
 0x90a   :  { %v2474_v24 = vpop.f32.mrf.mxu0 }
 0x90b   :  { %v2501_v21 = vsel %vm1223_vm5, %v2474_v24, -inf }
 0x90c   :  { %v13373_v10 = vpop.f32.mrf.mxu0 }
 0x90d   :  { %v2510_v27 = vsel %vm1223_vm5, %v13373_v10, -inf }
 0x90e   :  { %v2477_v39 = vpop.f32.mrf.mxu0 }
 0x90f   :  { %v2504_v8 = vsel %vm1223_vm5, %v2477_v39, -inf }
 0x919   :  { %2541 = vrot.lane.b32.xlu1 %v13290_v25, %s12224_s22 }
 0x91d   :  { %2684 = vrot.lane.b32.xlu1 %v12930_v42, %s12220_s2 }
 0x91e   :  { %2543 = vrot.lane.b32.xlu0 %v12924_v17, %s12224_s22 }
 0x93d   :  { %2508 = vmax.xlane.f32.xlu0 %v2507_v18 }
 0x941   :  { %2502 = vmax.xlane.f32.xlu1 %v2501_v21  ;;  %2505 = vmax.xlane.f32.xlu0 %v2504_v8 }
 0x945   :  { %2511 = vmax.xlane.f32.xlu1 %v2510_v27 }
 0x956   :  { %2680 = vrot.lane.b32.xlu1 %v12924_v17, %s12220_s2 }
 0x957   :  { %2682 = vrot.lane.b32.xlu0 %v13283_v40, %s12220_s2 }
 0x95a   :  { %2670 = vrot.lane.b32.xlu1 %v13290_v25, %s12222_s20 }
 0x95b   :  { %2678 = vrot.lane.b32.xlu0 %v13290_v25, %s12220_s2 }
 0x95e   :  { %2674 = vrot.lane.b32.xlu1 %v13283_v40, %s12222_s20 }
 0x95f   :  { %2672 = vrot.lane.b32.xlu0 %v12924_v17, %s12222_s20 }
 0x962   :  { %2831 = vrot.lane.b32.xlu1 %v13283_v40, %s12225_s23 }
 0x963   :  { %2676 = vrot.lane.b32.xlu0 %v12930_v42, %s12222_s20 }
 0x967   :  { %2833 = vrot.lane.b32.xlu0 %v12930_v42, %s12225_s23 }
 0x98b   :  { %v2497_v27 = vpop.xlane.xlu0 %2496 }
 0x98c   :  { %v2515_v18 = vsub.f32 %v10509_v41, %v2497_v27 }
 0x98d   :  { %v2491_v21 = vpop.xlane.xlu1 %2490 }
 0x98e   :  { %v2513_v8 = vsub.f32 %v2458_v48, %v2491_v21  ;;  %v2525_v5 = vmul.f32 1.442695, %v2515_v18 }
 0x990   :  { %v2521_v28 = vmul.f32 1.442695, %v2513_v8  ;;  %11573 = vpow2.f32 %v2525_v5 }
 0x991   :  { %v2500_v58 = vpop.xlane.xlu1 %2499  ;;  %v2494_v4 = vpop.xlane.xlu0 %2493 }
 0x992   :  { %v2516_v35 = vsub.f32 %v10510_v45, %v2500_v58  ;;  %v2514_v36 = vsub.f32 %v2461_v7, %v2494_v4  ;;  %11575 = vpow2.f32 %v2521_v28 }
 0x994   :  { %v2527_v38 = vmul.f32 1.442695, %v2516_v35  ;;  %v2523_v53 = vmul.f32 1.442695, %v2514_v36 }
 0x995   :  { %v2542_v33 = vpop.permute.xlu1 %2541  ;;  %v2544_v56 = vpop.permute.xlu0 %2543 }
 0x996   :  { %11577 = vpow2.f32 %v2527_v38  ;;  %10519 = vmatprep.subr.bf16.mxu1 %v2544_v56 }
 0x997   :  { %11579 = vpow2.f32 %v2523_v53  ;;  %10520 = vmatpush3.bf16.msra.mxu1 %v2544_v56 }
 0x998   :  { %10521 = vmatprep.subr.bf16.mxu1 %v2542_v33 }
 0x999   :  { %v2685_v41 = vpop.permute.xlu1 %2684 }
 0x99a   :  { %v2708_v38 = vsel %vm1133_vm4, %v2685_v41, 0 }
 0x99b   :  { %10522 = vmatpush3.bf16.msra.mxu1 %v2542_v33 }
 0x99c   :  { %11103 = vmatprep.subr.msk.bf16.mxu1 %vm1133_vm4, %v2685_v41 }
 0x99d   :  { %v13400_v48 = vpop.eup %11573 }
 0x99e   :  { %16988 = vst [vmem:[#allocation51_spill] sm:$0xff] %v13400_v48 }
 0x99f   :  { %v13402_v27 = vpop.eup %11575 }
 0x9a0   :  { %16989 = vst [vmem:[#allocation52_spill] sm:$0xff] %v13402_v27 }
 0x9a3   :  { %v13404_v4 = vpop.eup %11577 }
 0x9a4   :  { %16990 = vst [vmem:[#allocation53_spill] sm:$0xff] %v13404_v4  ;;  %v13406_v35 = vpop.eup %11579  ;;  %v2538_v36 = vpack.c.bf16 %v13404_v4, %v13400_v48 }
 0x9a5   :  { %16991 = vst [vmem:[#allocation54_spill] sm:$0xff] %v13406_v35  ;;  %v2537_v53 = vpack.c.bf16 %v13406_v35, %v13402_v27 }
 0x9a7   :  { %10523 = vmatprep.mubr.msk.bf16.mxu1 %vm1223_vm5, %v2537_v53 }
 0x9a8   :  { %10524 = vmatmul.mubr.msk.bf16.vlgmr.msra.gmra.mxu1 %vm1223_vm5, %v2538_v36 }
 0x9a9   :  { %10532 = vmatpush3.bf16.xpose.msra.mxu1 %v2708_v38 }
 0x9c6   :  { %v2509_v28 = vpop.xlane.xlu0 %2508 }
 0x9c7   :  { %v2519_v5 = vsub.f32 %v13371_v9, %v2509_v28 }
 0x9c9   :  { %v2533_v21 = vmul.f32 1.442695, %v2519_v5 }
 0x9ca   :  { %v2503_v56 = vpop.xlane.xlu1 %2502  ;;  %v2506_v58 = vpop.xlane.xlu0 %2505 }
 0x9cb   :  { %v2517_v33 = vsub.f32 %v2474_v24, %v2503_v56  ;;  %v2518_v45 = vsub.f32 %v2477_v39, %v2506_v58 }
 0x9cd   :  { %v2529_v7 = vmul.f32 1.442695, %v2517_v33  ;;  %v2531_v18 = vmul.f32 1.442695, %v2518_v45 }
 0x9ce   :  { %v2512_v8 = vpop.xlane.xlu1 %2511  ;;  %v2683_v48 = vpop.permute.xlu0 %2682 }
 0x9cf   :  { %11581 = vpow2.f32 %v2529_v7  ;;  %v2520_v53 = vsub.f32 %v13373_v10, %v2512_v8  ;;  %11104 = vmatprep.subr.msk.bf16.mxu1 %vm1133_vm4, %v2683_v48  ;;  %v2705_v41 = vsel %vm1133_vm4, %v2683_v48, 0 }
 0x9d0   :  { %11583 = vpow2.f32 %v2531_v18  ;;  %10534 = vmatpush3.bf16.xpose.msra.mxu1 %v2705_v41 }
 0x9d1   :  { %v2535_v36 = vmul.f32 1.442695, %v2520_v53  ;;  %11585 = vpow2.f32 %v2533_v21 }
 0x9d2   :  { %v2681_v9 = vpop.permute.xlu1 %2680  ;;  %v2679_v38 = vpop.permute.xlu0 %2678 }
 0x9d3   :  { %11587 = vpow2.f32 %v2535_v36  ;;  %11105 = vmatprep.subr.msk.bf16.mxu1 %vm1133_vm4, %v2681_v9  ;;  %v2702_v28 = vsel %vm1133_vm4, %v2681_v9, 0  ;;  %v2699_v7 = vsel %vm1133_vm4, %v2679_v38, 0 }
 0x9d6   :  { %v2671_v39 = vpop.permute.xlu1 %2670  ;;  %v2673_v24 = vpop.permute.xlu0 %2672 }
 0x9d8   :  { %10536 = vmatpush3.bf16.xpose.msra.mxu1 %v2702_v28 }
 0x9d9   :  { %11106 = vmatprep.subr.msk.bf16.mxu1 %vm1133_vm4, %v2679_v38 }
 0x9da   :  { %v2677_v10 = vpop.permute.xlu0 %2676  ;;  %v2675_v5 = vpop.permute.xlu1 %2674 }
 0x9dc   :  { %v13422_v56 = vpop.eup %11581 }
 0x9dd   :  { %16992 = vst [vmem:[#allocation55_spill] sm:$0xff] %v13422_v56  ;;  %v13424_v48 = vpop.eup %11583 }
 0x9de   :  { %16993 = vst [vmem:[#allocation56_spill] sm:$0xff] %v13424_v48  ;;  %v2834_v58 = vpop.permute.xlu0 %2833  ;;  %v2539_v33 = vpack.c.bf16 %v13424_v48, %v13422_v56  ;;  %v13428_v45 = vpop.eup %11585 }
 0x9df   :  { %16994 = vst [vmem:[#allocation57_spill] sm:$0xff] %v13428_v45  ;;  %10547 = vmatprep.subr.bf16.mxu0 %v2834_v58  ;;  %v2832_v21 = vpop.permute.xlu1 %2831 }
 0x9e0   :  { %v13431_v18 = vpop.eup %11587  ;;  %10527 = vmatprep.mubr.msk.bf16.mxu1 %vm1223_vm5, %v2539_v33  ;;  %10538 = vmatpush3.bf16.xpose.msra.mxu1 %v2699_v7 }
 0x9e1   :  { %16995 = vst [vmem:[#allocation58_spill] sm:$0xff] %v13431_v18  ;;  %10548 = vmatpush3.bf16.msra.mxu0 %v2834_v58  ;;  %v2540_v8 = vpack.c.bf16 %v13431_v18, %v13428_v45 }
 0x9e2   :  { %10549 = vmatprep.subr.bf16.mxu0 %v2832_v21 }
 0x9e3   :  { %10528 = vmatmul.mubr.msk.bf16.gmra.mxu1 %vm1223_vm5, %v2540_v8 }
 0x9e4   :  { %10539 = vmatprep.mubr.msk.bf16.mxu1 %vm1133_vm4, %v2671_v39 }
 0x9e5   :  { %10550 = vmatpush3.bf16.msra.mxu0 %v2832_v21 }
 0x9eb   :  { %10540 = vmatmul.mubr.msk.bf16.vlgmr.msra.gmra.mxu1 %vm1133_vm4, %v2673_v24 }
 0x9ec   :  { %10543 = vmatprep.mubr.msk.bf16.mxu1 %vm1133_vm4, %v2675_v5 }
 0x9f3   :  { %10544 = vmatmul.mubr.msk.bf16.gmra.mxu1 %vm1133_vm4, %v2677_v10 }
 0xa68   :  { %v13441_v53 = vpop.f32.mrf.mxu1 }
 0xa69   :  { %16996 = vst [vmem:[#allocation59_spill] sm:$0xff] %v13441_v53 }
 0xa6a   :  { %v13443_v41 = vpop.f32.mrf.mxu1 }
 0xa6b   :  { %16997 = vst [vmem:[#allocation60_spill] sm:$0xff] %v13443_v41 }
 0xa6c   :  { %v13445_v36 = vpop.f32.mrf.mxu1 }
 0xa6d   :  { %16998 = vst [vmem:[#allocation61_spill] sm:$0xff] %v13445_v36 }
 0xa6e   :  { %v13447_v9 = vpop.f32.mrf.mxu1 }
 0xa6f   :  { %16999 = vst [vmem:[#allocation62_spill] sm:$0xff] %v13447_v9 }
 0xaa3   :  { %v13449_v38 = vpop.f32.mrf.mxu1 }
 0xaa4   :  { %17000 = vst [vmem:[#allocation63_spill] sm:$0xff] %v13449_v38 }
 0xaa5   :  { %v13451_v28 = vpop.f32.mrf.mxu1 }
 0xaa6   :  { %17001 = vst [vmem:[#allocation64_spill] sm:$0xff] %v13451_v28 }
 0xaa7   :  { %v13453_v39 = vpop.f32.mrf.mxu1 }
 0xaa8   :  { %17002 = vst [vmem:[#allocation65_spill] sm:$0xff] %v13453_v39 }
 0xaa9   :  { %v13455_v58 = vpop.f32.mrf.mxu1 }
 0xaaa   :  { %17003 = vst [vmem:[#allocation66_spill] sm:$0xff] %v13455_v58 }
 0xaab   :  { %v10541_v24 = vpop.f32.mrf.mxu1 }
 0xaac   :  { %v2781_v5 = vsel %vm1223_vm5, %v10541_v24, -inf }
 0xaad   :  { %2782 = vmax.xlane.f32.xlu0 %v2781_v5  ;;  %v2744_v10 = vpop.f32.mrf.mxu1 }
 0xaae   :  { %v2775_v33 = vsel %vm1223_vm5, %v2744_v10, -inf }
 0xaaf   :  { %2776 = vmax.xlane.f32.xlu1 %v2775_v33  ;;  %v10542_v7 = vpop.f32.mrf.mxu1 }
 0xab0   :  { %v2784_v8 = vsel %vm1223_vm5, %v10542_v7, -inf }
 0xab1   :  { %v2747_v21 = vpop.f32.mrf.mxu1 }
 0xab2   :  { %v2778_v38 = vsel %vm1223_vm5, %v2747_v21, -inf }
 0xab3   :  { %2785 = vmax.xlane.f32.xlu1 %v2784_v8  ;;  %2779 = vmax.xlane.f32.xlu0 %v2778_v38  ;;  %v13467_v5 = vpop.f32.mrf.mxu1 }
 0xab4   :  { %v2793_v58 = vsel %vm1223_vm5, %v13467_v5, -inf }
 0xab5   :  { %v2760_v33 = vpop.f32.mrf.mxu1 }
 0xab6   :  { %v2787_v38 = vsel %vm1223_vm5, %v2760_v33, -inf }
 0xab7   :  { %v13469_v39 = vpop.f32.mrf.mxu1 }
 0xab8   :  { %v2796_v53 = vsel %vm1223_vm5, %v13469_v39, -inf }
 0xab9   :  { %v2763_v28 = vpop.f32.mrf.mxu1 }
 0xaba   :  { %v2790_v8 = vsel %vm1223_vm5, %v2763_v28, -inf }
 0xac4   :  { %2827 = vrot.lane.b32.xlu1 %v13290_v25, %s12225_s23 }
 0xac8   :  { %2970 = vrot.lane.b32.xlu1 %v12930_v42, %s12221_s19 }
 0xac9   :  { %2829 = vrot.lane.b32.xlu0 %v12924_v17, %s12225_s23 }
 0xae8   :  { %2794 = vmax.xlane.f32.xlu0 %v2793_v58 }
 0xaec   :  { %2788 = vmax.xlane.f32.xlu1 %v2787_v38  ;;  %2791 = vmax.xlane.f32.xlu0 %v2790_v8 }
 0xaf0   :  { %2797 = vmax.xlane.f32.xlu1 %v2796_v53 }
 0xb01   :  { %2966 = vrot.lane.b32.xlu1 %v12924_v17, %s12221_s19 }
 0xb02   :  { %2968 = vrot.lane.b32.xlu0 %v13283_v40, %s12221_s19 }
 0xb05   :  { %2956 = vrot.lane.b32.xlu1 %v13290_v25, %s12223_s21 }
 0xb06   :  { %2964 = vrot.lane.b32.xlu0 %v13290_v25, %s12221_s19 }
 0xb09   :  { %2960 = vrot.lane.b32.xlu1 %v13283_v40, %s12223_s21 }
 0xb0a   :  { %2958 = vrot.lane.b32.xlu0 %v12924_v17, %s12223_s21 }
 0xb0d   :  { %3117 = vrot.lane.b32.xlu1 %v13283_v40, %s12226_s24 }
 0xb0e   :  { %2962 = vrot.lane.b32.xlu0 %v12930_v42, %s12223_s21 }
 0xb12   :  { %3119 = vrot.lane.b32.xlu0 %v12930_v42, %s12226_s24 }
 0xb36   :  { %v2783_v53 = vpop.xlane.xlu0 %2782 }
 0xb37   :  { %v2801_v58 = vsub.f32 %v10541_v24, %v2783_v53 }
 0xb38   :  { %v2777_v38 = vpop.xlane.xlu1 %2776 }
 0xb39   :  { %v2799_v8 = vsub.f32 %v2744_v10, %v2777_v38  ;;  %v2811_v36 = vmul.f32 1.442695, %v2801_v58 }
 0xb3b   :  { %v2807_v9 = vmul.f32 1.442695, %v2799_v8  ;;  %11589 = vpow2.f32 %v2811_v36 }
 0xb3c   :  { %v2786_v41 = vpop.xlane.xlu1 %2785  ;;  %v2780_v18 = vpop.xlane.xlu0 %2779 }
 0xb3d   :  { %v2802_v45 = vsub.f32 %v10542_v7, %v2786_v41  ;;  %v2800_v48 = vsub.f32 %v2747_v21, %v2780_v18  ;;  %11591 = vpow2.f32 %v2807_v9 }
 0xb3f   :  { %v2813_v56 = vmul.f32 1.442695, %v2802_v45  ;;  %v2809_v4 = vmul.f32 1.442695, %v2800_v48 }
 0xb40   :  { %v2828_v27 = vpop.permute.xlu1 %2827  ;;  %v2830_v35 = vpop.permute.xlu0 %2829 }
 0xb41   :  { %11593 = vpow2.f32 %v2813_v56  ;;  %10551 = vmatprep.subr.bf16.mxu0 %v2830_v35 }
 0xb42   :  { %11595 = vpow2.f32 %v2809_v4  ;;  %10552 = vmatpush3.bf16.msra.mxu0 %v2830_v35 }
 0xb43   :  { %10553 = vmatprep.subr.bf16.mxu0 %v2828_v27 }
 0xb44   :  { %v2971_v24 = vpop.permute.xlu1 %2970 }
 0xb46   :  { %10554 = vmatpush3.bf16.msra.mxu0 %v2828_v27  ;;  %v2994_v27 = vsel %vm1133_vm4, %v2971_v24, 0 }
 0xb47   :  { %11107 = vmatprep.subr.msk.bf16.mxu0 %vm1133_vm4, %v2971_v24 }
 0xb48   :  { %v13496_v10 = vpop.eup %11589 }
 0xb49   :  { %17004 = vst [vmem:[#allocation67_spill] sm:$0xff] %v13496_v10 }
 0xb4a   :  { %v13498_v53 = vpop.eup %11591 }
 0xb4e   :  { %v13500_v18 = vpop.eup %11593 }
 0xb4f   :  { %v13502_v45 = vpop.eup %11595  ;;  %v2824_v48 = vpack.c.bf16 %v13500_v18, %v13496_v10 }
 0xb50   :  { %v2823_v4 = vpack.c.bf16 %v13502_v45, %v13498_v53 }
 0xb52   :  { %10555 = vmatprep.mubr.msk.bf16.mxu0 %vm1223_vm5, %v2823_v4 }
 0xb53   :  { %10556 = vmatmul.mubr.msk.bf16.vlgmr.msra.gmra.mxu0 %vm1223_vm5, %v2824_v48 }
 0xb54   :  { %10564 = vmatpush3.bf16.xpose.msra.mxu0 %v2994_v27 }
 0xb71   :  { %v2795_v35 = vpop.xlane.xlu0 %2794 }
 0xb72   :  { %v2805_v56 = vsub.f32 %v13467_v5, %v2795_v35 }
 0xb74   :  { %v2819_v38 = vmul.f32 1.442695, %v2805_v56 }
 0xb75   :  { %v2789_v41 = vpop.xlane.xlu1 %2788  ;;  %v2792_v36 = vpop.xlane.xlu0 %2791 }
 0xb76   :  { %v2803_v9 = vsub.f32 %v2760_v33, %v2789_v41  ;;  %v2804_v7 = vsub.f32 %v2763_v28, %v2792_v36 }
 0xb78   :  { %v2815_v21 = vmul.f32 1.442695, %v2803_v9  ;;  %v2817_v58 = vmul.f32 1.442695, %v2804_v7 }
 0xb79   :  { %v2798_v8 = vpop.xlane.xlu1 %2797  ;;  %v2969_v10 = vpop.permute.xlu0 %2968 }
 0xb7a   :  { %11597 = vpow2.f32 %v2815_v21  ;;  %v2806_v4 = vsub.f32 %v13469_v39, %v2798_v8  ;;  %11108 = vmatprep.subr.msk.bf16.mxu0 %vm1133_vm4, %v2969_v10  ;;  %v2991_v24 = vsel %vm1133_vm4, %v2969_v10, 0 }
 0xb7b   :  { %11599 = vpow2.f32 %v2817_v58  ;;  %10566 = vmatpush3.bf16.xpose.msra.mxu0 %v2991_v24 }
 0xb7c   :  { %v2821_v48 = vmul.f32 1.442695, %v2806_v4  ;;  %11601 = vpow2.f32 %v2819_v38 }
 0xb7d   :  { %v2967_v5 = vpop.permute.xlu1 %2966  ;;  %v2965_v27 = vpop.permute.xlu0 %2964 }
 0xb7e   :  { %11603 = vpow2.f32 %v2821_v48  ;;  %11109 = vmatprep.subr.msk.bf16.mxu0 %vm1133_vm4, %v2967_v5  ;;  %v2988_v35 = vsel %vm1133_vm4, %v2967_v5, 0  ;;  %v2985_v21 = vsel %vm1133_vm4, %v2965_v27, 0 }
 0xb81   :  { %v2957_v28 = vpop.permute.xlu1 %2956  ;;  %v2959_v33 = vpop.permute.xlu0 %2958 }
 0xb83   :  { %10568 = vmatpush3.bf16.xpose.msra.mxu0 %v2988_v35 }
 0xb84   :  { %11110 = vmatprep.subr.msk.bf16.mxu0 %vm1133_vm4, %v2965_v27 }
 0xb85   :  { %v2963_v39 = vpop.permute.xlu0 %2962  ;;  %v2961_v56 = vpop.permute.xlu1 %2960 }
 0xb87   :  { %v13518_v41 = vpop.eup %11597 }
 0xb88   :  { %v13520_v10 = vpop.eup %11599 }
 0xb89   :  { %v3120_v36 = vpop.permute.xlu0 %3119  ;;  %v2825_v9 = vpack.c.bf16 %v13520_v10, %v13518_v41  ;;  %v13524_v7 = vpop.eup %11601 }
 0xb8a   :  { %10579 = vmatprep.subr.bf16.mxu1 %v3120_v36  ;;  %v3118_v38 = vpop.permute.xlu1 %3117 }
 0xb8b   :  { %v13527_v58 = vpop.eup %11603  ;;  %10559 = vmatprep.mubr.msk.bf16.mxu0 %vm1223_vm5, %v2825_v9  ;;  %10570 = vmatpush3.bf16.xpose.msra.mxu0 %v2985_v21 }
 0xb8c   :  { %10580 = vmatpush3.bf16.msra.mxu1 %v3120_v36  ;;  %v2826_v8 = vpack.c.bf16 %v13527_v58, %v13524_v7 }
 0xb8d   :  { %10581 = vmatprep.subr.bf16.mxu1 %v3118_v38 }
 0xb8e   :  { %10560 = vmatmul.mubr.msk.bf16.gmra.mxu0 %vm1223_vm5, %v2826_v8 }
 0xb8f   :  { %10571 = vmatprep.mubr.msk.bf16.mxu0 %vm1133_vm4, %v2957_v28 }
 0xb90   :  { %10582 = vmatpush3.bf16.msra.mxu1 %v3118_v38 }
 0xb96   :  { %10572 = vmatmul.mubr.msk.bf16.vlgmr.msra.gmra.mxu0 %vm1133_vm4, %v2959_v33 }
 0xb97   :  { %10575 = vmatprep.mubr.msk.bf16.mxu0 %vm1133_vm4, %v2961_v56 }
 0xb9e   :  { %10576 = vmatmul.mubr.msk.bf16.gmra.mxu0 %vm1133_vm4, %v2963_v39 }
 0xc13   :  { %v13537_v4 = vpop.f32.mrf.mxu0 }
 0xc14   :  { %17005 = vst [vmem:[#allocation68_spill] sm:$0xff] %v13537_v4 }
 0xc15   :  { %v13539_v24 = vpop.f32.mrf.mxu0 }
 0xc16   :  { %17006 = vst [vmem:[#allocation69_spill] sm:$0xff] %v13539_v24  ;;  %v1940_v24 = vsel %vm1223_vm5, %v13146_v49, 0.0 }
 0xc17   :  { %v13541_v48 = vpop.f32.mrf.mxu0 }
 0xc18   :  { %17007 = vst [vmem:[#allocation70_spill] sm:$0xff] %v13541_v48  ;;  %v1937_v48 = vsel %vm1223_vm5, %v13153_v44, 0.0  ;;  %v2226_v44 = vsel %vm1223_vm5, %v13305_v57, 0.0 }
 0xc19   :  { %v13543_v5 = vpop.f32.mrf.mxu0 }
 0xc1a   :  { %17008 = vst [vmem:[#allocation71_spill] sm:$0xff] %v13543_v5 }
 0xc4e   :  { %v13545_v27 = vpop.f32.mrf.mxu0 }
 0xc4f   :  { %17009 = vst [vmem:[#allocation72_spill] sm:$0xff] %v13545_v27 }
 0xc50   :  { %v13547_v35 = vpop.f32.mrf.mxu0 }
 0xc51   :  { %17010 = vst [vmem:[#allocation73_spill] sm:$0xff] %v13547_v35 }
 0xc52   :  { %v13549_v28 = vpop.f32.mrf.mxu0 }
 0xc53   :  { %17011 = vst [vmem:[#allocation74_spill] sm:$0xff] %v13549_v28 }
 0xc54   :  { %v13551_v36 = vpop.f32.mrf.mxu0 }
 0xc55   :  { %17012 = vst [vmem:[#allocation75_spill] sm:$0xff] %v13551_v36 }
 0xc56   :  { %v10573_v33 = vpop.f32.mrf.mxu0 }
 0xc57   :  { %v3067_v56 = vsel %vm1223_vm5, %v10573_v33, -inf }
 0xc58   :  { %3068 = vmax.xlane.f32.xlu0 %v3067_v56  ;;  %v3030_v39 = vpop.f32.mrf.mxu0 }
 0xc59   :  { %v3061_v9 = vsel %vm1223_vm5, %v3030_v39, -inf }
 0xc5a   :  { %3062 = vmax.xlane.f32.xlu1 %v3061_v9  ;;  %v10574_v21 = vpop.f32.mrf.mxu0 }
 0xc5b   :  { %v3070_v8 = vsel %vm1223_vm5, %v10574_v21, -inf }
 0xc5c   :  { %v3033_v38 = vpop.f32.mrf.mxu0 }
 0xc5d   :  { %v3064_v27 = vsel %vm1223_vm5, %v3033_v38, -inf }
 0xc5e   :  { %3071 = vmax.xlane.f32.xlu1 %v3070_v8  ;;  %3065 = vmax.xlane.f32.xlu0 %v3064_v27  ;;  %v13563_v56 = vpop.f32.mrf.mxu0 }
 0xc5f   :  { %v3079_v36 = vsel %vm1223_vm5, %v13563_v56, -inf }
 0xc60   :  { %v13565_v9 = vpop.f32.mrf.mxu0 }
 0xc61   :  { %v3073_v27 = vsel %vm1223_vm5, %v13565_v9, -inf }
 0xc62   :  { %v13567_v28 = vpop.f32.mrf.mxu0 }
 0xc63   :  { %v3082_v5 = vsel %vm1223_vm5, %v13567_v28, -inf }
 0xc64   :  { %v13571_v8 = vpop.f32.mrf.mxu0 }
 0xc65   :  { %v3076_v35 = vsel %vm1223_vm5, %v13571_v8, -inf }
 0xc6f   :  { %3113 = vrot.lane.b32.xlu1 %v13290_v25, %s12226_s24 }
 0xc73   :  { %3256 = vrot.lane.b32.xlu1 %v12930_v42, %s12227_s25 }
 0xc74   :  { %3115 = vrot.lane.b32.xlu0 %v12924_v17, %s12226_s24 }
 0xc93   :  { %3080 = vmax.xlane.f32.xlu0 %v3079_v36  ;;  %v1660_v36 = vsel %vm1223_vm5, %v13126_v31, 0.0  ;;  %v1943_v31 = vsel %vm1223_vm5, %v13166_v55, 0.0 }
 0xc97   :  { %3074 = vmax.xlane.f32.xlu1 %v3073_v27  ;;  %3077 = vmax.xlane.f32.xlu0 %v3076_v35  ;;  %v1654_v35 = vsel %vm1223_vm5, %v13103_v23, 0.0  ;;  %v1657_v27 = vsel %vm1223_vm5, %v13130_v13, 0.0 }
 0xc9b   :  { %3083 = vmax.xlane.f32.xlu1 %v3082_v5  ;;  %v1651_v5 = vsel %vm1223_vm5, %v13115_v6, 0.0 }
 0xcac   :  { %3252 = vrot.lane.b32.xlu1 %v12924_v17, %s12227_s25 }
 0xcad   :  { %3254 = vrot.lane.b32.xlu0 %v13283_v40, %s12227_s25 }
 0xcb0   :  { %3242 = vrot.lane.b32.xlu1 %v13290_v25, %s12228_s26 }
 0xcb1   :  { %3250 = vrot.lane.b32.xlu0 %v13290_v25, %s12227_s25 }
 0xcb4   :  { %3246 = vrot.lane.b32.xlu1 %v13283_v40, %s12228_s26 }
 0xcb5   :  { %3244 = vrot.lane.b32.xlu0 %v12924_v17, %s12228_s26 }
 0xcb9   :  { %3248 = vrot.lane.b32.xlu0 %v12930_v42, %s12228_s26 }
 0xcd8   :  { %1652 = vadd.xlane.f32.xlu1 %v1651_v5  ;;  %1655 = vadd.xlane.f32.xlu0 %v1654_v35  ;;  %v1946_v35 = vsel %vm1223_vm5, %v13164_v12, 0.0 }
 0xcdc   :  { %1661 = vadd.xlane.f32.xlu1 %v1660_v36  ;;  %1658 = vadd.xlane.f32.xlu0 %v1657_v27 }
 0xce0   :  { %1941 = vadd.xlane.f32.xlu1 %v1940_v24  ;;  %1938 = vadd.xlane.f32.xlu0 %v1937_v48  ;;  %v2223_v24 = vsel %vm1223_vm5, %v13301_v15, 0.0  ;;  %v1666_v15 = vsel %vm1223_vm5, %v13128_v62, 0.0  ;;  %v1952_v62 = vsel %vm1223_vm5, %v13185_v19, 0.0  ;;  %v1955_v19 = vsel %vm1223_vm5, %v13192_v3, 0.0 }
 0xce1   :  { %v3069_v6 = vpop.xlane.xlu0 %3068  ;;  %v2244_v3 = vsel %vm1223_vm5, %v13331_v16, 0.0  ;;  %v1377_v16 = vsel %vm1223_vm5, %v13100_v63, 0.0 }
 0xce2   :  { %v3087_v23 = vsub.f32 %v10573_v33, %v3069_v6  ;;  %v2232_v6 = vsel %vm1223_vm5, %v13303_v52, 0.0 }
 0xce3   :  { %v3063_v5 = vpop.xlane.xlu1 %3062 }
 0xce4   :  { %v3085_v13 = vsub.f32 %v3030_v39, %v3063_v5  ;;  %1947 = vadd.xlane.f32.xlu1 %v1946_v35  ;;  %1944 = vadd.xlane.f32.xlu0 %v1943_v31  ;;  %v3097_v36 = vmul.f32 1.442695, %v3087_v23  ;;  %v2229_v23 = vsel %vm1223_vm5, %v13299_v61, 0.0  ;;  %v1672_v61 = vsel %vm1223_vm5, %v13144_v46, 0.0 }
 0xce5   :  { %v1958_v31 = vsel %vm1223_vm5, %v13195_v47, 0.0  ;;  %v2235_v47 = vsel %vm1223_vm5, %v13322_v43, 0.0  ;;  %v1374_v43 = vsel %vm1223_vm5, %v13067_v11, 0.0 }
 0xce6   :  { %v3093_v27 = vmul.f32 1.442695, %v3085_v13  ;;  %11605 = vpow2.f32 %v3097_v36  ;;  %v2238_v36 = vsel %vm1223_vm5, %v13324_v32, 0.0  ;;  %v1371_v32 = vsel %vm1223_vm5, %v13065_v22, 0.0 }
 0xce7   :  { %v3072_v49 = vpop.xlane.xlu1 %3071  ;;  %v3066_v4 = vpop.xlane.xlu0 %3065 }
 0xce8   :  { %v3088_v48 = vsub.f32 %v10574_v21, %v3072_v49  ;;  %v3086_v33 = vsub.f32 %v3033_v38, %v3066_v4  ;;  %2227 = vadd.xlane.f32.xlu1 %v2226_v44  ;;  %2224 = vadd.xlane.f32.xlu0 %v2223_v24  ;;  %11607 = vpow2.f32 %v3093_v27  ;;  %v1663_v4 = vsel %vm1223_vm5, %v13132_v30, 0.0 }
 0xce9   :  { %v1669_v21 = vsel %vm1223_vm5, %v13150_v20, 0.0  ;;  %v1949_v30 = vsel %vm1223_vm5, %v13188_v50, 0.0  ;;  %v2241_v27 = vsel %vm1223_vm5, %v13328_v51, 0.0  ;;  %v1368_v49 = vsel %vm1223_vm5, %v13058_v0, 0.0 }
 0xcea   :  { %v3099_v12 = vmul.f32 1.442695, %v3088_v48  ;;  %v3095_v55 = vmul.f32 1.442695, %v3086_v33  ;;  %v1365_v44 = vsel %vm1223_vm5, %v13056_v60, 0.0  ;;  %v1380_v51 = vsel %vm1223_vm5, %v13107_v26, 0.0 }
 0xceb   :  { %v3116_v39 = vpop.permute.xlu0 %3115  ;;  %v3114_v57 = vpop.permute.xlu1 %3113  ;;  %v1386_v60 = vsel %vm1223_vm5, %v13105_v34, 0.0  ;;  %v1383_v0 = vsel %vm1223_vm5, %v13111_v1, 0.0 }
 0xcec   :  { %11609 = vpow2.f32 %v3099_v12  ;;  %2233 = vadd.xlane.f32.xlu1 %v2232_v6  ;;  %2230 = vadd.xlane.f32.xlu0 %v2229_v23 }
 0xced   :  { %11611 = vpow2.f32 %v3095_v55  ;;  %10583 = vmatprep.subr.bf16.mxu1 %v3116_v39 }
 0xcee   :  { %10584 = vmatpush3.bf16.msra.mxu1 %v3116_v39 }
 0xcef   :  { %10585 = vmatprep.subr.bf16.mxu1 %v3114_v57  ;;  %v3257_v52 = vpop.permute.xlu1 %3256 }
 0xcf0   :  { %1667 = vadd.xlane.f32.xlu1 %v1666_v15  ;;  %1664 = vadd.xlane.f32.xlu0 %v1663_v4  ;;  %v3280_v13 = vsel %vm1133_vm4, %v3257_v52, 0 }
 0xcf2   :  { %10586 = vmatpush3.bf16.msra.mxu1 %v3114_v57 }
 0xcf3   :  { %11111 = vmatprep.subr.msk.bf16.mxu1 %vm1133_vm4, %v3257_v52  ;;  %v13626_v38 = vpop.eup %11605 }
 0xcf4   :  { %1673 = vadd.xlane.f32.xlu1 %v1672_v61  ;;  %1670 = vadd.xlane.f32.xlu0 %v1669_v21 }
 0xcf5   :  { %v13632_v5 = vpop.eup %11607 }
 0xcf8   :  { %1953 = vadd.xlane.f32.xlu1 %v1952_v62  ;;  %1950 = vadd.xlane.f32.xlu0 %v1949_v30 }
 0xcf9   :  { %v13634_v35 = vpop.eup %11609 }
 0xcfa   :  { %v13636_v46 = vpop.eup %11611  ;;  %v3110_v20 = vpack.c.bf16 %v13634_v35, %v13626_v38 }
 0xcfb   :  { %v3109_v50 = vpack.c.bf16 %v13636_v46, %v13632_v5 }
 0xcfc   :  { %1959 = vadd.xlane.f32.xlu1 %v1958_v31  ;;  %1956 = vadd.xlane.f32.xlu0 %v1955_v19 }
 0xcfd   :  { %10587 = vmatprep.mubr.msk.bf16.mxu1 %vm1223_vm5, %v3109_v50 }
 0xcfe   :  { %10588 = vmatmul.mubr.msk.bf16.vlgmr.msra.gmra.mxu1 %vm1223_vm5, %v3110_v20 }
 0xcff   :  { %10596 = vmatpush3.bf16.xpose.msra.mxu1 %v3280_v13 }
 0xd00   :  { %2239 = vadd.xlane.f32.xlu1 %v2238_v36  ;;  %2236 = vadd.xlane.f32.xlu0 %v2235_v47 }
 0xd04   :  { %2245 = vadd.xlane.f32.xlu1 %v2244_v3  ;;  %2242 = vadd.xlane.f32.xlu0 %v2241_v27 }
 0xd08   :  { %1369 = vadd.xlane.f32.xlu1 %v1368_v49  ;;  %1366 = vadd.xlane.f32.xlu0 %v1365_v44 }
 0xd0c   :  { %1375 = vadd.xlane.f32.xlu1 %v1374_v43  ;;  %1372 = vadd.xlane.f32.xlu0 %v1371_v32 }
 0xd10   :  { %1381 = vadd.xlane.f32.xlu1 %v1380_v51  ;;  %1378 = vadd.xlane.f32.xlu0 %v1377_v16 }
 0xd14   :  { %1387 = vadd.xlane.f32.xlu1 %v1386_v60  ;;  %1384 = vadd.xlane.f32.xlu0 %v1383_v0 }
 0xd1c   :  { %v3081_v11 = vpop.xlane.xlu0 %3080 }
 0xd1d   :  { %v3091_v22 = vsub.f32 %v13563_v56, %v3081_v11 }
 0xd1f   :  { %v3105_v55 = vmul.f32 1.442695, %v3091_v22 }
 0xd20   :  { %v3075_v24 = vpop.xlane.xlu1 %3074  ;;  %v3078_v48 = vpop.xlane.xlu0 %3077 }
 0xd21   :  { %v3089_v26 = vsub.f32 %v13565_v9, %v3075_v24  ;;  %v3090_v33 = vsub.f32 %v13571_v8, %v3078_v48 }
 0xd23   :  { %v3101_v63 = vmul.f32 1.442695, %v3089_v26  ;;  %v3103_v12 = vmul.f32 1.442695, %v3090_v33 }
 0xd24   :  { %v3084_v39 = vpop.xlane.xlu1 %3083  ;;  %v3255_v6 = vpop.permute.xlu0 %3254 }
 0xd25   :  { %11613 = vpow2.f32 %v3101_v63  ;;  %v3092_v34 = vsub.f32 %v13567_v28, %v3084_v39  ;;  %3403 = vrot.lane.b32.xlu1 %v13283_v40, %s12229_s5  ;;  %11112 = vmatprep.subr.msk.bf16.mxu1 %vm1133_vm4, %v3255_v6  ;;  %v3277_v1 = vsel %vm1133_vm4, %v3255_v6, 0 }
 0xd26   :  { %11615 = vpow2.f32 %v3103_v12  ;;  %10598 = vmatpush3.bf16.xpose.msra.mxu1 %v3277_v1 }
 0xd27   :  { %v3107_v56 = vmul.f32 1.442695, %v3092_v34  ;;  %11617 = vpow2.f32 %v3105_v55 }
 0xd28   :  { %v3253_v9 = vpop.permute.xlu1 %3252  ;;  %v3251_v28 = vpop.permute.xlu0 %3250 }
 0xd29   :  { %11619 = vpow2.f32 %v3107_v56  ;;  %3401 = vrot.lane.b32.xlu1 %v12924_v17, %s12229_s5  ;;  %11113 = vmatprep.subr.msk.bf16.mxu1 %vm1133_vm4, %v3253_v9  ;;  %v3274_v40 = vsel %vm1133_vm4, %v3253_v9, 0 }
 0xd2a   :  { %3405 = vrot.lane.b32.xlu0 %v12930_v42, %s12229_s5  ;;  %v3271_v42 = vsel %vm1133_vm4, %v3251_v28, 0 }
 0xd2c   :  { %v3243_v4 = vpop.permute.xlu1 %3242  ;;  %v3245_v52 = vpop.permute.xlu0 %3244 }
 0xd2e   :  { %3399 = vrot.lane.b32.xlu0 %v13290_v25, %s12229_s5  ;;  %10600 = vmatpush3.bf16.xpose.msra.mxu1 %v3274_v40 }
 0xd2f   :  { %11114 = vmatprep.subr.msk.bf16.mxu1 %vm1133_vm4, %v3251_v28 }
 0xd30   :  { %v3247_v61 = vpop.permute.xlu1 %3246  ;;  %v3249_v21 = vpop.permute.xlu0 %3248 }
 0xd32   :  { %v13690_v8 = vpop.eup %11613 }
 0xd33   :  { %v13692_v23 = vpop.eup %11615 }
 0xd34   :  { %v3111_v17 = vpack.c.bf16 %v13692_v23, %v13690_v8  ;;  %v13696_v57 = vpop.eup %11617 }
 0xd36   :  { %v13699_v15 = vpop.eup %11619  ;;  %10591 = vmatprep.mubr.msk.bf16.mxu1 %vm1223_vm5, %v3111_v17  ;;  %10602 = vmatpush3.bf16.xpose.msra.mxu1 %v3271_v42 }
 0xd37   :  { %v3112_v25 = vpack.c.bf16 %v13699_v15, %v13696_v57 }
 0xd39   :  { %10592 = vmatmul.mubr.msk.bf16.gmra.mxu1 %vm1223_vm5, %v3112_v25 }
 0xd3a   :  { %10603 = vmatprep.mubr.msk.bf16.mxu1 %vm1133_vm4, %v3243_v4 }
 0xd41   :  { %10604 = vmatmul.mubr.msk.bf16.vlgmr.msra.gmra.mxu1 %vm1133_vm4, %v3245_v52 }
 0xd42   :  { %10607 = vmatprep.mubr.msk.bf16.mxu1 %vm1133_vm4, %v3247_v61 }
 0xd49   :  { %10608 = vmatmul.mubr.msk.bf16.gmra.mxu1 %vm1133_vm4, %v3249_v21 }
 0xd61   :  { %v1653_v62 = vpop.xlane.xlu1 %1652  ;;  %v1656_v30 = vpop.xlane.xlu0 %1655 }
 0xd62   :  { %11621 = vrcp.f32 %v1653_v62 }
 0xd63   :  { %11623 = vrcp.f32 %v1656_v30 }
 0xd65   :  { %v1662_v20 = vpop.xlane.xlu1 %1661  ;;  %v1659_v31 = vpop.xlane.xlu0 %1658 }
 0xd66   :  { %11625 = vrcp.f32 %v1662_v20 }
 0xd67   :  { %11627 = vrcp.f32 %v1659_v31 }
 0xd69   :  { %v1942_v19 = vpop.xlane.xlu1 %1941  ;;  %v1939_v50 = vpop.xlane.xlu0 %1938 }
 0xd6a   :  { %11629 = vrcp.f32 %v1942_v19 }
 0xd6b   :  { %11631 = vrcp.f32 %v1939_v50 }
 0xd6d   :  { %v13709_v13 = vpop.xlane.xlu1 %1947  ;;  %v13711_v36 = vpop.xlane.xlu0 %1944 }
 0xd6e   :  { %11633 = vrcp.f32 %v13709_v13 }
 0xd6f   :  { %v11622_v47 = vpop.eup %11621 }
 0xd70   :  { %v11624_v3 = vpop.eup %11623  ;;  %v1683_v27 = vmul.f32 %v11622_v47, %v13224_v54 }
 0xd71   :  { %v13714_v49 = vpop.xlane.xlu1 %2227  ;;  %v13716_v44 = vpop.xlane.xlu0 %2224  ;;  %v1684_v43 = vmul.f32 %v11624_v3, %v13228_v2 }
 0xd72   :  { %11635 = vrcp.f32 %v13714_v49 }
 0xd73   :  { %v11626_v32 = vpop.eup %11625  ;;  %v11166_v51 = vpack.i.bf16 %v1684_v43, %v1683_v27  ;;  %11637 = vrcp.f32 %v13716_v44 }
 0xd74   :  { %v11628_v16 = vpop.eup %11627  ;;  %v1686_v60 = vmul.f32 %v11626_v32, %v13226_v37  ;;  %11639 = vrcp.f32 %v13711_v36 }
 0xd75   :  { %11167 = vrot.lane.b32.xlu1 %v11166_v51, %s12230_s29  ;;  %v13721_v0 = vpop.xlane.xlu1 %2233  ;;  %v13723_v11 = vpop.xlane.xlu0 %2230  ;;  %v1685_v54 = vmul.f32 %v11628_v16, %v13222_v29 }
 0xd76   :  { %11641 = vrcp.f32 %v13721_v0 }
 0xd77   :  { %v11630_v22 = vpop.eup %11629  ;;  %v11171_v24 = vpack.i.bf16 %v1686_v60, %v1685_v54 }
 0xd78   :  { %v11632_v48 = vpop.eup %11631  ;;  %v1970_v26 = vmul.f32 %v11630_v22, %v13244_v14 }
 0xd79   :  { %11172 = vrot.lane.b32.xlu0 %v11171_v24, %s12230_s29  ;;  %v13728_v2 = vpop.xlane.xlu1 %1667  ;;  %v13730_v33 = vpop.xlane.xlu0 %1664  ;;  %v1969_v37 = vmul.f32 %v11632_v48, %v13240_v59 }
 0xd7a   :  { %11643 = vrcp.f32 %v13728_v2 }
 0xd7b   :  { %v11176_v63 = vpack.i.bf16 %v1970_v26, %v1969_v37  ;;  %11645 = vrcp.f32 %v13730_v33  ;;  %v11634_v36 = vpop.eup %11633  ;;  %v17013_v26 = vld [vmem:[#allocation44_spill] sm:$0xff]  ;;  %v17014_v33 = vld [vmem:[#allocation46_spill] sm:$0xff] }
 0xd7c   :  { %11647 = vrcp.f32 %v13723_v11 }
 0xd7d   :  { %11177 = vrot.lane.b32.xlu1 %v11176_v63, %s12231_s6  ;;  %v13734_v12 = vpop.xlane.xlu1 %1673  ;;  %v13736_v29 = vpop.xlane.xlu0 %1670 }
 0xd7e   :  { %11649 = vrcp.f32 %v13734_v12  ;;  %v17015_v12 = vld [vmem:[#allocation37_spill] sm:$0xff] }
 0xd7f   :  { %v11636_v49 = vpop.eup %11635 }
 0xd80   :  { %v11638_v44 = vpop.eup %11637  ;;  %v2256_v37 = vmul.f32 %v11636_v49, %v17014_v33  ;;  %v17022_v33 = vld [vmem:[#allocation42_spill] sm:$0xff] }
 0xd81   :  { %v13738_v55 = vpop.xlane.xlu1 %1953  ;;  %v13740_v39 = vpop.xlane.xlu0 %1950  ;;  %v2255_v2 = vmul.f32 %v11638_v44, %v17013_v26  ;;  %v17021_v26 = vld [vmem:[#allocation40_spill] sm:$0xff] }
 0xd82   :  { %11651 = vrcp.f32 %v13738_v55  ;;  %v11640_v0 = vpop.eup %11639  ;;  %v17016_v55 = vld [vmem:[#allocation38_spill] sm:$0xff] }
 0xd83   :  { %11653 = vrcp.f32 %v13740_v39  ;;  %v11642_v11 = vpop.eup %11641  ;;  %v1972_v39 = vmul.f32 %v11634_v36, %v17016_v55  ;;  %v17024_v55 = vld [vmem:[#allocation35_spill] sm:$0xff] }
 0xd84   :  { %11655 = vrcp.f32 %v13736_v29  ;;  %v1971_v29 = vmul.f32 %v11640_v0, %v17015_v12  ;;  %v17023_v12 = vld [vmem:[#allocation33_spill] sm:$0xff] }
 0xd85   :  { %v13742_v14 = vpop.xlane.xlu1 %1959  ;;  %v13744_v6 = vpop.xlane.xlu0 %1956 }
 0xd86   :  { %11657 = vrcp.f32 %v13742_v14 }
 0xd87   :  { %v11644_v48 = vpop.eup %11643 }
 0xd88   :  { %v11646_v63 = vpop.eup %11645 }
 0xd89   :  { %v13746_v34 = vpop.xlane.xlu1 %2239  ;;  %v13748_v1 = vpop.xlane.xlu0 %2236 }
 0xd8a   :  { %11659 = vrcp.f32 %v13746_v34  ;;  %v11648_v14 = vpop.eup %11647 }
 0xd8b   :  { %11661 = vrcp.f32 %v13748_v1  ;;  %v11650_v34 = vpop.eup %11649 }
 0xd8c   :  { %11663 = vrcp.f32 %v13744_v6  ;;  %v11186_v6 = vpack.i.bf16 %v2256_v37, %v2255_v2 }
 0xd8d   :  { %v13750_v59 = vpop.xlane.xlu1 %2245  ;;  %v13752_v56 = vpop.xlane.xlu0 %2242 }
 0xd8e   :  { %11665 = vrcp.f32 %v13750_v59 }
 0xd8f   :  { %11667 = vrcp.f32 %v13752_v56  ;;  %v11652_v1 = vpop.eup %11651 }
 0xd90   :  { %v11654_v59 = vpop.eup %11653  ;;  %v1974_v37 = vmul.f32 %v11652_v1, %v17022_v33  ;;  %v2916_v33 = vsel %vm1223_vm5, %v13498_v53, 0.0  ;;  %v3211_v53 = vsel %vm1223_vm5, %v13634_v35, 0.0 }
 0xd91   :  { %v13754_v9 = vpop.xlane.xlu1 %1369  ;;  %v13756_v40 = vpop.xlane.xlu0 %1366  ;;  %v1973_v2 = vmul.f32 %v11654_v59, %v17021_v26  ;;  %v17030_v26 = vld [vmem:[#allocation49_spill] sm:$0xff] }
 0xd92   :  { %v11656_v44 = vpop.eup %11655  ;;  %11669 = vrcp.f32 %v13754_v9 }
 0xd93   :  { %v11658_v56 = vpop.eup %11657 }
 0xd95   :  { %v13758_v28 = vpop.xlane.xlu1 %1375  ;;  %v13760_v17 = vpop.xlane.xlu0 %1372 }
 0xd97   :  { %v11660_v36 = vpop.eup %11659 }
 0xd99   :  { %v13762_v42 = vpop.xlane.xlu1 %1381  ;;  %v13764_v25 = vpop.xlane.xlu0 %1378 }
 0xd9d   :  { %v13766_v4 = vpop.xlane.xlu1 %1387  ;;  %v13768_v52 = vpop.xlane.xlu0 %1384 }
 0xda1   :  { %v3404_v61 = vpop.permute.xlu1 %3403  ;;  %v3406_v21 = vpop.permute.xlu0 %3405 }
 0xda2   :  { %10611 = vmatprep.subr.bf16.mxu0 %v3406_v21  ;;  %11075 = vmatprep.subr.bf16.mxu1 %v3406_v21 }
 0xda3   :  { %10612 = vmatpush3.bf16.msra.mxu0 %v3406_v21  ;;  %11079 = vmatpush3.bf16.msra.mxu1 %v3406_v21 }
 0xda4   :  { %10613 = vmatprep.subr.bf16.mxu0 %v3404_v61  ;;  %11076 = vmatprep.subr.bf16.mxu1 %v3404_v61 }
 0xda5   :  { %v3402_v62 = vpop.permute.xlu1 %3401  ;;  %v3400_v30 = vpop.permute.xlu0 %3399 }
 0xda7   :  { %10614 = vmatpush3.bf16.msra.mxu0 %v3404_v61  ;;  %11080 = vmatpush3.bf16.msra.mxu1 %v3404_v61  ;;  %v17017_v61 = vld [vmem:[#allocation34_spill] sm:$0xff] }
 0xda8   :  { %10615 = vmatprep.subr.bf16.mxu0 %v3402_v62  ;;  %11077 = vmatprep.subr.bf16.mxu1 %v3402_v62  ;;  %v1687_v21 = vmul.f32 %v11646_v63, %v17017_v61 }
 0xdab   :  { %10616 = vmatpush3.bf16.msra.mxu0 %v3402_v62  ;;  %11081 = vmatpush3.bf16.msra.mxu1 %v3402_v62  ;;  %v17018_v62 = vld [vmem:[#allocation36_spill] sm:$0xff] }
 0xdac   :  { %10617 = vmatprep.subr.bf16.mxu0 %v3400_v30  ;;  %11078 = vmatprep.subr.bf16.mxu1 %v3400_v30 }
 0xdaf   :  { %10618 = vmatpush3.bf16.msra.mxu0 %v3400_v30  ;;  %11082 = vmatpush3.bf16.msra.mxu1 %v3400_v30  ;;  %v1688_v30 = vmul.f32 %v11644_v48, %v17018_v62  ;;  %v11662_v48 = vpop.eup %11661  ;;  %v17026_v62 = vld [vmem:[#allocation50_spill] sm:$0xff] }
 0xdb1   :  { %v11196_v0 = vpack.i.bf16 %v1688_v30, %v1687_v21  ;;  %v2260_v21 = vmul.f32 %v11660_v36, %v17026_v62  ;;  %v13849_v36 = vld [vmem:[%s16861_s9 + $0x8] sm:$0xff]  }
 0xdb2   :  { %10627 = vmatprep.subr.bf16.mxu0 %v13849_v36 }
 0xdbe   :  { %v13770_v20 = vpop.f32.mrf.mxu1 }
 0xdc0   :  { %v13772_v31 = vpop.f32.mrf.mxu1 }
 0xdc2   :  { %v13774_v19 = vpop.f32.mrf.mxu1 }
 0xdc4   :  { %v13776_v50 = vpop.f32.mrf.mxu1 }
 0xdf9   :  { %v13778_v47 = vpop.f32.mrf.mxu1 }
 0xdfb   :  { %v13780_v3 = vpop.f32.mrf.mxu1 }
 0xdfd   :  { %v13782_v27 = vpop.f32.mrf.mxu1 }
 0xdff   :  { %v13784_v43 = vpop.f32.mrf.mxu1 }
 0xe01   :  { %v13786_v32 = vpop.f32.mrf.mxu1 }
 0xe02   :  { %v3353_v51 = vsel %vm1223_vm5, %v13786_v32, -inf }
 0xe03   :  { %v13790_v16 = vpop.f32.mrf.mxu1  ;;  %3354 = vmax.xlane.f32.xlu0 %v3353_v51  ;;  %v11181_v51 = vpack.i.bf16 %v1972_v39, %v1971_v29  ;;  %v1689_v29 = vmul.f32 %v11656_v44, %v17023_v12  ;;  %v1690_v39 = vmul.f32 %v11650_v34, %v17024_v55  ;;  %v17029_v44 = vld [vmem:[#allocation47_spill] sm:$0xff]  ;;  %v3202_v55 = vsel %vm1223_vm5, %v13632_v5, 0.0 }
 0xe04   :  { %v3347_v54 = vsel %vm1223_vm5, %v13790_v16, -inf }
 0xe05   :  { %v13794_v60 = vpop.f32.mrf.mxu1  ;;  %v11201_v59 = vpack.i.bf16 %v1690_v39, %v1689_v29  ;;  %v3205_v29 = vsel %vm1223_vm5, %v13636_v46, 0.0  ;;  %v2931_v39 = vsel %vm1223_vm5, %v13520_v10, 0.0  ;;  %v2928_v46 = vsel %vm1223_vm5, %v13518_v41, 0.0 }
 0xe06   :  { %v3356_v22 = vsel %vm1223_vm5, %v13794_v60, -inf }
 0xe07   :  { %v13802_v24 = vpop.f32.mrf.mxu1  ;;  %3348 = vmax.xlane.f32.xlu0 %v3347_v54  ;;  %3357 = vmax.xlane.f32.xlu1 %v3356_v22  ;;  %v17019_v54 = vld [vmem:[#allocation43_spill] sm:$0xff] }
 0xe08   :  { %v3350_v13 = vsel %vm1223_vm5, %v13802_v24, -inf  ;;  %v2257_v22 = vmul.f32 %v11648_v14, %v17019_v54  ;;  %v11206_v14 = vpack.i.bf16 %v1974_v37, %v1973_v2  ;;  %v17028_v54 = vld [vmem:[#allocation41_spill] sm:$0xff]  ;;  %v2919_v37 = vsel %vm1223_vm5, %v13502_v45, 0.0 }
 0xe09   :  { %v3208_v45 = vsel %vm1223_vm5, %v13626_v38, 0.0  ;;  %v2934_v38 = vsel %vm1223_vm5, %v13524_v7, 0.0  ;;  %v3217_v7 = vsel %vm1223_vm5, %v13692_v23, 0.0  ;;  %v17034_v23 = vld [vmem:[#allocation53_spill] sm:$0xff] }
 0xe0b   :  { %3351 = vmax.xlane.f32.xlu1 %v3350_v13  ;;  %v17020_v13 = vld [vmem:[#allocation45_spill] sm:$0xff] }
 0xe0c   :  { %v2258_v49 = vmul.f32 %v11642_v11, %v17020_v13  ;;  %v11664_v11 = vpop.eup %11663 }
 0xe0d   :  { %v11666_v30 = vpop.eup %11665 }
 0xe0e   :  { %v11191_v63 = vpack.i.bf16 %v2258_v49, %v2257_v22  ;;  %v1976_v22 = vmul.f32 %v11658_v56, %v17028_v54  ;;  %v11668_v13 = vpop.eup %11667  ;;  %v2262_v2 = vmul.f32 %v11666_v30, %v17030_v26  ;;  %v17035_v54 = vld [vmem:[#allocation51_spill] sm:$0xff] }
 0xe1c   :  { %11187 = vrot.lane.b32.xlu1 %v11186_v6, %s16906_s30  ;;  %v17025_v6 = vld [vmem:[#allocation48_spill] sm:$0xff] }
 0xe1d   :  { %11182 = vrot.lane.b32.xlu0 %v11181_v51, %s12231_s6  ;;  %v2259_v61 = vmul.f32 %v11662_v48, %v17025_v6  ;;  %v17027_v51 = vld [vmem:[#allocation39_spill] sm:$0xff]  ;;  %v2925_v48 = vsel %vm1223_vm5, %v13500_v18, 0.0  ;;  %v13869_v18 = vpop.f32.mrf.mxu1  ;;  %v3214_v6 = vsel %vm1223_vm5, %v13690_v8, 0.0  ;;  %v17032_v8 = vld [vmem:[#allocation54_spill] sm:$0xff] }
 0xe1e   :  { %v1975_v1 = vmul.f32 %v11664_v11, %v17027_v51  ;;  %v3365_v41 = vsel %vm1223_vm5, %v13869_v18, -inf  ;;  %v2633_v30 = vsel %vm1223_vm5, %v17032_v8, 0.0 }
 0xe1f   :  { %v11216_v34 = vpack.i.bf16 %v2260_v21, %v2259_v61  ;;  %v13875_v11 = vpop.f32.mrf.mxu1  ;;  %v3223_v21 = vsel %vm1223_vm5, %v13699_v15, 0.0  ;;  %v11168_v15 = vpop.permute.xlu1 %11167 }
 0xe20   :  { %11197 = vrot.lane.b32.xlu1 %v11196_v0, %s12230_s29  ;;  %v11211_v49 = vpack.i.bf16 %v1976_v22, %v1975_v1  ;;  %v2261_v0 = vmul.f32 %v11668_v13, %v17029_v44  ;;  %v3359_v5 = vsel %vm1223_vm5, %v13875_v11, -inf  ;;  %v2639_v1 = vsel %vm1223_vm5, %v17034_v23, 0.0 }
 0xe21   :  { %11192 = vrot.lane.b32.xlu0 %v11191_v63, %s16906_s30  ;;  %v17031_v63 = vld [vmem:[#allocation67_spill] sm:$0xff]  ;;  %v13881_v35 = vpop.f32.mrf.mxu1  ;;  %v2636_v22 = vsel %vm1223_vm5, %v17035_v54, 0.0 }
 0xe22   :  { %v11221_v56 = vpack.i.bf16 %v2262_v2, %v2261_v0  ;;  %v2922_v12 = vsel %vm1223_vm5, %v17031_v63, 0.0  ;;  %v3368_v10 = vsel %vm1223_vm5, %v13881_v35, -inf }
 0xe23   :  { %v13891_v61 = vpop.f32.mrf.mxu1  ;;  %v11178_v13 = vpop.permute.xlu1 %11177 }
 0xe24   :  { %11207 = vrot.lane.b32.xlu1 %v11206_v14, %s12231_s6  ;;  %v2937_v14 = vsel %vm1223_vm5, %v13527_v58, 0.0  ;;  %v3362_v62 = vsel %vm1223_vm5, %v13891_v61, -inf  ;;  %v3220_v58 = vsel %vm1223_vm5, %v13696_v57, 0.0  ;;  %v13909_v57 = vpop.permute.xlu0 %11172 }
 0xe25   :  { %11202 = vrot.lane.b32.xlu0 %v11201_v59, %s12230_s29  ;;  %v17033_v59 = vld [vmem:[#allocation52_spill] sm:$0xff] }
 0xe26   :  { %v2630_v51 = vsel %vm1223_vm5, %v17033_v59, 0.0 }
 0xe28   :  { %11217 = vrot.lane.b32.xlu1 %v11216_v34, %s16906_s30 }
 0xe29   :  { %11212 = vrot.lane.b32.xlu0 %v11211_v49, %s12231_s6 }
 0xe2d   :  { %11222 = vrot.lane.b32.xlu0 %v11221_v56, %s16906_s30 }
 0xe4c   :  { %2917 = vadd.xlane.f32.xlu1 %v2916_v33  ;;  %2920 = vadd.xlane.f32.xlu0 %v2919_v37 }
 0xe50   :  { %2926 = vadd.xlane.f32.xlu1 %v2925_v48  ;;  %2923 = vadd.xlane.f32.xlu0 %v2922_v12 }
 0xe54   :  { %3206 = vadd.xlane.f32.xlu1 %v3205_v29  ;;  %3203 = vadd.xlane.f32.xlu0 %v3202_v55 }
 0xe58   :  { %3212 = vadd.xlane.f32.xlu1 %v3211_v53  ;;  %3209 = vadd.xlane.f32.xlu0 %v3208_v45  ;;  %v11170_v53 = vunpack.i.h.bf16 %v11168_v15  ;;  %v11169_v45 = vunpack.i.l.bf16 %v11168_v15  ;;  %v11175_v15 = vunpack.i.h.bf16 %v13909_v57 }
 0xe5c   :  { %2932 = vadd.xlane.f32.xlu1 %v2931_v39  ;;  %2929 = vadd.xlane.f32.xlu0 %v2928_v46 }
 0xe60   :  { %3360 = vmax.xlane.f32.xlu1 %v3359_v5  ;;  %2935 = vadd.xlane.f32.xlu0 %v2934_v38  ;;  %v17036_v38 = vld [vmem:[#allocation28_spill] sm:$0xff] }
 0xe64   :  { %3369 = vmax.xlane.f32.xlu1 %v3368_v10  ;;  %3366 = vmax.xlane.f32.xlu0 %v3365_v41  ;;  %v17037_v41 = vld [vmem:[#allocation26_spill] sm:$0xff] }
 0xe68   :  { %2938 = vadd.xlane.f32.xlu1 %v2937_v14  ;;  %3215 = vadd.xlane.f32.xlu0 %v3214_v6 }
 0xe6c   :  { %3218 = vadd.xlane.f32.xlu1 %v3217_v7  ;;  %3363 = vmax.xlane.f32.xlu0 %v3362_v62 }
 0xe70   :  { %3224 = vadd.xlane.f32.xlu1 %v3223_v21  ;;  %3221 = vadd.xlane.f32.xlu0 %v3220_v58 }
 0xe74   :  { %2634 = vadd.xlane.f32.xlu1 %v2633_v30  ;;  %2631 = vadd.xlane.f32.xlu0 %v2630_v51  ;;  %v17038_v30 = vld [vmem:[#allocation25_spill] sm:$0xff]  ;;  %v17039_v51 = vld [vmem:[#allocation27_spill] sm:$0xff] }
 0xe78   :  { %2640 = vadd.xlane.f32.xlu1 %v2639_v1  ;;  %2637 = vadd.xlane.f32.xlu0 %v2636_v22 }
 0xe8c   :  { %v3355_v34 = vpop.xlane.xlu0 %3354 }
 0xe8d   :  { %v3373_v49 = vsub.f32 %v13786_v32, %v3355_v34 }
 0xe8f   :  { %v3383_v44 = vmul.f32 1.442695, %v3373_v49 }
 0xe90   :  { %v3358_v0 = vpop.xlane.xlu1 %3357  ;;  %v3349_v26 = vpop.xlane.xlu0 %3348 }
 0xe91   :  { %11671 = vpow2.f32 %v3383_v44  ;;  %v3374_v2 = vsub.f32 %v13794_v60, %v3358_v0  ;;  %v3371_v56 = vsub.f32 %v13790_v16, %v3349_v26 }
 0xe92   :  { %11673 = vrcp.f32 %v13756_v40 }
 0xe93   :  { %11675 = vrcp.f32 %v13758_v28  ;;  %v3385_v33 = vmul.f32 1.442695, %v3374_v2  ;;  %v3379_v37 = vmul.f32 1.442695, %v3371_v56  ;;  %v11670_v28 = vpop.eup %11669 }
 0xe94   :  { %11677 = vrcp.f32 %v13760_v17  ;;  %v3352_v48 = vpop.xlane.xlu1 %3351  ;;  %v13919_v63 = vpop.permute.xlu0 %11182  ;;  %v1398_v10 = vmul.f32 %v11670_v28, %v17036_v38 }
 0xe95   :  { %11679 = vpow2.f32 %v3385_v33  ;;  %v3372_v32 = vsub.f32 %v13802_v24, %v3352_v48  ;;  %v11185_v0 = vunpack.i.h.bf16 %v13919_v63  ;;  %v11184_v26 = vunpack.i.l.bf16 %v13919_v63 }
 0xe96   :  { %11681 = vpow2.f32 %v3379_v37  ;;  %v2360_v58 = vsel %vm1133_vm4, %v1398_v10, %v11170_v53 }
 0xe97   :  { %v3381_v9 = vmul.f32 1.442695, %v3372_v32 }
 0xe98   :  { %v11188_v12 = vpop.permute.xlu1 %11187  ;;  %v13925_v16 = vpop.permute.xlu0 %11192 }
 0xe99   :  { %11683 = vpow2.f32 %v3381_v9  ;;  %v11190_v6 = vunpack.i.h.bf16 %v11188_v12  ;;  %v11189_v7 = vunpack.i.l.bf16 %v11188_v12  ;;  %v11195_v48 = vunpack.i.h.bf16 %v13925_v16  ;;  %v11434_v12 = vld [vmem:[%s16861_s9] sm:$0xff]  }
 0xe9a   :  { %11685 = vrcp.f32 %v13762_v42  ;;  %v11180_v42 = vunpack.i.h.bf16 %v11178_v13  ;;  %v11194_v28 = vunpack.i.l.bf16 %v13925_v16 }
 0xe9b   :  { %11687 = vrcp.f32 %v13764_v25  ;;  %v11179_v25 = vunpack.i.l.bf16 %v11178_v13  ;;  %v11174_v13 = vunpack.i.l.bf16 %v13909_v57 }
 0xe9c   :  { %v13923_v40 = vpop.permute.xlu1 %11197  ;;  %11689 = vrcp.f32 %v13766_v4  ;;  %v13932_v62 = vpop.permute.xlu0 %11202  ;;  %v2368_v1 = vsel %vm413_vm3, %v2360_v58, %v11180_v42 }
 0xe9d   :  { %11691 = vrcp.f32 %v13768_v52  ;;  %v2377_v34 = vsel %vm2375_vm6, %v2368_v1, %v11190_v6  ;;  %v11200_v32 = vunpack.i.h.bf16 %v13923_v40  ;;  %v11199_v57 = vunpack.i.l.bf16 %v13923_v40  ;;  %v17043_v1 = vld [vmem:[#allocation29_spill] sm:$0xff] }
 0xe9e   :  { %v11672_v17 = vpop.eup %11671  ;;  %v11205_v58 = vunpack.i.h.bf16 %v13932_v62 }
 0xe9f   :  { %v11674_v60 = vpop.eup %11673  ;;  %v3494_v29 = vsel %vm1223_vm5, %v11672_v17, 0.0 }
 0xea0   :  { %v11676_v24 = vpop.eup %11675  ;;  %3495 = vadd.xlane.f32.xlu0 %v3494_v29  ;;  %v11208_v46 = vpop.permute.xlu1 %11207  ;;  %v1397_v14 = vmul.f32 %v11674_v60, %v17037_v41 }
 0xea1   :  { %v11678_v55 = vpop.eup %11677  ;;  %v1400_v23 = vmul.f32 %v11676_v24, %v17039_v51  ;;  %v11213_v9 = vpop.permute.xlu0 %11212  ;;  %v11210_v63 = vunpack.i.h.bf16 %v11208_v46  ;;  %v11209_v60 = vunpack.i.l.bf16 %v11208_v46 }
 0xea2   :  { %v11680_v39 = vpop.eup %11679  ;;  %v2359_v52 = vsel %vm1133_vm4, %v1397_v14, %v11169_v45  ;;  %v1399_v59 = vmul.f32 %v11678_v55, %v17038_v30  ;;  %v17041_v55 = vld [vmem:[#allocation30_spill] sm:$0xff]  ;;  %v17042_v30 = vld [vmem:[#allocation31_spill] sm:$0xff]  ;;  %v11215_v51 = vunpack.i.h.bf16 %v11213_v9 }
 0xea3   :  { %v11682_v5 = vpop.eup %11681  ;;  %v3497_v4 = vsel %vm1223_vm5, %v11680_v39, 0.0  ;;  %v2367_v54 = vsel %vm413_vm3, %v2359_v52, %v11179_v25  ;;  %v3396_v37 = vpack.c.bf16 %v11680_v39, %v11672_v17  ;;  %v17040_v17 = vld [vmem:[#allocation32_spill] sm:$0xff]  ;;  %v2362_v40 = vsel %vm1133_vm4, %v1400_v23, %v11175_v15 }
 0xea4   :  { %v3488_v21 = vsel %vm1223_vm5, %v11682_v5, 0.0  ;;  %3498 = vadd.xlane.f32.xlu1 %v3497_v4  ;;  %v2376_v49 = vsel %vm2375_vm6, %v2367_v54, %v11189_v7  ;;  %v11218_v2 = vpop.permute.xlu1 %11217  ;;  %v2361_v42 = vsel %vm1133_vm4, %v1399_v59, %v11174_v13  ;;  %v2370_v25 = vsel %vm413_vm3, %v2362_v40, %v11185_v0 }
 0xea5   :  { %3489 = vadd.xlane.f32.xlu0 %v3488_v21  ;;  %v3653_v29 = vpack.c.bf16 %v2377_v34, %v2376_v49  ;;  %v11220_v45 = vunpack.i.h.bf16 %v11218_v2  ;;  %v11219_v39 = vunpack.i.l.bf16 %v11218_v2  ;;  %v2369_v16 = vsel %vm413_vm3, %v2361_v42, %v11184_v26  ;;  %v11223_v21 = vpop.permute.xlu0 %11222 }
 0xea6   :  { %v11684_v8 = vpop.eup %11683  ;;  %v2378_v10 = vsel %vm2375_vm6, %v2369_v16, %v11194_v28  ;;  %v2379_v41 = vsel %vm2375_vm6, %v2370_v25, %v11195_v48  ;;  %v11204_v52 = vunpack.i.l.bf16 %v13932_v62  ;;  %v11214_v23 = vunpack.i.l.bf16 %v11213_v9 }
 0xea7   :  { %v11686_v22 = vpop.eup %11685  ;;  %v3491_v56 = vsel %vm1223_vm5, %v11684_v8, 0.0  ;;  %v3395_v33 = vpack.c.bf16 %v11684_v8, %v11682_v5  ;;  %v3654_v8 = vpack.c.bf16 %v2379_v41, %v2378_v10  ;;  %v11224_v15 = vunpack.i.l.bf16 %v11223_v21 }
 0xea8   :  { %v11688_v44 = vpop.eup %11687  ;;  %3492 = vadd.xlane.f32.xlu1 %v3491_v56  ;;  %v1402_v24 = vmul.f32 %v11686_v22, %v17040_v17  ;;  %v11225_v22 = vunpack.i.h.bf16 %v11223_v21 }
 0xea9   :  { %10619 = vmatprep.mubr.msk.bf16.mxu0 %vm1223_vm5, %v3395_v33  ;;  %v1401_v53 = vmul.f32 %v11688_v44, %v17041_v55  ;;  %v11690_v38 = vpop.eup %11689 }
 0xeaa   :  { %10620 = vmatmul.mubr.msk.bf16.vlgmr.msra.gmra.mxu0 %vm1223_vm5, %v3396_v37  ;;  %v2364_v46 = vsel %vm1133_vm4, %v1402_v24, %v11200_v32  ;;  %v11692_v6 = vpop.eup %11691  ;;  %v1404_v59 = vmul.f32 %v11690_v38, %v17042_v30 }
 0xeab   :  { %10628 = vmatpush3.bf16.msra.mxu0 %v13849_v36  ;;  %10631 = vmatprep.mubr.msk.bf16.mxu0 %vm302_vm2, %v3653_v29  ;;  %v2363_v5 = vsel %vm1133_vm4, %v1401_v53, %v11199_v57  ;;  %v2372_v14 = vsel %vm413_vm3, %v2364_v46, %v11210_v63  ;;  %v1403_v54 = vmul.f32 %v11692_v6, %v17043_v1 }
 0xeac   :  { %10629 = vmatprep.subr.bf16.mxu0 %v11434_v12  ;;  %v2371_v36 = vsel %vm413_vm3, %v2363_v5, %v11209_v60  ;;  %v2381_v7 = vsel %vm2375_vm6, %v2372_v14, %v11220_v45  ;;  %v2366_v34 = vsel %vm1133_vm4, %v1404_v59, %v11205_v58 }
 0xead   :  { %v2380_v4 = vsel %vm2375_vm6, %v2371_v36, %v11219_v39  ;;  %v2365_v49 = vsel %vm1133_vm4, %v1403_v54, %v11204_v52  ;;  %v2374_v44 = vsel %vm413_vm3, %v2366_v34, %v11215_v51 }
 0xeae   :  { %v3655_v13 = vpack.c.bf16 %v2381_v7, %v2380_v4  ;;  %v2373_v62 = vsel %vm413_vm3, %v2365_v49, %v11214_v23  ;;  %v2383_v26 = vsel %vm2375_vm6, %v2374_v44, %v11225_v22  ;;  %v14048_v44 = vld [vmem:[%s16855_s14 + $0x8] ss:$0 sm:$0xff] }
 0xeaf   :  { %10630 = vmatpush3.bf16.msra.mxu0 %v11434_v12  ;;  %v2382_v0 = vsel %vm2375_vm6, %v2373_v62, %v11224_v15 }
 0xeb0   :  { %v3656_v2 = vpack.c.bf16 %v2383_v26, %v2382_v0 }
 0xeb2   :  { %10632 = vmatmul.mubr.msk.bf16.vlgmr.msra.gmra.mxu0 %vm302_vm2, %v3654_v8 }
 0xeb3   :  { %10635 = vmatprep.mubr.msk.bf16.mxu0 %vm302_vm2, %v3655_v13 }
 0xeba   :  { %10636 = vmatmul.mubr.msk.bf16.gmra.mxu0 %vm302_vm2, %v3656_v2 }
 0xed5   :  { %v13987_v56 = vpop.xlane.xlu1 %2917  ;;  %v13989_v33 = vpop.xlane.xlu0 %2920 }
 0xed9   :  { %v13991_v37 = vpop.xlane.xlu1 %2926  ;;  %v13993_v48 = vpop.xlane.xlu0 %2923 }
 0xedd   :  { %v13995_v32 = vpop.xlane.xlu1 %3206  ;;  %v13997_v57 = vpop.xlane.xlu0 %3203 }
 0xee1   :  { %v13999_v9 = vpop.xlane.xlu1 %3212  ;;  %v14001_v12 = vpop.xlane.xlu0 %3209 }
 0xee5   :  { %v14003_v28 = vpop.xlane.xlu1 %2932  ;;  %v14005_v63 = vpop.xlane.xlu0 %2929 }
 0xee9   :  { %v3361_v60 = vpop.xlane.xlu1 %3360  ;;  %v14007_v29 = vpop.xlane.xlu0 %2935 }
 0xeea   :  { %v3375_v17 = vsub.f32 %v13875_v11, %v3361_v60 }
 0xeec   :  { %v3387_v42 = vmul.f32 1.442695, %v3375_v17 }
 0xeed   :  { %v3370_v24 = vpop.xlane.xlu1 %3369  ;;  %v3367_v55 = vpop.xlane.xlu0 %3366 }
 0xeee   :  { %v3378_v53 = vsub.f32 %v13881_v35, %v3370_v24  ;;  %v3377_v45 = vsub.f32 %v13869_v18, %v3367_v55 }
 0xef0   :  { %v3393_v39 = vmul.f32 1.442695, %v3378_v53  ;;  %v3391_v40 = vmul.f32 1.442695, %v3377_v45 }
 0xef1   :  { %v14012_v16 = vpop.xlane.xlu0 %3215 }
 0xef2   :  { %11693 = vpow2.f32 %v3393_v39 }
 0xef3   :  { %11695 = vpow2.f32 %v3391_v40 }
 0xef4   :  { %11697 = vpow2.f32 %v3387_v42 }
 0xef5   :  { %v3364_v25 = vpop.xlane.xlu0 %3363 }
 0xef6   :  { %v3376_v46 = vsub.f32 %v13891_v61, %v3364_v25  ;;  %v14021_v61 = vpop.xlane.xlu1 %2938 }
 0xef8   :  { %v3389_v5 = vmul.f32 1.442695, %v3376_v46 }
 0xef9   :  { %v14025_v21 = vpop.xlane.xlu0 %3221 }
 0xefa   :  { %11699 = vpow2.f32 %v3389_v5  ;;  %v14023_v4 = vpop.xlane.xlu1 %3218 }
 0xefd   :  { %v14029_v52 = vpop.xlane.xlu0 %2631 }
 0xefe   :  { %v14027_v58 = vpop.xlane.xlu1 %3224 }
 0xeff   :  { %v11694_v11 = vpop.eup %11693 }
 0xf00   :  { %v11696_v38 = vpop.eup %11695  ;;  %v3509_v10 = vsel %vm1223_vm5, %v11694_v11, 0.0 }
 0xf01   :  { %3510 = vadd.xlane.f32.xlu1 %v3509_v10  ;;  %v3506_v18 = vsel %vm1223_vm5, %v11696_v38, 0.0  ;;  %v11698_v35 = vpop.eup %11697  ;;  %v3398_v7 = vpack.c.bf16 %v11694_v11, %v11696_v38  ;;  %v14033_v30 = vpop.xlane.xlu0 %2637  ;;  %v17044_v10 = vld [vmem:[#allocation55_spill] sm:$0xff] }
 0xf02   :  { %3507 = vadd.xlane.f32.xlu0 %v3506_v18  ;;  %v3500_v41 = vsel %vm1223_vm5, %v11698_v35, 0.0  ;;  %v14031_v8 = vpop.xlane.xlu1 %2634  ;;  %v2642_v18 = vsel %vm1223_vm5, %v17044_v10, 0.0 }
 0xf06   :  { %3501 = vadd.xlane.f32.xlu0 %v3500_v41  ;;  %v14035_v59 = vpop.xlane.xlu1 %2640 }
 0xf07   :  { %v11700_v14 = vpop.eup %11699 }
 0xf08   :  { %v3503_v36 = vsel %vm1223_vm5, %v11700_v14, 0.0  ;;  %v3397_v6 = vpack.c.bf16 %v11700_v14, %v11698_v35  ;;  %v17045_v35 = vld [vmem:[#allocation56_spill] sm:$0xff] }
 0xf09   :  { %3504 = vadd.xlane.f32.xlu1 %v3503_v36  ;;  %v2645_v41 = vsel %vm1223_vm5, %v17045_v35, 0.0 }
 0xf0a   :  { %10623 = vmatprep.mubr.msk.bf16.mxu1 %vm1223_vm5, %v3397_v6 }
 0xf0b   :  { %10624 = vmatmul.mubr.msk.bf16.vlgmr.msra.gmra.mxu1 %vm1223_vm5, %v3398_v7 }
 0xf29   :  { %v3496_v51 = vpop.xlane.xlu0 %3495 }
 0xf2a   :  { %11701 = vrcp.f32 %v3496_v51 }
 0xf2d   :  { %v3499_v23 = vpop.xlane.xlu1 %3498 }
 0xf2e   :  { %11703 = vrcp.f32 %v3499_v23  ;;  %v14072_v14 = vpop.xlane.xlu0 %3489 }
 0xf2f   :  { %11705 = vrcp.f32 %v13991_v37  ;;  %v17050_v37 = vld [vmem:[#allocation70_spill] sm:$0xff] }
 0xf30   :  { %11707 = vrcp.f32 %v13993_v48 }
 0xf31   :  { %v14074_v36 = vpop.xlane.xlu1 %3492  ;;  %11709 = vrcp.f32 %v13987_v56  ;;  %v17051_v56 = vld [vmem:[#allocation69_spill] sm:$0xff] }
 0xf32   :  { %11711 = vrcp.f32 %v13989_v33 }
 0xf33   :  { %11713 = vrcp.f32 %v13995_v32 }
 0xf34   :  { %11715 = vrcp.f32 %v13997_v57 }
 0xf35   :  { %11717 = vrcp.f32 %v13999_v9 }
 0xf36   :  { %11719 = vrcp.f32 %v14001_v12 }
 0xf37   :  { %v11702_v22 = vpop.eup %11701  ;;  %11721 = vrcp.f32 %v14003_v28 }
 0xf38   :  { %11723 = vrcp.f32 %v14074_v36 }
 0xf39   :  { %11725 = vrcp.f32 %v14005_v63 }
 0xf3a   :  { %11727 = vrcp.f32 %v14072_v14 }
 0xf3b   :  { %v11704_v15 = vpop.eup %11703  ;;  %11729 = vrcp.f32 %v14021_v61 }
 0xf3c   :  { %11731 = vrcp.f32 %v14007_v29 }
 0xf3d   :  { %11733 = vrcp.f32 %v14023_v4 }
 0xf3e   :  { %11735 = vrcp.f32 %v14027_v58 }
 0xf6a   :  { %v10621_v1 = vpop.f32.mrf.mxu0 }
 0xf6b   :  { %v14039_v34 = vmul.f32 %v11702_v22, %v10621_v1  ;;  %v17046_v22 = vld [vmem:[#allocation22_spill] sm:$0xff] }
 0xf6c   :  { %v14037_v54 = vpop.f32.mrf.mxu0 }
 0xf6e   :  { %v10622_v13 = vpop.f32.mrf.mxu0 }
 0xf6f   :  { %v14041_v49 = vmul.f32 %v11704_v15, %v10622_v13 }
 0xf70   :  { %v14043_v62 = vpop.f32.mrf.mxu0 }
 0xf71   :  { %v11251_v0 = vpack.i.bf16 %v14041_v49, %v14039_v34 }
 0xf72   :  { %v10633_v26 = vpop.f32.mrf.mxu0 }
 0xf73   :  { %v3746_v2 = vadd.f32 %v10633_v26, %v14048_v44 }
 0xf74   :  { %v3737_v60 = vpop.f32.mrf.mxu0 }
 0xf75   :  { %v3738_v17 = vadd.f32 %v14048_v44, %v3737_v60  ;;  %3820 = vrot.lane.b32.xlu1 %v3746_v2, %s12224_s22 }
 0xf76   :  { %v10634_v24 = vpop.f32.mrf.mxu0 }
 0xf77   :  { %3816 = vrot.lane.b32.xlu0 %v3738_v17, %s12224_s22  ;;  %v3749_v53 = vadd.f32 %v10634_v24, %v14048_v44 }
 0xf78   :  { %v3740_v55 = vpop.f32.mrf.mxu0 }
 0xf79   :  { %v3741_v45 = vadd.f32 %v14048_v44, %v3740_v55 }
 0xf7a   :  { %v10637_v39 = vpop.f32.mrf.mxu0 }
 0xf7b   :  { %3818 = vrot.lane.b32.xlu1 %v3741_v45, %s12224_s22  ;;  %3822 = vrot.lane.b32.xlu0 %v3749_v53, %s12224_s22  ;;  %v3762_v42 = vadd.f32 %v10637_v39, %v14048_v44 }
 0xf7c   :  { %v3753_v40 = vpop.f32.mrf.mxu0 }
 0xf7d   :  { %v3754_v11 = vadd.f32 %v14048_v44, %v3753_v40 }
 0xf7e   :  { %v10638_v25 = vpop.f32.mrf.mxu0 }
 0xf7f   :  { %v3765_v46 = vadd.f32 %v10638_v25, %v14048_v44  ;;  %3828 = vrot.lane.b32.xlu1 %v3762_v42, %s12224_s22 }
 0xf80   :  { %v3756_v5 = vpop.f32.mrf.mxu0 }
 0xf81   :  { %3830 = vrot.lane.b32.xlu0 %v3765_v46, %s12224_s22  ;;  %v3757_v38 = vadd.f32 %v14048_v44, %v3756_v5  ;;  %v17047_v5 = vld [vmem:[#allocation57_spill] sm:$0xff] }
 0xf83   :  { %3824 = vrot.lane.b32.xlu1 %v3754_v11, %s12224_s22  ;;  %v2648_v11 = vsel %vm1223_vm5, %v17047_v5, 0.0 }
 0xf85   :  { %3826 = vrot.lane.b32.xlu0 %v3757_v38, %s12224_s22  ;;  %v17048_v38 = vld [vmem:[#allocation58_spill] sm:$0xff] }
 0xf86   :  { %v2651_v10 = vsel %vm1223_vm5, %v17048_v38, 0.0 }
 0xf8a   :  { %v14076_v6 = vpop.xlane.xlu1 %3510 }
 0xf8b   :  { %v14078_v7 = vpop.xlane.xlu0 %3507 }
 0xf8f   :  { %v14082_v23 = vpop.xlane.xlu0 %3501 }
 0xf92   :  { %v14080_v51 = vpop.xlane.xlu1 %3504 }
 0xfa4   :  { %2643 = vadd.xlane.f32.xlu0 %v2642_v18  ;;  %v11706_v18 = vpop.eup %11705  ;;  %11737 = vrcp.f32 %v14025_v21 }
 0xfa5   :  { %v11708_v35 = vpop.eup %11707  ;;  %11739 = vrcp.f32 %v14012_v16 }
 0xfa7   :  { %2646 = vadd.xlane.f32.xlu1 %v2645_v41  ;;  %v11710_v41 = vpop.eup %11709  ;;  %11741 = vrcp.f32 %v14080_v51 }
 0xfa8   :  { %v11712_v48 = vpop.eup %11711  ;;  %11743 = vrcp.f32 %v14076_v6 }
 0xfa9   :  { %v11714_v57 = vpop.eup %11713  ;;  %11745 = vrcp.f32 %v14082_v23 }
 0xfaa   :  { %v11716_v9 = vpop.eup %11715  ;;  %v3235_v14 = vmul.f32 %v11714_v57, %v13776_v50  ;;  %11747 = vrcp.f32 %v14078_v7 }
 0xfab   :  { %v11718_v12 = vpop.eup %11717  ;;  %v3234_v63 = vmul.f32 %v11716_v9, %v13772_v31  ;;  %11749 = vrcp.f32 %v14031_v8 }
 0xfac   :  { %v11720_v28 = vpop.eup %11719  ;;  %v3237_v29 = vmul.f32 %v11718_v12, %v13774_v19  ;;  %11751 = vrcp.f32 %v14029_v52 }
 0xfad   :  { %v3236_v61 = vmul.f32 %v11720_v28, %v13770_v20  ;;  %v11236_v16 = vpack.i.bf16 %v3235_v14, %v3234_v63 }
 0xfcb   :  { %v10625_v36 = vpop.f32.mrf.mxu1 }
 0xfcd   :  { %v3473_v50 = vpop.f32.mrf.mxu1 }
 0xfe7   :  { %v3821_v1 = vpop.permute.xlu1 %3820 }
 0xfe8   :  { %v3866_v15 = vmul.f32 %v3821_v1, %v17046_v22  ;;  %v17049_v1 = vld [vmem:[#allocation68_spill] sm:$0xff] }
 0xfe9   :  { %v3817_v13 = vpop.permute.xlu0 %3816 }
 0xfea   :  { %3900 = vrot.lane.b32.xlu1 %v3866_v15, %s12224_s22  ;;  %v3864_v26 = vmul.f32 %v3817_v13, %v17046_v22  ;;  %v2950_v15 = vmul.f32 %v11708_v35, %v17049_v1  ;;  %v2951_v13 = vmul.f32 %v11706_v18, %v17050_v37  ;;  %v17056_v1 = vld [vmem:[#allocation9_spill] sm:$0xff]  ;;  %v17057_v37 = vld [vmem:[#allocation8_spill] sm:$0xff] }
 0xfed   :  { %v3819_v2 = vpop.permute.xlu1 %3818  ;;  %v3823_v60 = vpop.permute.xlu0 %3822 }
 0xfee   :  { %v3867_v17 = vmul.f32 %v3823_v60, %v17046_v22  ;;  %3896 = vrot.lane.b32.xlu1 %v3864_v26, %s12224_s22  ;;  %v3865_v55 = vmul.f32 %v3819_v2, %v17046_v22  ;;  %v11231_v26 = vpack.i.bf16 %v2951_v13, %v2950_v15  ;;  %v2948_v2 = vmul.f32 %v11710_v41, %v17051_v56  ;;  %v17052_v60 = vld [vmem:[#allocation71_spill] sm:$0xff] }
 0xff0   :  { %3902 = vrot.lane.b32.xlu0 %v3867_v17, %s12224_s22  ;;  %v2949_v17 = vmul.f32 %v11712_v48, %v17052_v60  ;;  %v17058_v60 = vld [vmem:[#allocation10_spill] sm:$0xff] }
 0xff1   :  { %v3829_v24 = vpop.permute.xlu1 %3828 }
 0xff2   :  { %v3870_v53 = vmul.f32 %v3829_v24, %v17046_v22  ;;  %v11226_v33 = vpack.i.bf16 %v2949_v17, %v2948_v2 }
 0xff3   :  { %v3831_v45 = vpop.permute.xlu0 %3830 }
 0xff4   :  { %3908 = vrot.lane.b32.xlu1 %v3870_v53, %s12224_s22  ;;  %3898 = vrot.lane.b32.xlu0 %v3865_v55, %s12224_s22  ;;  %v3871_v40 = vmul.f32 %v3831_v45, %v17046_v22  ;;  %v17053_v53 = vld [vmem:[#allocation5_spill] sm:$0xff] }
 0xff5   :  { %v3825_v39 = vpop.permute.xlu1 %3824 }
 0xff6   :  { %v3868_v42 = vmul.f32 %v3825_v39, %v17046_v22 }
 0xff7   :  { %v3827_v25 = vpop.permute.xlu0 %3826 }
 0xff8   :  { %3904 = vrot.lane.b32.xlu1 %v3868_v42, %s12224_s22  ;;  %3910 = vrot.lane.b32.xlu0 %v3871_v40, %s12224_s22  ;;  %v3869_v46 = vmul.f32 %v3827_v25, %v17046_v22  ;;  %v17054_v25 = vld [vmem:[#allocation6_spill] sm:$0xff] }
 0xffc   :  { %3906 = vrot.lane.b32.xlu0 %v3869_v46, %s12224_s22 }
0x101b   :  { %2649 = vadd.xlane.f32.xlu0 %v2648_v11  ;;  %v17055_v11 = vld [vmem:[#allocation7_spill] sm:$0xff] }
0x101c   :  { %2652 = vadd.xlane.f32.xlu1 %v2651_v10 }
0x102d   :  { %11232 = vrot.lane.b32.xlu1 %v11231_v26, %s12230_s29  ;;  %v14119_v39 = vpop.xlane.xlu0 %2643 }
0x1030   :  { %v14114_v24 = vpop.xlane.xlu1 %2646 }
0x1031   :  { %11227 = vrot.lane.b32.xlu0 %v11226_v33, %s12230_s29  ;;  %v17059_v33 = vld [vmem:[#allocation11_spill] sm:$0xff] }
0x105c   :  { %v3901_v55 = vpop.permute.xlu1 %3900 }
0x105d   :  { %v14117_v45 = vadd.f32 %v3901_v55, %v17053_v53 }
0x105f   :  { %v3966_v40 = vsel %vm302_vm2, %v14117_v45, 0.0 }
0x1060   :  { %v3897_v42 = vpop.permute.xlu1 %3896  ;;  %3967 = vadd.xlane.f32.xlu0 %v3966_v40 }
0x1061   :  { %v14124_v46 = vadd.f32 %v3897_v42, %v17054_v25  ;;  %v17060_v42 = vld [vmem:[#allocation12_spill] sm:$0xff] }
0x1062   :  { %v3903_v5 = vpop.permute.xlu0 %3902 }
0x1063   :  { %v14127_v38 = vadd.f32 %v3903_v5, %v17055_v11  ;;  %v3960_v10 = vsel %vm302_vm2, %v14124_v46, 0.0  ;;  %v11722_v11 = vpop.eup %11721  ;;  %11753 = vrcp.f32 %v14035_v59 }
0x1064   :  { %3961 = vadd.xlane.f32.xlu0 %v3960_v10  ;;  %v11724_v4 = vpop.eup %11723  ;;  %v11241_v10 = vpack.i.bf16 %v3237_v29, %v3236_v61  ;;  %11755 = vrcp.f32 %v14033_v30 }
0x1065   :  { %v3969_v18 = vsel %vm302_vm2, %v14127_v38, 0.0  ;;  %v11726_v58 = vpop.eup %11725  ;;  %v3521_v21 = vmul.f32 %v11724_v4, %v14043_v62  ;;  %11757 = vrcp.f32 %v14119_v39 }
0x1066   :  { %v3909_v35 = vpop.permute.xlu1 %3908  ;;  %3970 = vadd.xlane.f32.xlu1 %v3969_v18  ;;  %v3899_v41 = vpop.permute.xlu0 %3898 }
0x1067   :  { %v14134_v15 = vadd.f32 %v3909_v35, %v17056_v1  ;;  %v14137_v13 = vadd.f32 %v3899_v41, %v17057_v37  ;;  %v11728_v31 = vpop.eup %11727  ;;  %v17061_v35 = vld [vmem:[#allocation73_spill] sm:$0xff]  ;;  %v17062_v41 = vld [vmem:[#allocation75_spill] sm:$0xff]  ;;  %v10626_v37 = vpop.f32.mrf.mxu1  ;;  %11759 = vrcp.f32 %v14114_v24  ;;  %v17066_v24 = vld [vmem:[#allocation62_spill] sm:$0xff] }
0x1068   :  { %v11730_v20 = vpop.eup %11729  ;;  %v3520_v19 = vmul.f32 %v11728_v31, %v14037_v54  ;;  %v2952_v62 = vmul.f32 %v11726_v58, %v17061_v35  ;;  %v2953_v23 = vmul.f32 %v11722_v11, %v17062_v41  ;;  %v17064_v54 = vld [vmem:[#allocation72_spill] sm:$0xff] }
0x1069   :  { %v3978_v48 = vsel %vm302_vm2, %v14134_v15, 0.0  ;;  %v3963_v26 = vsel %vm302_vm2, %v14137_v13, 0.0  ;;  %v11732_v51 = vpop.eup %11731 }
0x106a   :  { %v3905_v56 = vpop.permute.xlu1 %3904  ;;  %3979 = vadd.xlane.f32.xlu0 %v3978_v48  ;;  %3964 = vadd.xlane.f32.xlu1 %v3963_v26  ;;  %v3911_v2 = vpop.permute.xlu0 %3910  ;;  %v11246_v18 = vpack.i.bf16 %v3521_v21, %v3520_v19  ;;  %v17063_v48 = vld [vmem:[#allocation74_spill] sm:$0xff] }
0x106b   :  { %v14145_v17 = vadd.f32 %v3905_v56, %v17058_v60  ;;  %v14148_v55 = vadd.f32 %v3911_v2, %v17059_v33  ;;  %v11734_v6 = vpop.eup %11733  ;;  %v2955_v7 = vmul.f32 %v11730_v20, %v17063_v48  ;;  %v2954_v2 = vmul.f32 %v11732_v51, %v17064_v54 }
0x106c   :  { %v11736_v1 = vpop.eup %11735  ;;  %v11256_v60 = vpack.i.bf16 %v2953_v23, %v2952_v62  ;;  %v3239_v33 = vmul.f32 %v11734_v6, %v13784_v43 }
0x106d   :  { %v3972_v53 = vsel %vm302_vm2, %v14145_v17, 0.0  ;;  %v3981_v40 = vsel %vm302_vm2, %v14148_v55, 0.0  ;;  %v11738_v26 = vpop.eup %11737 }
0x106e   :  { %3973 = vadd.xlane.f32.xlu0 %v3972_v53  ;;  %3982 = vadd.xlane.f32.xlu1 %v3981_v40  ;;  %v3907_v32 = vpop.permute.xlu0 %3906  ;;  %v11740_v56 = vpop.eup %11739  ;;  %v11261_v40 = vpack.i.bf16 %v2955_v7, %v2954_v2 }
0x106f   :  { %v14158_v25 = vadd.f32 %v3907_v32, %v17060_v42  ;;  %v3476_v53 = vpop.f32.mrf.mxu1  ;;  %v3240_v32 = vmul.f32 %v11738_v26, %v13778_v47  ;;  %v3241_v42 = vmul.f32 %v11736_v1, %v13782_v27  ;;  %v11742_v57 = vpop.eup %11741 }
0x1070   :  { %v11744_v34 = vpop.eup %11743  ;;  %v3525_v49 = vmul.f32 %v11742_v57, %v3476_v53 }
0x1071   :  { %v3975_v5 = vsel %vm302_vm2, %v14158_v25, 0.0  ;;  %v11746_v9 = vpop.eup %11745  ;;  %v3527_v12 = vmul.f32 %v11744_v34, %v10626_v37  ;;  %v11271_v28 = vpack.i.bf16 %v3241_v42, %v3240_v32 }
0x1072   :  { %3976 = vadd.xlane.f32.xlu1 %v3975_v5  ;;  %v3238_v5 = vmul.f32 %v11740_v56, %v13780_v3  ;;  %v11748_v43 = vpop.eup %11747  ;;  %v3524_v63 = vmul.f32 %v11746_v9, %v3473_v50 }
0x1073   :  { %v3526_v47 = vmul.f32 %v11748_v43, %v10625_v36  ;;  %v11750_v26 = vpop.eup %11749  ;;  %v17067_v43 = vld [vmem:[#allocation61_spill] sm:$0xff] }
0x1074   :  { %v11276_v27 = vpack.i.bf16 %v3525_v49, %v3524_v63  ;;  %v11752_v56 = vpop.eup %11751  ;;  %v2663_v34 = vmul.f32 %v11750_v26, %v17066_v24 }
0x1075   :  { %v11281_v14 = vpack.i.bf16 %v3527_v12, %v3526_v47  ;;  %v11754_v32 = vpop.eup %11753 }
0x1076   :  { %v11756_v42 = vpop.eup %11755  ;;  %v2665_v63 = vmul.f32 %v11754_v32, %v17067_v43 }
0x1083   :  { %11237 = vrot.lane.b32.xlu1 %v11236_v16, %s12231_s6 }
0x1084   :  { %11242 = vrot.lane.b32.xlu0 %v11241_v10, %s12231_s6 }
0x1087   :  { %11247 = vrot.lane.b32.xlu1 %v11246_v18, %s16906_s30 }
0x1088   :  { %11252 = vrot.lane.b32.xlu0 %v11251_v0, %s16906_s30  ;;  %v11266_v0 = vpack.i.bf16 %v3239_v33, %v3238_v5  ;;  %v17065_v5 = vld [vmem:[#allocation60_spill] sm:$0xff] }
0x1089   :  { %v2662_v57 = vmul.f32 %v11752_v56, %v17065_v5 }
0x108b   :  { %11257 = vrot.lane.b32.xlu1 %v11256_v60, %s12230_s29 }
0x108c   :  { %11262 = vrot.lane.b32.xlu0 %v11261_v40, %s12230_s29 }
0x108f   :  { %11267 = vrot.lane.b32.xlu1 %v11266_v0, %s12231_s6 }
0x1090   :  { %11272 = vrot.lane.b32.xlu0 %v11271_v28, %s12231_s6 }
0x1093   :  { %11277 = vrot.lane.b32.xlu1 %v11276_v27, %s16906_s30 }
0x1094   :  { %11282 = vrot.lane.b32.xlu0 %v11281_v14, %s16906_s30 }
0x10a4   :  { %v2650_v3 = vpop.xlane.xlu0 %2649 }
0x10a5   :  { %v2653_v61 = vpop.xlane.xlu1 %2652  ;;  %11761 = vrcp.f32 %v2650_v3 }
0x10a6   :  { %11763 = vrcp.f32 %v2653_v61 }
0x10a8   :  { %v14203_v29 = vpop.permute.xlu0 %11227 }
0x10a9   :  { %v14205_v58 = vpop.permute.xlu1 %11232  ;;  %v11230_v49 = vunpack.i.h.bf16 %v14203_v29  ;;  %v11229_v0 = vunpack.i.l.bf16 %v14203_v29  ;;  %v17068_v29 = vld [vmem:[#allocation59_spill] sm:$0xff] }
0x10aa   :  { %v11235_v47 = vunpack.i.h.bf16 %v14205_v58  ;;  %v11234_v27 = vunpack.i.l.bf16 %v14205_v58 }
0x10ab   :  { %v3624_v58 = vsel %vm1133_vm4, %v2662_v57, %v11229_v0  ;;  %v17069_v0 = vld [vmem:[#allocation64_spill] sm:$0xff] }
0x10e9   :  { %v3968_v11 = vpop.xlane.xlu0 %3967 }
0x10ea   :  { %v4010_v4 = vmul.f32 0.03125, %v3968_v11  ;;  %v2664_v11 = vmul.f32 %v11756_v42, %v17068_v29 }
0x10ec   :  { %v14209_v36 = vsub.f32 %v14117_v45, %v4010_v4 }
0x10ed   :  { %v3962_v21 = vpop.xlane.xlu0 %3961 }
0x10ee   :  { %v4008_v16 = vmul.f32 0.03125, %v3962_v21  ;;  %v4042_v31 = vmul.f32 %v14209_v36, %v14209_v36 }
0x10ef   :  { %v3971_v50 = vpop.xlane.xlu1 %3970 }
0x10f0   :  { %v14217_v10 = vsub.f32 %v14124_v46, %v4008_v16  ;;  %v4011_v20 = vmul.f32 0.03125, %v3971_v50  ;;  %v4062_v8 = vsel %vm302_vm2, %v4042_v31, 0.0 }
0x10f1   :  { %4063 = vadd.xlane.f32.xlu0 %v4062_v8 }
0x10f2   :  { %v14221_v19 = vsub.f32 %v14127_v38, %v4011_v20  ;;  %v4040_v52 = vmul.f32 %v14217_v10, %v14217_v10 }
0x10f3   :  { %v3965_v51 = vpop.xlane.xlu1 %3964  ;;  %v3980_v6 = vpop.xlane.xlu0 %3979 }
0x10f4   :  { %v4009_v18 = vmul.f32 0.03125, %v3965_v51  ;;  %v4014_v59 = vmul.f32 0.03125, %v3980_v6  ;;  %v4056_v35 = vsel %vm302_vm2, %v4040_v52, 0.0  ;;  %v4043_v30 = vmul.f32 %v14221_v19, %v14221_v19 }
0x10f5   :  { %4057 = vadd.xlane.f32.xlu1 %v4056_v35  ;;  %v3625_v52 = vsel %vm1133_vm4, %v2663_v34, %v11230_v49  ;;  %v3627_v6 = vsel %vm1133_vm4, %v2665_v63, %v11235_v47 }
0x10f6   :  { %v14229_v62 = vsub.f32 %v14137_v13, %v4009_v18  ;;  %v14232_v41 = vsub.f32 %v14134_v15, %v4014_v59  ;;  %v4065_v48 = vsel %vm302_vm2, %v4043_v30, 0.0  ;;  %v3626_v18 = vsel %vm1133_vm4, %v2664_v11, %v11234_v27  ;;  %v17071_v11 = vld [vmem:[#allocation63_spill] sm:$0xff] }
0x10f7   :  { %v3983_v23 = vpop.xlane.xlu1 %3982  ;;  %v3974_v1 = vpop.xlane.xlu0 %3973 }
0x10f8   :  { %v4012_v37 = vmul.f32 0.03125, %v3974_v1  ;;  %v4041_v7 = vmul.f32 %v14229_v62, %v14229_v62  ;;  %v4046_v60 = vmul.f32 %v14232_v41, %v14232_v41  ;;  %v4015_v33 = vmul.f32 0.03125, %v3983_v23 }
0x10f9   :  { %4066 = vadd.xlane.f32.xlu1 %v4065_v48 }
0x10fa   :  { %v14240_v54 = vsub.f32 %v14145_v17, %v4012_v37  ;;  %v4059_v2 = vsel %vm302_vm2, %v4041_v7, 0.0  ;;  %v4074_v12 = vsel %vm302_vm2, %v4046_v60, 0.0  ;;  %v14259_v14 = vsub.f32 %v14148_v55, %v4015_v33  ;;  %v11758_v33 = vpop.eup %11757 }
0x10fb   :  { %v3977_v53 = vpop.xlane.xlu1 %3976  ;;  %4060 = vadd.xlane.f32.xlu0 %v4059_v2  ;;  %v11243_v40 = vpop.permute.xlu0 %11242 }
0x10fc   :  { %v4013_v39 = vmul.f32 0.03125, %v3977_v53  ;;  %v4044_v28 = vmul.f32 %v14240_v54, %v14240_v54  ;;  %v11245_v4 = vunpack.i.h.bf16 %v11243_v40  ;;  %v11244_v21 = vunpack.i.l.bf16 %v11243_v40  ;;  %v11760_v32 = vpop.eup %11759 }
0x10fd   :  { %v4047_v23 = vmul.f32 %v14259_v14, %v14259_v14  ;;  %v11762_v24 = vpop.eup %11761 }
0x10fe   :  { %v14250_v9 = vsub.f32 %v14158_v25, %v4013_v39  ;;  %v4068_v51 = vsel %vm302_vm2, %v4044_v28, 0.0  ;;  %v3635_v1 = vsel %vm413_vm3, %v3627_v6, %v11245_v4  ;;  %v3634_v37 = vsel %vm413_vm3, %v3626_v18, %v11244_v21  ;;  %v11764_v49 = vpop.eup %11763  ;;  %v17070_v28 = vld [vmem:[#allocation66_spill] sm:$0xff]  ;;  %v17072_v21 = vld [vmem:[#allocation65_spill] sm:$0xff] }
0x10ff   :  { %v11238_v3 = vpop.permute.xlu1 %11237  ;;  %4075 = vadd.xlane.f32.xlu0 %v4074_v12  ;;  %v11253_v61 = vpop.permute.xlu0 %11252  ;;  %v4077_v42 = vsel %vm302_vm2, %v4047_v23, 0.0  ;;  %v2666_v12 = vmul.f32 %v11758_v33, %v17069_v0  ;;  %v2667_v43 = vmul.f32 %v11760_v32, %v17070_v28  ;;  %v2668_v4 = vmul.f32 %v11762_v24, %v17071_v11  ;;  %v11436_v32 = vld [vmem:[%s16862_s10] sm:$0xff]  }
0x1100   :  { %v11240_v16 = vunpack.i.h.bf16 %v11238_v3  ;;  %v11239_v31 = vunpack.i.l.bf16 %v11238_v3  ;;  %v11255_v50 = vunpack.i.h.bf16 %v11253_v61  ;;  %v11254_v20 = vunpack.i.l.bf16 %v11253_v61 }
0x1101   :  { %v4045_v8 = vmul.f32 %v14250_v9, %v14250_v9 }
0x1102   :  { %v3632_v26 = vsel %vm413_vm3, %v3624_v58, %v11239_v31  ;;  %v3633_v56 = vsel %vm413_vm3, %v3625_v52, %v11240_v16  ;;  %v3642_v2 = vsel %vm2375_vm6, %v3634_v37, %v11254_v20  ;;  %v3643_v60 = vsel %vm2375_vm6, %v3635_v1, %v11255_v50 }
0x1103   :  { %v11248_v59 = vpop.permute.xlu1 %11247  ;;  %v4071_v35 = vsel %vm302_vm2, %v4045_v8, 0.0  ;;  %4069 = vadd.xlane.f32.xlu0 %v4068_v51  ;;  %v11263_v30 = vpop.permute.xlu0 %11262  ;;  %v3658_v34 = vpack.c.bf16 %v3643_v60, %v3642_v2  ;;  %v2669_v16 = vmul.f32 %v11764_v49, %v17072_v21 }
0x1104   :  { %v11250_v48 = vunpack.i.h.bf16 %v11248_v59  ;;  %v11249_v7 = vunpack.i.l.bf16 %v11248_v59  ;;  %4072 = vadd.xlane.f32.xlu1 %v4071_v35  ;;  %v11265_v63 = vunpack.i.h.bf16 %v11263_v30  ;;  %v11264_v47 = vunpack.i.l.bf16 %v11263_v30 }
0x1106   :  { %v3640_v53 = vsel %vm2375_vm6, %v3632_v26, %v11249_v7  ;;  %v3641_v40 = vsel %vm2375_vm6, %v3633_v56, %v11250_v48  ;;  %v3631_v51 = vsel %vm1133_vm4, %v2669_v16, %v11265_v63  ;;  %v3630_v6 = vsel %vm1133_vm4, %v2668_v4, %v11264_v47  ;;  %v17073_v47 = vld [vmem:[#allocation4_spill] sm:$0xff] }
0x1107   :  { %v11258_v39 = vpop.permute.xlu1 %11257  ;;  %v11273_v5 = vpop.permute.xlu0 %11272  ;;  %v3657_v57 = vpack.c.bf16 %v3641_v40, %v3640_v53  ;;  %v11435_v40 = vld [vmem:[%s16862_s10 + $0x8] sm:$0xff]  }
0x1108   :  { %4078 = vadd.xlane.f32.xlu1 %v4077_v42  ;;  %v11260_v27 = vunpack.i.h.bf16 %v11258_v39  ;;  %v11259_v3 = vunpack.i.l.bf16 %v11258_v39  ;;  %v11275_v31 = vunpack.i.h.bf16 %v11273_v5  ;;  %v11274_v50 = vunpack.i.l.bf16 %v11273_v5  ;;  %10647 = vmatprep.subr.bf16.mxu1 %v11435_v40 }
0x1109   :  { %10639 = vmatprep.mubr.msk.bf16.mxu0 %vm302_vm2, %v3657_v57  ;;  %10648 = vmatpush3.bf16.msra.mxu1 %v11435_v40 }
0x110a   :  { %10640 = vmatmul.mubr.msk.bf16.gmra.mxu0 %vm302_vm2, %v3658_v34  ;;  %v3629_v18 = vsel %vm1133_vm4, %v2667_v43, %v11260_v27  ;;  %v3628_v59 = vsel %vm1133_vm4, %v2666_v12, %v11259_v3  ;;  %v3638_v30 = vsel %vm413_vm3, %v3630_v6, %v11274_v50  ;;  %v3639_v23 = vsel %vm413_vm3, %v3631_v51, %v11275_v31  ;;  %v17074_v27 = vld [vmem:[#allocation21_spill] sm:$0xff] }
0x110b   :  { %v11268_v61 = vpop.permute.xlu1 %11267  ;;  %v11283_v29 = vpop.permute.xlu0 %11282  ;;  %10649 = vmatprep.subr.bf16.mxu1 %v11436_v32  ;;  %v14311_v3 = vrot.slane %v17074_v27, %v17073_v47 }
0x110c   :  { %v11270_v20 = vunpack.i.h.bf16 %v11268_v61  ;;  %v11269_v8 = vunpack.i.l.bf16 %v11268_v61  ;;  %v11285_v52 = vunpack.i.h.bf16 %v11283_v29  ;;  %v11284_v58 = vunpack.i.l.bf16 %v11283_v29 }
0x110d   :  { %10650 = vmatpush3.bf16.msra.mxu1 %v11436_v32  ;;  %v696_v4 = vrot.slane %v14311_v3, %v17073_v47 }
0x110e   :  { %v3636_v48 = vsel %vm413_vm3, %v3628_v59, %v11269_v8  ;;  %v3637_v7 = vsel %vm413_vm3, %v3629_v18, %v11270_v20  ;;  %v3646_v26 = vsel %vm2375_vm6, %v3638_v30, %v11284_v58  ;;  %v3647_v56 = vsel %vm2375_vm6, %v3639_v23, %v11285_v52  ;;  %v17075_v58 = vld [vmem:[#allocation2_spill] sm:$0xff] }
0x110f   :  { %v11278_v35 = vpop.permute.xlu1 %11277  ;;  %v3660_v53 = vpack.c.bf16 %v3647_v56, %v3646_v26  ;;  %v14316_v51 = vrot.slane %v696_v4, %v17075_v58 }
0x1110   :  { %v11280_v1 = vunpack.i.h.bf16 %v11278_v35  ;;  %v11279_v37 = vunpack.i.l.bf16 %v11278_v35 }
0x1112   :  { %v3644_v2 = vsel %vm2375_vm6, %v3636_v48, %v11279_v37  ;;  %v3645_v60 = vsel %vm2375_vm6, %v3637_v7, %v11280_v1  ;;  %v4168_v37 = vadd.f32 1.0, %v14316_v51 }
0x1113   :  { %v3659_v33 = vpack.c.bf16 %v3645_v60, %v3644_v2 }
0x1115   :  { %10643 = vmatprep.mubr.msk.bf16.mxu0 %vm302_vm2, %v3659_v33 }
0x1116   :  { %10644 = vmatmul.mubr.msk.bf16.gmra.mxu0 %vm302_vm2, %v3660_v53 }
0x1119   :  { %4186 = vrot.lane.b32.xlu0 %v17046_v22, %s12233_s1 }
0x117a   :  { %v4064_v39 = vpop.xlane.xlu0 %4063 }
0x117b   :  { %v4106_v42 = vmul.f32 0.03125, %v4064_v39 }
0x117d   :  { %v4122_v24 = vadd.f32 1e-06, %v4106_v42 }
0x117e   :  { %v4058_v5 = vpop.xlane.xlu1 %4057 }
0x117f   :  { %v4104_v57 = vmul.f32 0.03125, %v4058_v5 }
0x1181   :  { %v4120_v34 = vadd.f32 1e-06, %v4104_v57 }
0x1182   :  { %v4067_v49 = vpop.xlane.xlu1 %4066 }
0x1183   :  { %11765 = vrsqrt.f32 %v4120_v34  ;;  %v4107_v0 = vmul.f32 0.03125, %v4067_v49 }
0x1184   :  { %11767 = vrsqrt.f32 %v4122_v24  ;;  %v4061_v12 = vpop.xlane.xlu0 %4060 }
0x1185   :  { %v4123_v28 = vadd.f32 1e-06, %v4107_v0  ;;  %v4105_v43 = vmul.f32 0.03125, %v4061_v12 }
0x1187   :  { %11769 = vrsqrt.f32 %v4123_v28  ;;  %v4121_v63 = vadd.f32 1e-06, %v4105_v43 }
0x1188   :  { %v4076_v22 = vpop.xlane.xlu0 %4075 }
0x1189   :  { %11771 = vrsqrt.f32 %v4121_v63  ;;  %v4110_v61 = vmul.f32 0.03125, %v4076_v22 }
0x118b   :  { %v4126_v29 = vadd.f32 1e-06, %v4110_v61 }
0x118c   :  { %v4070_v11 = vpop.xlane.xlu0 %4069 }
0x118d   :  { %v4073_v21 = vpop.xlane.xlu1 %4072  ;;  %v4108_v16 = vmul.f32 0.03125, %v4070_v11  ;;  %11773 = vrsqrt.f32 %v4126_v29 }
0x118e   :  { %v4109_v31 = vmul.f32 0.03125, %v4073_v21 }
0x118f   :  { %v4124_v50 = vadd.f32 1e-06, %v4108_v16 }
0x1190   :  { %v11766_v20 = vpop.eup %11765  ;;  %v4125_v8 = vadd.f32 1e-06, %v4109_v31  ;;  %v4187_v60 = vpop.permute.xlu0 %4186 }
0x1191   :  { %v11768_v52 = vpop.eup %11767  ;;  %11775 = vrsqrt.f32 %v4124_v50  ;;  %v4079_v6 = vpop.xlane.xlu1 %4078  ;;  %v4152_v59 = vmul.f32 %v11766_v20, %v14217_v10 }
0x1192   :  { %11777 = vrsqrt.f32 %v4125_v8  ;;  %v4111_v18 = vmul.f32 0.03125, %v4079_v6  ;;  %v4154_v30 = vmul.f32 %v11768_v52, %v14209_v36 }
0x1193   :  { %v4170_v26 = vmul.f32 %v4168_v37, %v4152_v59 }
0x1194   :  { %v11770_v35 = vpop.eup %11769  ;;  %v4127_v23 = vadd.f32 1e-06, %v4111_v18  ;;  %v4172_v2 = vmul.f32 %v4168_v37, %v4154_v30  ;;  %v11437_v30 = vld [vmem:[%s16863_s11 + $0x38] sm:$0xff]  }
0x1195   :  { %v4155_v1 = vmul.f32 %v11770_v35, %v14221_v19  ;;  %v4192_v40 = vadd.f32 %v4187_v60, %v4170_v26  ;;  %10667 = vmatprep.subr.bf16.mxu0 %v11437_v30  ;;  %v11444_v26 = vld [vmem:[%s16863_s11] sm:$0xff]  }
0x1196   :  { %v11772_v48 = vpop.eup %11771  ;;  %11779 = vrsqrt.f32 %v4127_v23  ;;  %v4194_v32 = vadd.f32 %v4187_v60, %v4172_v2  ;;  %10668 = vmatpush3.bf16.msra.mxu0 %v11437_v30  ;;  %v11438_v23 = vld [vmem:[%s16863_s11 + $0x30] sm:$0xff]  }
0x1197   :  { %v4153_v7 = vmul.f32 %v11772_v48, %v14229_v62  ;;  %v4173_v56 = vmul.f32 %v4168_v37, %v4155_v1  ;;  %10669 = vmatprep.subr.bf16.mxu0 %v11438_v23  ;;  %v11439_v1 = vld [vmem:[%s16863_s11 + $0x28] sm:$0xff]   ;;  %v11442_v48 = vld [vmem:[%s16863_s11 + $0x10] sm:$0xff]  }
0x1198   :  { %v17076_v2 = vld [vmem:[#allocation24_spill] sm:$0xff] }
0x1199   :  { %v4171_v33 = vmul.f32 %v4168_v37, %v4153_v7  ;;  %v4195_v53 = vadd.f32 %v4187_v60, %v4173_v56  ;;  %v11443_v7 = vld [vmem:[%s16863_s11 + $0x8] sm:$0xff]  }
0x119a   :  { %v11774_v39 = vpop.eup %11773  ;;  %10670 = vmatpush3.bf16.msra.mxu0 %v11438_v23 }
0x119b   :  { %v4193_v10 = vadd.f32 %v4187_v60, %v4171_v33  ;;  %v4214_v5 = vpack.c.bf16 %v4195_v53, %v4194_v32  ;;  %v4158_v24 = vmul.f32 %v11774_v39, %v14232_v41  ;;  %10671 = vmatprep.subr.bf16.mxu0 %v11439_v1 }
0x119d   :  { %v4213_v36 = vpack.c.bf16 %v4193_v10, %v4192_v40  ;;  %v4176_v63 = vmul.f32 %v4168_v37, %v4158_v24 }
0x119e   :  { %v11776_v42 = vpop.eup %11775  ;;  %10672 = vmatpush3.bf16.msra.mxu0 %v11439_v1 }
0x119f   :  { %v11778_v19 = vpop.eup %11777  ;;  %10651 = vmatprep.mubr.msk.bf16.mxu1 %vm302_vm2, %v4213_v36  ;;  %v4156_v57 = vmul.f32 %v11776_v42, %v14240_v54  ;;  %v4198_v61 = vadd.f32 %v4187_v60, %v4176_v63 }
0x11a0   :  { %10652 = vmatmul.mubr.msk.bf16.vlgmr.msra.gmra.mxu1 %vm302_vm2, %v4214_v5  ;;  %v4157_v62 = vmul.f32 %v11778_v19, %v14250_v9 }
0x11a1   :  { %v4174_v34 = vmul.f32 %v4168_v37, %v4156_v57 }
0x11a2   :  { %v4175_v49 = vmul.f32 %v4168_v37, %v4157_v62 }
0x11a3   :  { %v11780_v0 = vpop.eup %11779  ;;  %v4196_v12 = vadd.f32 %v4187_v60, %v4174_v34 }
0x11a4   :  { %v4197_v28 = vadd.f32 %v4187_v60, %v4175_v49  ;;  %v4159_v43 = vmul.f32 %v11780_v0, %v14259_v14  ;;  %v14390_v49 = vld [vmem:[%s16855_s14 + $0x9] ss:$0 sm:$0xff] }
0x11a6   :  { %v4215_v22 = vpack.c.bf16 %v4197_v28, %v4196_v12  ;;  %v4177_v27 = vmul.f32 %v4168_v37, %v4159_v43  ;;  %v11441_v37 = vld [vmem:[%s16863_s11 + $0x18] sm:$0xff]  }
0x11a8   :  { %10655 = vmatprep.mubr.msk.bf16.mxu1 %vm302_vm2, %v4215_v22  ;;  %v4199_v54 = vadd.f32 %v4187_v60, %v4177_v27 }
0x11aa   :  { %v4216_v29 = vpack.c.bf16 %v4199_v54, %v4198_v61 }
0x11ac   :  { %10656 = vmatmul.mubr.msk.bf16.gmra.mxu1 %vm302_vm2, %v4216_v29 }
0x11ca   :  { %v10641_v9 = vpop.f32.mrf.mxu0 }
0x11cb   :  { %v3778_v41 = vadd.f32 %v10641_v9, %v14048_v44 }
0x11cc   :  { %v3769_v11 = vpop.f32.mrf.mxu0 }
0x11cd   :  { %v3770_v4 = vadd.f32 %v14048_v44, %v3769_v11  ;;  %3836 = vrot.lane.b32.xlu0 %v3778_v41, %s12224_s22 }
0x11ce   :  { %v10642_v21 = vpop.f32.mrf.mxu0 }
0x11cf   :  { %3832 = vrot.lane.b32.xlu1 %v3770_v4, %s12224_s22  ;;  %v3781_v31 = vadd.f32 %v10642_v21, %v14048_v44 }
0x11d0   :  { %v3772_v14 = vpop.f32.mrf.mxu0 }
0x11d1   :  { %v3773_v16 = vadd.f32 %v14048_v44, %v3772_v14 }
0x11d3   :  { %3834 = vrot.lane.b32.xlu1 %v3773_v16, %s12224_s22 }
0x11d6   :  { %v10645_v50 = vpop.f32.mrf.mxu0 }
0x11d7   :  { %3838 = vrot.lane.b32.xlu1 %v3781_v31, %s12224_s22  ;;  %v3794_v18 = vadd.f32 %v10645_v50, %v14048_v44 }
0x11d8   :  { %v3785_v20 = vpop.f32.mrf.mxu0 }
0x11d9   :  { %v3786_v8 = vadd.f32 %v14048_v44, %v3785_v20 }
0x11da   :  { %v10646_v52 = vpop.f32.mrf.mxu0 }
0x11db   :  { %3840 = vrot.lane.b32.xlu0 %v3786_v8, %s12224_s22  ;;  %v3797_v35 = vadd.f32 %v10646_v52, %v14048_v44 }
0x11dc   :  { %v3788_v6 = vpop.f32.mrf.mxu0 }
0x11dd   :  { %v3789_v59 = vadd.f32 %v14048_v44, %v3788_v6  ;;  %v11440_v44 = vld [vmem:[%s16863_s11 + $0x20] sm:$0xff]  }
0x11de   :  { %10673 = vmatprep.subr.bf16.mxu0 %v11440_v44 }
0x11df   :  { %3844 = vrot.lane.b32.xlu0 %v3794_v18, %s12224_s22  ;;  %3842 = vrot.lane.b32.xlu1 %v3789_v59, %s12224_s22 }
0x11e0   :  { %10674 = vmatpush3.bf16.msra.mxu0 %v11440_v44 }
0x11e1   :  { %10675 = vmatprep.subr.bf16.mxu0 %v11441_v37 }
0x11e3   :  { %3846 = vrot.lane.b32.xlu1 %v3797_v35, %s12224_s22 }
0x11e4   :  { %10676 = vmatpush3.bf16.msra.mxu0 %v11441_v37 }
0x11e5   :  { %10677 = vmatprep.subr.bf16.mxu0 %v11442_v48 }
0x11e8   :  { %10678 = vmatpush3.bf16.msra.mxu0 %v11442_v48 }
0x11e9   :  { %10679 = vmatprep.subr.bf16.mxu0 %v11443_v7 }
0x11ec   :  { %10680 = vmatpush3.bf16.msra.mxu0 %v11443_v7 }
0x11ed   :  { %10681 = vmatprep.subr.bf16.mxu0 %v11444_v26 }
0x11f0   :  { %10682 = vmatpush3.bf16.msra.mxu0 %v11444_v26 }
0x123f   :  { %v3837_v33 = vpop.permute.xlu0 %3836 }
0x1240   :  { %v3874_v40 = vmul.f32 %v3837_v33, %v17076_v2 }
0x1241   :  { %v3833_v56 = vpop.permute.xlu1 %3832 }
0x1242   :  { %v3872_v60 = vmul.f32 %v3833_v56, %v17076_v2 }
0x1244   :  { %3912 = vrot.lane.b32.xlu0 %v3872_v60, %s12224_s22 }
0x1245   :  { %v3835_v53 = vpop.permute.xlu1 %3834 }
0x1246   :  { %v3873_v10 = vmul.f32 %v3835_v53, %v17076_v2 }
0x1248   :  { %3916 = vrot.lane.b32.xlu0 %v3874_v40, %s12224_s22  ;;  %3914 = vrot.lane.b32.xlu1 %v3873_v10, %s12224_s22 }
0x1249   :  { %v3839_v32 = vpop.permute.xlu1 %3838 }
0x124a   :  { %v3875_v39 = vmul.f32 %v3839_v32, %v17076_v2 }
0x124c   :  { %3918 = vrot.lane.b32.xlu1 %v3875_v39, %s12224_s22 }
0x124d   :  { %v3841_v36 = vpop.permute.xlu0 %3840 }
0x124e   :  { %v3876_v42 = vmul.f32 %v3841_v36, %v17076_v2 }
0x1250   :  { %3920 = vrot.lane.b32.xlu0 %v3876_v42, %s12224_s22 }
0x1251   :  { %v3845_v5 = vpop.permute.xlu0 %3844  ;;  %v3843_v19 = vpop.permute.xlu1 %3842 }
0x1252   :  { %v3878_v57 = vmul.f32 %v3845_v5, %v17076_v2  ;;  %v3877_v62 = vmul.f32 %v3843_v19, %v17076_v2 }
0x1254   :  { %3924 = vrot.lane.b32.xlu0 %v3878_v57, %s12224_s22  ;;  %3922 = vrot.lane.b32.xlu1 %v3877_v62, %s12224_s22 }
0x1255   :  { %v3847_v24 = vpop.permute.xlu1 %3846 }
0x1256   :  { %v3879_v34 = vmul.f32 %v3847_v24, %v17076_v2 }
0x1258   :  { %3926 = vrot.lane.b32.xlu1 %v3879_v34, %s12224_s22 }
0x1260   :  { %v10653_v0 = vpop.f32.mrf.mxu1 }
0x1261   :  { %v14393_v12 = vadd.f32 %v10653_v0, %v14390_v49 }
0x1262   :  { %v4297_v28 = vpop.f32.mrf.mxu1 }
0x1263   :  { %v4378_v43 = vmul.f32 0.044715, %v14393_v12  ;;  %v14397_v63 = vadd.f32 %v14390_v49, %v4297_v28 }
0x1264   :  { %v10654_v22 = vpop.f32.mrf.mxu1 }
0x1265   :  { %v4394_v27 = vmul.f32 %v4378_v43, %v14393_v12  ;;  %v4376_v61 = vmul.f32 0.044715, %v14397_v63  ;;  %v4309_v54 = vadd.f32 %v10654_v22, %v14390_v49 }
0x1266   :  { %v4300_v29 = vpop.f32.mrf.mxu1 }
0x1267   :  { %v4410_v9 = vmul.f32 %v4394_v27, %v14393_v12  ;;  %v4392_v41 = vmul.f32 %v4376_v61, %v14397_v63  ;;  %v4379_v11 = vmul.f32 0.044715, %v4309_v54  ;;  %v4301_v4 = vadd.f32 %v14390_v49, %v4300_v29 }
0x1269   :  { %v4426_v21 = vadd.f32 %v4410_v9, %v14393_v12  ;;  %v4408_v14 = vmul.f32 %v4392_v41, %v14397_v63  ;;  %v4395_v16 = vmul.f32 %v4379_v11, %v4309_v54  ;;  %v4377_v31 = vmul.f32 0.044715, %v4301_v4 }
0x126b   :  { %v4442_v50 = vmul.f32 0.7978846, %v4426_v21  ;;  %v4411_v20 = vmul.f32 %v4395_v16, %v4309_v54  ;;  %v4424_v8 = vadd.f32 %v4408_v14, %v14397_v63  ;;  %v4393_v52 = vmul.f32 %v4377_v31, %v4301_v4 }
0x126c   :  { %v10657_v6 = vpop.f32.mrf.mxu1  ;;  %v4363_v16 = vmul.f32 0.5, %v4309_v54 }
0x126d   :  { %v4427_v18 = vadd.f32 %v4411_v20, %v4309_v54  ;;  %v14409_v59 = vadd.f32 %v10657_v6, %v14390_v49  ;;  %v4440_v35 = vmul.f32 0.7978846, %v4424_v8  ;;  %v4409_v30 = vmul.f32 %v4393_v52, %v4301_v4 }
0x126e   :  { %v4313_v23 = vpop.f32.mrf.mxu1  ;;  %11781 = vtanh.f32 %v4442_v50  ;;  %v4360_v50 = vmul.f32 0.5, %v14397_v63  ;;  %v4361_v20 = vmul.f32 0.5, %v4301_v4  ;;  %v4362_v52 = vmul.f32 0.5, %v14393_v12 }
0x126f   :  { %v4443_v1 = vmul.f32 0.7978846, %v4427_v18  ;;  %v4382_v44 = vmul.f32 0.044715, %v14409_v59  ;;  %v4314_v37 = vadd.f32 %v14390_v49, %v4313_v23  ;;  %v4425_v7 = vadd.f32 %v4409_v30, %v4301_v4 }
0x1270   :  { %v10658_v48 = vpop.f32.mrf.mxu1  ;;  %11783 = vtanh.f32 %v4440_v35  ;;  %v4366_v12 = vmul.f32 0.5, %v14409_v59 }
0x1271   :  { %11785 = vtanh.f32 %v4443_v1  ;;  %v4398_v26 = vmul.f32 %v4382_v44, %v14409_v59  ;;  %v4380_v56 = vmul.f32 0.044715, %v4314_v37  ;;  %v4325_v60 = vadd.f32 %v10658_v48, %v14390_v49 }
0x1272   :  { %v4316_v33 = vpop.f32.mrf.mxu1  ;;  %v4441_v53 = vmul.f32 0.7978846, %v4425_v7  ;;  %v4364_v4 = vmul.f32 0.5, %v4314_v37 }
0x1273   :  { %v4414_v40 = vmul.f32 %v4398_v26, %v14409_v59  ;;  %v4396_v10 = vmul.f32 %v4380_v56, %v4314_v37  ;;  %v4383_v32 = vmul.f32 0.044715, %v4325_v60  ;;  %v4317_v39 = vadd.f32 %v14390_v49, %v4316_v33 }
0x1274   :  { %11787 = vtanh.f32 %v4441_v53  ;;  %v4367_v33 = vmul.f32 0.5, %v4325_v60 }
0x1275   :  { %v4412_v36 = vmul.f32 %v4396_v10, %v4314_v37  ;;  %v4399_v42 = vmul.f32 %v4383_v32, %v4325_v60  ;;  %v4381_v5 = vmul.f32 0.044715, %v4317_v39  ;;  %v4430_v19 = vadd.f32 %v4414_v40, %v14409_v59 }
0x1276   :  { %v4365_v53 = vmul.f32 0.5, %v4317_v39 }
0x1277   :  { %v4415_v57 = vmul.f32 %v4399_v42, %v4325_v60  ;;  %v4397_v62 = vmul.f32 %v4381_v5, %v4317_v39  ;;  %v4428_v24 = vadd.f32 %v4412_v36, %v4314_v37  ;;  %v4446_v34 = vmul.f32 0.7978846, %v4430_v19 }
0x1279   :  { %v4413_v0 = vmul.f32 %v4397_v62, %v4317_v39  ;;  %v4444_v28 = vmul.f32 0.7978846, %v4428_v24  ;;  %v4431_v43 = vadd.f32 %v4415_v57, %v4325_v60  ;;  %v17077_v62 = vld [vmem:[#allocation14_spill] sm:$0xff] }
0x127b   :  { %v4429_v22 = vadd.f32 %v4413_v0, %v4317_v39  ;;  %11789 = vtanh.f32 %v4444_v28  ;;  %v4447_v27 = vmul.f32 0.7978846, %v4431_v43  ;;  %v11782_v61 = vpop.eup %11781  ;;  %v17079_v0 = vld [vmem:[#allocation15_spill] sm:$0xff] }
0x127c   :  { %11791 = vtanh.f32 %v4446_v34  ;;  %v4474_v31 = vadd.f32 1.0, %v11782_v61  ;;  %v17078_v34 = vld [vmem:[#allocation16_spill] sm:$0xff]  ;;  %v17080_v61 = vld [vmem:[#allocation17_spill] sm:$0xff] }
0x127d   :  { %v11784_v29 = vpop.eup %11783  ;;  %v4445_v9 = vmul.f32 0.7978846, %v4429_v22  ;;  %11793 = vtanh.f32 %v4447_v27 }
0x127e   :  { %v11786_v41 = vpop.eup %11785  ;;  %v4472_v21 = vadd.f32 1.0, %v11784_v29  ;;  %v4490_v30 = vmul.f32 %v4474_v31, %v4362_v52 }
0x127f   :  { %v4475_v11 = vadd.f32 1.0, %v11786_v41  ;;  %11795 = vtanh.f32 %v4445_v9 }
0x1280   :  { %v4488_v18 = vmul.f32 %v4472_v21, %v4360_v50  ;;  %v17082_v50 = vld [vmem:[#allocation23_spill] sm:$0xff] }
0x1281   :  { %v11788_v14 = vpop.eup %11787  ;;  %v4491_v6 = vmul.f32 %v4475_v11, %v4363_v16  ;;  %v17081_v11 = vld [vmem:[#allocation18_spill] sm:$0xff] }
0x1282   :  { %v4473_v8 = vadd.f32 1.0, %v11788_v14 }
0x1283   :  { %v4522_v1 = vpack.c.bf16 %v4491_v6, %v4490_v30  ;;  %v17084_v30 = vld [vmem:[#allocation20_spill] sm:$0xff] }
0x1284   :  { %v4489_v35 = vmul.f32 %v4473_v8, %v4361_v20  ;;  %v17083_v8 = vld [vmem:[#allocation19_spill] sm:$0xff] }
0x1286   :  { %v4521_v23 = vpack.c.bf16 %v4489_v35, %v4488_v18 }
0x1288   :  { %v11790_v44 = vpop.eup %11789  ;;  %10683 = vmatprep.mubr.bf16.mxu0 %v4521_v23 }
0x1289   :  { %v11792_v48 = vpop.eup %11791  ;;  %10684 = vmatmul.mubr.bf16.vlgmr.msra.gmra.mxu0 %v4522_v1  ;;  %v4476_v26 = vadd.f32 1.0, %v11790_v44 }
0x128a   :  { %v11794_v7 = vpop.eup %11793  ;;  %v4478_v63 = vadd.f32 1.0, %v11792_v48 }
0x128b   :  { %v4479_v54 = vadd.f32 1.0, %v11794_v7  ;;  %v4492_v32 = vmul.f32 %v4476_v26, %v4364_v4 }
0x128c   :  { %v11796_v56 = vpop.eup %11795  ;;  %v4494_v42 = vmul.f32 %v4478_v63, %v4366_v12 }
0x128d   :  { %v4477_v40 = vadd.f32 1.0, %v11796_v56  ;;  %v4495_v10 = vmul.f32 %v4479_v54, %v4367_v33 }
0x128f   :  { %v4493_v36 = vmul.f32 %v4477_v40, %v4365_v53  ;;  %v4524_v19 = vpack.c.bf16 %v4495_v10, %v4494_v42 }
0x1291   :  { %v4523_v5 = vpack.c.bf16 %v4493_v36, %v4492_v32 }
0x1293   :  { %10687 = vmatprep.mubr.bf16.mxu0 %v4523_v5 }
0x1294   :  { %10688 = vmatmul.mubr.bf16.gmra.mxu0 %v4524_v19 }
0x12b6   :  { %v3913_v57 = vpop.permute.xlu0 %3912 }
0x12b7   :  { %v14422_v24 = vadd.f32 %v3913_v57, %v17077_v62 }
0x12b9   :  { %v3984_v60 = vsel %vm302_vm2, %v14422_v24, 0.0 }
0x12ba   :  { %3985 = vadd.xlane.f32.xlu0 %v3984_v60  ;;  %v3917_v37 = vpop.permute.xlu0 %3916  ;;  %v3915_v39 = vpop.permute.xlu1 %3914 }
0x12bb   :  { %v14427_v59 = vadd.f32 %v3917_v37, %v17078_v34  ;;  %v14430_v28 = vadd.f32 %v3915_v39, %v17079_v0 }
0x12bd   :  { %v3990_v43 = vsel %vm302_vm2, %v14427_v59, 0.0  ;;  %v3987_v22 = vsel %vm302_vm2, %v14430_v28, 0.0 }
0x12be   :  { %3991 = vadd.xlane.f32.xlu0 %v3990_v43  ;;  %3988 = vadd.xlane.f32.xlu1 %v3987_v22  ;;  %v3919_v27 = vpop.permute.xlu1 %3918 }
0x12bf   :  { %v14437_v29 = vadd.f32 %v3919_v27, %v17080_v61 }
0x12c1   :  { %v3993_v9 = vsel %vm302_vm2, %v14437_v29, 0.0 }
0x12c2   :  { %v3921_v41 = vpop.permute.xlu0 %3920  ;;  %3994 = vadd.xlane.f32.xlu0 %v3993_v9 }
0x12c3   :  { %v14442_v21 = vadd.f32 %v3921_v41, %v17081_v11 }
0x12c5   :  { %v3996_v14 = vsel %vm302_vm2, %v14442_v21, 0.0 }
0x12c6   :  { %v3925_v16 = vpop.permute.xlu0 %3924  ;;  %3997 = vadd.xlane.f32.xlu1 %v3996_v14  ;;  %v3923_v31 = vpop.permute.xlu1 %3922 }
0x12c7   :  { %v14447_v20 = vadd.f32 %v3925_v16, %v17082_v50  ;;  %v14450_v52 = vadd.f32 %v3923_v31, %v17083_v8 }
0x12c9   :  { %v4002_v6 = vsel %vm302_vm2, %v14447_v20, 0.0  ;;  %v3999_v18 = vsel %vm302_vm2, %v14450_v52, 0.0 }
0x12ca   :  { %4003 = vadd.xlane.f32.xlu1 %v4002_v6  ;;  %4000 = vadd.xlane.f32.xlu0 %v3999_v18  ;;  %v3927_v35 = vpop.permute.xlu1 %3926 }
0x12cb   :  { %v14457_v23 = vadd.f32 %v3927_v35, %v17084_v30 }
0x12cd   :  { %v4005_v1 = vsel %vm302_vm2, %v14457_v23, 0.0 }
0x12ce   :  { %4006 = vadd.xlane.f32.xlu0 %v4005_v1 }
0x1343   :  { %v3986_v44 = vpop.xlane.xlu0 %3985 }
0x1344   :  { %v4016_v48 = vmul.f32 0.03125, %v3986_v44 }
0x1346   :  { %v14462_v33 = vsub.f32 %v14422_v24, %v4016_v48 }
0x1347   :  { %v3992_v7 = vpop.xlane.xlu0 %3991  ;;  %v3989_v26 = vpop.xlane.xlu1 %3988 }
0x1348   :  { %v4018_v54 = vmul.f32 0.03125, %v3992_v7  ;;  %v4017_v56 = vmul.f32 0.03125, %v3989_v26  ;;  %v4048_v5 = vmul.f32 %v14462_v33, %v14462_v33 }
0x1349   :  { %v10685_v18 = vpop.f32.mrf.mxu0 }
0x134a   :  { %v14465_v63 = vsub.f32 %v14427_v59, %v4018_v54  ;;  %v14468_v4 = vsub.f32 %v14430_v28, %v4017_v56  ;;  %v4080_v60 = vsel %vm302_vm2, %v4048_v5, 0.0  ;;  %v14514_v54 = vld [vmem:[%s16855_s14 + $0xa] ss:$0 sm:$0xff] }
0x134b   :  { %v3995_v53 = vpop.xlane.xlu0 %3994  ;;  %v4617_v1 = vpop.f32.mrf.mxu0 }
0x134c   :  { %v4019_v40 = vmul.f32 0.03125, %v3995_v53  ;;  %v4050_v12 = vmul.f32 %v14465_v63, %v14465_v63  ;;  %v4049_v10 = vmul.f32 %v14468_v4, %v14468_v4  ;;  %v4618_v53 = vadd.f32 %v14514_v54, %v4617_v1 }
0x134d   :  { %v10686_v44 = vpop.f32.mrf.mxu0 }
0x134e   :  { %v14475_v32 = vsub.f32 %v14437_v29, %v4019_v40  ;;  %v4086_v36 = vsel %vm302_vm2, %v4050_v12, 0.0  ;;  %v4083_v42 = vsel %vm302_vm2, %v4049_v10, 0.0  ;;  %v4626_v12 = vadd.f32 %v10685_v18, %v14514_v54 }
0x134f   :  { %4087 = vadd.xlane.f32.xlu1 %v4086_v36  ;;  %4084 = vadd.xlane.f32.xlu0 %v4083_v42  ;;  %v3998_v19 = vpop.xlane.xlu1 %3997  ;;  %v4620_v48 = vpop.f32.mrf.mxu0  ;;  %v4629_v10 = vadd.f32 %v10686_v44, %v14514_v54  ;;  %v689_v18 = vcombine.high %v14311_v3, %v14311_v3 }
0x1350   :  { %v4051_v57 = vmul.f32 %v14475_v32, %v14475_v32  ;;  %v4020_v62 = vmul.f32 0.03125, %v3998_v19  ;;  %v4621_v56 = vadd.f32 %v14514_v54, %v4620_v48 }
0x1351   :  { %v703_v1 = vrot.slane %v689_v18, %v17073_v47 }
0x1352   :  { %v4089_v37 = vsel %vm302_vm2, %v4051_v57, 0.0  ;;  %v14486_v22 = vsub.f32 %v14442_v21, %v4020_v62  ;;  %v11447_v57 = vld [vmem:[%s16857_s7 + $0x34] ss:$8 sps:$4 sm:$0xff]   ;;  %v11445_v62 = vld [vmem:[%s16857_s7 + $0x30] ss:$8 sps:$4 sm:$0xff]  }
0x1353   :  { %4081 = vadd.xlane.f32.xlu1 %v4080_v60  ;;  %v4001_v39 = vpop.xlane.xlu0 %4000  ;;  %4090 = vadd.xlane.f32.xlu0 %v4089_v37  ;;  %v4004_v34 = vpop.xlane.xlu1 %4003  ;;  %v11450_v60 = vld [vmem:[%s16857_s7 + $0x24] ss:$8 sps:$4 sm:$0xff]   ;;  %v11448_v37 = vld [vmem:[%s16857_s7 + $0x20] ss:$8 sps:$4 sm:$0xff]  }
0x1354   :  { %v4021_v0 = vmul.f32 0.03125, %v4001_v39  ;;  %v4022_v43 = vmul.f32 0.03125, %v4004_v34  ;;  %v4052_v8 = vmul.f32 %v14486_v22, %v14486_v22  ;;  %v10689_v7 = vpop.f32.mrf.mxu0  ;;  %4889 = vmatprep.subr.bf16.mxu1 %v11447_v57 }
0x1355   :  { %v4642_v5 = vadd.f32 %v10689_v7, %v14514_v54  ;;  %4890 = vmatpush1.bf16.msra.mxu1 %v11445_v62 }
0x1356   :  { %v14489_v27 = vsub.f32 %v14450_v52, %v4021_v0  ;;  %v14492_v61 = vsub.f32 %v14447_v20, %v4022_v43  ;;  %v4092_v30 = vsel %vm302_vm2, %v4052_v8, 0.0  ;;  %v4633_v26 = vpop.f32.mrf.mxu0  ;;  %4891 = vmatprep.subr.bf16.mxu1 %v11450_v60 }
0x1357   :  { %v4007_v9 = vpop.xlane.xlu0 %4006 }
0x1358   :  { %v4023_v41 = vmul.f32 0.03125, %v4007_v9  ;;  %v4053_v11 = vmul.f32 %v14489_v27, %v14489_v27  ;;  %v4054_v14 = vmul.f32 %v14492_v61, %v14492_v61  ;;  %v10690_v40 = vpop.f32.mrf.mxu0 }
0x1359   :  { %v4645_v19 = vadd.f32 %v10690_v40, %v14514_v54  ;;  %4892 = vmatpush1.bf16.msra.mxu1 %v11448_v37  ;;  %v14548_v40 = vrot.slane %v703_v1, %v17075_v58 }
0x135a   :  { %v14499_v16 = vsub.f32 %v14457_v23, %v4023_v41  ;;  %v4095_v31 = vsel %vm302_vm2, %v4053_v11, 0.0  ;;  %v4098_v50 = vsel %vm302_vm2, %v4054_v14, 0.0  ;;  %v4636_v36 = vpop.f32.mrf.mxu0 }
0x135b   :  { %4096 = vadd.xlane.f32.xlu0 %v4095_v31  ;;  %4099 = vadd.xlane.f32.xlu1 %v4098_v50  ;;  %v4637_v42 = vadd.f32 %v14514_v54, %v4636_v36  ;;  %v4169_v37 = vadd.f32 1.0, %v14548_v40 }
0x135c   :  { %v4055_v6 = vmul.f32 %v14499_v16, %v14499_v16 }
0x135e   :  { %v4101_v35 = vsel %vm302_vm2, %v4055_v6, 0.0 }
0x135f   :  { %4102 = vadd.xlane.f32.xlu0 %v4101_v35  ;;  %4093 = vadd.xlane.f32.xlu1 %v4092_v30 }
0x1370   :  { %4188 = vrot.lane.b32.xlu1 %v17076_v2, %s12233_s1  ;;  %v4634_v2 = vadd.f32 %v14514_v54, %v4633_v26 }
0x1374   :  { %4698 = vrot.lane.b32.xlu1 %v4621_v56, %s12233_s1 }
0x1375   :  { %4696 = vrot.lane.b32.xlu0 %v4618_v53, %s12233_s1 }
0x1378   :  { %4700 = vrot.lane.b32.xlu1 %v4626_v12, %s12233_s1 }
0x1379   :  { %4702 = vrot.lane.b32.xlu0 %v4629_v10, %s12233_s1 }
0x137c   :  { %4704 = vrot.lane.b32.xlu1 %v4634_v2, %s12233_s1 }
0x137d   :  { %4706 = vrot.lane.b32.xlu0 %v4637_v42, %s12233_s1 }
0x1380   :  { %4708 = vrot.lane.b32.xlu1 %v4642_v5, %s12233_s1 }
0x1381   :  { %4710 = vrot.lane.b32.xlu0 %v4645_v19, %s12233_s1 }
0x13d8   :  { %v4085_v39 = vpop.xlane.xlu0 %4084  ;;  %v4088_v34 = vpop.xlane.xlu1 %4087 }
0x13d9   :  { %v4113_v0 = vmul.f32 0.03125, %v4085_v39  ;;  %v4114_v43 = vmul.f32 0.03125, %v4088_v34 }
0x13db   :  { %v4129_v9 = vadd.f32 1e-06, %v4113_v0  ;;  %v4130_v41 = vadd.f32 1e-06, %v4114_v43 }
0x13dc   :  { %v4091_v11 = vpop.xlane.xlu0 %4090  ;;  %v4082_v14 = vpop.xlane.xlu1 %4081 }
0x13dd   :  { %11797 = vrsqrt.f32 %v4129_v9  ;;  %v4115_v31 = vmul.f32 0.03125, %v4091_v11  ;;  %v4112_v50 = vmul.f32 0.03125, %v4082_v14 }
0x13de   :  { %11799 = vrsqrt.f32 %v4130_v41 }
0x13df   :  { %v4131_v8 = vadd.f32 1e-06, %v4115_v31  ;;  %v4128_v6 = vadd.f32 1e-06, %v4112_v50 }
0x13e1   :  { %11801 = vrsqrt.f32 %v4131_v8 }
0x13e2   :  { %11803 = vrsqrt.f32 %v4128_v6 }
0x13e4   :  { %v4097_v35 = vpop.xlane.xlu0 %4096  ;;  %v4100_v30 = vpop.xlane.xlu1 %4099 }
0x13e5   :  { %v4117_v44 = vmul.f32 0.03125, %v4097_v35  ;;  %v4118_v48 = vmul.f32 0.03125, %v4100_v30 }
0x13e7   :  { %v4133_v7 = vadd.f32 1e-06, %v4117_v44  ;;  %v4134_v26 = vadd.f32 1e-06, %v4118_v48 }
0x13e8   :  { %v4103_v56 = vpop.xlane.xlu0 %4102  ;;  %v4094_v53 = vpop.xlane.xlu1 %4093 }
0x13e9   :  { %11805 = vrsqrt.f32 %v4133_v7  ;;  %v4119_v12 = vmul.f32 0.03125, %v4103_v56  ;;  %v4116_v10 = vmul.f32 0.03125, %v4094_v53 }
0x13ea   :  { %v11798_v36 = vpop.eup %11797  ;;  %11807 = vrsqrt.f32 %v4134_v26 }
0x13eb   :  { %v11800_v3 = vpop.eup %11799  ;;  %v4135_v2 = vadd.f32 1e-06, %v4119_v12  ;;  %v4132_v42 = vadd.f32 1e-06, %v4116_v10  ;;  %v4161_v57 = vmul.f32 %v11798_v36, %v14468_v4 }
0x13ec   :  { %v4697_v5 = vpop.permute.xlu0 %4696  ;;  %v4189_v19 = vpop.permute.xlu1 %4188  ;;  %v4162_v62 = vmul.f32 %v11800_v3, %v14465_v63 }
0x13ed   :  { %11809 = vrsqrt.f32 %v4135_v2  ;;  %v4744_v60 = vmul.f32 %v4697_v5, %v14316_v51  ;;  %v4179_v4 = vmul.f32 %v4169_v37, %v4161_v57 }
0x13ee   :  { %v11802_v39 = vpop.eup %11801  ;;  %11811 = vrsqrt.f32 %v4132_v42  ;;  %v4180_v43 = vmul.f32 %v4169_v37, %v4162_v62 }
0x13ef   :  { %v11804_v34 = vpop.eup %11803  ;;  %4776 = vrot.lane.b32.xlu1 %v4744_v60, %s12219_s16  ;;  %v4163_v0 = vmul.f32 %v11802_v39, %v14475_v32  ;;  %v4201_v30 = vadd.f32 %v4189_v19, %v4179_v4  ;;  %v17086_v4 = vld [vmem:[#allocation13_spill] sm:$0xff] }
0x13f0   :  { %v4703_v9 = vpop.permute.xlu0 %4702  ;;  %v4699_v41 = vpop.permute.xlu1 %4698  ;;  %v4160_v11 = vmul.f32 %v11804_v34, %v14462_v33  ;;  %v4202_v50 = vadd.f32 %v4189_v19, %v4180_v43 }
0x13f1   :  { %v4745_v63 = vmul.f32 %v4699_v41, %v14316_v51  ;;  %v4181_v14 = vmul.f32 %v4169_v37, %v4163_v0  ;;  %v4747_v32 = vmul.f32 %v4703_v9, %v14316_v51 }
0x13f2   :  { %v4178_v31 = vmul.f32 %v4169_v37, %v4160_v11 }
0x13f3   :  { %4778 = vrot.lane.b32.xlu0 %v4745_v63, %s12219_s16  ;;  %v4203_v8 = vadd.f32 %v4189_v19, %v4181_v14 }
0x13f4   :  { %v4707_v6 = vpop.permute.xlu0 %4706  ;;  %v4701_v18 = vpop.permute.xlu1 %4700  ;;  %v4200_v35 = vadd.f32 %v4189_v19, %v4178_v31 }
0x13f5   :  { %v4746_v1 = vmul.f32 %v4701_v18, %v14316_v51  ;;  %v4218_v44 = vpack.c.bf16 %v4203_v8, %v4202_v50  ;;  %v4749_v12 = vmul.f32 %v4707_v6, %v14316_v51 }
0x13f6   :  { %v11806_v48 = vpop.eup %11805  ;;  %v4217_v33 = vpack.c.bf16 %v4201_v30, %v4200_v35 }
0x13f7   :  { %v11808_v7 = vpop.eup %11807  ;;  %4782 = vrot.lane.b32.xlu0 %v4747_v32, %s12219_s16  ;;  %4780 = vrot.lane.b32.xlu1 %v4746_v1, %s12219_s16  ;;  %v4165_v56 = vmul.f32 %v11806_v48, %v14489_v27 }
0x13f8   :  { %10659 = vmatprep.mubr.msk.bf16.mxu1 %vm302_vm2, %v4217_v33  ;;  %v4705_v26 = vpop.permute.xlu1 %4704  ;;  %v4166_v53 = vmul.f32 %v11808_v7, %v14492_v61  ;;  %v4711_v3 = vpop.permute.xlu0 %4710 }
0x13f9   :  { %10660 = vmatmul.mubr.msk.bf16.gmra.mxu1 %vm302_vm2, %v4218_v44  ;;  %v4748_v10 = vmul.f32 %v4705_v26, %v14316_v51  ;;  %v4183_v61 = vmul.f32 %v4169_v37, %v4165_v56  ;;  %v4751_v62 = vmul.f32 %v4711_v3, %v14316_v51 }
0x13fa   :  { %v11810_v36 = vpop.eup %11809  ;;  %v4184_v5 = vmul.f32 %v4169_v37, %v4166_v53 }
0x13fb   :  { %v11812_v2 = vpop.eup %11811  ;;  %4786 = vrot.lane.b32.xlu0 %v4749_v12, %s12219_s16  ;;  %4784 = vrot.lane.b32.xlu1 %v4748_v10, %s12219_s16  ;;  %v4167_v42 = vmul.f32 %v11810_v36, %v14499_v16  ;;  %v4205_v41 = vadd.f32 %v4189_v19, %v4183_v61 }
0x13fc   :  { %v4709_v57 = vpop.permute.xlu1 %4708  ;;  %v4164_v27 = vmul.f32 %v11812_v2, %v14486_v22  ;;  %v4206_v0 = vadd.f32 %v4189_v19, %v4184_v5  ;;  %v17085_v22 = vmov 0  }
0x13fd   :  { %v4750_v60 = vmul.f32 %v4709_v57, %v14316_v51  ;;  %v4185_v39 = vmul.f32 %v4169_v37, %v4167_v42 }
0x13fe   :  { %v4182_v34 = vmul.f32 %v4169_v37, %v4164_v27 }
0x13ff   :  { %4790 = vrot.lane.b32.xlu0 %v4751_v62, %s12219_s16  ;;  %4788 = vrot.lane.b32.xlu1 %v4750_v60, %s12219_s16  ;;  %v4207_v43 = vadd.f32 %v4189_v19, %v4185_v39 }
0x1400   :  { %v4204_v9 = vadd.f32 %v4189_v19, %v4182_v34 }
0x1401   :  { %v4220_v16 = vpack.c.bf16 %v4207_v43, %v4206_v0 }
0x1402   :  { %v4219_v11 = vpack.c.bf16 %v4205_v41, %v4204_v9 }
0x1404   :  { %10663 = vmatprep.mubr.msk.bf16.mxu1 %vm302_vm2, %v4219_v11 }
0x1405   :  { %10664 = vmatmul.mubr.msk.bf16.gmra.mxu1 %vm302_vm2, %v4220_v16 }
0x1406   :  { %4909 = vmatprep.mubr.bf16.mxu1 %v17085_v22 }
0x140d   :  { %9780 = vmatmul.mubr.msk.bf16.vlgmr.msra.gmra.mxu1 %vm302_vm2, %v17086_v4 }
0x1461   :  { %v4777_v51 = vpop.permute.xlu1 %4776 }
0x1462   :  { %v14583_v37 = vadd.f32 %v4777_v51, %v14124_v46 }
0x1464   :  { %17087 = vst [vmem:[#allocation44_spill] sm:$0xff] %v14583_v37  ;;  %v4984_v63 = vsel %vm302_vm2, %v14583_v37, 0.0 }
0x1465   :  { %v4779_v14 = vpop.permute.xlu0 %4778  ;;  %4985 = vadd.xlane.f32.xlu1 %v4984_v63 }
0x1466   :  { %v14588_v19 = vadd.f32 %v4779_v14, %v14137_v13 }
0x1468   :  { %17088 = vst [vmem:[#allocation46_spill] sm:$0xff] %v14588_v19  ;;  %v4987_v31 = vsel %vm302_vm2, %v14588_v19, 0.0 }
0x1469   :  { %4988 = vadd.xlane.f32.xlu0 %v4987_v31  ;;  %v4783_v50 = vpop.permute.xlu0 %4782  ;;  %v4781_v8 = vpop.permute.xlu1 %4780 }
0x146a   :  { %v14593_v6 = vadd.f32 %v4783_v50, %v14127_v38  ;;  %v14596_v46 = vadd.f32 %v4781_v8, %v14117_v45 }
0x146c   :  { %17089 = vst [vmem:[#allocation37_spill] sm:$0xff] %v14593_v6  ;;  %17090 = vst [vmem:[#allocation38_spill] sm:$0xff] %v14596_v46  ;;  %v4993_v18 = vsel %vm302_vm2, %v14593_v6, 0.0  ;;  %v4990_v35 = vsel %vm302_vm2, %v14596_v46, 0.0 }
0x146d   :  { %v4787_v13 = vpop.permute.xlu0 %4786  ;;  %4994 = vadd.xlane.f32.xlu1 %v4993_v18  ;;  %4991 = vadd.xlane.f32.xlu0 %v4990_v35  ;;  %v4785_v30 = vpop.permute.xlu1 %4784 }
0x146e   :  { %v14603_v32 = vadd.f32 %v4787_v13, %v14158_v25  ;;  %v14606_v1 = vadd.f32 %v4785_v30, %v14145_v17 }
0x1470   :  { %17091 = vst [vmem:[#allocation34_spill] sm:$0xff] %v14603_v32  ;;  %17092 = vst [vmem:[#allocation36_spill] sm:$0xff] %v14606_v1  ;;  %v4999_v45 = vsel %vm302_vm2, %v14603_v32, 0.0  ;;  %v4996_v38 = vsel %vm302_vm2, %v14606_v1, 0.0 }
0x1471   :  { %v4791_v44 = vpop.permute.xlu0 %4790  ;;  %5000 = vadd.xlane.f32.xlu1 %v4999_v45  ;;  %4997 = vadd.xlane.f32.xlu0 %v4996_v38  ;;  %v4789_v48 = vpop.permute.xlu1 %4788  ;;  %v14663_v45 = vld [vmem:[%s16855_s14 + $0xb] sm:$0x3] }
0x1472   :  { %v14613_v33 = vadd.f32 %v4791_v44, %v14148_v55  ;;  %v14616_v7 = vadd.f32 %v4789_v48, %v14134_v15  ;;  %v17095_v48 = vld [vmem:[#allocation3_spill] sm:$0xff] }
0x1474   :  { %17093 = vst [vmem:[#allocation43_spill] sm:$0xff] %v14613_v33  ;;  %17094 = vst [vmem:[#allocation45_spill] sm:$0xff] %v14616_v7  ;;  %v5005_v17 = vsel %vm302_vm2, %v14613_v33, 0.0  ;;  %v5002_v25 = vsel %vm302_vm2, %v14616_v7, 0.0 }
0x1475   :  { %5006 = vadd.xlane.f32.xlu1 %v5005_v17  ;;  %5003 = vadd.xlane.f32.xlu0 %v5002_v25  ;;  %v4854_v17 = vrot.slane %v14663_v45, %v17095_v48 }
0x14b9   :  { %v10661_v26 = vpop.f32.mrf.mxu1 }
0x14ba   :  { %v14623_v56 = vadd.f32 %v10661_v26, %v14390_v49 }
0x14bb   :  { %v4329_v53 = vpop.f32.mrf.mxu1 }
0x14bc   :  { %v4386_v12 = vmul.f32 0.044715, %v14623_v56  ;;  %v14627_v55 = vadd.f32 %v14390_v49, %v4329_v53 }
0x14bd   :  { %v10662_v15 = vpop.f32.mrf.mxu1 }
0x14be   :  { %v4402_v10 = vmul.f32 %v4386_v12, %v14623_v56  ;;  %v4384_v36 = vmul.f32 0.044715, %v14627_v55  ;;  %v14632_v3 = vadd.f32 %v10662_v15, %v14390_v49 }
0x14bf   :  { %v4332_v2 = vpop.f32.mrf.mxu1 }
0x14c0   :  { %v4418_v42 = vmul.f32 %v4402_v10, %v14623_v56  ;;  %v4400_v5 = vmul.f32 %v4384_v36, %v14627_v55  ;;  %v4387_v57 = vmul.f32 0.044715, %v14632_v3  ;;  %v14638_v27 = vadd.f32 %v14390_v49, %v4332_v2 }
0x14c2   :  { %v4416_v61 = vmul.f32 %v4400_v5, %v14627_v55  ;;  %v4403_v62 = vmul.f32 %v4387_v57, %v14632_v3  ;;  %v4385_v60 = vmul.f32 0.044715, %v14638_v27  ;;  %v4434_v39 = vadd.f32 %v4418_v42, %v14623_v56 }
0x14c4   :  { %v4419_v34 = vmul.f32 %v4403_v62, %v14632_v3  ;;  %v4401_v0 = vmul.f32 %v4385_v60, %v14638_v27  ;;  %v4432_v43 = vadd.f32 %v4416_v61, %v14627_v55  ;;  %v4450_v41 = vmul.f32 0.7978846, %v4434_v39 }
0x14c5   :  { %v10665_v9 = vpop.f32.mrf.mxu1 }
0x14c6   :  { %v4417_v16 = vmul.f32 %v4401_v0, %v14638_v27  ;;  %v14649_v11 = vadd.f32 %v10665_v9, %v14390_v49  ;;  %v4448_v22 = vmul.f32 0.7978846, %v4432_v43  ;;  %v4435_v51 = vadd.f32 %v4419_v34, %v14632_v3 }
0x14c7   :  { %v4345_v63 = vpop.f32.mrf.mxu1  ;;  %11813 = vtanh.f32 %v4450_v41 }
0x14c8   :  { %v4390_v14 = vmul.f32 0.044715, %v14649_v11  ;;  %v14654_v31 = vadd.f32 %v14390_v49, %v4345_v63  ;;  %v4433_v50 = vadd.f32 %v4417_v16, %v14638_v27  ;;  %11815 = vtanh.f32 %v4448_v22 }
0x14c9   :  { %v10666_v8 = vpop.f32.mrf.mxu1  ;;  %v4451_v18 = vmul.f32 0.7978846, %v4435_v51 }
0x14ca   :  { %v4406_v35 = vmul.f32 %v4390_v14, %v14649_v11  ;;  %v4388_v13 = vmul.f32 0.044715, %v14654_v31  ;;  %v4357_v30 = vadd.f32 %v10666_v8, %v14390_v49  ;;  %v4449_v38 = vmul.f32 0.7978846, %v4433_v50 }
0x14cb   :  { %v4348_v44 = vpop.f32.mrf.mxu1  ;;  %11817 = vtanh.f32 %v4451_v18 }
0x14cc   :  { %v4422_v25 = vmul.f32 %v4406_v35, %v14649_v11  ;;  %v4404_v26 = vmul.f32 %v4388_v13, %v14654_v31  ;;  %v4391_v53 = vmul.f32 0.044715, %v4357_v30  ;;  %v4349_v12 = vadd.f32 %v14390_v49, %v4348_v44 }
0x14cd   :  { %v14670_v15 = vpop.f32.mrf.mxu1  ;;  %11819 = vtanh.f32 %v4449_v38  ;;  %v4371_v35 = vmul.f32 0.5, %v14632_v3  ;;  %v4368_v38 = vmul.f32 0.5, %v14627_v55  ;;  %v4369_v44 = vmul.f32 0.5, %v14638_v27 }
0x14ce   :  { %v4420_v10 = vmul.f32 %v4404_v26, %v14654_v31  ;;  %v4407_v36 = vmul.f32 %v4391_v53, %v4357_v30  ;;  %v4389_v2 = vmul.f32 0.044715, %v4349_v12  ;;  %v4438_v5 = vadd.f32 %v4422_v25, %v14649_v11 }
0x14cf   :  { %v4913_v42 = vpop.f32.mrf.mxu1  ;;  %v4375_v55 = vmul.f32 0.5, %v4357_v30  ;;  %v4372_v27 = vmul.f32 0.5, %v14654_v31 }
0x14d0   :  { %v4423_v57 = vmul.f32 %v4407_v36, %v4357_v30  ;;  %v4405_v61 = vmul.f32 %v4389_v2, %v4349_v12  ;;  %v14674_v62 = vadd.f32 %v4913_v42, %v4854_v17  ;;  %v4436_v39 = vadd.f32 %v4420_v10, %v14654_v31 }
0x14d1   :  { %v4915_v60 = vpop.f32.mrf.mxu1  ;;  %v4454_v0 = vmul.f32 0.7978846, %v4438_v5  ;;  %v4370_v17 = vmul.f32 0.5, %v14623_v56 }
0x14d2   :  { %17096 = vst [vmem:[#allocation40_spill] sm:$0xff] %v14674_v62  ;;  %v4421_v34 = vmul.f32 %v4405_v61, %v4349_v12  ;;  %v4452_v43 = vmul.f32 0.7978846, %v4436_v39  ;;  %v4439_v9 = vadd.f32 %v4423_v57, %v4357_v30 }
0x14d3   :  { %v4916_v49 = vpop.f32.mrf.mxu1 }
0x14d4   :  { %v11814_v41 = vpop.eup %11813  ;;  %v4437_v16 = vadd.f32 %v4421_v34, %v4349_v12  ;;  %11821 = vtanh.f32 %v4452_v43  ;;  %v4455_v22 = vmul.f32 0.7978846, %v4439_v9  ;;  %v4373_v34 = vmul.f32 0.5, %v4349_v12 }
0x14d5   :  { %v11816_v51 = vpop.eup %11815  ;;  %11823 = vtanh.f32 %v4454_v0  ;;  %v4482_v13 = vadd.f32 1.0, %v11814_v41  ;;  %v4374_v0 = vmul.f32 0.5, %v14649_v11 }
0x14d6   :  { %v4453_v63 = vmul.f32 0.7978846, %v4437_v16  ;;  %11825 = vtanh.f32 %v4455_v22  ;;  %v4480_v50 = vadd.f32 1.0, %v11816_v51 }
0x14d7   :  { %v4498_v10 = vmul.f32 %v4482_v13, %v4370_v17 }
0x14d8   :  { %v11818_v14 = vpop.eup %11817  ;;  %11827 = vtanh.f32 %v4453_v63  ;;  %v4496_v26 = vmul.f32 %v4480_v50, %v4368_v38 }
0x14d9   :  { %v4483_v8 = vadd.f32 1.0, %v11818_v14 }
0x14da   :  { %v11820_v18 = vpop.eup %11819 }
0x14db   :  { %v4481_v48 = vadd.f32 1.0, %v11820_v18  ;;  %v4499_v25 = vmul.f32 %v4483_v8, %v4371_v35 }
0x14dd   :  { %v4497_v53 = vmul.f32 %v4481_v48, %v4369_v44  ;;  %v4526_v2 = vpack.c.bf16 %v4499_v25, %v4498_v10 }
0x14df   :  { %v4525_v36 = vpack.c.bf16 %v4497_v53, %v4496_v26 }
0x14e1   :  { %10691 = vmatprep.mubr.bf16.mxu0 %v4525_v36  ;;  %v11822_v42 = vpop.eup %11821 }
0x14e2   :  { %10692 = vmatmul.mubr.bf16.gmra.mxu0 %v4526_v2  ;;  %v11824_v5 = vpop.eup %11823  ;;  %v4484_v3 = vadd.f32 1.0, %v11822_v42 }
0x14e3   :  { %v11826_v57 = vpop.eup %11825  ;;  %v4486_v39 = vadd.f32 1.0, %v11824_v5 }
0x14e4   :  { %v4487_v61 = vadd.f32 1.0, %v11826_v57  ;;  %v4500_v43 = vmul.f32 %v4484_v3, %v4372_v27 }
0x14e5   :  { %v11828_v60 = vpop.eup %11827  ;;  %v4502_v41 = vmul.f32 %v4486_v39, %v4374_v0 }
0x14e6   :  { %v4485_v56 = vadd.f32 1.0, %v11828_v60  ;;  %v4503_v49 = vmul.f32 %v4487_v61, %v4375_v55 }
0x14e8   :  { %v4501_v9 = vmul.f32 %v4485_v56, %v4373_v34  ;;  %v4528_v22 = vpack.c.bf16 %v4503_v49, %v4502_v41 }
0x14ea   :  { %v4527_v16 = vpack.c.bf16 %v4501_v9, %v4500_v43 }
0x14ec   :  { %10695 = vmatprep.mubr.bf16.mxu0 %v4527_v16 }
0x14ed   :  { %10696 = vmatmul.mubr.bf16.gmra.mxu0 %v4528_v22 }
0x14ee   :  { %v4986_v51 = vpop.xlane.xlu1 %4985 }
0x14ef   :  { %v5032_v50 = vmul.f32 0.03125, %v4986_v51  ;;  %v4850_v51 = vrot.slane %v14663_v45, %v17075_v58  ;;  %v11452_v45 = vld [vmem:[%s16860_s8 + $0x10] sm:$0xff]  }
0x14f1   :  { %v14689_v35 = vsub.f32 %v14583_v37, %v5032_v50 }
0x14f2   :  { %v4989_v63 = vpop.xlane.xlu0 %4988 }
0x14f3   :  { %v5033_v14 = vmul.f32 0.03125, %v4989_v63  ;;  %v5064_v10 = vmul.f32 %v14689_v35, %v14689_v35  ;;  %v4912_v63 = vadd.f32 %v14670_v15, %v4850_v51 }
0x14f5   :  { %v14684_v30 = vsub.f32 %v14588_v19, %v5033_v14  ;;  %v5080_v39 = vsel %vm302_vm2, %v5064_v10, 0.0  ;;  %v14735_v14 = vrot.slane %v4912_v63, %v17073_v47 }
0x14f6   :  { %v4992_v31 = vpop.xlane.xlu0 %4991  ;;  %v4995_v12 = vpop.xlane.xlu1 %4994 }
0x14f7   :  { %v5034_v8 = vmul.f32 0.03125, %v4992_v31  ;;  %v5035_v18 = vmul.f32 0.03125, %v4995_v12  ;;  %v5065_v11 = vmul.f32 %v14684_v30, %v14684_v30  ;;  %v4933_v50 = vrot.slane %v14735_v14, %v17073_v47 }
0x14f9   :  { %v14692_v13 = vsub.f32 %v14596_v46, %v5034_v8  ;;  %v14695_v38 = vsub.f32 %v14593_v6, %v5035_v18  ;;  %v5083_v44 = vsel %vm302_vm2, %v5065_v11, 0.0  ;;  %v14740_v31 = vrot.slane %v4933_v50, %v17075_v58  ;;  %v11451_v8 = vld [vmem:[%s16860_s8 + $0x18] sm:$0xff]  }
0x14fa   :  { %5084 = vadd.xlane.f32.xlu1 %v5083_v44  ;;  %v4998_v48 = vpop.xlane.xlu0 %4997  ;;  %v5001_v17 = vpop.xlane.xlu1 %5000  ;;  %10699 = vmatprep.subr.bf16.mxu1 %v11451_v8 }
0x14fb   :  { %v5037_v25 = vmul.f32 0.03125, %v5001_v17  ;;  %v5066_v26 = vmul.f32 %v14692_v13, %v14692_v13  ;;  %v5067_v53 = vmul.f32 %v14695_v38, %v14695_v38  ;;  %v5036_v36 = vmul.f32 0.03125, %v4998_v48  ;;  %17097 = vst [vmem:[#allocation42_spill] sm:$0xff] %v14740_v31  ;;  %10700 = vmatpush3.bf16.msra.mxu1 %v11451_v8 }
0x14fc   :  { %v5192_v12 = vadd.f32 1.0, %v14740_v31  ;;  %10701 = vmatprep.subr.bf16.mxu1 %v11452_v45 }
0x14fd   :  { %v14705_v2 = vsub.f32 %v14603_v32, %v5037_v25  ;;  %v5086_v42 = vsel %vm302_vm2, %v5066_v26, 0.0  ;;  %v5089_v5 = vsel %vm302_vm2, %v5067_v53, 0.0  ;;  %v14713_v27 = vsub.f32 %v14606_v1, %v5036_v36 }
0x14fe   :  { %5087 = vadd.xlane.f32.xlu0 %v5086_v42  ;;  %v5004_v57 = vpop.xlane.xlu0 %5003  ;;  %5090 = vadd.xlane.f32.xlu1 %v5089_v5  ;;  %v5007_v3 = vpop.xlane.xlu1 %5006 }
0x14ff   :  { %v5038_v61 = vmul.f32 0.03125, %v5004_v57  ;;  %v5039_v60 = vmul.f32 0.03125, %v5007_v3  ;;  %v5069_v55 = vmul.f32 %v14705_v2, %v14705_v2  ;;  %v5068_v16 = vmul.f32 %v14713_v27, %v14713_v27  ;;  %10702 = vmatpush3.bf16.msra.mxu1 %v11452_v45 }
0x1501   :  { %v14716_v34 = vsub.f32 %v14616_v7, %v5038_v61  ;;  %v14719_v56 = vsub.f32 %v14613_v33, %v5039_v60  ;;  %v5095_v0 = vsel %vm302_vm2, %v5069_v55, 0.0  ;;  %v5092_v22 = vsel %vm302_vm2, %v5068_v16, 0.0 }
0x1502   :  { %5081 = vadd.xlane.f32.xlu0 %v5080_v39  ;;  %5096 = vadd.xlane.f32.xlu1 %v5095_v0 }
0x1503   :  { %v5070_v49 = vmul.f32 %v14716_v34, %v14716_v34  ;;  %v5071_v43 = vmul.f32 %v14719_v56, %v14719_v56 }
0x1505   :  { %v5098_v9 = vsel %vm302_vm2, %v5070_v49, 0.0  ;;  %v5101_v41 = vsel %vm302_vm2, %v5071_v43, 0.0 }
0x1506   :  { %5099 = vadd.xlane.f32.xlu0 %v5098_v9  ;;  %5102 = vadd.xlane.f32.xlu1 %v5101_v41 }
0x150a   :  { %5093 = vadd.xlane.f32.xlu0 %v5092_v22 }
0x1520   :  { %5196 = vrot.lane.b32.xlu0 %v5192_v12, %s12219_s16 }
0x1583   :  { %v5085_v15 = vpop.xlane.xlu1 %5084 }
0x1584   :  { %v5129_v18 = vmul.f32 0.03125, %v5085_v15 }
0x1586   :  { %v5145_v11 = vadd.f32 1e-06, %v5129_v18 }
0x1587   :  { %v5088_v44 = vpop.xlane.xlu0 %5087  ;;  %v5091_v48 = vpop.xlane.xlu1 %5090 }
0x1588   :  { %v5130_v17 = vmul.f32 0.03125, %v5088_v44  ;;  %v5131_v25 = vmul.f32 0.03125, %v5091_v48  ;;  %11829 = vrsqrt.f32 %v5145_v11 }
0x158a   :  { %v5146_v26 = vadd.f32 1e-06, %v5130_v17  ;;  %v5147_v53 = vadd.f32 1e-06, %v5131_v25 }
0x158b   :  { %v5082_v10 = vpop.xlane.xlu0 %5081  ;;  %v5097_v36 = vpop.xlane.xlu1 %5096 }
0x158c   :  { %11831 = vrsqrt.f32 %v5146_v26  ;;  %v5128_v42 = vmul.f32 0.03125, %v5082_v10  ;;  %v5133_v5 = vmul.f32 0.03125, %v5097_v36 }
0x158d   :  { %11833 = vrsqrt.f32 %v5147_v53 }
0x158e   :  { %v5144_v57 = vadd.f32 1e-06, %v5128_v42  ;;  %v5149_v3 = vadd.f32 1e-06, %v5133_v5 }
0x158f   :  { %v5100_v61 = vpop.xlane.xlu0 %5099  ;;  %v5103_v60 = vpop.xlane.xlu1 %5102 }
0x1590   :  { %11835 = vrsqrt.f32 %v5144_v57  ;;  %v5134_v55 = vmul.f32 0.03125, %v5100_v61  ;;  %v5135_v39 = vmul.f32 0.03125, %v5103_v60 }
0x1591   :  { %11837 = vrsqrt.f32 %v5149_v3 }
0x1592   :  { %v5150_v0 = vadd.f32 1e-06, %v5134_v55  ;;  %v5151_v49 = vadd.f32 1e-06, %v5135_v39 }
0x1593   :  { %v5094_v43 = vpop.xlane.xlu0 %5093 }
0x1594   :  { %11839 = vrsqrt.f32 %v5150_v0  ;;  %v5132_v9 = vmul.f32 0.03125, %v5094_v43 }
0x1595   :  { %11841 = vrsqrt.f32 %v5151_v49  ;;  %v11830_v16 = vpop.eup %11829 }
0x1596   :  { %v5148_v41 = vadd.f32 1e-06, %v5132_v9  ;;  %v5177_v50 = vmul.f32 %v11830_v16, %v14684_v30 }
0x1597   :  { %v5197_v8 = vpop.permute.xlu0 %5196 }
0x1598   :  { %11843 = vrsqrt.f32 %v5148_v41  ;;  %v5203_v44 = vmul.f32 %v5197_v8, %v5177_v50 }
0x1599   :  { %v11832_v22 = vpop.eup %11831 }
0x159a   :  { %v11834_v51 = vpop.eup %11833  ;;  %v5178_v63 = vmul.f32 %v11832_v22, %v14692_v13 }
0x159b   :  { %v5179_v12 = vmul.f32 %v11834_v51, %v14695_v38  ;;  %v5219_v38 = vadd.f32 %v5203_v44, %v14740_v31 }
0x159c   :  { %v5204_v15 = vmul.f32 %v5197_v8, %v5178_v63 }
0x159d   :  { %v11836_v45 = vpop.eup %11835  ;;  %v5205_v18 = vmul.f32 %v5197_v8, %v5179_v12 }
0x159e   :  { %v5176_v11 = vmul.f32 %v11836_v45, %v14689_v35  ;;  %v11838_v48 = vpop.eup %11837  ;;  %v5220_v26 = vadd.f32 %v5204_v15, %v14740_v31 }
0x159f   :  { %v5221_v53 = vadd.f32 %v5205_v18, %v14740_v31  ;;  %v5181_v36 = vmul.f32 %v11838_v48, %v14705_v2 }
0x15a0   :  { %v5202_v17 = vmul.f32 %v5197_v8, %v5176_v11 }
0x15a1   :  { %v11840_v25 = vpop.eup %11839  ;;  %v5241_v57 = vpack.c.bf16 %v5221_v53, %v5220_v26  ;;  %v5207_v55 = vmul.f32 %v5197_v8, %v5181_v36 }
0x15a2   :  { %v11842_v10 = vpop.eup %11841  ;;  %v5182_v13 = vmul.f32 %v11840_v25, %v14716_v34  ;;  %v5218_v30 = vadd.f32 %v5202_v17, %v14740_v31 }
0x15a3   :  { %v5183_v42 = vmul.f32 %v11842_v10, %v14719_v56  ;;  %v5223_v56 = vadd.f32 %v5207_v55, %v14740_v31  ;;  %v10693_v10 = vpop.f32.mrf.mxu0 }
0x15a4   :  { %v5240_v35 = vpack.c.bf16 %v5219_v38, %v5218_v30  ;;  %v5208_v3 = vmul.f32 %v5197_v8, %v5182_v13 }
0x15a5   :  { %v11844_v5 = vpop.eup %11843  ;;  %v5209_v61 = vmul.f32 %v5197_v8, %v5183_v42  ;;  %v4649_v30 = vpop.f32.mrf.mxu0 }
0x15a6   :  { %10703 = vmatprep.mubr.msk.bf16.mxu1 %vm302_vm2, %v5240_v35  ;;  %v5180_v60 = vmul.f32 %v11844_v5, %v14713_v27  ;;  %v5224_v39 = vadd.f32 %v5208_v3, %v14740_v31  ;;  %v14773_v27 = vld [vmem:[%s16855_s14 + $0xd] ss:$0 sm:$0xff]  ;;  %v4650_v36 = vadd.f32 %v14514_v54, %v4649_v30 }
0x15a7   :  { %10704 = vmatmul.mubr.msk.bf16.vlgmr.msra.gmra.mxu1 %vm302_vm2, %v5241_v57  ;;  %v5225_v0 = vadd.f32 %v5209_v61, %v14740_v31  ;;  %v10694_v38 = vpop.f32.mrf.mxu0 }
0x15a8   :  { %v5206_v34 = vmul.f32 %v5197_v8, %v5180_v60  ;;  %v4661_v5 = vadd.f32 %v10694_v38, %v14514_v54  ;;  %v4658_v60 = vadd.f32 %v10693_v10, %v14514_v54 }
0x15a9   :  { %v5243_v43 = vpack.c.bf16 %v5225_v0, %v5224_v39  ;;  %v4652_v42 = vpop.f32.mrf.mxu0 }
0x15aa   :  { %v5222_v2 = vadd.f32 %v5206_v34, %v14740_v31  ;;  %v4653_v3 = vadd.f32 %v14514_v54, %v4652_v42 }
0x15ac   :  { %v5242_v49 = vpack.c.bf16 %v5223_v56, %v5222_v2 }
0x15ad   :  { %v10697_v35 = vpop.f32.mrf.mxu0 }
0x15ae   :  { %10707 = vmatprep.mubr.msk.bf16.mxu1 %vm302_vm2, %v5242_v49  ;;  %v4674_v55 = vadd.f32 %v10697_v35, %v14514_v54 }
0x15af   :  { %10708 = vmatmul.mubr.msk.bf16.gmra.mxu1 %vm302_vm2, %v5243_v43  ;;  %v4665_v57 = vpop.f32.mrf.mxu0 }
0x15b0   :  { %v4666_v61 = vadd.f32 %v14514_v54, %v4665_v57 }
0x15b1   :  { %v10698_v34 = vpop.f32.mrf.mxu0 }
0x15b2   :  { %v4677_v2 = vadd.f32 %v10698_v34, %v14514_v54 }
0x15b3   :  { %v4668_v39 = vpop.f32.mrf.mxu0 }
0x15b4   :  { %v4669_v0 = vadd.f32 %v14514_v54, %v4668_v39 }
0x1667   :  { %v10705_v9 = vpop.f32.mrf.mxu1 }
0x1668   :  { %v5333_v22 = vadd.f32 %v10705_v9, %v14773_v27 }
0x1669   :  { %v5324_v41 = vpop.f32.mrf.mxu1 }
0x166a   :  { %v5325_v50 = vadd.f32 %v14773_v27, %v5324_v41 }
0x166b   :  { %v10706_v16 = vpop.f32.mrf.mxu1 }
0x166c   :  { %v5336_v51 = vadd.f32 %v10706_v16, %v14773_v27 }
0x166d   :  { %v5327_v63 = vpop.f32.mrf.mxu1 }
0x166e   :  { %v14778_v12 = vpack.c.bf16 %v5336_v51, %v5333_v22  ;;  %v5328_v8 = vadd.f32 %v14773_v27, %v5327_v63 }
0x166f   :  { %v10709_v45 = vpop.f32.mrf.mxu1 }
0x1670   :  { %v14781_v15 = vpack.c.bf16 %v5328_v8, %v5325_v50  ;;  %5397 = vrot.lane.b32.xlu0 %v14778_v12, %s12219_s16  ;;  %v5349_v44 = vadd.f32 %v10709_v45, %v14773_v27 }
0x1671   :  { %v5340_v18 = vpop.f32.mrf.mxu1 }
0x1672   :  { %10727 = vmatprep.mubr.msk.bf16.mxu0 %vm1133_vm4, %v14781_v15  ;;  %v5341_v53 = vadd.f32 %v14773_v27, %v5340_v18 }
0x1673   :  { %v10710_v11 = vpop.f32.mrf.mxu1 }
0x1674   :  { %v5352_v48 = vadd.f32 %v10710_v11, %v14773_v27 }
0x1675   :  { %v5343_v17 = vpop.f32.mrf.mxu1 }
0x1676   :  { %v14789_v25 = vpack.c.bf16 %v5352_v48, %v5349_v44  ;;  %v5344_v26 = vadd.f32 %v14773_v27, %v5343_v17 }
0x1678   :  { %5687 = vrot.lane.b32.xlu0 %v14789_v25, %s12220_s2  ;;  %5401 = vrot.lane.b32.xlu1 %v14789_v25, %s12219_s16  ;;  %v14797_v13 = vpack.c.bf16 %v5344_v26, %v5341_v53 }
0x167c   :  { %5683 = vrot.lane.b32.xlu0 %v14778_v12, %s12220_s2  ;;  %5399 = vrot.lane.b32.xlu1 %v14797_v13, %s12219_s16 }
0x1680   :  { %5673 = vrot.lane.b32.xlu0 %v14781_v15, %s12222_s20  ;;  %5395 = vrot.lane.b32.xlu1 %v14781_v15, %s12219_s16 }
0x1684   :  { %4712 = vrot.lane.b32.xlu0 %v4650_v36, %s12233_s1  ;;  %5685 = vrot.lane.b32.xlu1 %v14797_v13, %s12220_s2 }
0x1688   :  { %5677 = vrot.lane.b32.xlu0 %v14797_v13, %s12222_s20  ;;  %5681 = vrot.lane.b32.xlu1 %v14781_v15, %s12220_s2 }
0x168c   :  { %4718 = vrot.lane.b32.xlu0 %v4661_v5, %s12233_s1  ;;  %5675 = vrot.lane.b32.xlu1 %v14778_v12, %s12222_s20 }
0x1690   :  { %4720 = vrot.lane.b32.xlu0 %v4666_v61, %s12233_s1  ;;  %4714 = vrot.lane.b32.xlu1 %v4653_v3, %s12233_s1 }
0x1694   :  { %4724 = vrot.lane.b32.xlu0 %v4674_v55, %s12233_s1  ;;  %4716 = vrot.lane.b32.xlu1 %v4658_v60, %s12233_s1 }
0x1698   :  { %5679 = vrot.lane.b32.xlu1 %v14789_v25, %s12222_s20 }
0x169c   :  { %4722 = vrot.lane.b32.xlu1 %v4669_v0, %s12233_s1 }
0x16a0   :  { %4726 = vrot.lane.b32.xlu1 %v4677_v2, %s12233_s1 }
0x16e2   :  { %v5398_v56 = vpop.permute.xlu0 %5397 }
0x16e3   :  { %v5419_v11 = vsel %vm1133_vm4, %v5398_v56, 0 }
0x16ea   :  { %v5688_v49 = vpop.permute.xlu0 %5687  ;;  %v5402_v43 = vpop.permute.xlu1 %5401 }
0x16eb   :  { %11115 = vmatprep.subr.msk.bf16.mxu0 %vm1133_vm4, %v5402_v43  ;;  %v5425_v9 = vsel %vm1133_vm4, %v5402_v43, 0  ;;  %v5711_v5 = vsel %vm1133_vm4, %v5688_v49, 0 }
0x16ec   :  { %10720 = vmatpush3.bf16.xpose.msra.mxu0 %v5425_v9 }
0x16ee   :  { %v5684_v41 = vpop.permute.xlu0 %5683  ;;  %v5400_v16 = vpop.permute.xlu1 %5399 }
0x16ef   :  { %11116 = vmatprep.subr.msk.bf16.mxu0 %vm1133_vm4, %v5400_v16  ;;  %v5422_v63 = vsel %vm1133_vm4, %v5400_v16, 0  ;;  %v5705_v0 = vsel %vm1133_vm4, %v5684_v41, 0 }
0x16f2   :  { %v5674_v22 = vpop.permute.xlu0 %5673  ;;  %v5396_v51 = vpop.permute.xlu1 %5395 }
0x16f3   :  { %v5416_v53 = vsel %vm1133_vm4, %v5396_v51, 0 }
0x16f4   :  { %10722 = vmatpush3.bf16.xpose.msra.mxu0 %v5422_v63 }
0x16f5   :  { %11117 = vmatprep.subr.msk.bf16.mxu0 %vm1133_vm4, %v5398_v56 }
0x16f6   :  { %v4713_v54 = vpop.permute.xlu0 %4712  ;;  %v5686_v50 = vpop.permute.xlu1 %5685 }
0x16f7   :  { %v4752_v8 = vmul.f32 %v4713_v54, %v14548_v40  ;;  %v5708_v39 = vsel %vm1133_vm4, %v5686_v50, 0 }
0x16f9   :  { %4792 = vrot.lane.b32.xlu0 %v4752_v8, %s12219_s16 }
0x16fa   :  { %v5678_v45 = vpop.permute.xlu0 %5677  ;;  %v5682_v18 = vpop.permute.xlu1 %5681 }
0x16fb   :  { %v5702_v2 = vsel %vm1133_vm4, %v5682_v18, 0 }
0x16fc   :  { %10724 = vmatpush3.bf16.xpose.msra.mxu0 %v5419_v11 }
0x16fd   :  { %11118 = vmatprep.subr.msk.bf16.mxu0 %vm1133_vm4, %v5396_v51 }
0x16fe   :  { %v5676_v44 = vpop.permute.xlu1 %5675  ;;  %v4719_v48 = vpop.permute.xlu0 %4718 }
0x16ff   :  { %v4755_v38 = vmul.f32 %v4719_v48, %v14548_v40 }
0x1702   :  { %v4715_v17 = vpop.permute.xlu1 %4714  ;;  %v4721_v10 = vpop.permute.xlu0 %4720 }
0x1703   :  { %v4753_v26 = vmul.f32 %v4715_v17, %v14548_v40  ;;  %v4756_v35 = vmul.f32 %v4721_v10, %v14548_v40 }
0x1704   :  { %10726 = vmatpush3.bf16.xpose.msra.mxu0 %v5416_v53 }
0x1705   :  { %11119 = vmatprep.subr.msk.bf16.mxu0 %vm1133_vm4, %v5688_v49  ;;  %4794 = vrot.lane.b32.xlu1 %v4753_v26, %s12219_s16 }
0x1706   :  { %v4717_v30 = vpop.permute.xlu1 %4716  ;;  %v4725_v57 = vpop.permute.xlu0 %4724 }
0x1707   :  { %v4754_v36 = vmul.f32 %v4717_v30, %v14548_v40  ;;  %v4758_v61 = vmul.f32 %v4725_v57, %v14548_v40 }
0x1709   :  { %4798 = vrot.lane.b32.xlu1 %v4755_v38, %s12219_s16  ;;  %4796 = vrot.lane.b32.xlu0 %v4754_v36, %s12219_s16 }
0x170a   :  { %v5680_v42 = vpop.permute.xlu1 %5679 }
0x170b   :  { %10728 = vmatmul.mubr.msk.bf16.vlgmr.msra.gmra.mxu0 %vm1133_vm4, %v14778_v12 }
0x170c   :  { %10731 = vmatprep.mubr.msk.bf16.mxu0 %vm1133_vm4, %v14797_v13  ;;  %10752 = vmatpush3.bf16.xpose.msra.mxu0 %v5711_v5 }
0x170d   :  { %11120 = vmatprep.subr.msk.bf16.mxu0 %vm1133_vm4, %v5686_v50  ;;  %4800 = vrot.lane.b32.xlu0 %v4756_v35, %s12219_s16 }
0x170e   :  { %v4723_v3 = vpop.permute.xlu1 %4722 }
0x170f   :  { %v4757_v60 = vmul.f32 %v4723_v3, %v14548_v40 }
0x1711   :  { %4804 = vrot.lane.b32.xlu0 %v4758_v61, %s12219_s16  ;;  %4802 = vrot.lane.b32.xlu1 %v4757_v60, %s12219_s16 }
0x1712   :  { %v4727_v55 = vpop.permute.xlu1 %4726 }
0x1713   :  { %v4759_v34 = vmul.f32 %v4727_v55, %v14548_v40  ;;  %10732 = vmatmul.mubr.msk.bf16.gmra.mxu0 %vm1133_vm4, %v14789_v25 }
0x1714   :  { %10754 = vmatpush3.bf16.xpose.msra.mxu0 %v5708_v39  ;;  %10759 = vmatprep.mubr.msk.bf16.mxu0 %vm1133_vm4, %v5674_v22 }
0x1715   :  { %11121 = vmatprep.subr.msk.bf16.mxu0 %vm1133_vm4, %v5684_v41  ;;  %4806 = vrot.lane.b32.xlu1 %v4759_v34, %s12219_s16 }
0x171c   :  { %10756 = vmatpush3.bf16.xpose.msra.mxu0 %v5705_v0 }
0x171d   :  { %11122 = vmatprep.subr.msk.bf16.mxu0 %vm1133_vm4, %v5682_v18 }
0x1724   :  { %10758 = vmatpush3.bf16.xpose.msra.mxu0 %v5702_v2 }
0x172b   :  { %10760 = vmatmul.mubr.msk.bf16.vlgmr.msra.gmra.mxu0 %vm1133_vm4, %v5676_v44 }
0x172c   :  { %10763 = vmatprep.mubr.msk.bf16.mxu0 %vm1133_vm4, %v5678_v45 }
0x1733   :  { %10764 = vmatmul.mubr.msk.bf16.gmra.mxu0 %vm1133_vm4, %v5680_v42 }
0x176b   :  { %v4793_v40 = vpop.permute.xlu0 %4792 }
0x176c   :  { %v14876_v56 = vadd.f32 %v4793_v40, %v14422_v24 }
0x176e   :  { %17098 = vst [vmem:[#allocation33_spill] sm:$0xff] %v14876_v56  ;;  %v5008_v49 = vsel %vm302_vm2, %v14876_v56, 0.0 }
0x176f   :  { %5009 = vadd.xlane.f32.xlu0 %v5008_v49 }
0x1777   :  { %v4795_v43 = vpop.permute.xlu1 %4794 }
0x1778   :  { %v14881_v9 = vadd.f32 %v4795_v43, %v14430_v28 }
0x177a   :  { %17099 = vst [vmem:[#allocation35_spill] sm:$0xff] %v14881_v9  ;;  %v5011_v41 = vsel %vm302_vm2, %v14881_v9, 0.0 }
0x177b   :  { %v4797_v16 = vpop.permute.xlu0 %4796  ;;  %5012 = vadd.xlane.f32.xlu1 %v5011_v41  ;;  %v4799_v22 = vpop.permute.xlu1 %4798 }
0x177c   :  { %v14886_v51 = vadd.f32 %v4797_v16, %v14427_v59  ;;  %v14889_v24 = vadd.f32 %v4799_v22, %v14437_v29 }
0x177e   :  { %17100 = vst [vmem:[#allocation48_spill] sm:$0xff] %v14886_v51  ;;  %17101 = vst [vmem:[#allocation50_spill] sm:$0xff] %v14889_v24  ;;  %v5014_v63 = vsel %vm302_vm2, %v14886_v51, 0.0  ;;  %v5017_v8 = vsel %vm302_vm2, %v14889_v24, 0.0 }
0x177f   :  { %5015 = vadd.xlane.f32.xlu0 %v5014_v63  ;;  %v4801_v54 = vpop.permute.xlu0 %4800 }
0x1780   :  { %v14894_v28 = vadd.f32 %v4801_v54, %v14442_v21 }
0x1782   :  { %17102 = vst [vmem:[#allocation39_spill] sm:$0xff] %v14894_v28  ;;  %v5020_v50 = vsel %vm302_vm2, %v14894_v28, 0.0 }
0x1783   :  { %v4805_v45 = vpop.permute.xlu0 %4804  ;;  %5021 = vadd.xlane.f32.xlu1 %v5020_v50  ;;  %5018 = vadd.xlane.f32.xlu0 %v5017_v8  ;;  %v4803_v59 = vpop.permute.xlu1 %4802 }
0x1784   :  { %v14901_v29 = vadd.f32 %v4805_v45, %v14447_v20  ;;  %v14904_v18 = vadd.f32 %v4803_v59, %v14450_v52 }
0x1786   :  { %17103 = vst [vmem:[#allocation41_spill] sm:$0xff] %v14901_v29  ;;  %17104 = vst [vmem:[#allocation47_spill] sm:$0xff] %v14904_v18  ;;  %v5026_v21 = vsel %vm302_vm2, %v14901_v29, 0.0  ;;  %v5023_v11 = vsel %vm302_vm2, %v14904_v18, 0.0 }
0x1787   :  { %5027 = vadd.xlane.f32.xlu1 %v5026_v21  ;;  %5024 = vadd.xlane.f32.xlu0 %v5023_v11  ;;  %v4807_v44 = vpop.permute.xlu1 %4806 }
0x1788   :  { %v14911_v48 = vadd.f32 %v4807_v44, %v14457_v23 }
0x178a   :  { %17105 = vst [vmem:[#allocation49_spill] sm:$0xff] %v14911_v48  ;;  %v5029_v17 = vsel %vm302_vm2, %v14911_v48, 0.0 }
0x178b   :  { %5030 = vadd.xlane.f32.xlu0 %v5029_v17 }
0x17f8   :  { %v5010_v20 = vpop.xlane.xlu0 %5009 }
0x17f9   :  { %v5040_v26 = vmul.f32 0.03125, %v5010_v20 }
0x17fb   :  { %v14916_v52 = vsub.f32 %v14876_v56, %v5040_v26 }
0x17fd   :  { %v5072_v53 = vmul.f32 %v14916_v52, %v14916_v52 }
0x17ff   :  { %v5104_v10 = vsel %vm302_vm2, %v5072_v53, 0.0  ;;  %v4926_v53 = vcombine.high %v14735_v14, %v14735_v14  ;;  %v14983_v14 = vpop.f32.mrf.mxu0 }
0x1800   :  { %5105 = vadd.xlane.f32.xlu1 %v5104_v10 }
0x1804   :  { %v5013_v30 = vpop.xlane.xlu1 %5012 }
0x1805   :  { %v5041_v38 = vmul.f32 0.03125, %v5013_v30  ;;  %v4940_v30 = vrot.slane %v4926_v53, %v17073_v47 }
0x1807   :  { %v14922_v23 = vsub.f32 %v14881_v9, %v5041_v38  ;;  %v14967_v38 = vrot.slane %v4940_v30, %v17075_v58 }
0x1808   :  { %v5016_v36 = vpop.xlane.xlu0 %5015 }
0x1809   :  { %v5042_v42 = vmul.f32 0.03125, %v5016_v36  ;;  %v5073_v35 = vmul.f32 %v14922_v23, %v14922_v23  ;;  %17106 = vst [vmem:[#allocation67_spill] sm:$0xff] %v14967_v38  ;;  %v5193_v36 = vadd.f32 1.0, %v14967_v38 }
0x180b   :  { %v14927_v5 = vsub.f32 %v14886_v51, %v5042_v42  ;;  %v5107_v57 = vsel %vm302_vm2, %v5073_v35, 0.0  ;;  %v14985_v42 = vpop.f32.mrf.mxu0 }
0x180c   :  { %v5019_v3 = vpop.xlane.xlu0 %5018  ;;  %5108 = vadd.xlane.f32.xlu0 %v5107_v57  ;;  %v5022_v61 = vpop.xlane.xlu1 %5021 }
0x180d   :  { %v5043_v60 = vmul.f32 0.03125, %v5019_v3  ;;  %v5044_v55 = vmul.f32 0.03125, %v5022_v61  ;;  %v5074_v34 = vmul.f32 %v14927_v5, %v14927_v5  ;;  %v14987_v35 = vpop.f32.mrf.mxu0 }
0x180f   :  { %v14933_v39 = vsub.f32 %v14889_v24, %v5043_v60  ;;  %v14936_v0 = vsub.f32 %v14894_v28, %v5044_v55  ;;  %v5110_v2 = vsel %vm302_vm2, %v5074_v34, 0.0  ;;  %v14989_v57 = vpop.f32.mrf.mxu0  ;;  %v5501_v55 = vsel %vm1223_vm5, %v14987_v35, -inf }
0x1810   :  { %5111 = vadd.xlane.f32.xlu1 %v5110_v2  ;;  %v5025_v40 = vpop.xlane.xlu0 %5024  ;;  %v5028_v49 = vpop.xlane.xlu1 %5027  ;;  %v5498_v34 = vsel %vm1223_vm5, %v14983_v14, -inf }
0x1811   :  { %v5045_v43 = vmul.f32 0.03125, %v5025_v40  ;;  %v5046_v41 = vmul.f32 0.03125, %v5028_v49  ;;  %v5075_v16 = vmul.f32 %v14933_v39, %v14933_v39  ;;  %v5076_v22 = vmul.f32 %v14936_v0, %v14936_v0  ;;  %v14991_v3 = vpop.f32.mrf.mxu0 }
0x1812   :  { %v5495_v40 = vsel %vm1223_vm5, %v14989_v57, -inf  ;;  %v5492_v49 = vsel %vm1223_vm5, %v14985_v42, -inf }
0x1813   :  { %v14944_v63 = vsub.f32 %v14904_v18, %v5045_v43  ;;  %v14947_v54 = vsub.f32 %v14901_v29, %v5046_v41  ;;  %v5113_v50 = vsel %vm302_vm2, %v5075_v16, 0.0  ;;  %v5116_v8 = vsel %vm302_vm2, %v5076_v22, 0.0  ;;  %v14993_v61 = vpop.f32.mrf.mxu0 }
0x1814   :  { %v5031_v45 = vpop.xlane.xlu0 %5030  ;;  %5114 = vadd.xlane.f32.xlu0 %v5113_v50  ;;  %5117 = vadd.xlane.f32.xlu1 %v5116_v8  ;;  %v5510_v16 = vsel %vm1223_vm5, %v14991_v3, -inf  ;;  %v5504_v8 = vsel %vm1223_vm5, %v14993_v61, -inf }
0x1815   :  { %v5047_v59 = vmul.f32 0.03125, %v5031_v45  ;;  %v5077_v21 = vmul.f32 %v14944_v63, %v14944_v63  ;;  %v5078_v11 = vmul.f32 %v14947_v54, %v14947_v54  ;;  %v14995_v60 = vpop.f32.mrf.mxu0 }
0x1816   :  { %v5513_v41 = vsel %vm1223_vm5, %v14995_v60, -inf }
0x1817   :  { %v14956_v44 = vsub.f32 %v14911_v48, %v5047_v59  ;;  %v5119_v17 = vsel %vm302_vm2, %v5077_v21, 0.0  ;;  %v5122_v20 = vsel %vm302_vm2, %v5078_v11, 0.0  ;;  %v15001_v2 = vpop.f32.mrf.mxu0 }
0x1818   :  { %5120 = vadd.xlane.f32.xlu0 %v5119_v17  ;;  %5123 = vadd.xlane.f32.xlu1 %v5122_v20  ;;  %v5507_v50 = vsel %vm1223_vm5, %v15001_v2, -inf }
0x1819   :  { %v5079_v26 = vmul.f32 %v14956_v44, %v14956_v44  ;;  %v15007_v43 = vpop.f32.mrf.mxu0 }
0x181a   :  { %v5784_v21 = vsel %vm1223_vm5, %v15007_v43, -inf }
0x181b   :  { %v5125_v10 = vsel %vm302_vm2, %v5079_v26, 0.0  ;;  %v15013_v22 = vpop.f32.mrf.mxu0 }
0x181c   :  { %5126 = vadd.xlane.f32.xlu0 %v5125_v10  ;;  %v5778_v20 = vsel %vm1223_vm5, %v15013_v22, -inf }
0x181d   :  { %v15019_v45 = vpop.f32.mrf.mxu0 }
0x181e   :  { %v5787_v59 = vsel %vm1223_vm5, %v15019_v45, -inf }
0x181f   :  { %v15025_v11 = vpop.f32.mrf.mxu0 }
0x1820   :  { %v5781_v17 = vsel %vm1223_vm5, %v15025_v11, -inf }
0x1829   :  { %5198 = vrot.lane.b32.xlu1 %v5193_v36, %s12219_s16  ;;  %v15037_v36 = vpop.f32.mrf.mxu0 }
0x182d   :  { %5544 = vrot.lane.b32.xlu1 %v14781_v15, %s12224_s22 }
0x1831   :  { %5836 = vrot.lane.b32.xlu1 %v14789_v25, %s12225_s23 }
0x1832   :  { %5550 = vrot.lane.b32.xlu0 %v14789_v25, %s12224_s22 }
0x1835   :  { %5548 = vrot.lane.b32.xlu1 %v14797_v13, %s12224_s22 }
0x1836   :  { %5546 = vrot.lane.b32.xlu0 %v14778_v12, %s12224_s22 }
0x183a   :  { %5834 = vrot.lane.b32.xlu0 %v14797_v13, %s12225_s23 }
0x1859   :  { %5502 = vmax.xlane.f32.xlu0 %v5501_v55  ;;  %5499 = vmax.xlane.f32.xlu1 %v5498_v34 }
0x185d   :  { %5496 = vmax.xlane.f32.xlu0 %v5495_v40  ;;  %5493 = vmax.xlane.f32.xlu1 %v5492_v49  ;;  %v15039_v49 = vpop.f32.mrf.mxu0 }
0x1861   :  { %5514 = vmax.xlane.f32.xlu0 %v5513_v41  ;;  %5511 = vmax.xlane.f32.xlu1 %v5510_v16 }
0x1865   :  { %5508 = vmax.xlane.f32.xlu0 %v5507_v50  ;;  %5505 = vmax.xlane.f32.xlu1 %v5504_v8 }
0x1869   :  { %5788 = vmax.xlane.f32.xlu0 %v5787_v59  ;;  %5785 = vmax.xlane.f32.xlu1 %v5784_v21  ;;  %v15041_v59 = vpop.f32.mrf.mxu0 }
0x186a   :  { %v5799_v62 = vsel %vm1223_vm5, %v15041_v59, -inf }
0x186d   :  { %5782 = vmax.xlane.f32.xlu0 %v5781_v17  ;;  %5779 = vmax.xlane.f32.xlu1 %v5778_v20 }
0x187e   :  { %5830 = vrot.lane.b32.xlu1 %v14781_v15, %s12225_s23 }
0x1882   :  { %5973 = vrot.lane.b32.xlu1 %v14789_v25, %s12221_s19 }
0x1883   :  { %5832 = vrot.lane.b32.xlu0 %v14778_v12, %s12225_s23 }
0x1889   :  { %v5106_v26 = vpop.xlane.xlu1 %5105 }
0x188a   :  { %v5136_v53 = vmul.f32 0.03125, %v5106_v26 }
0x188c   :  { %v5152_v10 = vadd.f32 1e-06, %v5136_v53 }
0x188e   :  { %11845 = vrsqrt.f32 %v5152_v10  ;;  %v5796_v10 = vsel %vm1223_vm5, %v15037_v36, -inf }
0x1895   :  { %v5109_v30 = vpop.xlane.xlu0 %5108 }
0x1896   :  { %v5137_v55 = vmul.f32 0.03125, %v5109_v30  ;;  %v15045_v30 = vpop.f32.mrf.mxu0 }
0x1898   :  { %v5153_v34 = vadd.f32 1e-06, %v5137_v55 }
0x1899   :  { %v5112_v40 = vpop.xlane.xlu1 %5111 }
0x189a   :  { %11847 = vrsqrt.f32 %v5153_v34  ;;  %v5138_v41 = vmul.f32 0.03125, %v5112_v40 }
0x189b   :  { %v11846_v40 = vpop.eup %11845 }
0x189c   :  { %v5154_v16 = vadd.f32 1e-06, %v5138_v41 }
0x189d   :  { %v5115_v50 = vpop.xlane.xlu0 %5114  ;;  %v5118_v8 = vpop.xlane.xlu1 %5117 }
0x189e   :  { %11849 = vrsqrt.f32 %v5154_v16  ;;  %v5139_v21 = vmul.f32 0.03125, %v5115_v50  ;;  %v5140_v17 = vmul.f32 0.03125, %v5118_v8  ;;  %v5793_v8 = vsel %vm1223_vm5, %v15045_v30, -inf }
0x18a0   :  { %v5155_v20 = vadd.f32 1e-06, %v5139_v21  ;;  %v5156_v26 = vadd.f32 1e-06, %v5140_v17  ;;  %v5790_v21 = vsel %vm1223_vm5, %v15039_v49, -inf }
0x18a1   :  { %v5121_v53 = vpop.xlane.xlu0 %5120  ;;  %v5124_v4 = vpop.xlane.xlu1 %5123 }
0x18a2   :  { %11851 = vrsqrt.f32 %v5155_v20  ;;  %v5141_v55 = vmul.f32 0.03125, %v5121_v53  ;;  %v5142_v34 = vmul.f32 0.03125, %v5124_v4  ;;  %5797 = vmax.xlane.f32.xlu0 %v5796_v10  ;;  %v5184_v20 = vmul.f32 %v11846_v40, %v14916_v52 }
0x18a3   :  { %11853 = vrsqrt.f32 %v5156_v26 }
0x18a4   :  { %v5157_v41 = vadd.f32 1e-06, %v5141_v55  ;;  %v5158_v58 = vadd.f32 1e-06, %v5142_v34 }
0x18a5   :  { %v5127_v16 = vpop.xlane.xlu0 %5126  ;;  %v5199_v50 = vpop.permute.xlu1 %5198 }
0x18a6   :  { %11855 = vrsqrt.f32 %v5157_v41  ;;  %v5143_v17 = vmul.f32 0.03125, %v5127_v16  ;;  %5794 = vmax.xlane.f32.xlu0 %v5793_v8  ;;  %5791 = vmax.xlane.f32.xlu1 %v5790_v21  ;;  %v5210_v10 = vmul.f32 %v5199_v50, %v5184_v20 }
0x18a7   :  { %v11848_v4 = vpop.eup %11847  ;;  %11857 = vrsqrt.f32 %v5158_v58 }
0x18a8   :  { %v5159_v53 = vadd.f32 1e-06, %v5143_v17  ;;  %v5185_v26 = vmul.f32 %v11848_v4, %v14922_v23  ;;  %v5226_v52 = vadd.f32 %v5210_v10, %v14967_v38 }
0x18a9   :  { %v5551_v55 = vpop.permute.xlu0 %5550  ;;  %v5545_v34 = vpop.permute.xlu1 %5544 }
0x18aa   :  { %11859 = vrsqrt.f32 %v5159_v53  ;;  %10735 = vmatprep.subr.bf16.mxu1 %v5551_v55  ;;  %5800 = vmax.xlane.f32.xlu1 %v5799_v62  ;;  %v5211_v41 = vmul.f32 %v5199_v50, %v5185_v26 }
0x18ab   :  { %v11850_v16 = vpop.eup %11849  ;;  %10736 = vmatpush3.bf16.msra.mxu1 %v5551_v55 }
0x18ac   :  { %v5186_v8 = vmul.f32 %v11850_v16, %v14927_v5  ;;  %v5227_v58 = vadd.f32 %v5211_v41, %v14967_v38 }
0x18ad   :  { %v15058_v40 = vpop.permute.xlu1 %5836  ;;  %v5547_v55 = vpop.permute.xlu0 %5546 }
0x18ae   :  { %v5244_v23 = vpack.c.bf16 %v5227_v58, %v5226_v52  ;;  %v5212_v4 = vmul.f32 %v5199_v50, %v5186_v8 }
0x18af   :  { %v11852_v21 = vpop.eup %11851 }
0x18b0   :  { %v11854_v17 = vpop.eup %11853  ;;  %v5187_v20 = vmul.f32 %v11852_v21, %v14933_v39  ;;  %10711 = vmatprep.mubr.msk.bf16.mxu1 %vm302_vm2, %v5244_v23  ;;  %v5228_v16 = vadd.f32 %v5212_v4, %v14967_v38 }
0x18b1   :  { %v5549_v62 = vpop.permute.xlu1 %5548  ;;  %v5188_v53 = vmul.f32 %v11854_v17, %v14936_v0 }
0x18b2   :  { %10737 = vmatprep.subr.bf16.mxu1 %v5549_v62  ;;  %v5213_v26 = vmul.f32 %v5199_v50, %v5187_v20 }
0x18b3   :  { %v11856_v5 = vpop.eup %11855  ;;  %10738 = vmatpush3.bf16.msra.mxu1 %v5549_v62  ;;  %v5214_v10 = vmul.f32 %v5199_v50, %v5188_v53 }
0x18b4   :  { %v11858_v41 = vpop.eup %11857  ;;  %10739 = vmatprep.subr.bf16.mxu1 %v5547_v55  ;;  %v5229_v52 = vadd.f32 %v5213_v26, %v14967_v38  ;;  %v5189_v39 = vmul.f32 %v11856_v5, %v14944_v63 }
0x18b5   :  { %v5190_v58 = vmul.f32 %v11858_v41, %v14947_v54  ;;  %v5230_v0 = vadd.f32 %v5214_v10, %v14967_v38 }
0x18b6   :  { %v5245_v8 = vpack.c.bf16 %v5229_v52, %v5228_v16  ;;  %v5215_v23 = vmul.f32 %v5199_v50, %v5189_v39 }
0x18b7   :  { %v11860_v21 = vpop.eup %11859  ;;  %10740 = vmatpush3.bf16.msra.mxu1 %v5547_v55  ;;  %v5216_v4 = vmul.f32 %v5199_v50, %v5190_v58 }
0x18b8   :  { %v5191_v17 = vmul.f32 %v11860_v21, %v14956_v44  ;;  %10712 = vmatmul.mubr.msk.bf16.gmra.mxu1 %vm302_vm2, %v5245_v8  ;;  %10741 = vmatprep.subr.bf16.mxu1 %v5545_v34  ;;  %v5231_v20 = vadd.f32 %v5215_v23, %v14967_v38 }
0x18b9   :  { %v5232_v63 = vadd.f32 %v5216_v4, %v14967_v38 }
0x18ba   :  { %v5246_v62 = vpack.c.bf16 %v5231_v20, %v5230_v0  ;;  %v5217_v53 = vmul.f32 %v5199_v50, %v5191_v17  ;;  %v15094_v50 = vpop.permute.xlu0 %5834 }
0x18bb   :  { %5969 = vrot.lane.b32.xlu1 %v14778_v12, %s12221_s19  ;;  %10742 = vmatpush3.bf16.msra.mxu1 %v5545_v34 }
0x18bc   :  { %5971 = vrot.lane.b32.xlu0 %v14797_v13, %s12221_s19  ;;  %10715 = vmatprep.mubr.msk.bf16.mxu1 %vm302_vm2, %v5246_v62  ;;  %v5233_v54 = vadd.f32 %v5217_v53, %v14967_v38 }
0x18bd   :  { %10767 = vmatprep.subr.bf16.mxu1 %v15058_v40 }
0x18be   :  { %v5247_v44 = vpack.c.bf16 %v5233_v54, %v5232_v63 }
0x18bf   :  { %5959 = vrot.lane.b32.xlu1 %v14781_v15, %s12223_s21 }
0x18c0   :  { %5967 = vrot.lane.b32.xlu0 %v14781_v15, %s12221_s19  ;;  %10716 = vmatmul.mubr.msk.bf16.gmra.mxu1 %vm302_vm2, %v5247_v44 }
0x18c3   :  { %5963 = vrot.lane.b32.xlu1 %v14797_v13, %s12223_s21 }
0x18c4   :  { %5961 = vrot.lane.b32.xlu0 %v14778_v12, %s12223_s21 }
0x18c7   :  { %6120 = vrot.lane.b32.xlu1 %v14797_v13, %s12226_s24 }
0x18c8   :  { %5965 = vrot.lane.b32.xlu0 %v14789_v25, %s12223_s21 }
0x18cc   :  { %6122 = vrot.lane.b32.xlu0 %v14789_v25, %s12226_s24 }
0x18e2   :  { %v5503_v34 = vpop.xlane.xlu0 %5502  ;;  %v5500_v26 = vpop.xlane.xlu1 %5499 }
0x18e3   :  { %v5519_v5 = vsub.f32 %v14987_v35, %v5503_v34  ;;  %v5518_v55 = vsub.f32 %v14983_v14, %v5500_v26 }
0x18e5   :  { %v5530_v10 = vmul.f32 1.442695, %v5519_v5  ;;  %v5528_v41 = vmul.f32 1.442695, %v5518_v55 }
0x18e6   :  { %v5497_v16 = vpop.xlane.xlu0 %5496  ;;  %v5494_v52 = vpop.xlane.xlu1 %5493 }
0x18e7   :  { %v5517_v39 = vsub.f32 %v14989_v57, %v5497_v16  ;;  %v5516_v58 = vsub.f32 %v14985_v42, %v5494_v52  ;;  %11861 = vpow2.f32 %v5530_v10 }
0x18e8   :  { %11863 = vpow2.f32 %v5528_v41 }
0x18e9   :  { %v5526_v8 = vmul.f32 1.442695, %v5517_v39  ;;  %v5524_v23 = vmul.f32 1.442695, %v5516_v58 }
0x18ea   :  { %v5515_v21 = vpop.xlane.xlu0 %5514  ;;  %v5512_v0 = vpop.xlane.xlu1 %5511 }
0x18eb   :  { %11865 = vpow2.f32 %v5526_v8  ;;  %v5523_v17 = vsub.f32 %v14995_v60, %v5515_v21  ;;  %v5522_v35 = vsub.f32 %v14991_v3, %v5512_v0 }
0x18ec   :  { %11867 = vpow2.f32 %v5524_v23 }
0x18ed   :  { %v5538_v14 = vmul.f32 1.442695, %v5523_v17  ;;  %v5536_v20 = vmul.f32 1.442695, %v5522_v35 }
0x18ee   :  { %v5509_v4 = vpop.xlane.xlu0 %5508  ;;  %v5506_v62 = vpop.xlane.xlu1 %5505 }
0x18ef   :  { %v5521_v57 = vsub.f32 %v15001_v2, %v5509_v4  ;;  %v5520_v42 = vsub.f32 %v14993_v61, %v5506_v62  ;;  %11869 = vpow2.f32 %v5538_v14 }
0x18f0   :  { %11871 = vpow2.f32 %v5536_v20 }
0x18f1   :  { %v5534_v53 = vmul.f32 1.442695, %v5521_v57  ;;  %v5532_v63 = vmul.f32 1.442695, %v5520_v42 }
0x18f2   :  { %v5789_v54 = vpop.xlane.xlu0 %5788  ;;  %v5786_v44 = vpop.xlane.xlu1 %5785 }
0x18f3   :  { %11873 = vpow2.f32 %v5534_v53  ;;  %v5805_v60 = vsub.f32 %v15019_v45, %v5789_v54  ;;  %v5804_v3 = vsub.f32 %v15007_v43, %v5786_v44 }
0x18f4   :  { %11875 = vpow2.f32 %v5532_v63  ;;  %v15106_v26 = vpop.eup %11861 }
0x18f5   :  { %v5816_v34 = vmul.f32 1.442695, %v5805_v60  ;;  %v5814_v5 = vmul.f32 1.442695, %v5804_v3  ;;  %v15108_v10 = vpop.eup %11863 }
0x18f6   :  { %v5783_v55 = vpop.xlane.xlu0 %5782  ;;  %v5780_v2 = vpop.xlane.xlu1 %5779  ;;  %v5541_v58 = vpack.c.bf16 %v15106_v26, %v15108_v10 }
0x18f7   :  { %v5803_v61 = vsub.f32 %v15025_v11, %v5783_v55  ;;  %v5802_v41 = vsub.f32 %v15013_v22, %v5780_v2  ;;  %11877 = vpow2.f32 %v5816_v34 }
0x18f8   :  { %v15112_v16 = vpop.eup %11865  ;;  %11879 = vpow2.f32 %v5814_v5 }
0x18f9   :  { %v15114_v52 = vpop.eup %11867  ;;  %v5812_v45 = vmul.f32 1.442695, %v5803_v61  ;;  %v5810_v43 = vmul.f32 1.442695, %v5802_v41 }
0x18fa   :  { %v5540_v39 = vpack.c.bf16 %v15112_v16, %v15114_v52  ;;  %v5833_v21 = vpop.permute.xlu0 %5832  ;;  %v5831_v35 = vpop.permute.xlu1 %5830 }
0x18fb   :  { %11881 = vpow2.f32 %v5812_v45 }
0x18fc   :  { %11883 = vpow2.f32 %v5810_v43  ;;  %10743 = vmatprep.mubr.msk.bf16.mxu1 %vm1223_vm5, %v5540_v39  ;;  %v15122_v22 = vpop.eup %11869 }
0x18fd   :  { %10744 = vmatmul.mubr.msk.bf16.vlgmr.msra.gmra.mxu1 %vm1223_vm5, %v5541_v58  ;;  %17107 = vst [vmem:[#allocation54_spill] sm:$0xff] %v15122_v22  ;;  %v15125_v11 = vpop.eup %11871 }
0x18fe   :  { %10768 = vmatpush3.bf16.msra.mxu1 %v15058_v40  ;;  %v5543_v17 = vpack.c.bf16 %v15122_v22, %v15125_v11  ;;  %v5974_v4 = vpop.permute.xlu1 %5973 }
0x18ff   :  { %10769 = vmatprep.subr.bf16.mxu1 %v15094_v50  ;;  %v5997_v42 = vsel %vm1133_vm4, %v5974_v4, 0 }
0x1900   :  { %v15128_v8 = vpop.eup %11873 }
0x1901   :  { %v15130_v23 = vpop.eup %11875 }
0x1902   :  { %10770 = vmatpush3.bf16.msra.mxu1 %v15094_v50  ;;  %v5542_v0 = vpack.c.bf16 %v15128_v8, %v15130_v23 }
0x1903   :  { %10771 = vmatprep.subr.bf16.mxu1 %v5833_v21 }
0x1904   :  { %10747 = vmatprep.mubr.msk.bf16.mxu1 %vm1223_vm5, %v5542_v0  ;;  %v15139_v40 = vpop.eup %11877 }
0x1905   :  { %10748 = vmatmul.mubr.msk.bf16.gmra.mxu1 %vm1223_vm5, %v5543_v17  ;;  %v15141_v14 = vpop.eup %11879 }
0x1906   :  { %10772 = vmatpush3.bf16.msra.mxu1 %v5833_v21  ;;  %v5827_v57 = vpack.c.bf16 %v15139_v40, %v15141_v14 }
0x1907   :  { %10773 = vmatprep.subr.bf16.mxu1 %v5831_v35 }
0x1908   :  { %v15143_v20 = vpop.eup %11881 }
0x1909   :  { %v15145_v50 = vpop.eup %11883 }
0x190a   :  { %10774 = vmatpush3.bf16.msra.mxu1 %v5831_v35  ;;  %v5826_v62 = vpack.c.bf16 %v15143_v20, %v15145_v50 }
0x190b   :  { %11123 = vmatprep.subr.msk.bf16.mxu1 %vm1133_vm4, %v5974_v4 }
0x190c   :  { %10775 = vmatprep.mubr.msk.bf16.mxu1 %vm1223_vm5, %v5826_v62 }
0x190d   :  { %10776 = vmatmul.mubr.msk.bf16.vlgmr.msra.gmra.mxu1 %vm1223_vm5, %v5827_v57 }
0x190e   :  { %10784 = vmatpush3.bf16.xpose.msra.mxu1 %v5997_v42 }
0x192b   :  { %v5798_v53 = vpop.xlane.xlu0 %5797 }
0x192c   :  { %v5808_v63 = vsub.f32 %v15037_v36, %v5798_v53 }
0x192e   :  { %v5822_v55 = vmul.f32 1.442695, %v5808_v63 }
0x192f   :  { %v5795_v54 = vpop.xlane.xlu0 %5794  ;;  %v5792_v44 = vpop.xlane.xlu1 %5791 }
0x1930   :  { %v5807_v60 = vsub.f32 %v15045_v30, %v5795_v54  ;;  %v5806_v3 = vsub.f32 %v15039_v49, %v5792_v44 }
0x1932   :  { %v5820_v34 = vmul.f32 1.442695, %v5807_v60  ;;  %v5818_v5 = vmul.f32 1.442695, %v5806_v3 }
0x1933   :  { %v5972_v2 = vpop.permute.xlu0 %5971  ;;  %v5801_v61 = vpop.xlane.xlu1 %5800 }
0x1934   :  { %11885 = vpow2.f32 %v5820_v34  ;;  %v5809_v41 = vsub.f32 %v15041_v59, %v5801_v61  ;;  %11124 = vmatprep.subr.msk.bf16.mxu1 %vm1133_vm4, %v5972_v2  ;;  %v5994_v45 = vsel %vm1133_vm4, %v5972_v2, 0 }
0x1935   :  { %11887 = vpow2.f32 %v5818_v5  ;;  %10786 = vmatpush3.bf16.xpose.msra.mxu1 %v5994_v45 }
0x1936   :  { %v5824_v36 = vmul.f32 1.442695, %v5809_v41  ;;  %11889 = vpow2.f32 %v5822_v55 }
0x1937   :  { %v5968_v43 = vpop.permute.xlu0 %5967  ;;  %v5970_v30 = vpop.permute.xlu1 %5969 }
0x1938   :  { %11891 = vpow2.f32 %v5824_v36  ;;  %11125 = vmatprep.subr.msk.bf16.mxu1 %vm1133_vm4, %v5970_v30  ;;  %v5991_v58 = vsel %vm1133_vm4, %v5970_v30, 0  ;;  %v5988_v57 = vsel %vm1133_vm4, %v5968_v43, 0 }
0x193b   :  { %v5962_v49 = vpop.permute.xlu0 %5961  ;;  %v5960_v39 = vpop.permute.xlu1 %5959 }
0x193d   :  { %10788 = vmatpush3.bf16.xpose.msra.mxu1 %v5991_v58 }
0x193e   :  { %11126 = vmatprep.subr.msk.bf16.mxu1 %vm1133_vm4, %v5968_v43 }
0x193f   :  { %v5966_v59 = vpop.permute.xlu0 %5965  ;;  %v5964_v21 = vpop.permute.xlu1 %5963 }
0x1941   :  { %v15164_v0 = vpop.eup %11885 }
0x1942   :  { %v15166_v17 = vpop.eup %11887 }
0x1943   :  { %v6123_v35 = vpop.permute.xlu0 %6122  ;;  %v5828_v4 = vpack.c.bf16 %v15164_v0, %v15166_v17  ;;  %v15170_v62 = vpop.eup %11889 }
0x1944   :  { %10799 = vmatprep.subr.bf16.mxu0 %v6123_v35  ;;  %v6121_v53 = vpop.permute.xlu1 %6120 }
0x1945   :  { %v15173_v42 = vpop.eup %11891  ;;  %10779 = vmatprep.mubr.msk.bf16.mxu1 %vm1223_vm5, %v5828_v4  ;;  %10790 = vmatpush3.bf16.xpose.msra.mxu1 %v5988_v57 }
0x1946   :  { %10800 = vmatpush3.bf16.msra.mxu0 %v6123_v35  ;;  %v5829_v63 = vpack.c.bf16 %v15173_v42, %v15170_v62 }
0x1947   :  { %10801 = vmatprep.subr.bf16.mxu0 %v6121_v53 }
0x1948   :  { %10780 = vmatmul.mubr.msk.bf16.gmra.mxu1 %vm1223_vm5, %v5829_v63 }
0x1949   :  { %10791 = vmatprep.mubr.msk.bf16.mxu1 %vm1133_vm4, %v5960_v39 }
0x194a   :  { %10802 = vmatpush3.bf16.msra.mxu0 %v6121_v53 }
0x1950   :  { %10792 = vmatmul.mubr.msk.bf16.vlgmr.msra.gmra.mxu1 %vm1133_vm4, %v5962_v49  ;;  %v12214_v49 = vld [vmem:[%s16855_s14 + $0xd] ss:$0 sm:$0xff] }
0x1951   :  { %10795 = vmatprep.mubr.msk.bf16.mxu1 %vm1133_vm4, %v5964_v21 }
0x1958   :  { %10796 = vmatmul.mubr.msk.bf16.gmra.mxu1 %vm1133_vm4, %v5966_v59 }
0x1978   :  { %v10713_v54 = vpop.f32.mrf.mxu1 }
0x1979   :  { %v5365_v3 = vadd.f32 %v10713_v54, %v14773_v27 }
0x197a   :  { %v5356_v44 = vpop.f32.mrf.mxu1 }
0x197b   :  { %v5357_v55 = vadd.f32 %v14773_v27, %v5356_v44 }
0x197c   :  { %v10714_v60 = vpop.f32.mrf.mxu1 }
0x197d   :  { %v5368_v34 = vadd.f32 %v10714_v60, %v14773_v27 }
0x197e   :  { %v5359_v5 = vpop.f32.mrf.mxu1 }
0x197f   :  { %v15186_v2 = vpack.c.bf16 %v5368_v34, %v5365_v3  ;;  %v5360_v61 = vadd.f32 %v14773_v27, %v5359_v5 }
0x1980   :  { %v10717_v41 = vpop.f32.mrf.mxu1 }
0x1981   :  { %v15189_v45 = vpack.c.bf16 %v5360_v61, %v5357_v55  ;;  %v5381_v30 = vadd.f32 %v10717_v41, %v14773_v27 }
0x1982   :  { %v5372_v36 = vpop.f32.mrf.mxu1 }
0x1983   :  { %v5373_v59 = vadd.f32 %v12214_v49, %v5372_v36 }
0x1984   :  { %v10718_v43 = vpop.f32.mrf.mxu1 }
0x1985   :  { %v5384_v39 = vadd.f32 %v12214_v49, %v10718_v43 }
0x1986   :  { %v5375_v58 = vpop.f32.mrf.mxu1 }
0x1987   :  { %v15195_v21 = vpack.c.bf16 %v5384_v39, %v5381_v30  ;;  %v5376_v35 = vadd.f32 %v12214_v49, %v5375_v58 }
0x1989   :  { %v15197_v4 = vpack.c.bf16 %v5376_v35, %v5373_v59 }
0x19bd   :  { %v15199_v57 = vpop.f32.mrf.mxu1 }
0x19be   :  { %17108 = vst [vmem:[#allocation52_spill] sm:$0xff] %v15199_v57 }
0x19bf   :  { %v15201_v53 = vpop.f32.mrf.mxu1 }
0x19c0   :  { %17109 = vst [vmem:[#allocation53_spill] sm:$0xff] %v15201_v53 }
0x19c1   :  { %v15203_v63 = vpop.f32.mrf.mxu1 }
0x19c2   :  { %17110 = vst [vmem:[#allocation51_spill] sm:$0xff] %v15203_v63 }
0x19c3   :  { %v15205_v54 = vpop.f32.mrf.mxu1 }
0x19c4   :  { %17111 = vst [vmem:[#allocation28_spill] sm:$0xff] %v15205_v54 }
0x19c5   :  { %v15207_v27 = vpop.f32.mrf.mxu1 }
0x19c6   :  { %17112 = vst [vmem:[#allocation26_spill] sm:$0xff] %v15207_v27 }
0x19c7   :  { %v15209_v44 = vpop.f32.mrf.mxu1 }
0x19c8   :  { %17113 = vst [vmem:[#allocation25_spill] sm:$0xff] %v15209_v44 }
0x19c9   :  { %v15211_v60 = vpop.f32.mrf.mxu1 }
0x19ca   :  { %17114 = vst [vmem:[#allocation27_spill] sm:$0xff] %v15211_v60 }
0x19cb   :  { %v15213_v3 = vpop.f32.mrf.mxu1 }
0x19cc   :  { %17115 = vst [vmem:[#allocation32_spill] sm:$0xff] %v15213_v3 }
0x19cd   :  { %v15215_v34 = vpop.f32.mrf.mxu1 }
0x19ce   :  { %17116 = vst [vmem:[#allocation30_spill] sm:$0xff] %v15215_v34 }
0x19cf   :  { %v15217_v5 = vpop.f32.mrf.mxu1 }
0x19d0   :  { %17117 = vst [vmem:[#allocation31_spill] sm:$0xff] %v15217_v5 }
0x19d1   :  { %v15219_v55 = vpop.f32.mrf.mxu1 }
0x19d2   :  { %17118 = vst [vmem:[#allocation29_spill] sm:$0xff] %v15219_v55 }
0x19d3   :  { %v15221_v61 = vpop.f32.mrf.mxu1 }
0x19d4   :  { %17119 = vst [vmem:[#allocation55_spill] sm:$0xff] %v15221_v61 }
0x1a08   :  { %v15223_v41 = vpop.f32.mrf.mxu1 }
0x1a09   :  { %17120 = vst [vmem:[#allocation56_spill] sm:$0xff] %v15223_v41 }
0x1a0a   :  { %v15225_v36 = vpop.f32.mrf.mxu1 }
0x1a0b   :  { %17121 = vst [vmem:[#allocation22_spill] sm:$0xff] %v15225_v36 }
0x1a0c   :  { %v15227_v43 = vpop.f32.mrf.mxu1 }
0x1a0d   :  { %17122 = vst [vmem:[#allocation57_spill] sm:$0xff] %v15227_v43 }
0x1a0e   :  { %v15229_v30 = vpop.f32.mrf.mxu1 }
0x1a0f   :  { %17123 = vst [vmem:[#allocation58_spill] sm:$0xff] %v15229_v30 }
0x1a10   :  { %v10793_v49 = vpop.f32.mrf.mxu1 }
0x1a11   :  { %v6070_v39 = vsel %vm1223_vm5, %v10793_v49, -inf }
0x1a12   :  { %6071 = vmax.xlane.f32.xlu0 %v6070_v39  ;;  %v6033_v58 = vpop.f32.mrf.mxu1 }
0x1a13   :  { %v6064_v59 = vsel %vm1223_vm5, %v6033_v58, -inf }
0x1a14   :  { %6065 = vmax.xlane.f32.xlu1 %v6064_v59  ;;  %v10794_v35 = vpop.f32.mrf.mxu1 }
0x1a15   :  { %v6073_v48 = vsel %vm1223_vm5, %v10794_v35, -inf }
0x1a16   :  { %v6036_v47 = vpop.f32.mrf.mxu1 }
0x1a17   :  { %v6067_v29 = vsel %vm1223_vm5, %v6036_v47, -inf }
0x1a18   :  { %6074 = vmax.xlane.f32.xlu1 %v6073_v48  ;;  %6068 = vmax.xlane.f32.xlu0 %v6067_v29  ;;  %v15241_v39 = vpop.f32.mrf.mxu1 }
0x1a19   :  { %v6082_v28 = vsel %vm1223_vm5, %v15241_v39, -inf }
0x1a1a   :  { %v6049_v59 = vpop.f32.mrf.mxu1 }
0x1a1b   :  { %v6076_v29 = vsel %vm1223_vm5, %v6049_v59, -inf }
0x1a1c   :  { %v15243_v18 = vpop.f32.mrf.mxu1 }
0x1a1d   :  { %v6085_v51 = vsel %vm1223_vm5, %v15243_v18, -inf }
0x1a1e   :  { %v6052_v24 = vpop.f32.mrf.mxu1 }
0x1a1f   :  { %v6079_v48 = vsel %vm1223_vm5, %v6052_v24, -inf }
0x1a29   :  { %6116 = vrot.lane.b32.xlu1 %v14781_v15, %s12226_s24 }
0x1a2d   :  { %6259 = vrot.lane.b32.xlu1 %v14789_v25, %s12227_s25 }
0x1a2e   :  { %6118 = vrot.lane.b32.xlu0 %v14778_v12, %s12226_s24 }
0x1a4d   :  { %6083 = vmax.xlane.f32.xlu0 %v6082_v28 }
0x1a51   :  { %6077 = vmax.xlane.f32.xlu1 %v6076_v29  ;;  %6080 = vmax.xlane.f32.xlu0 %v6079_v48 }
0x1a55   :  { %6086 = vmax.xlane.f32.xlu1 %v6085_v51 }
0x1a66   :  { %6255 = vrot.lane.b32.xlu1 %v14778_v12, %s12227_s25 }
0x1a67   :  { %6257 = vrot.lane.b32.xlu0 %v14797_v13, %s12227_s25 }
0x1a6a   :  { %6245 = vrot.lane.b32.xlu1 %v14781_v15, %s12228_s26 }
0x1a6b   :  { %6253 = vrot.lane.b32.xlu0 %v14781_v15, %s12227_s25 }
0x1a6e   :  { %6249 = vrot.lane.b32.xlu1 %v14797_v13, %s12228_s26 }
0x1a6f   :  { %6247 = vrot.lane.b32.xlu0 %v14778_v12, %s12228_s26 }
0x1a72   :  { %6406 = vrot.lane.b32.xlu1 %v14797_v13, %s12229_s5 }
0x1a73   :  { %6251 = vrot.lane.b32.xlu0 %v14789_v25, %s12228_s26 }
0x1a77   :  { %6408 = vrot.lane.b32.xlu0 %v14789_v25, %s12229_s5 }
0x1a9b   :  { %v6072_v51 = vpop.xlane.xlu0 %6071 }
0x1a9c   :  { %v6090_v28 = vsub.f32 %v10793_v49, %v6072_v51 }
0x1a9d   :  { %v6066_v29 = vpop.xlane.xlu1 %6065 }
0x1a9e   :  { %v6088_v48 = vsub.f32 %v6033_v58, %v6066_v29  ;;  %v6100_v9 = vmul.f32 1.442695, %v6090_v28 }
0x1aa0   :  { %v6096_v56 = vmul.f32 1.442695, %v6088_v48  ;;  %11893 = vpow2.f32 %v6100_v9 }
0x1aa1   :  { %v6069_v33 = vpop.xlane.xlu0 %6068  ;;  %v6075_v7 = vpop.xlane.xlu1 %6074 }
0x1aa2   :  { %v6089_v32 = vsub.f32 %v6036_v47, %v6069_v33  ;;  %v6091_v1 = vsub.f32 %v10794_v35, %v6075_v7  ;;  %11895 = vpow2.f32 %v6096_v56 }
0x1aa4   :  { %v6098_v6 = vmul.f32 1.442695, %v6089_v32  ;;  %v6102_v46 = vmul.f32 1.442695, %v6091_v1 }
0x1aa5   :  { %v6119_v13 = vpop.permute.xlu0 %6118  ;;  %v6117_v37 = vpop.permute.xlu1 %6116 }
0x1aa6   :  { %11897 = vpow2.f32 %v6098_v6  ;;  %10803 = vmatprep.subr.bf16.mxu0 %v6119_v13 }
0x1aa7   :  { %11899 = vpow2.f32 %v6102_v46  ;;  %10804 = vmatpush3.bf16.msra.mxu0 %v6119_v13 }
0x1aa8   :  { %10805 = vmatprep.subr.bf16.mxu0 %v6117_v37 }
0x1aa9   :  { %v6260_v25 = vpop.permute.xlu1 %6259 }
0x1aab   :  { %10806 = vmatpush3.bf16.msra.mxu0 %v6117_v37  ;;  %v6283_v37 = vsel %vm1133_vm4, %v6260_v25, 0 }
0x1aac   :  { %11127 = vmatprep.subr.msk.bf16.mxu0 %vm1133_vm4, %v6260_v25 }
0x1aad   :  { %v15270_v49 = vpop.eup %11893 }
0x1aaf   :  { %v15272_v58 = vpop.eup %11895 }
0x1ab3   :  { %v15274_v47 = vpop.eup %11897 }
0x1ab4   :  { %v15276_v32 = vpop.eup %11899  ;;  %v6112_v1 = vpack.c.bf16 %v15274_v47, %v15272_v58 }
0x1ab5   :  { %v6113_v6 = vpack.c.bf16 %v15276_v32, %v15270_v49 }
0x1ab6   :  { %10807 = vmatprep.mubr.msk.bf16.mxu0 %vm1223_vm5, %v6112_v1 }
0x1ab7   :  { %10808 = vmatmul.mubr.msk.bf16.vlgmr.msra.gmra.mxu0 %vm1223_vm5, %v6113_v6 }
0x1ab8   :  { %10816 = vmatpush3.bf16.xpose.msra.mxu0 %v6283_v37 }
0x1ad6   :  { %v6084_v46 = vpop.xlane.xlu0 %6083 }
0x1ad7   :  { %v6094_v33 = vsub.f32 %v15241_v39, %v6084_v46 }
0x1ad9   :  { %v6108_v29 = vmul.f32 1.442695, %v6094_v33 }
0x1ada   :  { %v6081_v7 = vpop.xlane.xlu0 %6080  ;;  %v6078_v56 = vpop.xlane.xlu1 %6077 }
0x1adb   :  { %v6093_v9 = vsub.f32 %v6052_v24, %v6081_v7  ;;  %v6092_v35 = vsub.f32 %v6049_v59, %v6078_v56 }
0x1add   :  { %v6106_v51 = vmul.f32 1.442695, %v6093_v9  ;;  %v6104_v28 = vmul.f32 1.442695, %v6092_v35 }
0x1ade   :  { %v6258_v48 = vpop.permute.xlu0 %6257  ;;  %v6087_v13 = vpop.xlane.xlu1 %6086 }
0x1adf   :  { %11901 = vpow2.f32 %v6106_v51  ;;  %v6095_v1 = vsub.f32 %v15243_v18, %v6087_v13  ;;  %11128 = vmatprep.subr.msk.bf16.mxu0 %vm1133_vm4, %v6258_v48  ;;  %v6280_v25 = vsel %vm1133_vm4, %v6258_v48, 0 }
0x1ae0   :  { %11903 = vpow2.f32 %v6104_v28  ;;  %10818 = vmatpush3.bf16.xpose.msra.mxu0 %v6280_v25 }
0x1ae1   :  { %v6110_v6 = vmul.f32 1.442695, %v6095_v1  ;;  %11905 = vpow2.f32 %v6108_v29 }
0x1ae2   :  { %v6254_v39 = vpop.permute.xlu0 %6253  ;;  %v6256_v37 = vpop.permute.xlu1 %6255 }
0x1ae3   :  { %11907 = vpow2.f32 %v6110_v6  ;;  %11129 = vmatprep.subr.msk.bf16.mxu0 %vm1133_vm4, %v6256_v37  ;;  %v6277_v46 = vsel %vm1133_vm4, %v6256_v37, 0  ;;  %v6274_v28 = vsel %vm1133_vm4, %v6254_v39, 0 }
0x1ae6   :  { %v6248_v24 = vpop.permute.xlu0 %6247  ;;  %v6246_v59 = vpop.permute.xlu1 %6245 }
0x1ae8   :  { %10820 = vmatpush3.bf16.xpose.msra.mxu0 %v6277_v46 }
0x1ae9   :  { %11130 = vmatprep.subr.msk.bf16.mxu0 %vm1133_vm4, %v6254_v39 }
0x1aea   :  { %v6252_v18 = vpop.permute.xlu0 %6251  ;;  %v6250_v33 = vpop.permute.xlu1 %6249 }
0x1aec   :  { %v15292_v7 = vpop.eup %11901 }
0x1aed   :  { %v15294_v56 = vpop.eup %11903 }
0x1aee   :  { %v6409_v9 = vpop.permute.xlu0 %6408  ;;  %v6114_v35 = vpack.c.bf16 %v15292_v7, %v15294_v56  ;;  %v15298_v51 = vpop.eup %11905 }
0x1aef   :  { %10831 = vmatprep.subr.bf16.mxu1 %v6409_v9  ;;  %v6407_v48 = vpop.permute.xlu1 %6406 }
0x1af0   :  { %v15301_v29 = vpop.eup %11907  ;;  %10811 = vmatprep.mubr.msk.bf16.mxu0 %vm1223_vm5, %v6114_v35  ;;  %10822 = vmatpush3.bf16.xpose.msra.mxu0 %v6274_v28 }
0x1af1   :  { %10832 = vmatpush3.bf16.msra.mxu1 %v6409_v9  ;;  %v6115_v13 = vpack.c.bf16 %v15301_v29, %v15298_v51 }
0x1af2   :  { %10833 = vmatprep.subr.bf16.mxu1 %v6407_v48 }
0x1af3   :  { %10812 = vmatmul.mubr.msk.bf16.gmra.mxu0 %vm1223_vm5, %v6115_v13 }
0x1af4   :  { %10823 = vmatprep.mubr.msk.bf16.mxu0 %vm1133_vm4, %v6246_v59 }
0x1af5   :  { %10834 = vmatpush3.bf16.msra.mxu1 %v6407_v48 }
0x1afb   :  { %10824 = vmatmul.mubr.msk.bf16.vlgmr.msra.gmra.mxu0 %vm1133_vm4, %v6248_v24 }
0x1afc   :  { %10827 = vmatprep.mubr.msk.bf16.mxu0 %vm1133_vm4, %v6250_v33 }
0x1b03   :  { %10828 = vmatmul.mubr.msk.bf16.gmra.mxu0 %vm1133_vm4, %v6252_v18 }
0x1b77   :  { %v15311_v1 = vpop.f32.mrf.mxu0 }
0x1b78   :  { %17124 = vst [vmem:[#allocation68_spill] sm:$0xff] %v15311_v1 }
0x1b79   :  { %v15313_v25 = vpop.f32.mrf.mxu0 }
0x1b7a   :  { %17125 = vst [vmem:[#allocation70_spill] sm:$0xff] %v15313_v25 }
0x1b7b   :  { %v15315_v6 = vpop.f32.mrf.mxu0 }
0x1b7c   :  { %17126 = vst [vmem:[#allocation69_spill] sm:$0xff] %v15315_v6 }
0x1b7d   :  { %v15317_v39 = vpop.f32.mrf.mxu0 }
0x1b7e   :  { %17127 = vst [vmem:[#allocation71_spill] sm:$0xff] %v15317_v39 }
0x1bb3   :  { %v15319_v37 = vpop.f32.mrf.mxu0 }
0x1bb4   :  { %17128 = vst [vmem:[#allocation5_spill] sm:$0xff] %v15319_v37 }
0x1bb5   :  { %v15321_v46 = vpop.f32.mrf.mxu0 }
0x1bb6   :  { %17129 = vst [vmem:[#allocation6_spill] sm:$0xff] %v15321_v46 }
0x1bb7   :  { %v15323_v59 = vpop.f32.mrf.mxu0 }
0x1bb8   :  { %17130 = vst [vmem:[#allocation7_spill] sm:$0xff] %v15323_v59 }
0x1bb9   :  { %v15325_v9 = vpop.f32.mrf.mxu0 }
0x1bba   :  { %17131 = vst [vmem:[#allocation9_spill] sm:$0xff] %v15325_v9 }
0x1bbb   :  { %v10825_v24 = vpop.f32.mrf.mxu0 }
0x1bbc   :  { %v6356_v33 = vsel %vm1223_vm5, %v10825_v24, -inf }
0x1bbd   :  { %6357 = vmax.xlane.f32.xlu0 %v6356_v33  ;;  %v6319_v18 = vpop.f32.mrf.mxu0 }
0x1bbe   :  { %v6350_v35 = vsel %vm1223_vm5, %v6319_v18, -inf }
0x1bbf   :  { %6351 = vmax.xlane.f32.xlu1 %v6350_v35  ;;  %v10826_v28 = vpop.f32.mrf.mxu0 }
0x1bc0   :  { %v6359_v13 = vsel %vm1223_vm5, %v10826_v28, -inf }
0x1bc1   :  { %v6322_v48 = vpop.f32.mrf.mxu0 }
0x1bc2   :  { %v6353_v19 = vsel %vm1223_vm5, %v6322_v48, -inf }
0x1bc3   :  { %6360 = vmax.xlane.f32.xlu1 %v6359_v13  ;;  %6354 = vmax.xlane.f32.xlu0 %v6353_v19  ;;  %v10829_v33 = vpop.f32.mrf.mxu0 }
0x1bc4   :  { %v6368_v31 = vsel %vm1223_vm5, %v10829_v33, -inf }
0x1bc5   :  { %v6335_v38 = vpop.f32.mrf.mxu0 }
0x1bc6   :  { %v6362_v13 = vsel %vm1223_vm5, %v6335_v38, -inf }
0x1bc7   :  { %v15337_v35 = vpop.f32.mrf.mxu0 }
0x1bc9   :  { %v6338_v60 = vpop.f32.mrf.mxu0 }
0x1bca   :  { %v6365_v19 = vsel %vm1223_vm5, %v6338_v60, -inf }
0x1bd4   :  { %6402 = vrot.lane.b32.xlu1 %v14781_v15, %s12229_s5  ;;  %v6371_v15 = vsel %vm1223_vm5, %v15337_v35, -inf }
0x1bd8   :  { %6665 = vrot.lane.b32.xlu1 %v15195_v21, %s12219_s16 }
0x1bd9   :  { %6404 = vrot.lane.b32.xlu0 %v14778_v12, %s12229_s5 }
0x1bf8   :  { %6369 = vmax.xlane.f32.xlu0 %v6368_v31 }
0x1bfc   :  { %6363 = vmax.xlane.f32.xlu1 %v6362_v13  ;;  %6366 = vmax.xlane.f32.xlu0 %v6365_v19 }
0x1c00   :  { %6372 = vmax.xlane.f32.xlu1 %v6371_v15 }
0x1c11   :  { %6661 = vrot.lane.b32.xlu1 %v15186_v2, %s12219_s16 }
0x1c12   :  { %6663 = vrot.lane.b32.xlu0 %v15197_v4, %s12219_s16 }
0x1c15   :  { %6812 = vrot.lane.b32.xlu1 %v15197_v4, %s12224_s22 }
0x1c16   :  { %6659 = vrot.lane.b32.xlu0 %v15189_v45, %s12219_s16 }
0x1c1a   :  { %6814 = vrot.lane.b32.xlu0 %v15195_v21, %s12224_s22 }
0x1c46   :  { %v6358_v31 = vpop.xlane.xlu0 %6357 }
0x1c47   :  { %v6376_v12 = vsub.f32 %v10825_v24, %v6358_v31 }
0x1c48   :  { %v6352_v13 = vpop.xlane.xlu1 %6351 }
0x1c49   :  { %v6374_v19 = vsub.f32 %v6319_v18, %v6352_v13  ;;  %v6386_v15 = vmul.f32 1.442695, %v6376_v12 }
0x1c4b   :  { %v6382_v27 = vmul.f32 1.442695, %v6374_v19  ;;  %11909 = vpow2.f32 %v6386_v15 }
0x1c4c   :  { %v6355_v3 = vpop.xlane.xlu0 %6354  ;;  %v6361_v44 = vpop.xlane.xlu1 %6360 }
0x1c4d   :  { %v6375_v63 = vsub.f32 %v6322_v48, %v6355_v3  ;;  %v6377_v57 = vsub.f32 %v10826_v28, %v6361_v44  ;;  %11911 = vpow2.f32 %v6382_v27 }
0x1c4f   :  { %v6384_v54 = vmul.f32 1.442695, %v6375_v63  ;;  %v6388_v53 = vmul.f32 1.442695, %v6377_v57 }
0x1c50   :  { %v6405_v59 = vpop.permute.xlu0 %6404  ;;  %v6403_v37 = vpop.permute.xlu1 %6402 }
0x1c51   :  { %11913 = vpow2.f32 %v6384_v54  ;;  %10835 = vmatprep.subr.bf16.mxu1 %v6405_v59 }
0x1c52   :  { %11915 = vpow2.f32 %v6388_v53  ;;  %10836 = vmatpush3.bf16.msra.mxu1 %v6405_v59 }
0x1c53   :  { %10837 = vmatprep.subr.bf16.mxu1 %v6403_v37 }
0x1c54   :  { %v6666_v24 = vpop.permute.xlu1 %6665 }
0x1c55   :  { %v6689_v54 = vsel %vm1133_vm4, %v6666_v24, 0 }
0x1c56   :  { %10838 = vmatpush3.bf16.msra.mxu1 %v6403_v37 }
0x1c57   :  { %11131 = vmatprep.subr.msk.bf16.mxu1 %vm1133_vm4, %v6666_v24 }
0x1c58   :  { %v15355_v18 = vpop.eup %11909 }
0x1c5a   :  { %v15357_v31 = vpop.eup %11911 }
0x1c5e   :  { %v15359_v44 = vpop.eup %11913 }
0x1c5f   :  { %v15361_v63 = vpop.eup %11915  ;;  %v6398_v57 = vpack.c.bf16 %v15359_v44, %v15357_v31 }
0x1c60   :  { %v6399_v53 = vpack.c.bf16 %v15361_v63, %v15355_v18 }
0x1c61   :  { %10839 = vmatprep.mubr.msk.bf16.mxu1 %vm1223_vm5, %v6398_v57 }
0x1c62   :  { %10840 = vmatmul.mubr.msk.bf16.vlgmr.msra.gmra.mxu1 %vm1223_vm5, %v6399_v53 }
0x1c63   :  { %10848 = vmatpush3.bf16.xpose.msra.mxu1 %v6689_v54 }
0x1c81   :  { %v6370_v27 = vpop.xlane.xlu0 %6369 }
0x1c82   :  { %v6380_v3 = vsub.f32 %v10829_v33, %v6370_v27 }
0x1c84   :  { %v6394_v19 = vmul.f32 1.442695, %v6380_v3 }
0x1c85   :  { %v6367_v37 = vpop.xlane.xlu0 %6366  ;;  %v6364_v59 = vpop.xlane.xlu1 %6363 }
0x1c86   :  { %v6379_v28 = vsub.f32 %v6338_v60, %v6367_v37  ;;  %v6378_v48 = vsub.f32 %v6335_v38, %v6364_v59 }
0x1c88   :  { %v6392_v12 = vmul.f32 1.442695, %v6379_v28  ;;  %v6390_v13 = vmul.f32 1.442695, %v6378_v48 }
0x1c89   :  { %v6664_v15 = vpop.permute.xlu0 %6663  ;;  %v6373_v9 = vpop.xlane.xlu1 %6372 }
0x1c8a   :  { %11917 = vpow2.f32 %v6392_v12  ;;  %v6381_v46 = vsub.f32 %v15337_v35, %v6373_v9  ;;  %11132 = vmatprep.subr.msk.bf16.mxu1 %vm1133_vm4, %v6664_v15  ;;  %v6686_v57 = vsel %vm1133_vm4, %v6664_v15, 0 }
0x1c8b   :  { %11919 = vpow2.f32 %v6390_v13  ;;  %10850 = vmatpush3.bf16.xpose.msra.mxu1 %v6686_v57 }
0x1c8c   :  { %v6396_v24 = vmul.f32 1.442695, %v6381_v46  ;;  %11921 = vpow2.f32 %v6394_v19 }
0x1c8d   :  { %v6660_v33 = vpop.permute.xlu0 %6659  ;;  %v6662_v53 = vpop.permute.xlu1 %6661 }
0x1c8e   :  { %11923 = vpow2.f32 %v6396_v24  ;;  %11133 = vmatprep.subr.msk.bf16.mxu1 %vm1133_vm4, %v6662_v53  ;;  %v6683_v60 = vsel %vm1133_vm4, %v6662_v53, 0  ;;  %v6680_v3 = vsel %vm1133_vm4, %v6660_v33, 0 }
0x1c91   :  { %v6815_v38 = vpop.permute.xlu0 %6814  ;;  %v6813_v54 = vpop.permute.xlu1 %6812 }
0x1c92   :  { %10863 = vmatprep.subr.bf16.mxu0 %v6815_v38 }
0x1c93   :  { %10852 = vmatpush3.bf16.xpose.msra.mxu1 %v6683_v60  ;;  %10864 = vmatpush3.bf16.msra.mxu0 %v6815_v38 }
0x1c94   :  { %11134 = vmatprep.subr.msk.bf16.mxu1 %vm1133_vm4, %v6660_v33  ;;  %10865 = vmatprep.subr.bf16.mxu0 %v6813_v54 }
0x1c97   :  { %v15376_v9 = vpop.eup %11917  ;;  %10866 = vmatpush3.bf16.msra.mxu0 %v6813_v54 }
0x1c98   :  { %v15378_v46 = vpop.eup %11919 }
0x1c99   :  { %v6400_v35 = vpack.c.bf16 %v15376_v9, %v15378_v46  ;;  %v15382_v27 = vpop.eup %11921 }
0x1c9b   :  { %v15385_v37 = vpop.eup %11923  ;;  %10843 = vmatprep.mubr.msk.bf16.mxu1 %vm1223_vm5, %v6400_v35  ;;  %10854 = vmatpush3.bf16.xpose.msra.mxu1 %v6680_v3 }
0x1c9c   :  { %v6401_v59 = vpack.c.bf16 %v15385_v37, %v15382_v27 }
0x1c9e   :  { %10844 = vmatmul.mubr.msk.bf16.gmra.mxu1 %vm1223_vm5, %v6401_v59 }
0x1c9f   :  { %10855 = vmatprep.mubr.msk.bf16.mxu1 %vm1133_vm4, %v15189_v45 }
0x1ca6   :  { %10856 = vmatmul.mubr.msk.bf16.vlgmr.msra.gmra.mxu1 %vm1133_vm4, %v15186_v2 }
0x1ca7   :  { %10859 = vmatprep.mubr.msk.bf16.mxu1 %vm1133_vm4, %v15197_v4 }
0x1cae   :  { %10860 = vmatmul.mubr.msk.bf16.gmra.mxu1 %vm1133_vm4, %v15195_v21 }
0x1d22   :  { %v15399_v28 = vpop.f32.mrf.mxu1 }
0x1d23   :  { %17132 = vst [vmem:[#allocation8_spill] sm:$0xff] %v15399_v28 }
0x1d24   :  { %v15401_v48 = vpop.f32.mrf.mxu1 }
0x1d25   :  { %17133 = vst [vmem:[#allocation10_spill] sm:$0xff] %v15401_v48 }
0x1d26   :  { %v15403_v12 = vpop.f32.mrf.mxu1 }
0x1d27   :  { %17134 = vst [vmem:[#allocation11_spill] sm:$0xff] %v15403_v12 }
0x1d28   :  { %v15405_v13 = vpop.f32.mrf.mxu1 }
0x1d29   :  { %17135 = vst [vmem:[#allocation12_spill] sm:$0xff] %v15405_v13 }
0x1d5e   :  { %v15407_v19 = vpop.f32.mrf.mxu1 }
0x1d5f   :  { %17136 = vst [vmem:[#allocation73_spill] sm:$0xff] %v15407_v19 }
0x1d60   :  { %v15409_v15 = vpop.f32.mrf.mxu1 }
0x1d61   :  { %17137 = vst [vmem:[#allocation75_spill] sm:$0xff] %v15409_v15 }
0x1d62   :  { %v15411_v57 = vpop.f32.mrf.mxu1 }
0x1d63   :  { %17138 = vst [vmem:[#allocation74_spill] sm:$0xff] %v15411_v57 }
0x1d64   :  { %v15413_v24 = vpop.f32.mrf.mxu1 }
0x1d65   :  { %17139 = vst [vmem:[#allocation72_spill] sm:$0xff] %v15413_v24 }
0x1d66   :  { %v10857_v33 = vpop.f32.mrf.mxu1 }
0x1d67   :  { %v6762_v53 = vsel %vm1223_vm5, %v10857_v33, -inf }
0x1d68   :  { %6763 = vmax.xlane.f32.xlu0 %v6762_v53  ;;  %v6725_v38 = vpop.f32.mrf.mxu1 }
0x1d69   :  { %v6756_v60 = vsel %vm1223_vm5, %v6725_v38, -inf }
0x1d6a   :  { %6757 = vmax.xlane.f32.xlu1 %v6756_v60  ;;  %v10858_v54 = vpop.f32.mrf.mxu1 }
0x1d6b   :  { %v6765_v3 = vsel %vm1223_vm5, %v10858_v54, -inf }
0x1d6c   :  { %v6728_v35 = vpop.f32.mrf.mxu1 }
0x1d6d   :  { %v6759_v59 = vsel %vm1223_vm5, %v6728_v35, -inf }
0x1d6e   :  { %6766 = vmax.xlane.f32.xlu1 %v6765_v3  ;;  %6760 = vmax.xlane.f32.xlu0 %v6759_v59  ;;  %v15425_v53 = vpop.f32.mrf.mxu1 }
0x1d6f   :  { %v6774_v19 = vsel %vm1223_vm5, %v15425_v53, -inf }
0x1d70   :  { %v6741_v60 = vpop.f32.mrf.mxu1 }
0x1d71   :  { %v6768_v3 = vsel %vm1223_vm5, %v6741_v60, -inf }
0x1d72   :  { %v15427_v57 = vpop.f32.mrf.mxu1 }
0x1d73   :  { %v6777_v15 = vsel %vm1223_vm5, %v15427_v57, -inf }
0x1d74   :  { %v6744_v24 = vpop.f32.mrf.mxu1 }
0x1d75   :  { %v6771_v59 = vsel %vm1223_vm5, %v6744_v24, -inf }
0x1d7f   :  { %6808 = vrot.lane.b32.xlu1 %v15189_v45, %s12224_s22 }
0x1d83   :  { %6951 = vrot.lane.b32.xlu1 %v15195_v21, %s12220_s2 }
0x1d84   :  { %6810 = vrot.lane.b32.xlu0 %v15186_v2, %s12224_s22 }
0x1da3   :  { %6775 = vmax.xlane.f32.xlu0 %v6774_v19 }
0x1da7   :  { %6769 = vmax.xlane.f32.xlu1 %v6768_v3  ;;  %6772 = vmax.xlane.f32.xlu0 %v6771_v59 }
0x1dab   :  { %6778 = vmax.xlane.f32.xlu1 %v6777_v15 }
0x1dbc   :  { %6947 = vrot.lane.b32.xlu1 %v15186_v2, %s12220_s2 }
0x1dbd   :  { %6949 = vrot.lane.b32.xlu0 %v15197_v4, %s12220_s2 }
0x1dc0   :  { %6937 = vrot.lane.b32.xlu1 %v15189_v45, %s12222_s20 }
0x1dc1   :  { %6945 = vrot.lane.b32.xlu0 %v15189_v45, %s12220_s2 }
0x1dc4   :  { %6941 = vrot.lane.b32.xlu1 %v15197_v4, %s12222_s20 }
0x1dc5   :  { %6939 = vrot.lane.b32.xlu0 %v15186_v2, %s12222_s20 }
0x1dc8   :  { %7098 = vrot.lane.b32.xlu1 %v15197_v4, %s12225_s23 }
0x1dc9   :  { %6943 = vrot.lane.b32.xlu0 %v15195_v21, %s12222_s20 }
0x1dcd   :  { %7100 = vrot.lane.b32.xlu0 %v15195_v21, %s12225_s23 }
0x1df1   :  { %v6764_v19 = vpop.xlane.xlu0 %6763 }
0x1df2   :  { %v6782_v15 = vsub.f32 %v10857_v33, %v6764_v19 }
0x1df3   :  { %v6758_v3 = vpop.xlane.xlu1 %6757 }
0x1df4   :  { %v6780_v59 = vsub.f32 %v6725_v38, %v6758_v3  ;;  %v6792_v43 = vmul.f32 1.442695, %v6782_v15 }
0x1df6   :  { %v6788_v41 = vmul.f32 1.442695, %v6780_v59  ;;  %11925 = vpow2.f32 %v6792_v43 }
0x1df7   :  { %v6761_v30 = vpop.xlane.xlu0 %6760  ;;  %v6767_v36 = vpop.xlane.xlu1 %6766 }
0x1df8   :  { %v6781_v12 = vsub.f32 %v6728_v35, %v6761_v30  ;;  %v6783_v28 = vsub.f32 %v10858_v54, %v6767_v36  ;;  %11927 = vpow2.f32 %v6788_v41 }
0x1dfa   :  { %v6790_v13 = vmul.f32 1.442695, %v6781_v12  ;;  %v6794_v48 = vmul.f32 1.442695, %v6783_v28 }
0x1dfb   :  { %v6811_v6 = vpop.permute.xlu0 %6810  ;;  %v6809_v1 = vpop.permute.xlu1 %6808 }
0x1dfc   :  { %11929 = vpow2.f32 %v6790_v13  ;;  %10867 = vmatprep.subr.bf16.mxu0 %v6811_v6 }
0x1dfd   :  { %11931 = vpow2.f32 %v6794_v48  ;;  %10868 = vmatpush3.bf16.msra.mxu0 %v6811_v6 }
0x1dfe   :  { %10869 = vmatprep.subr.bf16.mxu0 %v6809_v1 }
0x1dff   :  { %v6952_v33 = vpop.permute.xlu1 %6951 }
0x1e01   :  { %10870 = vmatpush3.bf16.msra.mxu0 %v6809_v1  ;;  %v6975_v1 = vsel %vm1133_vm4, %v6952_v33, 0 }
0x1e02   :  { %11135 = vmatprep.subr.msk.bf16.mxu0 %vm1133_vm4, %v6952_v33 }
0x1e03   :  { %v15454_v38 = vpop.eup %11925 }
0x1e04   :  { %17140 = vst [vmem:[#allocation60_spill] sm:$0xff] %v15454_v38 }
0x1e05   :  { %v15456_v19 = vpop.eup %11927 }
0x1e06   :  { %17141 = vst [vmem:[#allocation62_spill] sm:$0xff] %v15456_v19 }
0x1e09   :  { %v15458_v36 = vpop.eup %11929 }
0x1e0a   :  { %17142 = vst [vmem:[#allocation61_spill] sm:$0xff] %v15458_v36  ;;  %v15460_v43 = vpop.eup %11931  ;;  %v6804_v41 = vpack.c.bf16 %v15458_v36, %v15456_v19 }
0x1e0b   :  { %17143 = vst [vmem:[#allocation59_spill] sm:$0xff] %v15460_v43  ;;  %v6805_v30 = vpack.c.bf16 %v15460_v43, %v15454_v38 }
0x1e0c   :  { %10871 = vmatprep.mubr.msk.bf16.mxu0 %vm1223_vm5, %v6804_v41 }
0x1e0d   :  { %10872 = vmatmul.mubr.msk.bf16.vlgmr.msra.gmra.mxu0 %vm1223_vm5, %v6805_v30 }
0x1e0e   :  { %10880 = vmatpush3.bf16.xpose.msra.mxu0 %v6975_v1 }
0x1e2c   :  { %v6776_v6 = vpop.xlane.xlu0 %6775 }
0x1e2d   :  { %v6786_v28 = vsub.f32 %v15425_v53, %v6776_v6 }
0x1e2f   :  { %v6800_v3 = vmul.f32 1.442695, %v6786_v28 }
0x1e30   :  { %v6773_v48 = vpop.xlane.xlu0 %6772  ;;  %v6770_v12 = vpop.xlane.xlu1 %6769 }
0x1e31   :  { %v6785_v13 = vsub.f32 %v6744_v24, %v6773_v48  ;;  %v6784_v54 = vsub.f32 %v6741_v60, %v6770_v12 }
0x1e33   :  { %v6798_v35 = vmul.f32 1.442695, %v6785_v13  ;;  %v6796_v15 = vmul.f32 1.442695, %v6784_v54 }
0x1e34   :  { %v6950_v59 = vpop.permute.xlu0 %6949  ;;  %v6779_v39 = vpop.xlane.xlu1 %6778 }
0x1e35   :  { %11933 = vpow2.f32 %v6798_v35  ;;  %v6787_v41 = vsub.f32 %v15427_v57, %v6779_v39  ;;  %11136 = vmatprep.subr.msk.bf16.mxu0 %vm1133_vm4, %v6950_v59  ;;  %v6972_v33 = vsel %vm1133_vm4, %v6950_v59, 0 }
0x1e36   :  { %11935 = vpow2.f32 %v6796_v15  ;;  %10882 = vmatpush3.bf16.xpose.msra.mxu0 %v6972_v33 }
0x1e37   :  { %v6802_v30 = vmul.f32 1.442695, %v6787_v41  ;;  %11937 = vpow2.f32 %v6800_v3 }
0x1e38   :  { %v6946_v53 = vpop.permute.xlu0 %6945  ;;  %v6948_v1 = vpop.permute.xlu1 %6947 }
0x1e39   :  { %11939 = vpow2.f32 %v6802_v30  ;;  %11137 = vmatprep.subr.msk.bf16.mxu0 %vm1133_vm4, %v6948_v1  ;;  %v6969_v6 = vsel %vm1133_vm4, %v6948_v1, 0  ;;  %v6966_v35 = vsel %vm1133_vm4, %v6946_v53, 0 }
0x1e3c   :  { %v6940_v24 = vpop.permute.xlu0 %6939  ;;  %v6938_v60 = vpop.permute.xlu1 %6937 }
0x1e3e   :  { %10884 = vmatpush3.bf16.xpose.msra.mxu0 %v6969_v6 }
0x1e3f   :  { %11138 = vmatprep.subr.msk.bf16.mxu0 %vm1133_vm4, %v6946_v53 }
0x1e40   :  { %v6944_v39 = vpop.permute.xlu0 %6943  ;;  %v6942_v57 = vpop.permute.xlu1 %6941 }
0x1e42   :  { %v15476_v28 = vpop.eup %11933 }
0x1e43   :  { %17144 = vst [vmem:[#allocation64_spill] sm:$0xff] %v15476_v28  ;;  %v15478_v48 = vpop.eup %11935 }
0x1e44   :  { %17145 = vst [vmem:[#allocation66_spill] sm:$0xff] %v15478_v48  ;;  %v7101_v12 = vpop.permute.xlu0 %7100  ;;  %v6806_v13 = vpack.c.bf16 %v15476_v28, %v15478_v48  ;;  %v15482_v54 = vpop.eup %11937 }
0x1e45   :  { %17146 = vst [vmem:[#allocation63_spill] sm:$0xff] %v15482_v54  ;;  %10895 = vmatprep.subr.bf16.mxu1 %v7101_v12  ;;  %v7099_v3 = vpop.permute.xlu1 %7098 }
0x1e46   :  { %v15485_v15 = vpop.eup %11939  ;;  %10875 = vmatprep.mubr.msk.bf16.mxu0 %vm1223_vm5, %v6806_v13  ;;  %10886 = vmatpush3.bf16.xpose.msra.mxu0 %v6966_v35 }
0x1e47   :  { %17147 = vst [vmem:[#allocation65_spill] sm:$0xff] %v15485_v15  ;;  %10896 = vmatpush3.bf16.msra.mxu1 %v7101_v12  ;;  %v6807_v59 = vpack.c.bf16 %v15485_v15, %v15482_v54 }
0x1e48   :  { %10897 = vmatprep.subr.bf16.mxu1 %v7099_v3 }
0x1e49   :  { %10876 = vmatmul.mubr.msk.bf16.gmra.mxu0 %vm1223_vm5, %v6807_v59 }
0x1e4a   :  { %10887 = vmatprep.mubr.msk.bf16.mxu0 %vm1133_vm4, %v6938_v60 }
0x1e4b   :  { %10898 = vmatpush3.bf16.msra.mxu1 %v7099_v3 }
0x1e51   :  { %10888 = vmatmul.mubr.msk.bf16.vlgmr.msra.gmra.mxu0 %vm1133_vm4, %v6940_v24 }
0x1e52   :  { %10891 = vmatprep.mubr.msk.bf16.mxu0 %vm1133_vm4, %v6942_v57 }
0x1e59   :  { %10892 = vmatmul.mubr.msk.bf16.gmra.mxu0 %vm1133_vm4, %v6944_v39 }
0x1ecd   :  { %v15495_v41 = vpop.f32.mrf.mxu0 }
0x1ece   :  { %17148 = vst [vmem:[#allocation21_spill] sm:$0xff] %v15495_v41 }
0x1ecf   :  { %v15497_v33 = vpop.f32.mrf.mxu0 }
0x1ed0   :  { %17149 = vst [vmem:[#allocation24_spill] sm:$0xff] %v15497_v33 }
0x1ed1   :  { %v15499_v30 = vpop.f32.mrf.mxu0 }
0x1ed2   :  { %17150 = vst [vmem:[#allocation14_spill] sm:$0xff] %v15499_v30 }
0x1ed3   :  { %v15501_v53 = vpop.f32.mrf.mxu0 }
0x1ed4   :  { %17151 = vst [vmem:[#allocation16_spill] sm:$0xff] %v15501_v53 }
0x1f09   :  { %v15503_v1 = vpop.f32.mrf.mxu0 }
0x1f0a   :  { %17152 = vst [vmem:[#allocation15_spill] sm:$0xff] %v15503_v1 }
0x1f0b   :  { %v15505_v6 = vpop.f32.mrf.mxu0 }
0x1f0c   :  { %17153 = vst [vmem:[#allocation17_spill] sm:$0xff] %v15505_v6 }
0x1f0d   :  { %v15507_v60 = vpop.f32.mrf.mxu0 }
0x1f0e   :  { %17154 = vst [vmem:[#allocation18_spill] sm:$0xff] %v15507_v60 }
0x1f0f   :  { %v15509_v12 = vpop.f32.mrf.mxu0 }
0x1f10   :  { %17155 = vst [vmem:[#allocation23_spill] sm:$0xff] %v15509_v12 }
0x1f11   :  { %v10889_v24 = vpop.f32.mrf.mxu0 }
0x1f12   :  { %v7048_v57 = vsel %vm1223_vm5, %v10889_v24, -inf }
0x1f13   :  { %7049 = vmax.xlane.f32.xlu0 %v7048_v57  ;;  %v7011_v39 = vpop.f32.mrf.mxu0 }
0x1f14   :  { %v7042_v13 = vsel %vm1223_vm5, %v7011_v39, -inf }
0x1f15   :  { %7043 = vmax.xlane.f32.xlu1 %v7042_v13  ;;  %v10890_v35 = vpop.f32.mrf.mxu0 }
0x1f16   :  { %v7051_v59 = vsel %vm1223_vm5, %v10890_v35, -inf }
0x1f17   :  { %v7014_v3 = vpop.f32.mrf.mxu0 }
0x1f18   :  { %v7045_v1 = vsel %vm1223_vm5, %v7014_v3, -inf }
0x1f19   :  { %7052 = vmax.xlane.f32.xlu1 %v7051_v59  ;;  %7046 = vmax.xlane.f32.xlu0 %v7045_v1  ;;  %v15521_v57 = vpop.f32.mrf.mxu0 }
0x1f1a   :  { %v7060_v12 = vsel %vm1223_vm5, %v15521_v57, -inf }
0x1f1b   :  { %v7027_v13 = vpop.f32.mrf.mxu0 }
0x1f1c   :  { %v7054_v1 = vsel %vm1223_vm5, %v7027_v13, -inf }
0x1f1d   :  { %v15523_v60 = vpop.f32.mrf.mxu0 }
0x1f1e   :  { %v7063_v30 = vsel %vm1223_vm5, %v15523_v60, -inf }
0x1f1f   :  { %v7030_v6 = vpop.f32.mrf.mxu0 }
0x1f20   :  { %v7057_v59 = vsel %vm1223_vm5, %v7030_v6, -inf }
0x1f2a   :  { %7094 = vrot.lane.b32.xlu1 %v15189_v45, %s12225_s23 }
0x1f2e   :  { %7237 = vrot.lane.b32.xlu1 %v15195_v21, %s12221_s19 }
0x1f2f   :  { %7096 = vrot.lane.b32.xlu0 %v15186_v2, %s12225_s23 }
0x1f4e   :  { %7061 = vmax.xlane.f32.xlu0 %v7060_v12 }
0x1f52   :  { %7055 = vmax.xlane.f32.xlu1 %v7054_v1  ;;  %7058 = vmax.xlane.f32.xlu0 %v7057_v59 }
0x1f56   :  { %7064 = vmax.xlane.f32.xlu1 %v7063_v30 }
0x1f67   :  { %7233 = vrot.lane.b32.xlu1 %v15186_v2, %s12221_s19 }
0x1f68   :  { %7235 = vrot.lane.b32.xlu0 %v15197_v4, %s12221_s19 }
0x1f6b   :  { %7223 = vrot.lane.b32.xlu1 %v15189_v45, %s12223_s21 }
0x1f6c   :  { %7231 = vrot.lane.b32.xlu0 %v15189_v45, %s12221_s19 }
0x1f6f   :  { %7227 = vrot.lane.b32.xlu1 %v15197_v4, %s12223_s21 }
0x1f70   :  { %7225 = vrot.lane.b32.xlu0 %v15186_v2, %s12223_s21 }
0x1f73   :  { %7384 = vrot.lane.b32.xlu1 %v15197_v4, %s12226_s24 }
0x1f74   :  { %7229 = vrot.lane.b32.xlu0 %v15195_v21, %s12223_s21 }
0x1f78   :  { %7386 = vrot.lane.b32.xlu0 %v15195_v21, %s12226_s24 }
0x1f9c   :  { %v7050_v30 = vpop.xlane.xlu0 %7049 }
0x1f9d   :  { %v7068_v12 = vsub.f32 %v10889_v24, %v7050_v30 }
0x1f9e   :  { %v7044_v1 = vpop.xlane.xlu1 %7043 }
0x1f9f   :  { %v7066_v59 = vsub.f32 %v7011_v39, %v7044_v1  ;;  %v7078_v41 = vmul.f32 1.442695, %v7068_v12 }
0x1fa1   :  { %v7074_v53 = vmul.f32 1.442695, %v7066_v59  ;;  %11941 = vpow2.f32 %v7078_v41 }
0x1fa2   :  { %v7047_v33 = vpop.xlane.xlu0 %7046  ;;  %v7053_v25 = vpop.xlane.xlu1 %7052 }
0x1fa3   :  { %v7067_v55 = vsub.f32 %v7014_v3, %v7047_v33  ;;  %v7069_v34 = vsub.f32 %v10890_v35, %v7053_v25  ;;  %11943 = vpow2.f32 %v7074_v53 }
0x1fa5   :  { %v7076_v61 = vmul.f32 1.442695, %v7067_v55  ;;  %v7080_v5 = vmul.f32 1.442695, %v7069_v34 }
0x1fa6   :  { %v7097_v15 = vpop.permute.xlu0 %7096  ;;  %v7095_v54 = vpop.permute.xlu1 %7094 }
0x1fa7   :  { %11945 = vpow2.f32 %v7076_v61  ;;  %10899 = vmatprep.subr.bf16.mxu1 %v7097_v15 }
0x1fa8   :  { %11947 = vpow2.f32 %v7080_v5  ;;  %10900 = vmatpush3.bf16.msra.mxu1 %v7097_v15 }
0x1fa9   :  { %10901 = vmatprep.subr.bf16.mxu1 %v7095_v54 }
0x1faa   :  { %v7238_v24 = vpop.permute.xlu1 %7237 }
0x1fab   :  { %v7261_v61 = vsel %vm1133_vm4, %v7238_v24, 0 }
0x1fac   :  { %10902 = vmatpush3.bf16.msra.mxu1 %v7095_v54 }
0x1fad   :  { %11139 = vmatprep.subr.msk.bf16.mxu1 %vm1133_vm4, %v7238_v24 }
0x1fae   :  { %v15550_v39 = vpop.eup %11941 }
0x1fb0   :  { %v15552_v30 = vpop.eup %11943 }
0x1fb4   :  { %v15554_v25 = vpop.eup %11945 }
0x1fb5   :  { %v15556_v55 = vpop.eup %11947  ;;  %v7090_v34 = vpack.c.bf16 %v15554_v25, %v15552_v30 }
0x1fb6   :  { %v7091_v5 = vpack.c.bf16 %v15556_v55, %v15550_v39 }
0x1fb7   :  { %10903 = vmatprep.mubr.msk.bf16.mxu1 %vm1223_vm5, %v7090_v34 }
0x1fb8   :  { %10904 = vmatmul.mubr.msk.bf16.vlgmr.msra.gmra.mxu1 %vm1223_vm5, %v7091_v5 }
0x1fb9   :  { %10912 = vmatpush3.bf16.xpose.msra.mxu1 %v7261_v61 }
0x1fd7   :  { %v7062_v54 = vpop.xlane.xlu0 %7061 }
0x1fd8   :  { %v7072_v15 = vsub.f32 %v15521_v57, %v7062_v54 }
0x1fda   :  { %v7086_v1 = vmul.f32 1.442695, %v7072_v15 }
0x1fdb   :  { %v7059_v41 = vpop.xlane.xlu0 %7058  ;;  %v7056_v33 = vpop.xlane.xlu1 %7055 }
0x1fdc   :  { %v7071_v53 = vsub.f32 %v7030_v6, %v7059_v41  ;;  %v7070_v35 = vsub.f32 %v7027_v13, %v7056_v33 }
0x1fde   :  { %v7084_v3 = vmul.f32 1.442695, %v7071_v53  ;;  %v7082_v12 = vmul.f32 1.442695, %v7070_v35 }
0x1fdf   :  { %v7236_v59 = vpop.permute.xlu0 %7235  ;;  %v7065_v28 = vpop.xlane.xlu1 %7064 }
0x1fe0   :  { %11949 = vpow2.f32 %v7084_v3  ;;  %v7073_v34 = vsub.f32 %v15523_v60, %v7065_v28  ;;  %11140 = vmatprep.subr.msk.bf16.mxu1 %vm1133_vm4, %v7236_v59  ;;  %v7258_v24 = vsel %vm1133_vm4, %v7236_v59, 0 }
0x1fe1   :  { %11951 = vpow2.f32 %v7082_v12  ;;  %10914 = vmatpush3.bf16.xpose.msra.mxu1 %v7258_v24 }
0x1fe2   :  { %v7088_v5 = vmul.f32 1.442695, %v7073_v34  ;;  %11953 = vpow2.f32 %v7086_v1 }
0x1fe3   :  { %v7232_v57 = vpop.permute.xlu0 %7231  ;;  %v7234_v61 = vpop.permute.xlu1 %7233 }
0x1fe4   :  { %11955 = vpow2.f32 %v7088_v5  ;;  %11141 = vmatprep.subr.msk.bf16.mxu1 %vm1133_vm4, %v7234_v61  ;;  %v7255_v54 = vsel %vm1133_vm4, %v7234_v61, 0  ;;  %v7252_v3 = vsel %vm1133_vm4, %v7232_v57, 0 }
0x1fe7   :  { %v7226_v6 = vpop.permute.xlu0 %7225  ;;  %v7224_v13 = vpop.permute.xlu1 %7223 }
0x1fe9   :  { %10916 = vmatpush3.bf16.xpose.msra.mxu1 %v7255_v54 }
0x1fea   :  { %11142 = vmatprep.subr.msk.bf16.mxu1 %vm1133_vm4, %v7232_v57 }
0x1feb   :  { %v7230_v28 = vpop.permute.xlu0 %7229  ;;  %v7228_v60 = vpop.permute.xlu1 %7227 }
0x1fed   :  { %v15572_v15 = vpop.eup %11949 }
0x1fee   :  { %v15574_v41 = vpop.eup %11951 }
0x1fef   :  { %v7387_v33 = vpop.permute.xlu0 %7386  ;;  %v7092_v53 = vpack.c.bf16 %v15572_v15, %v15574_v41  ;;  %v15578_v35 = vpop.eup %11953 }
0x1ff0   :  { %10927 = vmatprep.subr.bf16.mxu0 %v7387_v33  ;;  %v7385_v1 = vpop.permute.xlu1 %7384 }
0x1ff1   :  { %v15581_v12 = vpop.eup %11955  ;;  %10907 = vmatprep.mubr.msk.bf16.mxu1 %vm1223_vm5, %v7092_v53  ;;  %10918 = vmatpush3.bf16.xpose.msra.mxu1 %v7252_v3 }
0x1ff2   :  { %10928 = vmatpush3.bf16.msra.mxu0 %v7387_v33  ;;  %v7093_v59 = vpack.c.bf16 %v15581_v12, %v15578_v35 }
0x1ff3   :  { %10929 = vmatprep.subr.bf16.mxu0 %v7385_v1 }
0x1ff4   :  { %10908 = vmatmul.mubr.msk.bf16.gmra.mxu1 %vm1223_vm5, %v7093_v59 }
0x1ff5   :  { %10919 = vmatprep.mubr.msk.bf16.mxu1 %vm1133_vm4, %v7224_v13 }
0x1ff6   :  { %10930 = vmatpush3.bf16.msra.mxu0 %v7385_v1 }
0x1ffc   :  { %10920 = vmatmul.mubr.msk.bf16.vlgmr.msra.gmra.mxu1 %vm1133_vm4, %v7226_v6 }
0x1ffd   :  { %10923 = vmatprep.mubr.msk.bf16.mxu1 %vm1133_vm4, %v7228_v60 }
0x2004   :  { %10924 = vmatmul.mubr.msk.bf16.gmra.mxu1 %vm1133_vm4, %v7230_v28 }
0x2078   :  { %v15591_v34 = vpop.f32.mrf.mxu1 }
0x2079   :  { %17156 = vst [vmem:[#allocation19_spill] sm:$0xff] %v15591_v34 }
0x207a   :  { %v15593_v24 = vpop.f32.mrf.mxu1 }
0x207b   :  { %17157 = vst [vmem:[#allocation20_spill] sm:$0xff] %v15593_v24 }
0x207c   :  { %v15595_v5 = vpop.f32.mrf.mxu1 }
0x207d   :  { %17158 = vst [vmem:[#allocation3_spill] sm:$0xff] %v15595_v5 }
0x207e   :  { %v15597_v57 = vpop.f32.mrf.mxu1 }
0x207f   :  { %17159 = vst [vmem:[#allocation76_spill] sm:$0xff] %v15597_v57 }
0x20b4   :  { %v15599_v61 = vpop.f32.mrf.mxu1 }
0x20b5   :  { %17160 = vst [vmem:[#allocation77_spill] sm:$0xff] %v15599_v61 }
0x20b6   :  { %v15601_v54 = vpop.f32.mrf.mxu1 }
0x20b7   :  { %17161 = vst [vmem:[#allocation78_spill] sm:$0xff] %v15601_v54 }
0x20b8   :  { %v15603_v13 = vpop.f32.mrf.mxu1 }
0x20b9   :  { %17162 = vst [vmem:[#allocation79_spill] sm:$0xff] %v15603_v13 }
0x20ba   :  { %v15605_v33 = vpop.f32.mrf.mxu1 }
0x20bb   :  { %17163 = vst [vmem:[#allocation80_spill] sm:$0xff] %v15605_v33 }
0x20bc   :  { %v10921_v6 = vpop.f32.mrf.mxu1 }
0x20bd   :  { %v7334_v60 = vsel %vm1223_vm5, %v10921_v6, -inf }
0x20be   :  { %7335 = vmax.xlane.f32.xlu0 %v7334_v60  ;;  %v7297_v28 = vpop.f32.mrf.mxu1 }
0x20bf   :  { %v7328_v53 = vsel %vm1223_vm5, %v7297_v28, -inf }
0x20c0   :  { %7329 = vmax.xlane.f32.xlu1 %v7328_v53  ;;  %v10922_v3 = vpop.f32.mrf.mxu1 }
0x20c1   :  { %v7337_v59 = vsel %vm1223_vm5, %v10922_v3, -inf }
0x20c2   :  { %v7300_v1 = vpop.f32.mrf.mxu1 }
0x20c3   :  { %v7331_v61 = vsel %vm1223_vm5, %v7300_v1, -inf }
0x20c4   :  { %7338 = vmax.xlane.f32.xlu1 %v7337_v59  ;;  %7332 = vmax.xlane.f32.xlu0 %v7331_v61  ;;  %v15617_v60 = vpop.f32.mrf.mxu1 }
0x20c5   :  { %v7346_v33 = vsel %vm1223_vm5, %v15617_v60, -inf }
0x20c6   :  { %v7313_v53 = vpop.f32.mrf.mxu1 }
0x20c7   :  { %v7340_v61 = vsel %vm1223_vm5, %v7313_v53, -inf }
0x20c8   :  { %v15619_v13 = vpop.f32.mrf.mxu1 }
0x20c9   :  { %v7349_v5 = vsel %vm1223_vm5, %v15619_v13, -inf }
0x20ca   :  { %v7316_v54 = vpop.f32.mrf.mxu1 }
0x20cb   :  { %v7343_v59 = vsel %vm1223_vm5, %v7316_v54, -inf }
0x20d5   :  { %7380 = vrot.lane.b32.xlu1 %v15189_v45, %s12226_s24 }
0x20d9   :  { %7523 = vrot.lane.b32.xlu1 %v15195_v21, %s12227_s25 }
0x20da   :  { %7382 = vrot.lane.b32.xlu0 %v15186_v2, %s12226_s24 }
0x20f9   :  { %7347 = vmax.xlane.f32.xlu0 %v7346_v33 }
0x20fd   :  { %7341 = vmax.xlane.f32.xlu1 %v7340_v61  ;;  %7344 = vmax.xlane.f32.xlu0 %v7343_v59 }
0x2101   :  { %7350 = vmax.xlane.f32.xlu1 %v7349_v5 }
0x2112   :  { %7519 = vrot.lane.b32.xlu1 %v15186_v2, %s12227_s25 }
0x2113   :  { %7521 = vrot.lane.b32.xlu0 %v15197_v4, %s12227_s25 }
0x2116   :  { %7509 = vrot.lane.b32.xlu1 %v15189_v45, %s12228_s26 }
0x2117   :  { %7517 = vrot.lane.b32.xlu0 %v15189_v45, %s12227_s25 }
0x211a   :  { %7513 = vrot.lane.b32.xlu1 %v15197_v4, %s12228_s26 }
0x211b   :  { %7511 = vrot.lane.b32.xlu0 %v15186_v2, %s12228_s26 }
0x211e   :  { %7670 = vrot.lane.b32.xlu1 %v15197_v4, %s12229_s5 }
0x211f   :  { %7515 = vrot.lane.b32.xlu0 %v15195_v21, %s12228_s26 }
0x2123   :  { %7672 = vrot.lane.b32.xlu0 %v15195_v21, %s12229_s5 }
0x2147   :  { %v7336_v5 = vpop.xlane.xlu0 %7335 }
0x2148   :  { %v7354_v33 = vsub.f32 %v10921_v6, %v7336_v5 }
0x2149   :  { %v7330_v61 = vpop.xlane.xlu1 %7329 }
0x214a   :  { %v7352_v59 = vsub.f32 %v7297_v28, %v7330_v61  ;;  %v7364_v34 = vmul.f32 1.442695, %v7354_v33 }
0x214c   :  { %v7360_v57 = vmul.f32 1.442695, %v7352_v59  ;;  %11957 = vpow2.f32 %v7364_v34 }
0x214d   :  { %v7333_v24 = vpop.xlane.xlu0 %7332  ;;  %v7339_v48 = vpop.xlane.xlu1 %7338 }
0x214e   :  { %v7353_v38 = vsub.f32 %v7300_v1, %v7333_v24  ;;  %v7355_v43 = vsub.f32 %v10922_v3, %v7339_v48  ;;  %11959 = vpow2.f32 %v7360_v57 }
0x2150   :  { %v7362_v36 = vmul.f32 1.442695, %v7353_v38  ;;  %v7366_v19 = vmul.f32 1.442695, %v7355_v43 }
0x2151   :  { %v7383_v4 = vpop.permute.xlu0 %7382  ;;  %v7381_v22 = vpop.permute.xlu1 %7380 }
0x2152   :  { %11961 = vpow2.f32 %v7362_v36  ;;  %10931 = vmatprep.subr.bf16.mxu0 %v7383_v4 }
0x2153   :  { %11963 = vpow2.f32 %v7366_v19  ;;  %10932 = vmatpush3.bf16.msra.mxu0 %v7383_v4 }
0x2154   :  { %10933 = vmatprep.subr.bf16.mxu0 %v7381_v22 }
0x2155   :  { %v7524_v21 = vpop.permute.xlu1 %7523 }
0x2157   :  { %10934 = vmatpush3.bf16.msra.mxu0 %v7381_v22  ;;  %v7547_v22 = vsel %vm1133_vm4, %v7524_v21, 0 }
0x2158   :  { %11143 = vmatprep.subr.msk.bf16.mxu0 %vm1133_vm4, %v7524_v21 }
0x2159   :  { %v15646_v6 = vpop.eup %11957 }
0x215b   :  { %v15648_v28 = vpop.eup %11959 }
0x215f   :  { %v15650_v48 = vpop.eup %11961 }
0x2160   :  { %v15652_v38 = vpop.eup %11963  ;;  %v7376_v43 = vpack.c.bf16 %v15650_v48, %v15648_v28 }
0x2161   :  { %v7377_v19 = vpack.c.bf16 %v15652_v38, %v15646_v6 }
0x2162   :  { %10935 = vmatprep.mubr.msk.bf16.mxu0 %vm1223_vm5, %v7376_v43 }
0x2163   :  { %10936 = vmatmul.mubr.msk.bf16.vlgmr.msra.gmra.mxu0 %vm1223_vm5, %v7377_v19 }
0x2164   :  { %10944 = vmatpush3.bf16.xpose.msra.mxu0 %v7547_v22 }
0x2182   :  { %v7348_v36 = vpop.xlane.xlu0 %7347 }
0x2183   :  { %v7358_v34 = vsub.f32 %v15617_v60, %v7348_v36 }
0x2185   :  { %v7372_v61 = vmul.f32 1.442695, %v7358_v34 }
0x2186   :  { %v7345_v24 = vpop.xlane.xlu0 %7344  ;;  %v7342_v57 = vpop.xlane.xlu1 %7341 }
0x2187   :  { %v7357_v3 = vsub.f32 %v7316_v54, %v7345_v24  ;;  %v7356_v1 = vsub.f32 %v7313_v53, %v7342_v57 }
0x2189   :  { %v7370_v5 = vmul.f32 1.442695, %v7357_v3  ;;  %v7368_v33 = vmul.f32 1.442695, %v7356_v1 }
0x218a   :  { %v7522_v59 = vpop.permute.xlu0 %7521  ;;  %v7351_v4 = vpop.xlane.xlu1 %7350 }
0x218b   :  { %11965 = vpow2.f32 %v7370_v5  ;;  %v7359_v43 = vsub.f32 %v15619_v13, %v7351_v4  ;;  %11144 = vmatprep.subr.msk.bf16.mxu0 %vm1133_vm4, %v7522_v59  ;;  %v7544_v21 = vsel %vm1133_vm4, %v7522_v59, 0 }
0x218c   :  { %11967 = vpow2.f32 %v7368_v33  ;;  %10946 = vmatpush3.bf16.xpose.msra.mxu0 %v7544_v21 }
0x218d   :  { %v7374_v19 = vmul.f32 1.442695, %v7359_v43  ;;  %11969 = vpow2.f32 %v7372_v61 }
0x218e   :  { %v7518_v60 = vpop.permute.xlu0 %7517  ;;  %v7520_v22 = vpop.permute.xlu1 %7519 }
0x218f   :  { %11971 = vpow2.f32 %v7374_v19  ;;  %11145 = vmatprep.subr.msk.bf16.mxu0 %vm1133_vm4, %v7520_v22  ;;  %v7541_v36 = vsel %vm1133_vm4, %v7520_v22, 0  ;;  %v7538_v33 = vsel %vm1133_vm4, %v7518_v60, 0 }
0x2192   :  { %v7512_v54 = vpop.permute.xlu0 %7511  ;;  %v7510_v53 = vpop.permute.xlu1 %7509 }
0x2194   :  { %10948 = vmatpush3.bf16.xpose.msra.mxu0 %v7541_v36 }
0x2195   :  { %11146 = vmatprep.subr.msk.bf16.mxu0 %vm1133_vm4, %v7518_v60 }
0x2196   :  { %v7516_v13 = vpop.permute.xlu0 %7515  ;;  %v7514_v34 = vpop.permute.xlu1 %7513 }
0x2198   :  { %v15668_v24 = vpop.eup %11965 }
0x2199   :  { %v15670_v57 = vpop.eup %11967 }
0x219a   :  { %v7673_v3 = vpop.permute.xlu0 %7672  ;;  %v7378_v1 = vpack.c.bf16 %v15668_v24, %v15670_v57  ;;  %v15674_v5 = vpop.eup %11969 }
0x219b   :  { %10959 = vmatprep.subr.bf16.mxu1 %v7673_v3  ;;  %v7671_v59 = vpop.permute.xlu1 %7670 }
0x219c   :  { %v15677_v61 = vpop.eup %11971  ;;  %10939 = vmatprep.mubr.msk.bf16.mxu0 %vm1223_vm5, %v7378_v1  ;;  %10950 = vmatpush3.bf16.xpose.msra.mxu0 %v7538_v33 }
0x219d   :  { %10960 = vmatpush3.bf16.msra.mxu1 %v7673_v3  ;;  %v7379_v4 = vpack.c.bf16 %v15677_v61, %v15674_v5 }
0x219e   :  { %10961 = vmatprep.subr.bf16.mxu1 %v7671_v59 }
0x219f   :  { %10940 = vmatmul.mubr.msk.bf16.gmra.mxu0 %vm1223_vm5, %v7379_v4 }
0x21a0   :  { %10951 = vmatprep.mubr.msk.bf16.mxu0 %vm1133_vm4, %v7510_v53 }
0x21a1   :  { %10962 = vmatpush3.bf16.msra.mxu1 %v7671_v59 }
0x21a7   :  { %10952 = vmatmul.mubr.msk.bf16.vlgmr.msra.gmra.mxu0 %vm1133_vm4, %v7512_v54 }
0x21a8   :  { %10955 = vmatprep.mubr.msk.bf16.mxu0 %vm1133_vm4, %v7514_v34 }
0x21af   :  { %10956 = vmatmul.mubr.msk.bf16.gmra.mxu0 %vm1133_vm4, %v7516_v13 }
0x2223   :  { %v15687_v43 = vpop.f32.mrf.mxu0 }
0x2225   :  { %v15689_v21 = vpop.f32.mrf.mxu0 }
0x2227   :  { %v15691_v19 = vpop.f32.mrf.mxu0 }
0x2228   :  { %17164 = vst [vmem:[#allocation81_spill] sm:$0xff] %v15691_v19 }
0x2229   :  { %v15693_v60 = vpop.f32.mrf.mxu0 }
0x225f   :  { %v15695_v22 = vpop.f32.mrf.mxu0 }
0x2260   :  { %17165 = vst [vmem:[#allocation82_spill] sm:$0xff] %v15695_v22 }
0x2261   :  { %v15697_v36 = vpop.f32.mrf.mxu0 }
0x2262   :  { %17166 = vst [vmem:[#allocation83_spill] sm:$0xff] %v15697_v36 }
0x2263   :  { %v15699_v53 = vpop.f32.mrf.mxu0 }
0x2264   :  { %17167 = vst [vmem:[#allocation84_spill] sm:$0xff] %v15699_v53 }
0x2265   :  { %v15701_v3 = vpop.f32.mrf.mxu0 }
0x2266   :  { %17168 = vst [vmem:[#allocation85_spill] sm:$0xff] %v15701_v3 }
0x2267   :  { %v15703_v54 = vpop.f32.mrf.mxu0 }
0x2268   :  { %v7620_v13 = vsel %vm1223_vm5, %v15703_v54, -inf }
0x2269   :  { %7621 = vmax.xlane.f32.xlu0 %v7620_v13  ;;  %v15707_v34 = vpop.f32.mrf.mxu0 }
0x226a   :  { %v7614_v1 = vsel %vm1223_vm5, %v15707_v34, -inf }
0x226b   :  { %7615 = vmax.xlane.f32.xlu1 %v7614_v1  ;;  %v15711_v33 = vpop.f32.mrf.mxu0 }
0x226c   :  { %v7623_v4 = vsel %vm1223_vm5, %v15711_v33, -inf }
0x226d   :  { %v15713_v59 = vpop.f32.mrf.mxu0 }
0x226e   :  { %v7617_v36 = vsel %vm1223_vm5, %v15713_v59, -inf }
0x226f   :  { %7624 = vmax.xlane.f32.xlu1 %v7623_v4  ;;  %7618 = vmax.xlane.f32.xlu0 %v7617_v36  ;;  %v15719_v3 = vpop.f32.mrf.mxu0 }
0x2270   :  { %v7632_v22 = vsel %vm1223_vm5, %v15719_v3, -inf }
0x2271   :  { %v15721_v13 = vpop.f32.mrf.mxu0 }
0x2272   :  { %v7626_v4 = vsel %vm1223_vm5, %v15721_v13, -inf }
0x2273   :  { %7633 = vmax.xlane.f32.xlu0 %v7632_v22  ;;  %v15725_v1 = vpop.f32.mrf.mxu0  ;;  %v5922_v22 = vsel %vm1223_vm5, %v15143_v20, 0.0  ;;  %v6208_v20 = vsel %vm1223_vm5, %v15274_v47, 0.0  ;;  %v5931_v47 = vsel %vm1223_vm5, %v15166_v17, 0.0  ;;  %v6220_v17 = vsel %vm1223_vm5, %v15292_v7, 0.0 }
0x2274   :  { %v7635_v53 = vsel %vm1223_vm5, %v15725_v1, -inf  ;;  %v6509_v7 = vsel %vm1223_vm5, %v15382_v27, 0.0  ;;  %v7469_v27 = vsel %vm1223_vm5, %v15648_v28, 0.0  ;;  %v7201_v28 = vsel %vm1223_vm5, %v15578_v35, 0.0 }
0x2275   :  { %7636 = vmax.xlane.f32.xlu1 %v7635_v53  ;;  %v15729_v19 = vpop.f32.mrf.mxu0  ;;  %v5919_v53 = vsel %vm1223_vm5, %v15145_v50, 0.0  ;;  %v6211_v50 = vsel %vm1223_vm5, %v15270_v49, 0.0  ;;  %v6500_v49 = vsel %vm1223_vm5, %v15361_v63, 0.0  ;;  %v7186_v63 = vsel %vm1223_vm5, %v15554_v25, 0.0 }
0x2276   :  { %v7629_v36 = vsel %vm1223_vm5, %v15729_v19, -inf  ;;  %v7195_v25 = vsel %vm1223_vm5, %v15574_v41, 0.0  ;;  %v7487_v35 = vsel %vm1223_vm5, %v15674_v5, 0.0 }
0x2277   :  { %7627 = vmax.xlane.f32.xlu0 %v7626_v4  ;;  %v5925_v4 = vsel %vm1223_vm5, %v15141_v14, 0.0  ;;  %v6214_v14 = vsel %vm1223_vm5, %v15276_v32, 0.0  ;;  %v5934_v32 = vsel %vm1223_vm5, %v15164_v0, 0.0  ;;  %v6223_v0 = vsel %vm1223_vm5, %v15298_v51, 0.0 }
0x2278   :  { %v6512_v51 = vsel %vm1223_vm5, %v15385_v37, 0.0  ;;  %v7472_v37 = vsel %vm1223_vm5, %v15650_v48, 0.0  ;;  %v7481_v48 = vsel %vm1223_vm5, %v15670_v57, 0.0 }
0x2279   :  { %7630 = vmax.xlane.f32.xlu1 %v7629_v36  ;;  %v5928_v36 = vsel %vm1223_vm5, %v15139_v40, 0.0  ;;  %v6491_v40 = vsel %vm1223_vm5, %v15357_v31, 0.0  ;;  %v5937_v31 = vsel %vm1223_vm5, %v15170_v62, 0.0  ;;  %v6226_v62 = vsel %vm1223_vm5, %v15301_v29, 0.0 }
0x227a   :  { %v7183_v29 = vsel %vm1223_vm5, %v15552_v30, 0.0  ;;  %v7475_v30 = vsel %vm1223_vm5, %v15646_v6, 0.0  ;;  %v7204_v6 = vsel %vm1223_vm5, %v15581_v12, 0.0 }
0x228a   :  { %7668 = vrot.lane.b32.xlu1 %v15186_v2, %s12229_s5  ;;  %v6205_v2 = vsel %vm1223_vm5, %v15272_v58, 0.0  ;;  %v6497_v58 = vsel %vm1223_vm5, %v15355_v18, 0.0  ;;  %v5940_v18 = vsel %vm1223_vm5, %v15173_v42, 0.0  ;;  %v6503_v42 = vsel %vm1223_vm5, %v15378_v46, 0.0 }
0x228b   :  { %v7192_v46 = vsel %vm1223_vm5, %v15556_v55, 0.0  ;;  %v7198_v55 = vsel %vm1223_vm5, %v15572_v15, 0.0  ;;  %v7484_v15 = vsel %vm1223_vm5, %v15668_v24, 0.0  ;;  %v5633_v24 = vsel %vm1223_vm5, %v15114_v52, 0.0 }
0x228c   :  { %v5639_v52 = vsel %vm1223_vm5, %v15108_v10, 0.0 }
0x228d   :  { %7666 = vrot.lane.b32.xlu0 %v15189_v45, %s12229_s5  ;;  %v6494_v45 = vsel %vm1223_vm5, %v15359_v44, 0.0  ;;  %v6217_v44 = vsel %vm1223_vm5, %v15294_v56, 0.0  ;;  %v6506_v56 = vsel %vm1223_vm5, %v15376_v9, 0.0  ;;  %v7189_v9 = vsel %vm1223_vm5, %v15550_v39, 0.0 }
0x228e   :  { %v7478_v39 = vsel %vm1223_vm5, %v15652_v38, 0.0 }
0x22ac   :  { %5923 = vadd.xlane.f32.xlu0 %v5922_v22 }
0x22ae   :  { %5920 = vadd.xlane.f32.xlu1 %v5919_v53 }
0x22b0   :  { %5926 = vadd.xlane.f32.xlu0 %v5925_v4 }
0x22b2   :  { %5929 = vadd.xlane.f32.xlu1 %v5928_v36 }
0x22b4   :  { %6206 = vadd.xlane.f32.xlu0 %v6205_v2 }
0x22b6   :  { %6209 = vadd.xlane.f32.xlu1 %v6208_v20 }
0x22b8   :  { %6212 = vadd.xlane.f32.xlu0 %v6211_v50 }
0x22ba   :  { %6215 = vadd.xlane.f32.xlu1 %v6214_v14 }
0x22bc   :  { %6492 = vadd.xlane.f32.xlu0 %v6491_v40 }
0x22be   :  { %6495 = vadd.xlane.f32.xlu1 %v6494_v45 }
0x22c0   :  { %6498 = vadd.xlane.f32.xlu0 %v6497_v58 }
0x22c2   :  { %6501 = vadd.xlane.f32.xlu1 %v6500_v49 }
0x22c4   :  { %5932 = vadd.xlane.f32.xlu0 %v5931_v47 }
0x22c6   :  { %5935 = vadd.xlane.f32.xlu1 %v5934_v32 }
0x22c8   :  { %5938 = vadd.xlane.f32.xlu0 %v5937_v31  ;;  %v5648_v31 = vsel %vm1223_vm5, %v15128_v8, 0.0  ;;  %v17170_v8 = vld [vmem:[#allocation62_spill] sm:$0xff] }
0x22ca   :  { %5941 = vadd.xlane.f32.xlu1 %v5940_v18 }
0x22cc   :  { %6218 = vadd.xlane.f32.xlu0 %v6217_v44 }
0x22ce   :  { %6221 = vadd.xlane.f32.xlu1 %v6220_v17 }
0x22d0   :  { %6224 = vadd.xlane.f32.xlu0 %v6223_v0 }
0x22d2   :  { %6227 = vadd.xlane.f32.xlu1 %v6226_v62  ;;  %v6897_v62 = vsel %vm1223_vm5, %v17170_v8, 0.0 }
0x22d4   :  { %6504 = vadd.xlane.f32.xlu0 %v6503_v42 }
0x22d6   :  { %6507 = vadd.xlane.f32.xlu1 %v6506_v56 }
0x22d8   :  { %6510 = vadd.xlane.f32.xlu0 %v6509_v7 }
0x22da   :  { %6513 = vadd.xlane.f32.xlu1 %v6512_v51 }
0x22dc   :  { %7184 = vadd.xlane.f32.xlu0 %v7183_v29 }
0x22de   :  { %7187 = vadd.xlane.f32.xlu1 %v7186_v63 }
0x22e0   :  { %7190 = vadd.xlane.f32.xlu0 %v7189_v9 }
0x22e2   :  { %7193 = vadd.xlane.f32.xlu1 %v7192_v46 }
0x22e4   :  { %7470 = vadd.xlane.f32.xlu0 %v7469_v27 }
0x22e6   :  { %7473 = vadd.xlane.f32.xlu1 %v7472_v37 }
0x22e8   :  { %7476 = vadd.xlane.f32.xlu0 %v7475_v30 }
0x22ea   :  { %7479 = vadd.xlane.f32.xlu1 %v7478_v39 }
0x22ec   :  { %7196 = vadd.xlane.f32.xlu0 %v7195_v25 }
0x22ee   :  { %7199 = vadd.xlane.f32.xlu1 %v7198_v55 }
0x22f0   :  { %7202 = vadd.xlane.f32.xlu0 %v7201_v28 }
0x22f2   :  { %7205 = vadd.xlane.f32.xlu1 %v7204_v6  ;;  %v7622_v38 = vpop.xlane.xlu0 %7621  ;;  %v17172_v6 = vld [vmem:[#allocation59_spill] sm:$0xff] }
0x22f3   :  { %v7640_v53 = vsub.f32 %v15703_v54, %v7622_v38 }
0x22f4   :  { %7482 = vadd.xlane.f32.xlu0 %v7481_v48  ;;  %v7616_v22 = vpop.xlane.xlu1 %7615  ;;  %v6906_v48 = vsel %vm1223_vm5, %v17172_v6, 0.0 }
0x22f5   :  { %v7638_v41 = vsub.f32 %v15707_v34, %v7616_v22  ;;  %v7490_v34 = vsel %vm1223_vm5, %v15677_v61, 0.0  ;;  %v7650_v20 = vmul.f32 1.442695, %v7640_v53 }
0x22f6   :  { %7485 = vadd.xlane.f32.xlu1 %v7484_v15 }
0x22f7   :  { %v7646_v4 = vmul.f32 1.442695, %v7638_v41  ;;  %v17173_v41 = vld [vmem:[#allocation60_spill] sm:$0xff] }
0x22f8   :  { %v7619_v12 = vpop.xlane.xlu0 %7618  ;;  %7488 = vadd.xlane.f32.xlu0 %v7487_v35  ;;  %v7625_v36 = vpop.xlane.xlu1 %7624  ;;  %v6903_v15 = vsel %vm1223_vm5, %v17173_v41, 0.0  ;;  %v17174_v35 = vld [vmem:[#allocation66_spill] sm:$0xff] }
0x22f9   :  { %v7639_v57 = vsub.f32 %v15713_v59, %v7619_v12  ;;  %v7641_v2 = vsub.f32 %v15711_v33, %v7625_v36  ;;  %11973 = vpow2.f32 %v7646_v4  ;;  %v5636_v59 = vsel %vm1223_vm5, %v15112_v16, 0.0  ;;  %v17175_v12 = vld [vmem:[#allocation64_spill] sm:$0xff] }
0x22fa   :  { %7491 = vadd.xlane.f32.xlu1 %v7490_v34  ;;  %v6909_v4 = vsel %vm1223_vm5, %v17174_v35, 0.0  ;;  %v6912_v36 = vsel %vm1223_vm5, %v17175_v12, 0.0  ;;  %v17177_v34 = vld [vmem:[#allocation65_spill] sm:$0xff] }
0x22fb   :  { %v7648_v54 = vmul.f32 1.442695, %v7639_v57  ;;  %v7652_v50 = vmul.f32 1.442695, %v7641_v2  ;;  %v17176_v57 = vld [vmem:[#allocation63_spill] sm:$0xff] }
0x22fc   :  { %v7634_v5 = vpop.xlane.xlu0 %7633  ;;  %5634 = vadd.xlane.f32.xlu0 %v5633_v24  ;;  %v6915_v2 = vsel %vm1223_vm5, %v17176_v57, 0.0  ;;  %v6918_v24 = vsel %vm1223_vm5, %v17177_v34, 0.0 }
0x22fd   :  { %11975 = vpow2.f32 %v7648_v54  ;;  %v7644_v14 = vsub.f32 %v15719_v3, %v7634_v5  ;;  %v5642_v3 = vsel %vm1223_vm5, %v15106_v26, 0.0  ;;  %v5651_v26 = vsel %vm1223_vm5, %v15125_v11, 0.0  ;;  %v17171_v11 = vld [vmem:[#allocation61_spill] sm:$0xff] }
0x22fe   :  { %11977 = vpow2.f32 %v7652_v50  ;;  %5637 = vadd.xlane.f32.xlu1 %v5636_v59  ;;  %v7637_v33 = vpop.xlane.xlu1 %7636  ;;  %v6900_v51 = vsel %vm1223_vm5, %v17171_v11, 0.0  ;;  %v11453_v11 = vld [vmem:[%s16861_s9 + $0x18] sm:$0xff]  }
0x22ff   :  { %11979 = vpow2.f32 %v7650_v20  ;;  %v7645_v61 = vsub.f32 %v15725_v1, %v7637_v33  ;;  %v7658_v40 = vmul.f32 1.442695, %v7644_v14  ;;  %v5645_v1 = vsel %vm1223_vm5, %v15130_v23, 0.0  ;;  %v17169_v23 = vld [vmem:[#allocation54_spill] sm:$0xff] }
0x2300   :  { %5640 = vadd.xlane.f32.xlu0 %v5639_v52  ;;  %v7628_v45 = vpop.xlane.xlu0 %7627  ;;  %v5654_v44 = vsel %vm1223_vm5, %v17169_v23, 0.0 }
0x2301   :  { %v7660_v58 = vmul.f32 1.442695, %v7645_v61  ;;  %v7642_v49 = vsub.f32 %v15721_v13, %v7628_v45  ;;  %11981 = vpow2.f32 %v7658_v40 }
0x2302   :  { %5643 = vadd.xlane.f32.xlu1 %v5642_v3  ;;  %v7631_v16 = vpop.xlane.xlu1 %7630  ;;  %v17179_v3 = vld [vmem:[#allocation55_spill] sm:$0xff] }
0x2303   :  { %v7654_v47 = vmul.f32 1.442695, %v7642_v49  ;;  %v7643_v32 = vsub.f32 %v15729_v19, %v7631_v16  ;;  %11983 = vpow2.f32 %v7660_v58  ;;  %v17178_v58 = vld [vmem:[#allocation31_spill] sm:$0xff] }
0x2304   :  { %5646 = vadd.xlane.f32.xlu0 %v5645_v1  ;;  %v7667_v18 = vpop.permute.xlu0 %7666 }
0x2305   :  { %v7656_v10 = vmul.f32 1.442695, %v7643_v32  ;;  %11985 = vpow2.f32 %v7654_v47 }
0x2306   :  { %5649 = vadd.xlane.f32.xlu1 %v5648_v31  ;;  %v7669_v13 = vpop.permute.xlu1 %7668  ;;  %v11974_v19 = vpop.eup %11973 }
0x2307   :  { %11987 = vpow2.f32 %v7656_v10  ;;  %10963 = vmatprep.subr.bf16.mxu1 %v7669_v13  ;;  %v7755_v37 = vsel %vm1223_vm5, %v11974_v19, 0.0 }
0x2308   :  { %5652 = vadd.xlane.f32.xlu0 %v5651_v26  ;;  %10964 = vmatpush3.bf16.msra.mxu1 %v7669_v13  ;;  %v17180_v13 = vld [vmem:[#allocation30_spill] sm:$0xff] }
0x2309   :  { %10965 = vmatprep.subr.bf16.mxu1 %v7667_v18 }
0x230a   :  { %v11976_v17 = vpop.eup %11975  ;;  %5655 = vadd.xlane.f32.xlu1 %v5654_v44 }
0x230b   :  { %v11978_v0 = vpop.eup %11977  ;;  %v7662_v42 = vpack.c.bf16 %v11976_v17, %v11974_v19  ;;  %v7758_v39 = vsel %vm1223_vm5, %v11976_v17, 0.0 }
0x230c   :  { %v11980_v56 = vpop.eup %11979  ;;  %6898 = vadd.xlane.f32.xlu0 %v6897_v62  ;;  %10966 = vmatpush3.bf16.msra.mxu1 %v7667_v18  ;;  %v7764_v9 = vsel %vm1223_vm5, %v11978_v0, 0.0  ;;  %v17181_v18 = vld [vmem:[#allocation29_spill] sm:$0xff]  ;;  %v17182_v62 = vld [vmem:[#allocation70_spill] sm:$0xff] }
0x230d   :  { %v7663_v7 = vpack.c.bf16 %v11978_v0, %v11980_v56  ;;  %10967 = vmatprep.mubr.msk.bf16.mxu1 %vm1223_vm5, %v7662_v42  ;;  %v7761_v29 = vsel %vm1223_vm5, %v11980_v56, 0.0  ;;  %v17183_v56 = vld [vmem:[#allocation71_spill] sm:$0xff]  ;;  %10975 = vmatprep.subr.bf16.mxu1 %v11453_v11 }
0x230e   :  { %6901 = vadd.xlane.f32.xlu1 %v6900_v51  ;;  %v11982_v63 = vpop.eup %11981 }
0x230f   :  { %10968 = vmatmul.mubr.msk.bf16.vlgmr.msra.gmra.mxu1 %vm1223_vm5, %v7663_v7  ;;  %v7773_v28 = vsel %vm1223_vm5, %v11982_v63, 0.0 }
0x2310   :  { %7762 = vadd.xlane.f32.xlu0 %v7761_v29  ;;  %v11984_v46 = vpop.eup %11983  ;;  %10976 = vmatpush3.bf16.msra.mxu1 %v11453_v11  ;;  %v17197_v11 = vld [vmem:[#allocation5_spill] sm:$0xff] }
0x2311   :  { %v7665_v55 = vpack.c.bf16 %v11984_v46, %v11982_v63  ;;  %v7776_v22 = vsel %vm1223_vm5, %v11984_v46, 0.0 }
0x2312   :  { %7765 = vadd.xlane.f32.xlu1 %v7764_v9  ;;  %v11986_v27 = vpop.eup %11985 }
0x2313   :  { %v7767_v38 = vsel %vm1223_vm5, %v11986_v27, 0.0 }
0x2314   :  { %v11988_v30 = vpop.eup %11987  ;;  %7756 = vadd.xlane.f32.xlu0 %v7755_v37 }
0x2315   :  { %v7664_v25 = vpack.c.bf16 %v11988_v30, %v11986_v27  ;;  %v7770_v53 = vsel %vm1223_vm5, %v11988_v30, 0.0  ;;  %v17184_v27 = vld [vmem:[#allocation68_spill] sm:$0xff]  ;;  %v17185_v30 = vld [vmem:[#allocation69_spill] sm:$0xff] }
0x2316   :  { %7759 = vadd.xlane.f32.xlu1 %v7758_v39 }
0x2317   :  { %10971 = vmatprep.mubr.msk.bf16.mxu1 %vm1223_vm5, %v7664_v25  ;;  %v11454_v25 = vld [vmem:[%s16861_s9 + $0x10] sm:$0xff]   ;;  %s17188_s9 = smov 24  }
0x2318   :  { %7774 = vadd.xlane.f32.xlu0 %v7773_v28  ;;  %10972 = vmatmul.mubr.msk.bf16.gmra.mxu1 %vm1223_vm5, %v7665_v55 }
0x2319   :  { %10977 = vmatprep.subr.bf16.mxu1 %v11454_v25 }
0x231a   :  { %6907 = vadd.xlane.f32.xlu1 %v6906_v48  ;;  %10978 = vmatpush3.bf16.msra.mxu1 %v11454_v25 }
0x231c   :  { %7768 = vadd.xlane.f32.xlu0 %v7767_v38 }
0x231e   :  { %7777 = vadd.xlane.f32.xlu1 %v7776_v22  ;;  %v17186_v22 = vld [vmem:[#allocation10_spill] sm:$0xff] }
0x2320   :  { %6904 = vadd.xlane.f32.xlu0 %v6903_v15  ;;  %v17187_v15 = vld [vmem:[#allocation12_spill] sm:$0xff] }
0x2322   :  { %7771 = vadd.xlane.f32.xlu1 %v7770_v53 }
0x2324   :  { %6910 = vadd.xlane.f32.xlu0 %v6909_v4 }
0x2326   :  { %6913 = vadd.xlane.f32.xlu1 %v6912_v36 }
0x2328   :  { %6916 = vadd.xlane.f32.xlu0 %v6915_v2  ;;  %v17189_v2 = vld [vmem:[#allocation8_spill] sm:$0xff] }
0x232a   :  { %6919 = vadd.xlane.f32.xlu1 %v6918_v24  ;;  %v17190_v24 = vld [vmem:[#allocation11_spill] sm:$0xff] }
0x2335   :  { %v5924_v20 = vpop.xlane.xlu0 %5923 }
0x2336   :  { %11989 = vrcp.f32 %v5924_v20 }
0x2337   :  { %v5921_v54 = vpop.xlane.xlu1 %5920 }
0x2338   :  { %11991 = vrcp.f32 %v5921_v54 }
0x2339   :  { %v5927_v50 = vpop.xlane.xlu0 %5926 }
0x233a   :  { %11993 = vrcp.f32 %v5927_v50 }
0x233b   :  { %v5930_v5 = vpop.xlane.xlu1 %5929 }
0x233c   :  { %11995 = vrcp.f32 %v5930_v5 }
0x233d   :  { %v6207_v14 = vpop.xlane.xlu0 %6206 }
0x233e   :  { %11997 = vrcp.f32 %v6207_v14 }
0x233f   :  { %v6210_v59 = vpop.xlane.xlu1 %6209 }
0x2340   :  { %11999 = vrcp.f32 %v6210_v59 }
0x2341   :  { %v6213_v33 = vpop.xlane.xlu0 %6212 }
0x2342   :  { %12001 = vrcp.f32 %v6213_v33  ;;  %v17191_v33 = vld [vmem:[#allocation22_spill] sm:$0xff] }
0x2343   :  { %v11990_v61 = vpop.eup %11989  ;;  %v6216_v52 = vpop.xlane.xlu1 %6215 }
0x2344   :  { %12003 = vrcp.f32 %v6216_v52  ;;  %v5952_v16 = vmul.f32 %v11990_v61, %v17179_v3  ;;  %v17192_v52 = vld [vmem:[#allocation58_spill] sm:$0xff] }
0x2345   :  { %v11992_v40 = vpop.eup %11991  ;;  %v6493_v45 = vpop.xlane.xlu0 %6492 }
0x2346   :  { %12005 = vrcp.f32 %v6493_v45  ;;  %v5951_v49 = vmul.f32 %v11992_v40, %v17178_v58 }
0x2347   :  { %v11994_v47 = vpop.eup %11993  ;;  %v6496_v32 = vpop.xlane.xlu1 %6495 }
0x2348   :  { %12007 = vrcp.f32 %v6496_v32  ;;  %v11286_v1 = vpack.i.bf16 %v5952_v16, %v5951_v49  ;;  %v5953_v26 = vmul.f32 %v11994_v47, %v17180_v13  ;;  %v17193_v47 = vld [vmem:[#allocation56_spill] sm:$0xff] }
0x2349   :  { %v11996_v10 = vpop.eup %11995  ;;  %v6499_v31 = vpop.xlane.xlu0 %6498 }
0x234a   :  { %12009 = vrcp.f32 %v6499_v31  ;;  %11287 = vrot.lane.b32.xlu0 %v11286_v1, %s12230_s29  ;;  %v5954_v19 = vmul.f32 %v11996_v10, %v17181_v18  ;;  %v17194_v1 = vld [vmem:[#allocation57_spill] sm:$0xff] }
0x234b   :  { %v11998_v23 = vpop.eup %11997  ;;  %v6502_v44 = vpop.xlane.xlu1 %6501 }
0x234c   :  { %12011 = vrcp.f32 %v6502_v44  ;;  %v11291_v17 = vpack.i.bf16 %v5954_v19, %v5953_v26  ;;  %v6237_v42 = vmul.f32 %v11998_v23, %v17182_v62  ;;  %v17195_v23 = vld [vmem:[#allocation6_spill] sm:$0xff] }
0x234d   :  { %v12000_v0 = vpop.eup %11999  ;;  %v5933_v8 = vpop.xlane.xlu0 %5932 }
0x234e   :  { %12013 = vrcp.f32 %v5933_v8  ;;  %11292 = vrot.lane.b32.xlu1 %v11291_v17, %s12230_s29  ;;  %v6238_v7 = vmul.f32 %v12000_v0, %v17183_v56  ;;  %v17196_v17 = vld [vmem:[#allocation9_spill] sm:$0xff] }
0x234f   :  { %v12002_v51 = vpop.eup %12001  ;;  %v5936_v29 = vpop.xlane.xlu1 %5935 }
0x2350   :  { %12015 = vrcp.f32 %v5936_v29  ;;  %v11296_v63 = vpack.i.bf16 %v6238_v7, %v6237_v42  ;;  %v6239_v37 = vmul.f32 %v12002_v51, %v17184_v27  ;;  %v17198_v29 = vld [vmem:[#allocation7_spill] sm:$0xff] }
0x2351   :  { %v12004_v9 = vpop.eup %12003  ;;  %v5939_v46 = vpop.xlane.xlu0 %5938 }
0x2352   :  { %12017 = vrcp.f32 %v5939_v46  ;;  %11297 = vrot.lane.b32.xlu1 %v11296_v63, %s12231_s6  ;;  %v6240_v39 = vmul.f32 %v12004_v9, %v17185_v30 }
0x2353   :  { %v12006_v55 = vpop.eup %12005  ;;  %v5942_v28 = vpop.xlane.xlu1 %5941 }
0x2354   :  { %12019 = vrcp.f32 %v5942_v28  ;;  %v11301_v6 = vpack.i.bf16 %v6240_v39, %v6239_v37  ;;  %v6523_v41 = vmul.f32 %v12006_v55, %v17186_v22  ;;  %v17199_v39 = vld [vmem:[#allocation75_spill] sm:$0xff]  ;;  %v17200_v55 = vld [vmem:[#allocation72_spill] sm:$0xff] }
0x2355   :  { %v12008_v48 = vpop.eup %12007  ;;  %v6219_v38 = vpop.xlane.xlu0 %6218 }
0x2356   :  { %12021 = vrcp.f32 %v6219_v38  ;;  %11302 = vrot.lane.b32.xlu0 %v11301_v6, %s12231_s6  ;;  %v6524_v53 = vmul.f32 %v12008_v48, %v17187_v15  ;;  %v17201_v15 = vld [vmem:[#allocation73_spill] sm:$0xff] }
0x2357   :  { %v12010_v35 = vpop.eup %12009  ;;  %v6222_v4 = vpop.xlane.xlu1 %6221 }
0x2358   :  { %12023 = vrcp.f32 %v6222_v4  ;;  %v11306_v12 = vpack.i.bf16 %v6524_v53, %v6523_v41  ;;  %v6525_v34 = vmul.f32 %v12010_v35, %v17189_v2  ;;  %v17202_v35 = vld [vmem:[#allocation74_spill] sm:$0xff] }
0x2359   :  { %v12012_v36 = vpop.eup %12011  ;;  %v6225_v57 = vpop.xlane.xlu0 %6224 }
0x235a   :  { %12025 = vrcp.f32 %v6225_v57  ;;  %11307 = vrot.lane.b32.xlu1 %v11306_v12, %s17188_s9  ;;  %v6526_v20 = vmul.f32 %v12012_v36, %v17190_v24  ;;  %v17203_v24 = vld [vmem:[#allocation20_spill] sm:$0xff] }
0x235b   :  { %v12014_v54 = vpop.eup %12013  ;;  %v6228_v50 = vpop.xlane.xlu1 %6227 }
0x235c   :  { %12027 = vrcp.f32 %v6228_v50  ;;  %v11311_v5 = vpack.i.bf16 %v6526_v20, %v6525_v34  ;;  %v5955_v61 = vmul.f32 %v12014_v54, %v17191_v33  ;;  %v17204_v54 = vld [vmem:[#allocation76_spill] sm:$0xff] }
0x235d   :  { %v12016_v14 = vpop.eup %12015  ;;  %v6505_v59 = vpop.xlane.xlu0 %6504 }
0x235e   :  { %12029 = vrcp.f32 %v6505_v59  ;;  %11312 = vrot.lane.b32.xlu0 %v11311_v5, %s17188_s9  ;;  %v5956_v40 = vmul.f32 %v12016_v14, %v17192_v52  ;;  %v17205_v52 = vld [vmem:[#allocation19_spill] sm:$0xff] }
0x235f   :  { %v12018_v45 = vpop.eup %12017  ;;  %v6508_v58 = vpop.xlane.xlu1 %6507 }
0x2360   :  { %12031 = vrcp.f32 %v6508_v58  ;;  %v11316_v49 = vpack.i.bf16 %v5956_v40, %v5955_v61  ;;  %v5957_v32 = vmul.f32 %v12018_v45, %v17193_v47  ;;  %v17206_v45 = vld [vmem:[#allocation3_spill] sm:$0xff] }
0x2361   :  { %v12020_v3 = vpop.eup %12019  ;;  %v6511_v16 = vpop.xlane.xlu0 %6510 }
0x2362   :  { %12033 = vrcp.f32 %v6511_v16  ;;  %11317 = vrot.lane.b32.xlu1 %v11316_v49, %s12230_s29  ;;  %v5958_v10 = vmul.f32 %v12020_v3, %v17194_v1 }
0x2363   :  { %v12022_v31 = vpop.eup %12021  ;;  %v6514_v13 = vpop.xlane.xlu1 %6513 }
0x2364   :  { %12035 = vrcp.f32 %v6514_v13  ;;  %v11321_v26 = vpack.i.bf16 %v5958_v10, %v5957_v32  ;;  %v6241_v44 = vmul.f32 %v12022_v31, %v17195_v23 }
0x2365   :  { %v12024_v18 = vpop.eup %12023  ;;  %v7185_v19 = vpop.xlane.xlu0 %7184 }
0x2366   :  { %12037 = vrcp.f32 %v7185_v19  ;;  %11322 = vrot.lane.b32.xlu0 %v11321_v26, %s12230_s29  ;;  %v6242_v0 = vmul.f32 %v12024_v18, %v17196_v17 }
0x2367   :  { %v12026_v8 = vpop.eup %12025  ;;  %v7188_v62 = vpop.xlane.xlu1 %7187 }
0x2368   :  { %12039 = vrcp.f32 %v7188_v62  ;;  %v11326_v42 = vpack.i.bf16 %v6242_v0, %v6241_v44  ;;  %v6243_v51 = vmul.f32 %v12026_v8, %v17197_v11  ;;  %v17207_v44 = vld [vmem:[#allocation81_spill] sm:$0xff] }
0x2369   :  { %v12028_v56 = vpop.eup %12027  ;;  %v7191_v7 = vpop.xlane.xlu0 %7190 }
0x236a   :  { %12041 = vrcp.f32 %v7191_v7  ;;  %11327 = vrot.lane.b32.xlu1 %v11326_v42, %s12231_s6  ;;  %v6244_v63 = vmul.f32 %v12028_v56, %v17198_v29  ;;  %v17209_v7 = vld [vmem:[#allocation80_spill] sm:$0xff] }
0x236b   :  { %v12030_v9 = vpop.eup %12029  ;;  %v7194_v46 = vpop.xlane.xlu1 %7193 }
0x236c   :  { %12043 = vrcp.f32 %v7194_v46  ;;  %v11331_v27 = vpack.i.bf16 %v6244_v63, %v6243_v51  ;;  %v6527_v25 = vmul.f32 %v12030_v9, %v17199_v39 }
0x236d   :  { %v12032_v37 = vpop.eup %12031  ;;  %v7471_v30 = vpop.xlane.xlu0 %7470 }
0x236e   :  { %12045 = vrcp.f32 %v7471_v30  ;;  %11332 = vrot.lane.b32.xlu0 %v11331_v27, %s12231_s6  ;;  %v6528_v28 = vmul.f32 %v12032_v37, %v17200_v55  ;;  %v17211_v37 = vld [vmem:[#allocation79_spill] sm:$0xff] }
0x236f   :  { %v12034_v6 = vpop.eup %12033  ;;  %v7474_v48 = vpop.xlane.xlu1 %7473 }
0x2370   :  { %12047 = vrcp.f32 %v7474_v48  ;;  %v11336_v38 = vpack.i.bf16 %v6528_v28, %v6527_v25  ;;  %v6529_v53 = vmul.f32 %v12034_v6, %v17201_v15 }
0x2371   :  { %v12036_v22 = vpop.eup %12035  ;;  %v7477_v41 = vpop.xlane.xlu0 %7476 }
0x2372   :  { %12049 = vrcp.f32 %v7477_v41  ;;  %11337 = vrot.lane.b32.xlu1 %v11336_v38, %s17188_s9  ;;  %v6530_v4 = vmul.f32 %v12036_v22, %v17202_v35 }
0x2373   :  { %v12038_v12 = vpop.eup %12037  ;;  %v7480_v36 = vpop.xlane.xlu1 %7479 }
0x2374   :  { %12051 = vrcp.f32 %v7480_v36  ;;  %v11341_v57 = vpack.i.bf16 %v6530_v4, %v6529_v53  ;;  %v7215_v20 = vmul.f32 %v12038_v12, %v17203_v24 }
0x2375   :  { %v12040_v2 = vpop.eup %12039  ;;  %v7197_v34 = vpop.xlane.xlu0 %7196 }
0x2376   :  { %12053 = vrcp.f32 %v7197_v34  ;;  %11342 = vrot.lane.b32.xlu0 %v11341_v57, %s17188_s9  ;;  %v7216_v50 = vmul.f32 %v12040_v2, %v17204_v54 }
0x2377   :  { %v12042_v5 = vpop.eup %12041  ;;  %v7200_v14 = vpop.xlane.xlu1 %7199 }
0x2378   :  { %12055 = vrcp.f32 %v7200_v14  ;;  %v11346_v59 = vpack.i.bf16 %v7216_v50, %v7215_v20  ;;  %v7217_v40 = vmul.f32 %v12042_v5, %v17205_v52 }
0x2379   :  { %v12044_v33 = vpop.eup %12043  ;;  %v7203_v61 = vpop.xlane.xlu0 %7202 }
0x237a   :  { %12057 = vrcp.f32 %v7203_v61  ;;  %11347 = vrot.lane.b32.xlu1 %v11346_v59, %s12230_s29  ;;  %v7218_v58 = vmul.f32 %v12044_v33, %v17206_v45 }
0x237b   :  { %v12046_v49 = vpop.eup %12045  ;;  %v7206_v3 = vpop.xlane.xlu1 %7205 }
0x237c   :  { %12059 = vrcp.f32 %v7206_v3  ;;  %v11351_v16 = vpack.i.bf16 %v7218_v58, %v7217_v40  ;;  %v7501_v1 = vmul.f32 %v12046_v49, %v15689_v21  ;;  %v17208_v21 = vld [vmem:[#allocation78_spill] sm:$0xff]  ;;  %v17212_v58 = vld [vmem:[#allocation53_spill] sm:$0xff]  ;;  %v17213_v3 = vld [vmem:[#allocation28_spill] sm:$0xff] }
0x237d   :  { %v12048_v47 = vpop.eup %12047  ;;  %v7483_v32 = vpop.xlane.xlu0 %7482 }
0x237e   :  { %11352 = vrot.lane.b32.xlu0 %v11351_v16, %s12230_s29  ;;  %v7502_v10 = vmul.f32 %v12048_v47, %v15693_v60 }
0x237f   :  { %v12050_v31 = vpop.eup %12049  ;;  %v7486_v13 = vpop.xlane.xlu1 %7485 }
0x2380   :  { %v11356_v26 = vpack.i.bf16 %v7502_v10, %v7501_v1  ;;  %v7503_v23 = vmul.f32 %v12050_v31, %v15687_v43  ;;  %v17210_v43 = vld [vmem:[#allocation77_spill] sm:$0xff] }
0x2381   :  { %v12052_v18 = vpop.eup %12051  ;;  %v7489_v19 = vpop.xlane.xlu0 %7488 }
0x2382   :  { %11357 = vrot.lane.b32.xlu1 %v11356_v26, %s12231_s6  ;;  %v7504_v17 = vmul.f32 %v12052_v18, %v17207_v44  ;;  %v17214_v26 = vld [vmem:[#allocation52_spill] sm:$0xff] }
0x2383   :  { %v12054_v0 = vpop.eup %12053  ;;  %v7492_v8 = vpop.xlane.xlu1 %7491 }
0x2384   :  { %v11361_v62 = vpack.i.bf16 %v7504_v17, %v7503_v23  ;;  %v7219_v60 = vmul.f32 %v12054_v0, %v17208_v21 }
0x2385   :  { %v12056_v42 = vpop.eup %12055  ;;  %v5635_v56 = vpop.xlane.xlu0 %5634 }
0x2386   :  { %11362 = vrot.lane.b32.xlu0 %v11361_v62, %s12231_s6  ;;  %v7220_v11 = vmul.f32 %v12056_v42, %v17209_v7  ;;  %12061 = vrcp.f32 %v5635_v56  ;;  %v17215_v7 = vld [vmem:[#allocation51_spill] sm:$0xff] }
0x2387   :  { %v12058_v51 = vpop.eup %12057  ;;  %v5638_v29 = vpop.xlane.xlu1 %5637 }
0x2388   :  { %v11366_v63 = vpack.i.bf16 %v7220_v11, %v7219_v60  ;;  %v7221_v27 = vmul.f32 %v12058_v51, %v17210_v43  ;;  %12063 = vrcp.f32 %v5638_v29 }
0x2389   :  { %v12060_v9 = vpop.eup %12059  ;;  %v5641_v46 = vpop.xlane.xlu0 %5640 }
0x238a   :  { %11367 = vrot.lane.b32.xlu1 %v11366_v63, %s12230_s29  ;;  %v7222_v30 = vmul.f32 %v12060_v9, %v17211_v37  ;;  %12065 = vrcp.f32 %v5641_v46 }
0x238b   :  { %v5644_v39 = vpop.xlane.xlu1 %5643 }
0x238c   :  { %v11371_v25 = vpack.i.bf16 %v7222_v30, %v7221_v27  ;;  %12067 = vrcp.f32 %v5644_v39 }
0x238d   :  { %v5647_v55 = vpop.xlane.xlu0 %5646  ;;  %12069 = vrcp.f32 %v7483_v32 }
0x238e   :  { %11372 = vrot.lane.b32.xlu0 %v11371_v25, %s12230_s29  ;;  %12071 = vrcp.f32 %v7486_v13 }
0x238f   :  { %v15931_v28 = vpop.xlane.xlu1 %5649  ;;  %12073 = vrcp.f32 %v7489_v19 }
0x2390   :  { %12075 = vrcp.f32 %v7492_v8 }
0x2391   :  { %v15933_v6 = vpop.xlane.xlu0 %5652 }
0x2393   :  { %v15935_v48 = vpop.xlane.xlu1 %5655  ;;  %v12062_v59 = vpop.eup %12061 }
0x2394   :  { %v5665_v49 = vmul.f32 %v12062_v59, %v17212_v58  ;;  %v17216_v58 = vld [vmem:[#allocation84_spill] sm:$0xff] }
0x2395   :  { %v15937_v38 = vpop.xlane.xlu0 %6898  ;;  %v12064_v33 = vpop.eup %12063 }
0x2396   :  { %v5666_v16 = vmul.f32 %v12064_v33, %v17213_v3 }
0x2397   :  { %v15939_v22 = vpop.xlane.xlu1 %6901  ;;  %v12066_v45 = vpop.eup %12065 }
0x2398   :  { %v5667_v18 = vmul.f32 %v12066_v45, %v17214_v26 }
0x2399   :  { %v7763_v15 = vpop.xlane.xlu0 %7762  ;;  %v12068_v10 = vpop.eup %12067 }
0x239a   :  { %12077 = vrcp.f32 %v7763_v15  ;;  %v12070_v8 = vpop.eup %12069  ;;  %v5668_v11 = vmul.f32 %v12068_v10, %v17215_v7  ;;  %v17218_v10 = vld [vmem:[#allocation85_spill] sm:$0xff] }
0x239b   :  { %v7766_v41 = vpop.xlane.xlu1 %7765  ;;  %v12072_v60 = vpop.eup %12071 }
0x239c   :  { %12079 = vrcp.f32 %v7766_v41  ;;  %v12074_v9 = vpop.eup %12073 }
0x239d   :  { %v7757_v35 = vpop.xlane.xlu0 %7756  ;;  %v12076_v27 = vpop.eup %12075 }
0x239e   :  { %12081 = vrcp.f32 %v7757_v35 }
0x239f   :  { %v7760_v53 = vpop.xlane.xlu1 %7759 }
0x23a0   :  { %12083 = vrcp.f32 %v7760_v53 }
0x23a1   :  { %v7775_v12 = vpop.xlane.xlu0 %7774  ;;  %12085 = vrcp.f32 %v5647_v55 }
0x23a2   :  { %12087 = vrcp.f32 %v7775_v12 }
0x23a3   :  { %v15941_v4 = vpop.xlane.xlu1 %6907 }
0x23a5   :  { %v7769_v57 = vpop.xlane.xlu0 %7768 }
0x23a6   :  { %12089 = vrcp.f32 %v7769_v57 }
0x23a7   :  { %v7778_v36 = vpop.xlane.xlu1 %7777  ;;  %v12078_v41 = vpop.eup %12077 }
0x23a8   :  { %12091 = vrcp.f32 %v7778_v36 }
0x23a9   :  { %v15943_v34 = vpop.xlane.xlu0 %6904  ;;  %v12080_v35 = vpop.eup %12079 }
0x23ab   :  { %v7772_v2 = vpop.xlane.xlu1 %7771 }
0x23ac   :  { %12093 = vrcp.f32 %v7772_v2  ;;  %v12082_v2 = vpop.eup %12081 }
0x23ad   :  { %v15947_v20 = vpop.xlane.xlu0 %6910  ;;  %12095 = vrcp.f32 %v15931_v28  ;;  %v12084_v33 = vpop.eup %12083 }
0x23ae   :  { %12097 = vrcp.f32 %v15933_v6  ;;  %v7506_v6 = vmul.f32 %v12072_v60, %v17218_v10 }
0x23af   :  { %v15945_v24 = vpop.xlane.xlu1 %6913  ;;  %12099 = vrcp.f32 %v15935_v48 }
0x23b0   :  { %12101 = vrcp.f32 %v15937_v38 }
0x23b1   :  { %v15951_v50 = vpop.xlane.xlu0 %6916  ;;  %12103 = vrcp.f32 %v15939_v22 }
0x23b2   :  { %12105 = vrcp.f32 %v15941_v4 }
0x23b3   :  { %v15949_v54 = vpop.xlane.xlu1 %6919  ;;  %12107 = vrcp.f32 %v15943_v34 }
0x23b4   :  { %12109 = vrcp.f32 %v15947_v20 }
0x23b5   :  { %12111 = vrcp.f32 %v15945_v24  ;;  %v17225_v24 = vld [vmem:[#allocation16_spill] sm:$0xff] }
0x23b6   :  { %12113 = vrcp.f32 %v15951_v50 }
0x23b7   :  { %12115 = vrcp.f32 %v15949_v54 }
0x23bc   :  { %v11288_v14 = vpop.permute.xlu0 %11287 }
0x23bd   :  { %v11290_v52 = vunpack.i.h.bf16 %v11288_v14  ;;  %v11289_v40 = vunpack.i.l.bf16 %v11288_v14 }
0x23bf   :  { %v6627_v31 = vsel %vm1133_vm4, %v5665_v49, %v11289_v40  ;;  %v6628_v13 = vsel %vm1133_vm4, %v5666_v16, %v11290_v52  ;;  %v7508_v49 = vmul.f32 %v12076_v27, %v17216_v58 }
0x23c0   :  { %v11293_v5 = vpop.permute.xlu1 %11292 }
0x23c1   :  { %v11295_v23 = vunpack.i.h.bf16 %v11293_v5  ;;  %v11294_v44 = vunpack.i.l.bf16 %v11293_v5 }
0x23c3   :  { %v6630_v37 = vsel %vm1133_vm4, %v5668_v11, %v11295_v23  ;;  %v6629_v30 = vsel %vm1133_vm4, %v5667_v18, %v11294_v44  ;;  %v17219_v18 = vld [vmem:[#allocation83_spill] sm:$0xff] }
0x23c4   :  { %v11298_v61 = vpop.permute.xlu1 %11297 }
0x23c5   :  { %v11300_v47 = vunpack.i.h.bf16 %v11298_v61  ;;  %v11299_v32 = vunpack.i.l.bf16 %v11298_v61  ;;  %v12086_v61 = vpop.eup %12085 }
0x23c6   :  { %v12088_v3 = vpop.eup %12087 }
0x23c7   :  { %v6636_v62 = vsel %vm413_vm3, %v6628_v13, %v11300_v47  ;;  %v6635_v42 = vsel %vm413_vm3, %v6627_v31, %v11299_v32  ;;  %v17217_v32 = vld [vmem:[#allocation82_spill] sm:$0xff]  ;;  %v12090_v31 = vpop.eup %12089 }
0x23c8   :  { %v11303_v1 = vpop.permute.xlu0 %11302  ;;  %v12092_v44 = vpop.eup %12091 }
0x23c9   :  { %v11305_v56 = vunpack.i.h.bf16 %v11303_v1  ;;  %v11304_v21 = vunpack.i.l.bf16 %v11303_v1  ;;  %v7507_v1 = vmul.f32 %v12074_v9, %v17217_v32 }
0x23cb   :  { %v6637_v15 = vsel %vm413_vm3, %v6629_v30, %v11304_v21  ;;  %v6638_v53 = vsel %vm413_vm3, %v6630_v37, %v11305_v56  ;;  %v11391_v26 = vpack.i.bf16 %v7508_v49, %v7507_v1  ;;  %v17221_v37 = vld [vmem:[#allocation32_spill] sm:$0xff] }
0x23cc   :  { %v11308_v19 = vpop.permute.xlu1 %11307 }
0x23cd   :  { %v11310_v17 = vunpack.i.h.bf16 %v11308_v19  ;;  %v11309_v0 = vunpack.i.l.bf16 %v11308_v19  ;;  %v7505_v19 = vmul.f32 %v12070_v8, %v17219_v18 }
0x23cf   :  { %v6643_v51 = vsel %vm2375_vm6, %v6635_v42, %v11309_v0  ;;  %v6644_v29 = vsel %vm2375_vm6, %v6636_v62, %v11310_v17  ;;  %v10969_v63 = vpop.f32.mrf.mxu1  ;;  %v11386_v48 = vpack.i.bf16 %v7506_v6, %v7505_v19  ;;  %v12094_v0 = vpop.eup %12093 }
0x23d0   :  { %v11313_v46 = vpop.permute.xlu0 %11312  ;;  %v7921_v43 = vpack.c.bf16 %v6644_v29, %v6643_v51  ;;  %v7789_v5 = vmul.f32 %v12078_v41, %v10969_v63  ;;  %v12096_v21 = vpop.eup %12095 }
0x23d1   :  { %v11315_v39 = vunpack.i.h.bf16 %v11313_v46  ;;  %v11314_v25 = vunpack.i.l.bf16 %v11313_v46  ;;  %v7724_v55 = vpop.f32.mrf.mxu1  ;;  %v12098_v46 = vpop.eup %12097  ;;  %v5670_v30 = vmul.f32 %v12096_v21, %v17221_v37 }
0x23d2   :  { %10979 = vmatprep.mubr.msk.bf16.mxu1 %vm302_vm2, %v7921_v43  ;;  %v7787_v52 = vmul.f32 %v12082_v2, %v7724_v55  ;;  %v17220_v43 = vld [vmem:[#allocation25_spill] sm:$0xff]  ;;  %v12100_v41 = vpop.eup %12099 }
0x23d3   :  { %v6645_v12 = vsel %vm2375_vm6, %v6637_v15, %v11314_v25  ;;  %v6646_v36 = vsel %vm2375_vm6, %v6638_v53, %v11315_v39  ;;  %v10970_v57 = vpop.f32.mrf.mxu1  ;;  %v5669_v27 = vmul.f32 %v12086_v61, %v17220_v43 }
0x23d4   :  { %v7922_v14 = vpack.c.bf16 %v6646_v36, %v6645_v12  ;;  %v7790_v59 = vmul.f32 %v12080_v35, %v10970_v57  ;;  %v11318_v23 = vpop.permute.xlu1 %11317 }
0x23d5   :  { %v7727_v28 = vpop.f32.mrf.mxu1  ;;  %v11320_v63 = vunpack.i.h.bf16 %v11318_v23  ;;  %v11319_v8 = vunpack.i.l.bf16 %v11318_v23 }
0x23d6   :  { %v11376_v40 = vpack.i.bf16 %v7790_v59, %v7789_v5  ;;  %v7788_v45 = vmul.f32 %v12084_v33, %v7727_v28  ;;  %10980 = vmatmul.mubr.msk.bf16.vlgmr.msra.gmra.mxu1 %vm302_vm2, %v7922_v14  ;;  %v17222_v28 = vld [vmem:[#allocation26_spill] sm:$0xff] }
0x23d7   :  { %v6632_v15 = vsel %vm1133_vm4, %v5670_v30, %v11320_v63  ;;  %v6631_v53 = vsel %vm1133_vm4, %v5669_v27, %v11319_v8  ;;  %v5671_v61 = vmul.f32 %v12098_v46, %v17222_v28 }
0x23d8   :  { %v11381_v16 = vpack.i.bf16 %v7788_v45, %v7787_v52  ;;  %v10973_v47 = vpop.f32.mrf.mxu1  ;;  %11377 = vrot.lane.b32.xlu0 %v11376_v40, %s17188_s9  ;;  %v11323_v60 = vpop.permute.xlu0 %11322  ;;  %v17223_v52 = vld [vmem:[#allocation27_spill] sm:$0xff] }
0x23d9   :  { %v7793_v62 = vmul.f32 %v12088_v3, %v10973_v47  ;;  %v11325_v12 = vunpack.i.h.bf16 %v11323_v60  ;;  %v11324_v36 = vunpack.i.l.bf16 %v11323_v60  ;;  %v5672_v40 = vmul.f32 %v12100_v41, %v17223_v52 }
0x23da   :  { %v7740_v13 = vpop.f32.mrf.mxu1  ;;  %11382 = vrot.lane.b32.xlu1 %v11381_v16, %s17188_s9 }
0x23db   :  { %v7791_v7 = vmul.f32 %v12090_v31, %v7740_v13  ;;  %v6633_v16 = vsel %vm1133_vm4, %v5671_v61, %v11324_v36  ;;  %v6634_v47 = vsel %vm1133_vm4, %v5672_v40, %v11325_v12 }
0x23dc   :  { %v10974_v17 = vpop.f32.mrf.mxu1  ;;  %11392 = vrot.lane.b32.xlu0 %v11391_v26, %s12231_s6  ;;  %v11328_v51 = vpop.permute.xlu1 %11327 }
0x23dd   :  { %v7794_v42 = vmul.f32 %v12092_v44, %v10974_v17  ;;  %v11330_v39 = vunpack.i.h.bf16 %v11328_v51  ;;  %v11329_v25 = vunpack.i.l.bf16 %v11328_v51  ;;  %v12102_v44 = vpop.eup %12101  ;;  %v17227_v51 = vld [vmem:[#allocation14_spill] sm:$0xff] }
0x23de   :  { %v7743_v56 = vpop.f32.mrf.mxu1  ;;  %11387 = vrot.lane.b32.xlu1 %v11386_v48, %s12231_s6  ;;  %v12104_v38 = vpop.eup %12103 }
0x23df   :  { %v11401_v11 = vpack.i.bf16 %v7794_v42, %v7793_v62  ;;  %v7792_v29 = vmul.f32 %v12094_v0, %v7743_v56  ;;  %v6639_v5 = vsel %vm413_vm3, %v6631_v53, %v11329_v25  ;;  %v6640_v14 = vsel %vm413_vm3, %v6632_v15, %v11330_v39  ;;  %v12106_v48 = vpop.eup %12105  ;;  %v17224_v56 = vld [vmem:[#allocation24_spill] sm:$0xff] }
0x23e0   :  { %v11333_v55 = vpop.permute.xlu0 %11332  ;;  %v12108_v4 = vpop.eup %12107  ;;  %v6929_v21 = vmul.f32 %v12102_v44, %v17224_v56  ;;  %v6930_v60 = vmul.f32 %v12104_v38, %v17225_v24 }
0x23e1   :  { %v11396_v9 = vpack.i.bf16 %v7792_v29, %v7791_v7  ;;  %11402 = vrot.lane.b32.xlu0 %v11401_v11, %s17188_s9  ;;  %v11335_v59 = vunpack.i.h.bf16 %v11333_v55  ;;  %v11334_v33 = vunpack.i.l.bf16 %v11333_v55  ;;  %v17226_v11 = vld [vmem:[#allocation21_spill] sm:$0xff]  ;;  %v6932_v29 = vmul.f32 %v12106_v48, %v17227_v51  ;;  %v12110_v55 = vpop.eup %12109 }
0x23e2   :  { %v6931_v54 = vmul.f32 %v12108_v4, %v17226_v11  ;;  %v12112_v12 = vpop.eup %12111 }
0x23e3   :  { %11397 = vrot.lane.b32.xlu1 %v11396_v9, %s17188_s9  ;;  %v6641_v10 = vsel %vm413_vm3, %v6633_v16, %v11334_v33  ;;  %v6642_v6 = vsel %vm413_vm3, %v6634_v47, %v11335_v59  ;;  %v12114_v59 = vpop.eup %12113  ;;  %v17228_v47 = vld [vmem:[#allocation17_spill] sm:$0xff] }
0x23e4   :  { %v11338_v35 = vpop.permute.xlu1 %11337  ;;  %v12116_v61 = vpop.eup %12115 }
0x23e5   :  { %v11340_v57 = vunpack.i.h.bf16 %v11338_v35  ;;  %v11339_v2 = vunpack.i.l.bf16 %v11338_v35 }
0x23e7   :  { %v6647_v45 = vsel %vm2375_vm6, %v6639_v5, %v11339_v2  ;;  %v6648_v58 = vsel %vm2375_vm6, %v6640_v14, %v11340_v57 }
0x23e8   :  { %v11343_v49 = vpop.permute.xlu0 %11342  ;;  %v7923_v3 = vpack.c.bf16 %v6648_v58, %v6647_v45 }
0x23e9   :  { %v11345_v32 = vunpack.i.h.bf16 %v11343_v49  ;;  %v11344_v1 = vunpack.i.l.bf16 %v11343_v49 }
0x23ea   :  { %10983 = vmatprep.mubr.msk.bf16.mxu1 %vm302_vm2, %v7923_v3 }
0x23eb   :  { %v6649_v31 = vsel %vm2375_vm6, %v6641_v10, %v11344_v1  ;;  %v6650_v13 = vsel %vm2375_vm6, %v6642_v6, %v11345_v32  ;;  %v6933_v32 = vmul.f32 %v12110_v55, %v17228_v47  ;;  %v17229_v1 = vld [vmem:[#allocation23_spill] sm:$0xff] }
0x23ec   :  { %v7924_v26 = vpack.c.bf16 %v6650_v13, %v6649_v31  ;;  %v11348_v19 = vpop.permute.xlu1 %11347  ;;  %v6934_v10 = vmul.f32 %v12112_v12, %v17229_v1  ;;  %v17230_v13 = vld [vmem:[#allocation15_spill] sm:$0xff] }
0x23ed   :  { %v11350_v0 = vunpack.i.h.bf16 %v11348_v19  ;;  %v11349_v34 = vunpack.i.l.bf16 %v11348_v19 }
0x23ee   :  { %10984 = vmatmul.mubr.msk.bf16.gmra.mxu1 %vm302_vm2, %v7924_v26  ;;  %v6935_v26 = vmul.f32 %v12114_v59, %v17230_v13 }
0x23ef   :  { %v7892_v27 = vsel %vm1133_vm4, %v6930_v60, %v11350_v0  ;;  %v7891_v37 = vsel %vm1133_vm4, %v6929_v21, %v11349_v34 }
0x23f0   :  { %v11353_v18 = vpop.permute.xlu0 %11352 }
0x23f1   :  { %v11355_v62 = vunpack.i.h.bf16 %v11353_v18  ;;  %v11354_v42 = vunpack.i.l.bf16 %v11353_v18  ;;  %v17231_v18 = vld [vmem:[#allocation18_spill] sm:$0xff] }
0x23f2   :  { %v6936_v19 = vmul.f32 %v12116_v61, %v17231_v18 }
0x23f3   :  { %v7893_v30 = vsel %vm1133_vm4, %v6931_v54, %v11354_v42  ;;  %v7894_v39 = vsel %vm1133_vm4, %v6932_v29, %v11355_v62 }
0x23f4   :  { %v11358_v17 = vpop.permute.xlu1 %11357 }
0x23f5   :  { %v11360_v63 = vunpack.i.h.bf16 %v11358_v17  ;;  %v11359_v8 = vunpack.i.l.bf16 %v11358_v17 }
0x23f7   :  { %v7899_v36 = vsel %vm413_vm3, %v7891_v37, %v11359_v8  ;;  %v7900_v57 = vsel %vm413_vm3, %v7892_v27, %v11360_v63  ;;  %v9864_v8 = vld [vmem:[%s16855_s14 + $0xe] ss:$0 sm:$0xff] }
0x23f8   :  { %v11363_v23 = vpop.permute.xlu0 %11362 }
0x23f9   :  { %v11365_v50 = vunpack.i.h.bf16 %v11363_v23  ;;  %v11364_v7 = vunpack.i.l.bf16 %v11363_v23 }
0x23fb   :  { %v7901_v41 = vsel %vm413_vm3, %v7893_v30, %v11364_v7  ;;  %v7902_v15 = vsel %vm413_vm3, %v7894_v39, %v11365_v50 }
0x23fc   :  { %v11368_v20 = vpop.permute.xlu1 %11367 }
0x23fd   :  { %v11370_v52 = vunpack.i.h.bf16 %v11368_v20  ;;  %v11369_v58 = vunpack.i.l.bf16 %v11368_v20 }
0x23ff   :  { %v7895_v4 = vsel %vm1133_vm4, %v6933_v32, %v11369_v58 }
0x2400   :  { %v16010_v22 = vpop.permute.xlu0 %11372 }
0x2401   :  { %v11375_v49 = vunpack.i.h.bf16 %v16010_v22  ;;  %v11374_v3 = vunpack.i.l.bf16 %v16010_v22  ;;  %v7896_v22 = vsel %vm1133_vm4, %v6934_v10, %v11370_v52  ;;  %v17232_v10 = vld [vmem:[#allocation42_spill] sm:$0xff] }
0x2403   :  { %v7897_v0 = vsel %vm1133_vm4, %v6935_v26, %v11374_v3  ;;  %v7898_v34 = vsel %vm1133_vm4, %v6936_v19, %v11375_v49 }
0x244a   :  { %v11378_v9 = vpop.permute.xlu0 %11377 }
0x244b   :  { %v11380_v46 = vunpack.i.h.bf16 %v11378_v9  ;;  %v11379_v43 = vunpack.i.l.bf16 %v11378_v9 }
0x244c   :  { %v11383_v25 = vpop.permute.xlu1 %11382 }
0x244d   :  { %v11385_v53 = vunpack.i.h.bf16 %v11383_v25  ;;  %v11384_v35 = vunpack.i.l.bf16 %v11383_v25  ;;  %v7909_v2 = vsel %vm2375_vm6, %v7901_v41, %v11379_v43  ;;  %v7910_v5 = vsel %vm2375_vm6, %v7902_v15, %v11380_v46 }
0x244e   :  { %v11393_v14 = vpop.permute.xlu0 %11392  ;;  %v7926_v16 = vpack.c.bf16 %v7910_v5, %v7909_v2 }
0x244f   :  { %v7907_v33 = vsel %vm2375_vm6, %v7899_v36, %v11384_v35  ;;  %v7908_v28 = vsel %vm2375_vm6, %v7900_v57, %v11385_v53  ;;  %v11395_v6 = vunpack.i.h.bf16 %v11393_v14  ;;  %v11394_v31 = vunpack.i.l.bf16 %v11393_v14 }
0x2450   :  { %v11388_v40 = vpop.permute.xlu1 %11387  ;;  %v7925_v45 = vpack.c.bf16 %v7908_v28, %v7907_v33 }
0x2451   :  { %v11390_v23 = vunpack.i.h.bf16 %v11388_v40  ;;  %v11389_v44 = vunpack.i.l.bf16 %v11388_v40  ;;  %v7905_v42 = vsel %vm413_vm3, %v7897_v0, %v11394_v31  ;;  %v7906_v20 = vsel %vm413_vm3, %v7898_v34, %v11395_v6 }
0x2452   :  { %10987 = vmatprep.mubr.msk.bf16.mxu1 %vm302_vm2, %v7925_v45 }
0x2453   :  { %v11403_v17 = vpop.permute.xlu0 %11402  ;;  %10988 = vmatmul.mubr.msk.bf16.gmra.mxu1 %vm302_vm2, %v7926_v16  ;;  %v7903_v24 = vsel %vm413_vm3, %v7895_v4, %v11389_v44  ;;  %v7904_v60 = vsel %vm413_vm3, %v7896_v22, %v11390_v23 }
0x2454   :  { %v11405_v38 = vunpack.i.h.bf16 %v11403_v17  ;;  %v11404_v48 = vunpack.i.l.bf16 %v11403_v17 }
0x2455   :  { %v11398_v62 = vpop.permute.xlu1 %11397 }
0x2456   :  { %v11400_v56 = vunpack.i.h.bf16 %v11398_v62  ;;  %v11399_v21 = vunpack.i.l.bf16 %v11398_v62  ;;  %v7913_v50 = vsel %vm2375_vm6, %v7905_v42, %v11404_v48  ;;  %v7914_v7 = vsel %vm2375_vm6, %v7906_v20, %v11405_v38  ;;  %v17233_v62 = vld [vmem:[#allocation67_spill] sm:$0xff] }
0x2457   :  { %v7928_v29 = vpack.c.bf16 %v7914_v7, %v7913_v50 }
0x2458   :  { %v7911_v11 = vsel %vm2375_vm6, %v7903_v24, %v11399_v21  ;;  %v7912_v54 = vsel %vm2375_vm6, %v7904_v60, %v11400_v56 }
0x2459   :  { %v7927_v51 = vpack.c.bf16 %v7912_v54, %v7911_v11 }
0x245b   :  { %10991 = vmatprep.mubr.msk.bf16.mxu1 %vm302_vm2, %v7927_v51 }
0x245c   :  { %10992 = vmatmul.mubr.msk.bf16.gmra.mxu1 %vm302_vm2, %v7928_v29 }
0x2496   :  { %v10981_v63 = vpop.f32.mrf.mxu1 }
0x2497   :  { %v8014_v37 = vadd.f32 %v10981_v63, %v9864_v8 }
0x2498   :  { %v8005_v9 = vpop.f32.mrf.mxu1 }
0x2499   :  { %v8006_v46 = vadd.f32 %v9864_v8, %v8005_v9 }
0x249a   :  { %v10982_v43 = vpop.f32.mrf.mxu1 }
0x249b   :  { %8084 = vrot.lane.b32.xlu1 %v8006_v46, %s12224_s22  ;;  %v8017_v39 = vadd.f32 %v10982_v43, %v9864_v8 }
0x249c   :  { %v8008_v27 = vpop.f32.mrf.mxu1 }
0x249d   :  { %v8009_v30 = vadd.f32 %v9864_v8, %v8008_v27 }
0x249f   :  { %8086 = vrot.lane.b32.xlu0 %v8009_v30, %s12224_s22  ;;  %8088 = vrot.lane.b32.xlu1 %v8014_v37, %s12224_s22  ;;  %v17234_v30 = vld [vmem:[#allocation46_spill] sm:$0xff] }
0x24a3   :  { %8090 = vrot.lane.b32.xlu0 %v8017_v39, %s12224_s22 }
0x24ae   :  { %v10985_v25 = vpop.f32.mrf.mxu1 }
0x24af   :  { %v8030_v35 = vadd.f32 %v10985_v25, %v9864_v8  ;;  %v17235_v25 = vld [vmem:[#allocation44_spill] sm:$0xff] }
0x24b0   :  { %v8021_v55 = vpop.f32.mrf.mxu1 }
0x24b1   :  { %v8022_v41 = vadd.f32 %v9864_v8, %v8021_v55 }
0x24b2   :  { %v10986_v15 = vpop.f32.mrf.mxu1 }
0x24b3   :  { %8092 = vrot.lane.b32.xlu1 %v8022_v41, %s12224_s22  ;;  %v8033_v36 = vadd.f32 %v10986_v15, %v9864_v8  ;;  %v17236_v15 = vld [vmem:[#allocation38_spill] sm:$0xff] }
0x24b4   :  { %v8024_v53 = vpop.f32.mrf.mxu1 }
0x24b5   :  { %v8025_v12 = vadd.f32 %v9864_v8, %v8024_v53 }
0x24b7   :  { %8094 = vrot.lane.b32.xlu0 %v8025_v12, %s12224_s22  ;;  %8096 = vrot.lane.b32.xlu1 %v8030_v35, %s12224_s22 }
0x24bb   :  { %8098 = vrot.lane.b32.xlu0 %v8033_v36, %s12224_s22  ;;  %v17237_v36 = vld [vmem:[#allocation37_spill] sm:$0xff] }
0x250d   :  { %v8085_v58 = vpop.permute.xlu1 %8084 }
0x250e   :  { %v8132_v6 = vmul.f32 %v8085_v58, %v17232_v10 }
0x2511   :  { %v8087_v32 = vpop.permute.xlu0 %8086  ;;  %v8089_v1 = vpop.permute.xlu1 %8088 }
0x2512   :  { %v8133_v18 = vmul.f32 %v8087_v32, %v17232_v10  ;;  %v8134_v19 = vmul.f32 %v8089_v1, %v17232_v10 }
0x2513   :  { %v10989_v57 = vpop.f32.mrf.mxu1 }
0x2514   :  { %v8046_v33 = vadd.f32 %v10989_v57, %v9864_v8 }
0x2515   :  { %v8037_v2 = vpop.f32.mrf.mxu1  ;;  %v8091_v13 = vpop.permute.xlu0 %8090 }
0x2516   :  { %v8038_v5 = vadd.f32 %v9864_v8, %v8037_v2  ;;  %v8135_v44 = vmul.f32 %v8091_v13, %v17232_v10 }
0x2517   :  { %v10990_v14 = vpop.f32.mrf.mxu1 }
0x2518   :  { %8100 = vrot.lane.b32.xlu1 %v8038_v5, %s12224_s22  ;;  %v8049_v52 = vadd.f32 %v10990_v14, %v9864_v8  ;;  %v17238_v5 = vld [vmem:[#allocation36_spill] sm:$0xff] }
0x2519   :  { %v8040_v59 = vpop.f32.mrf.mxu1 }
0x251a   :  { %v8041_v28 = vadd.f32 %v9864_v8, %v8040_v59 }
0x251c   :  { %v10993_v61 = vpop.f32.mrf.mxu1  ;;  %8102 = vrot.lane.b32.xlu0 %v8041_v28, %s12224_s22  ;;  %8104 = vrot.lane.b32.xlu1 %v8046_v33, %s12224_s22  ;;  %v17239_v33 = vld [vmem:[#allocation34_spill] sm:$0xff] }
0x251d   :  { %v8062_v16 = vadd.f32 %v10993_v61, %v9864_v8 }
0x251e   :  { %v8053_v40 = vpop.f32.mrf.mxu1 }
0x251f   :  { %v8054_v45 = vadd.f32 %v9864_v8, %v8053_v40 }
0x2520   :  { %v10994_v49 = vpop.f32.mrf.mxu1  ;;  %8106 = vrot.lane.b32.xlu0 %v8049_v52, %s12224_s22 }
0x2521   :  { %8108 = vrot.lane.b32.xlu1 %v8054_v45, %s12224_s22  ;;  %v8065_v31 = vadd.f32 %v10994_v49, %v9864_v8  ;;  %v17240_v45 = vld [vmem:[#allocation45_spill] sm:$0xff] }
0x2522   :  { %v8056_v3 = vpop.f32.mrf.mxu1 }
0x2523   :  { %v8057_v47 = vadd.f32 %v9864_v8, %v8056_v3  ;;  %v17241_v3 = vld [vmem:[#allocation43_spill] sm:$0xff] }
0x2525   :  { %8110 = vrot.lane.b32.xlu0 %v8057_v47, %s12224_s22  ;;  %8112 = vrot.lane.b32.xlu1 %v8062_v16, %s12224_s22  ;;  %v8093_v26 = vpop.permute.xlu1 %8092 }
0x2526   :  { %v8136_v17 = vmul.f32 %v8093_v26, %v17232_v10 }
0x2529   :  { %8114 = vrot.lane.b32.xlu0 %v8065_v31, %s12224_s22  ;;  %8164 = vrot.lane.b32.xlu1 %v8132_v6, %s12224_s22  ;;  %v8095_v23 = vpop.permute.xlu0 %8094  ;;  %v8097_v38 = vpop.permute.xlu1 %8096  ;;  %v17242_v31 = vld [vmem:[#allocation33_spill] sm:$0xff] }
0x252a   :  { %v8137_v48 = vmul.f32 %v8095_v23, %v17232_v10  ;;  %v8138_v22 = vmul.f32 %v8097_v38, %v17232_v10  ;;  %v17243_v23 = vld [vmem:[#allocation35_spill] sm:$0xff] }
0x252d   :  { %8166 = vrot.lane.b32.xlu0 %v8133_v18, %s12224_s22  ;;  %8168 = vrot.lane.b32.xlu1 %v8134_v19, %s12224_s22  ;;  %v8099_v4 = vpop.permute.xlu0 %8098 }
0x252e   :  { %v8139_v0 = vmul.f32 %v8099_v4, %v17232_v10 }
0x2531   :  { %8170 = vrot.lane.b32.xlu0 %v8135_v44, %s12224_s22  ;;  %8172 = vrot.lane.b32.xlu1 %v8136_v17, %s12224_s22  ;;  %v17244_v17 = vld [vmem:[#allocation48_spill] sm:$0xff] }
0x2535   :  { %8174 = vrot.lane.b32.xlu0 %v8137_v48, %s12224_s22  ;;  %8176 = vrot.lane.b32.xlu1 %v8138_v22, %s12224_s22 }
0x2539   :  { %8178 = vrot.lane.b32.xlu0 %v8139_v0, %s12224_s22  ;;  %v17245_v0 = vld [vmem:[#allocation50_spill] sm:$0xff] }
0x258a   :  { %v8101_v34 = vpop.permute.xlu1 %8100 }
0x258b   :  { %v8140_v42 = vmul.f32 %v8101_v34, %v17233_v62 }
0x258d   :  { %8180 = vrot.lane.b32.xlu1 %v8140_v42, %s12224_s22 }
0x258e   :  { %v8103_v20 = vpop.permute.xlu0 %8102  ;;  %v8105_v56 = vpop.permute.xlu1 %8104 }
0x258f   :  { %v8141_v21 = vmul.f32 %v8103_v20, %v17233_v62  ;;  %v8142_v24 = vmul.f32 %v8105_v56, %v17233_v62  ;;  %v17246_v20 = vld [vmem:[#allocation39_spill] sm:$0xff] }
0x2591   :  { %8182 = vrot.lane.b32.xlu0 %v8141_v21, %s12224_s22  ;;  %8184 = vrot.lane.b32.xlu1 %v8142_v24, %s12224_s22 }
0x2592   :  { %v8107_v60 = vpop.permute.xlu0 %8106 }
0x2593   :  { %v8143_v50 = vmul.f32 %v8107_v60, %v17233_v62  ;;  %v8109_v7 = vpop.permute.xlu1 %8108 }
0x2594   :  { %v8144_v11 = vmul.f32 %v8109_v7, %v17233_v62  ;;  %v17247_v7 = vld [vmem:[#allocation47_spill] sm:$0xff] }
0x2595   :  { %8186 = vrot.lane.b32.xlu0 %v8143_v50, %s12224_s22 }
0x2596   :  { %8188 = vrot.lane.b32.xlu1 %v8144_v11, %s12224_s22 }
0x2597   :  { %v8111_v54 = vpop.permute.xlu0 %8110  ;;  %v8113_v51 = vpop.permute.xlu1 %8112 }
0x2598   :  { %v8145_v29 = vmul.f32 %v8111_v54, %v17233_v62  ;;  %v8146_v63 = vmul.f32 %v8113_v51, %v17233_v62  ;;  %v17248_v54 = vld [vmem:[#allocation41_spill] sm:$0xff] }
0x259a   :  { %8190 = vrot.lane.b32.xlu0 %v8145_v29, %s12224_s22  ;;  %8192 = vrot.lane.b32.xlu1 %v8146_v63, %s12224_s22 }
0x259b   :  { %v8115_v8 = vpop.permute.xlu0 %8114  ;;  %v8165_v46 = vpop.permute.xlu1 %8164 }
0x259c   :  { %v8147_v9 = vmul.f32 %v8115_v8, %v17233_v62  ;;  %v16105_v55 = vadd.f32 %v8165_v46, %v17235_v25 }
0x259e   :  { %8194 = vrot.lane.b32.xlu0 %v8147_v9, %s12224_s22  ;;  %v8228_v2 = vsel %vm302_vm2, %v16105_v55, 0.0  ;;  %v17249_v9 = vld [vmem:[#allocation49_spill] sm:$0xff] }
0x259f   :  { %v8167_v43 = vpop.permute.xlu0 %8166  ;;  %v8169_v27 = vpop.permute.xlu1 %8168 }
0x25a0   :  { %v16102_v39 = vadd.f32 %v8167_v43, %v17234_v30  ;;  %v16108_v53 = vadd.f32 %v8169_v27, %v17236_v15 }
0x25a2   :  { %v8231_v12 = vsel %vm302_vm2, %v16102_v39, 0.0  ;;  %v8234_v59 = vsel %vm302_vm2, %v16108_v53, 0.0 }
0x25a3   :  { %v8171_v37 = vpop.permute.xlu0 %8170  ;;  %v8173_v41 = vpop.permute.xlu1 %8172 }
0x25a4   :  { %v16113_v57 = vadd.f32 %v8171_v37, %v17237_v36  ;;  %v16118_v14 = vadd.f32 %v8173_v41, %v17238_v5 }
0x25a6   :  { %v8237_v52 = vsel %vm302_vm2, %v16113_v57, 0.0  ;;  %v8240_v49 = vsel %vm302_vm2, %v16118_v14, 0.0 }
0x25a7   :  { %v8175_v35 = vpop.permute.xlu0 %8174  ;;  %v8177_v61 = vpop.permute.xlu1 %8176 }
0x25a8   :  { %v16123_v28 = vadd.f32 %v8175_v35, %v17239_v33  ;;  %v16128_v58 = vadd.f32 %v8177_v61, %v17240_v45 }
0x25aa   :  { %v8243_v47 = vsel %vm302_vm2, %v16123_v28, 0.0  ;;  %v8246_v32 = vsel %vm302_vm2, %v16128_v58, 0.0 }
0x25ab   :  { %v8179_v40 = vpop.permute.xlu0 %8178 }
0x25ac   :  { %v16133_v16 = vadd.f32 %v8179_v40, %v17241_v3 }
0x25ae   :  { %v8249_v1 = vsel %vm302_vm2, %v16133_v16, 0.0 }
0x25bd   :  { %8232 = vadd.xlane.f32.xlu0 %v8231_v12 }
0x25be   :  { %8229 = vadd.xlane.f32.xlu1 %v8228_v2 }
0x25c1   :  { %8235 = vadd.xlane.f32.xlu0 %v8234_v59 }
0x25c2   :  { %8238 = vadd.xlane.f32.xlu1 %v8237_v52 }
0x25c5   :  { %8241 = vadd.xlane.f32.xlu0 %v8240_v49 }
0x25c6   :  { %8244 = vadd.xlane.f32.xlu1 %v8243_v47 }
0x25c9   :  { %8247 = vadd.xlane.f32.xlu0 %v8246_v32 }
0x25ca   :  { %8250 = vadd.xlane.f32.xlu1 %v8249_v1 }
0x25ff   :  { %v8181_v6 = vpop.permute.xlu1 %8180 }
0x2600   :  { %v16142_v13 = vadd.f32 %v8181_v6, %v17242_v31 }
0x2602   :  { %v8252_v26 = vsel %vm302_vm2, %v16142_v13, 0.0 }
0x2603   :  { %v8183_v18 = vpop.permute.xlu0 %8182  ;;  %8253 = vadd.xlane.f32.xlu0 %v8252_v26  ;;  %v8185_v19 = vpop.permute.xlu1 %8184 }
0x2604   :  { %v16147_v44 = vadd.f32 %v8183_v18, %v17243_v23  ;;  %v16150_v38 = vadd.f32 %v8185_v19, %v17244_v17 }
0x2606   :  { %v8255_v48 = vsel %vm302_vm2, %v16147_v44, 0.0  ;;  %v8258_v22 = vsel %vm302_vm2, %v16150_v38, 0.0 }
0x2607   :  { %v8187_v4 = vpop.permute.xlu0 %8186  ;;  %8256 = vadd.xlane.f32.xlu1 %v8255_v48  ;;  %8259 = vadd.xlane.f32.xlu0 %v8258_v22 }
0x2608   :  { %v16157_v34 = vadd.f32 %v8187_v4, %v17245_v0  ;;  %v8189_v42 = vpop.permute.xlu1 %8188 }
0x2609   :  { %v16160_v56 = vadd.f32 %v8189_v42, %v17246_v20 }
0x260a   :  { %v8261_v21 = vsel %vm302_vm2, %v16157_v34, 0.0 }
0x260b   :  { %8262 = vadd.xlane.f32.xlu1 %v8261_v21  ;;  %v8264_v24 = vsel %vm302_vm2, %v16160_v56, 0.0 }
0x260c   :  { %v8191_v60 = vpop.permute.xlu0 %8190  ;;  %8265 = vadd.xlane.f32.xlu0 %v8264_v24  ;;  %v8193_v50 = vpop.permute.xlu1 %8192 }
0x260d   :  { %v16167_v11 = vadd.f32 %v8191_v60, %v17247_v7  ;;  %v16170_v51 = vadd.f32 %v8193_v50, %v17248_v54 }
0x260f   :  { %v8267_v29 = vsel %vm302_vm2, %v16167_v11, 0.0  ;;  %v8270_v63 = vsel %vm302_vm2, %v16170_v51, 0.0 }
0x2610   :  { %v8195_v8 = vpop.permute.xlu0 %8194  ;;  %8268 = vadd.xlane.f32.xlu1 %v8267_v29  ;;  %8271 = vadd.xlane.f32.xlu0 %v8270_v63 }
0x2611   :  { %v16177_v46 = vadd.f32 %v8195_v8, %v17249_v9 }
0x2613   :  { %v8273_v43 = vsel %vm302_vm2, %v16177_v46, 0.0 }
0x2614   :  { %8274 = vadd.xlane.f32.xlu1 %v8273_v43 }
0x2646   :  { %v8233_v27 = vpop.xlane.xlu0 %8232 }
0x2647   :  { %v8277_v37 = vmul.f32 0.03125, %v8233_v27  ;;  %v8230_v30 = vpop.xlane.xlu1 %8229 }
0x2648   :  { %v8276_v25 = vmul.f32 0.03125, %v8230_v30 }
0x2649   :  { %v16182_v41 = vsub.f32 %v16102_v39, %v8277_v37 }
0x264a   :  { %v16185_v15 = vsub.f32 %v16105_v55, %v8276_v25  ;;  %v8236_v35 = vpop.xlane.xlu0 %8235 }
0x264b   :  { %v8278_v12 = vmul.f32 0.03125, %v8236_v35  ;;  %v8239_v36 = vpop.xlane.xlu1 %8238  ;;  %v8309_v2 = vmul.f32 %v16182_v41, %v16182_v41 }
0x264c   :  { %v8279_v5 = vmul.f32 0.03125, %v8239_v36  ;;  %v8308_v59 = vmul.f32 %v16185_v15, %v16185_v15 }
0x264d   :  { %v16192_v33 = vsub.f32 %v16108_v53, %v8278_v12  ;;  %v8327_v61 = vsel %vm302_vm2, %v8309_v2, 0.0 }
0x264e   :  { %v16196_v52 = vsub.f32 %v16113_v57, %v8279_v5  ;;  %8328 = vadd.xlane.f32.xlu1 %v8327_v61  ;;  %v8242_v40 = vpop.xlane.xlu0 %8241  ;;  %v8324_v45 = vsel %vm302_vm2, %v8308_v59, 0.0 }
0x264f   :  { %v8280_v49 = vmul.f32 0.03125, %v8242_v40  ;;  %8325 = vadd.xlane.f32.xlu0 %v8324_v45  ;;  %v8245_v3 = vpop.xlane.xlu1 %8244  ;;  %v8310_v47 = vmul.f32 %v16192_v33, %v16192_v33 }
0x2650   :  { %v8281_v32 = vmul.f32 0.03125, %v8245_v3  ;;  %v8311_v1 = vmul.f32 %v16196_v52, %v16196_v52 }
0x2651   :  { %v16204_v6 = vsub.f32 %v16118_v14, %v8280_v49  ;;  %v8330_v31 = vsel %vm302_vm2, %v8310_v47, 0.0 }
0x2652   :  { %v16208_v26 = vsub.f32 %v16123_v28, %v8281_v32  ;;  %v8248_v18 = vpop.xlane.xlu0 %8247  ;;  %v8333_v19 = vsel %vm302_vm2, %v8311_v1, 0.0 }
0x2653   :  { %v8282_v23 = vmul.f32 0.03125, %v8248_v18  ;;  %8331 = vadd.xlane.f32.xlu0 %v8330_v31  ;;  %8334 = vadd.xlane.f32.xlu1 %v8333_v19  ;;  %v8251_v17 = vpop.xlane.xlu1 %8250  ;;  %v8312_v48 = vmul.f32 %v16204_v6, %v16204_v6 }
0x2654   :  { %v8283_v22 = vmul.f32 0.03125, %v8251_v17  ;;  %v8313_v4 = vmul.f32 %v16208_v26, %v16208_v26 }
0x2655   :  { %v16216_v0 = vsub.f32 %v16128_v58, %v8282_v23  ;;  %v8336_v42 = vsel %vm302_vm2, %v8312_v48, 0.0 }
0x2656   :  { %v16220_v20 = vsub.f32 %v16133_v16, %v8283_v22  ;;  %v8339_v21 = vsel %vm302_vm2, %v8313_v4, 0.0 }
0x2657   :  { %8337 = vadd.xlane.f32.xlu0 %v8336_v42  ;;  %8340 = vadd.xlane.f32.xlu1 %v8339_v21  ;;  %v8314_v24 = vmul.f32 %v16216_v0, %v16216_v0 }
0x2658   :  { %v8315_v60 = vmul.f32 %v16220_v20, %v16220_v20 }
0x2659   :  { %v8342_v50 = vsel %vm302_vm2, %v8314_v24, 0.0 }
0x265a   :  { %v8345_v7 = vsel %vm302_vm2, %v8315_v60, 0.0 }
0x265b   :  { %8343 = vadd.xlane.f32.xlu0 %v8342_v50  ;;  %8346 = vadd.xlane.f32.xlu1 %v8345_v7 }
0x268c   :  { %v8254_v54 = vpop.xlane.xlu0 %8253 }
0x268d   :  { %v8284_v29 = vmul.f32 0.03125, %v8254_v54 }
0x268f   :  { %v16230_v43 = vsub.f32 %v16142_v13, %v8284_v29 }
0x2690   :  { %v8260_v63 = vpop.xlane.xlu0 %8259  ;;  %v8257_v8 = vpop.xlane.xlu1 %8256 }
0x2691   :  { %v8286_v9 = vmul.f32 0.03125, %v8260_v63  ;;  %v8285_v37 = vmul.f32 0.03125, %v8257_v8  ;;  %v8316_v59 = vmul.f32 %v16230_v43, %v16230_v43  ;;  %v11455_v63 = vld [vmem:[%s16862_s10 + $0x18] sm:$0xff]   ;;  %v11456_v8 = vld [vmem:[%s16862_s10 + $0x10] sm:$0xff]  }
0x2692   :  { %10995 = vmatprep.subr.bf16.mxu0 %v11455_v63 }
0x2693   :  { %v16233_v27 = vsub.f32 %v16150_v38, %v8286_v9  ;;  %v16238_v36 = vsub.f32 %v16147_v44, %v8285_v37  ;;  %v8348_v47 = vsel %vm302_vm2, %v8316_v59, 0.0  ;;  %10996 = vmatpush3.bf16.msra.mxu0 %v11455_v63  ;;  %v17250_v9 = vmov 0.0  }
0x2694   :  { %v8263_v30 = vpop.xlane.xlu1 %8262  ;;  %10997 = vmatprep.subr.bf16.mxu0 %v11456_v8 }
0x2695   :  { %v8287_v25 = vmul.f32 0.03125, %v8263_v30  ;;  %v8266_v35 = vpop.xlane.xlu0 %8265  ;;  %v8318_v12 = vmul.f32 %v16233_v27, %v16233_v27  ;;  %v8317_v1 = vmul.f32 %v16238_v36, %v16238_v36 }
0x2696   :  { %v8288_v61 = vmul.f32 0.03125, %v8266_v35 }
0x2697   :  { %v16241_v2 = vsub.f32 %v16157_v34, %v8287_v25  ;;  %v8354_v5 = vsel %vm302_vm2, %v8318_v12, 0.0  ;;  %v8351_v22 = vsel %vm302_vm2, %v8317_v1, 0.0  ;;  %10998 = vmatpush3.bf16.msra.mxu0 %v11456_v8 }
0x2698   :  { %8355 = vadd.xlane.f32.xlu0 %v8354_v5  ;;  %v16253_v31 = vsub.f32 %v16160_v56, %v8288_v61  ;;  %11047 = vmatprep.subr.bf16.mxu0 %v17250_v9 }
0x2699   :  { %v8272_v40 = vpop.xlane.xlu0 %8271  ;;  %v8269_v45 = vpop.xlane.xlu1 %8268  ;;  %v8319_v49 = vmul.f32 %v16241_v2, %v16241_v2 }
0x269a   :  { %v8290_v3 = vmul.f32 0.03125, %v8272_v40  ;;  %v8289_v19 = vmul.f32 0.03125, %v8269_v45  ;;  %v8320_v24 = vmul.f32 %v16253_v31, %v16253_v31 }
0x269b   :  { %v8357_v32 = vsel %vm302_vm2, %v8319_v49, 0.0 }
0x269c   :  { %v16256_v18 = vsub.f32 %v16170_v51, %v8290_v3  ;;  %8349 = vadd.xlane.f32.xlu0 %v8348_v47  ;;  %8358 = vadd.xlane.f32.xlu1 %v8357_v32  ;;  %v16262_v4 = vsub.f32 %v16167_v11, %v8289_v19  ;;  %v8360_v50 = vsel %vm302_vm2, %v8320_v24, 0.0 }
0x269d   :  { %v8275_v23 = vpop.xlane.xlu1 %8274 }
0x269e   :  { %v8291_v17 = vmul.f32 0.03125, %v8275_v23  ;;  %v8322_v48 = vmul.f32 %v16256_v18, %v16256_v18  ;;  %v8321_v54 = vmul.f32 %v16262_v4, %v16262_v4 }
0x26a0   :  { %v16265_v42 = vsub.f32 %v16177_v46, %v8291_v17  ;;  %8352 = vadd.xlane.f32.xlu1 %v8351_v22  ;;  %v8366_v21 = vsel %vm302_vm2, %v8322_v48, 0.0  ;;  %v8363_v29 = vsel %vm302_vm2, %v8321_v54, 0.0 }
0x26a1   :  { %8367 = vadd.xlane.f32.xlu0 %v8366_v21 }
0x26a2   :  { %v8323_v60 = vmul.f32 %v16265_v42, %v16265_v42 }
0x26a4   :  { %v8369_v7 = vsel %vm302_vm2, %v8323_v60, 0.0  ;;  %v17251_v60 = vld [vmem:[#allocation4_spill] sm:$0xff] }
0x26a5   :  { %8361 = vadd.xlane.f32.xlu0 %v8360_v50  ;;  %8370 = vadd.xlane.f32.xlu1 %v8369_v7  ;;  %v17252_v50 = vld [vmem:[#allocation40_spill] sm:$0xff] }
0x26a6   :  { %v4958_v7 = vrot.slane %v17252_v50, %v17251_v60 }
0x26a9   :  { %8364 = vadd.xlane.f32.xlu1 %v8363_v29  ;;  %v4966_v29 = vrot.slane %v4958_v7, %v17251_v60 }
0x26ba   :  { %8456 = vrot.lane.b32.xlu1 %v17233_v62, %s12233_s1 }
0x26bb   :  { %8454 = vrot.lane.b32.xlu0 %v17232_v10, %s12233_s1 }
0x26d7   :  { %v8329_v30 = vpop.xlane.xlu1 %8328 }
0x26d8   :  { %v8326_v37 = vpop.xlane.xlu0 %8325  ;;  %v8373_v12 = vmul.f32 0.03125, %v8329_v30 }
0x26d9   :  { %v8372_v59 = vmul.f32 0.03125, %v8326_v37 }
0x26da   :  { %v8389_v49 = vadd.f32 1e-06, %v8373_v12 }
0x26db   :  { %v8388_v47 = vadd.f32 1e-06, %v8372_v59 }
0x26dc   :  { %v8332_v25 = vpop.xlane.xlu0 %8331  ;;  %v8335_v35 = vpop.xlane.xlu1 %8334  ;;  %12117 = vrsqrt.f32 %v8389_v49 }
0x26dd   :  { %v8374_v61 = vmul.f32 0.03125, %v8332_v25  ;;  %v8375_v45 = vmul.f32 0.03125, %v8335_v35  ;;  %12119 = vrsqrt.f32 %v8388_v47 }
0x26df   :  { %v8390_v1 = vadd.f32 1e-06, %v8374_v61  ;;  %v8391_v62 = vadd.f32 1e-06, %v8375_v45  ;;  %v17253_v45 = vld [vmem:[#allocation2_spill] sm:$0xff] }
0x26e0   :  { %v8338_v5 = vpop.xlane.xlu0 %8337  ;;  %v8341_v40 = vpop.xlane.xlu1 %8340  ;;  %v16292_v49 = vrot.slane %v4966_v29, %v17253_v45 }
0x26e1   :  { %v8376_v3 = vmul.f32 0.03125, %v8338_v5  ;;  %v8377_v32 = vmul.f32 0.03125, %v8341_v40  ;;  %12121 = vrsqrt.f32 %v8390_v1 }
0x26e2   :  { %12123 = vrsqrt.f32 %v8391_v62 }
0x26e3   :  { %v8392_v23 = vadd.f32 1e-06, %v8376_v3  ;;  %v8393_v17 = vadd.f32 1e-06, %v8377_v32 }
0x26e4   :  { %v8344_v19 = vpop.xlane.xlu0 %8343  ;;  %v8347_v10 = vpop.xlane.xlu1 %8346 }
0x26e5   :  { %v8378_v48 = vmul.f32 0.03125, %v8344_v19  ;;  %v8379_v22 = vmul.f32 0.03125, %v8347_v10  ;;  %12125 = vrsqrt.f32 %v8392_v23  ;;  %v4959_v10 = vcombine.high %v4958_v7, %v4958_v7 }
0x26e6   :  { %12127 = vrsqrt.f32 %v8393_v17 }
0x26e7   :  { %v8394_v21 = vadd.f32 1e-06, %v8378_v48  ;;  %v8395_v24 = vadd.f32 1e-06, %v8379_v22 }
0x26e9   :  { %12129 = vrsqrt.f32 %v8394_v21  ;;  %v12118_v30 = vpop.eup %12117  ;;  %v8436_v21 = vadd.f32 1.0, %v16292_v49 }
0x26ea   :  { %12131 = vrsqrt.f32 %v8395_v24  ;;  %v12120_v12 = vpop.eup %12119  ;;  %v8421_v22 = vmul.f32 %v12118_v30, %v16182_v41  ;;  %v4973_v41 = vrot.slane %v4959_v10, %v17251_v60 }
0x26eb   :  { %v8420_v48 = vmul.f32 %v12120_v12, %v16185_v15 }
0x26ed   :  { %v8438_v30 = vmul.f32 %v8436_v21, %v8420_v48 }
0x26ee   :  { %v12122_v5 = vpop.eup %12121 }
0x26ef   :  { %v12124_v40 = vpop.eup %12123  ;;  %v8422_v24 = vmul.f32 %v12122_v5, %v16192_v33 }
0x26f0   :  { %v8423_v50 = vmul.f32 %v12124_v40, %v16196_v52 }
0x26f1   :  { %v8440_v33 = vmul.f32 %v8436_v21, %v8422_v24 }
0x26f2   :  { %v12126_v32 = vpop.eup %12125  ;;  %v8441_v5 = vmul.f32 %v8436_v21, %v8423_v50  ;;  %v11457_v50 = vld [vmem:[%s16864_s12 + $0x8] sm:$0xff]  }
0x26f3   :  { %v12128_v62 = vpop.eup %12127 }
0x26f4   :  { %v8425_v7 = vmul.f32 %v12128_v62, %v16208_v26 }
0x2721   :  { %v8356_v54 = vpop.xlane.xlu0 %8355 }
0x2722   :  { %v8382_v63 = vmul.f32 0.03125, %v8356_v54 }
0x2724   :  { %v8398_v3 = vadd.f32 1e-06, %v8382_v63 }
0x2725   :  { %v8350_v8 = vpop.xlane.xlu0 %8349  ;;  %v8359_v37 = vpop.xlane.xlu1 %8358 }
0x2726   :  { %v8380_v25 = vmul.f32 0.03125, %v8350_v8  ;;  %v8383_v35 = vmul.f32 0.03125, %v8359_v37  ;;  %v8424_v8 = vmul.f32 %v12126_v32, %v16204_v6  ;;  %v12130_v37 = vpop.eup %12129 }
0x2727   :  { %v12132_v12 = vpop.eup %12131 }
0x2728   :  { %v8396_v59 = vadd.f32 1e-06, %v8380_v25  ;;  %v8399_v61 = vadd.f32 1e-06, %v8383_v35  ;;  %v8439_v35 = vmul.f32 %v8436_v21, %v8421_v22  ;;  %v8442_v6 = vmul.f32 %v8436_v21, %v8424_v8 }
0x2729   :  { %v8353_v47 = vpop.xlane.xlu1 %8352 }
0x272a   :  { %12133 = vrsqrt.f32 %v8396_v59  ;;  %v8381_v1 = vmul.f32 0.03125, %v8353_v47  ;;  %v8368_v19 = vpop.xlane.xlu0 %8367  ;;  %v8443_v47 = vmul.f32 %v8436_v21, %v8425_v7 }
0x272b   :  { %12135 = vrsqrt.f32 %v8399_v61  ;;  %v8386_v23 = vmul.f32 0.03125, %v8368_v19  ;;  %v8426_v61 = vmul.f32 %v12130_v37, %v16216_v0  ;;  %v8427_v19 = vmul.f32 %v12132_v12, %v16220_v20 }
0x272c   :  { %v8397_v17 = vadd.f32 1e-06, %v8381_v1  ;;  %12137 = vrsqrt.f32 %v8398_v3  ;;  %v16305_v0 = vrot.slane %v4973_v41, %v17253_v45 }
0x272d   :  { %v8402_v54 = vadd.f32 1e-06, %v8386_v23  ;;  %v8444_v8 = vmul.f32 %v8436_v21, %v8426_v61  ;;  %v8445_v7 = vmul.f32 %v8436_v21, %v8427_v19 }
0x272e   :  { %12139 = vrsqrt.f32 %v8397_v17  ;;  %v8362_v29 = vpop.xlane.xlu0 %8361  ;;  %v8371_v63 = vpop.xlane.xlu1 %8370 }
0x272f   :  { %v8384_v25 = vmul.f32 0.03125, %v8362_v29  ;;  %v8387_v15 = vmul.f32 0.03125, %v8371_v63  ;;  %12141 = vrsqrt.f32 %v8402_v54 }
0x2731   :  { %v8400_v52 = vadd.f32 1e-06, %v8384_v25  ;;  %v8403_v59 = vadd.f32 1e-06, %v8387_v15  ;;  %v8437_v25 = vadd.f32 1.0, %v16305_v0  ;;  %v11458_v15 = vld [vmem:[%s16864_s12] sm:$0xff]  }
0x2732   :  { %v8455_v40 = vpop.permute.xlu0 %8454  ;;  %v8365_v3 = vpop.xlane.xlu1 %8364 }
0x2733   :  { %12143 = vrsqrt.f32 %v8400_v52  ;;  %v8462_v26 = vadd.f32 %v8455_v40, %v8440_v33  ;;  %v8463_v32 = vadd.f32 %v8455_v40, %v8441_v5  ;;  %v8385_v1 = vmul.f32 0.03125, %v8365_v3 }
0x2734   :  { %12145 = vrsqrt.f32 %v8403_v59  ;;  %v8460_v62 = vadd.f32 %v8455_v40, %v8438_v30  ;;  %v8461_v23 = vadd.f32 %v8455_v40, %v8439_v35  ;;  %v8464_v48 = vadd.f32 %v8455_v40, %v8442_v6 }
0x2735   :  { %v8483_v10 = vpack.c.bf16 %v8463_v32, %v8462_v26  ;;  %v8401_v17 = vadd.f32 1e-06, %v8385_v1  ;;  %v8465_v22 = vadd.f32 %v8455_v40, %v8443_v47  ;;  %v8466_v35 = vadd.f32 %v8455_v40, %v8444_v8  ;;  %v11460_v8 = vld [vmem:[%s16863_s11 + $0x70] sm:$0xff]  }
0x2736   :  { %v8482_v24 = vpack.c.bf16 %v8461_v23, %v8460_v62  ;;  %v8467_v12 = vadd.f32 %v8455_v40, %v8445_v7  ;;  %v8457_v59 = vpop.permute.xlu1 %8456  ;;  %v11461_v7 = vld [vmem:[%s16863_s11 + $0x68] sm:$0xff]  }
0x2737   :  { %v12134_v54 = vpop.eup %12133  ;;  %12147 = vrsqrt.f32 %v8401_v17  ;;  %v8484_v20 = vpack.c.bf16 %v8465_v22, %v8464_v48 }
0x2738   :  { %v12136_v29 = vpop.eup %12135  ;;  %10999 = vmatprep.mubr.msk.bf16.mxu0 %vm302_vm2, %v8482_v24  ;;  %v8428_v63 = vmul.f32 %v12134_v54, %v16230_v43  ;;  %v8485_v61 = vpack.c.bf16 %v8467_v12, %v8466_v35 }
0x2739   :  { %11000 = vmatmul.mubr.msk.bf16.vlgmr.msra.gmra.mxu0 %vm302_vm2, %v8483_v10  ;;  %v12138_v37 = vpop.eup %12137  ;;  %v8431_v30 = vmul.f32 %v12136_v29, %v16241_v2 }
0x273a   :  { %11003 = vmatprep.mubr.msk.bf16.mxu0 %vm302_vm2, %v8484_v20  ;;  %11048 = vmatpush3.bf16.msra.mxu0 %v11457_v50  ;;  %v8446_v21 = vmul.f32 %v8437_v25, %v8428_v63  ;;  %v8430_v33 = vmul.f32 %v12138_v37, %v16233_v27  ;;  %v11463_v37 = vld [vmem:[%s16863_s11 + $0x58] sm:$0xff]  }
0x273b   :  { %v12140_v41 = vpop.eup %12139  ;;  %11049 = vmatprep.subr.bf16.mxu0 %v17250_v9  ;;  %v8449_v3 = vmul.f32 %v8437_v25, %v8431_v30  ;;  %v16362_v30 = vld [vmem:[%s16855_s14 + $0xf] ss:$0 sm:$0xff] }
0x273c   :  { %v8429_v43 = vmul.f32 %v12140_v41, %v16238_v36  ;;  %v12142_v52 = vpop.eup %12141  ;;  %v8468_v47 = vadd.f32 %v8457_v59, %v8446_v21  ;;  %v8448_v2 = vmul.f32 %v8437_v25, %v8430_v33  ;;  %v11466_v41 = vld [vmem:[%s16863_s11 + $0x40] sm:$0xff]  }
0x273d   :  { %v8471_v19 = vadd.f32 %v8457_v59, %v8449_v3  ;;  %v8434_v62 = vmul.f32 %v12142_v52, %v16256_v18  ;;  %v17254_v18 = vld [vmem:[#allocation13_spill] sm:$0xff] }
0x273e   :  { %v8447_v5 = vmul.f32 %v8437_v25, %v8429_v43  ;;  %11050 = vmatpush3.bf16.msra.mxu0 %v11458_v15  ;;  %v8470_v23 = vadd.f32 %v8457_v59, %v8448_v2  ;;  %v11465_v15 = vld [vmem:[%s16863_s11 + $0x48] sm:$0xff]  }
0x273f   :  { %v8452_v54 = vmul.f32 %v8437_v25, %v8434_v62 }
0x2740   :  { %v12144_v6 = vpop.eup %12143  ;;  %v8469_v26 = vadd.f32 %v8457_v59, %v8447_v5  ;;  %v8487_v48 = vpack.c.bf16 %v8471_v19, %v8470_v23 }
0x2741   :  { %v12146_v32 = vpop.eup %12145  ;;  %11004 = vmatmul.mubr.msk.bf16.gmra.mxu0 %vm302_vm2, %v8485_v61  ;;  %v8432_v40 = vmul.f32 %v12144_v6, %v16253_v31  ;;  %v8474_v20 = vadd.f32 %v8457_v59, %v8452_v54 }
0x2742   :  { %v8486_v1 = vpack.c.bf16 %v8469_v26, %v8468_v47  ;;  %v8435_v36 = vmul.f32 %v12146_v32, %v16265_v42 }
0x2743   :  { %v8450_v17 = vmul.f32 %v8437_v25, %v8432_v40 }
0x2744   :  { %v12148_v27 = vpop.eup %12147  ;;  %11007 = vmatprep.mubr.msk.bf16.mxu0 %vm302_vm2, %v8486_v1  ;;  %v8453_v24 = vmul.f32 %v8437_v25, %v8435_v36 }
0x2745   :  { %v8433_v10 = vmul.f32 %v12148_v27, %v16262_v4  ;;  %v8472_v50 = vadd.f32 %v8457_v59, %v8450_v17  ;;  %v11459_v4 = vld [vmem:[%s16863_s11 + $0x78] sm:$0xff]  }
0x2746   :  { %v8475_v42 = vadd.f32 %v8457_v59, %v8453_v24  ;;  %11015 = vmatprep.subr.bf16.mxu1 %v11459_v4 }
0x2747   :  { %v8451_v22 = vmul.f32 %v8437_v25, %v8433_v10  ;;  %11016 = vmatpush3.bf16.msra.mxu1 %v11459_v4  ;;  %v11464_v25 = vld [vmem:[%s16863_s11 + $0x50] sm:$0xff]  }
0x2748   :  { %v8489_v63 = vpack.c.bf16 %v8475_v42, %v8474_v20  ;;  %11017 = vmatprep.subr.bf16.mxu1 %v11460_v8 }
0x2749   :  { %11008 = vmatmul.mubr.msk.bf16.gmra.mxu0 %vm302_vm2, %v8487_v48  ;;  %v8473_v31 = vadd.f32 %v8457_v59, %v8451_v22 }
0x274b   :  { %v8488_v29 = vpack.c.bf16 %v8473_v31, %v8472_v50  ;;  %11018 = vmatpush3.bf16.msra.mxu1 %v11460_v8 }
0x274c   :  { %11019 = vmatprep.subr.bf16.mxu1 %v11461_v7 }
0x274d   :  { %11011 = vmatprep.mubr.msk.bf16.mxu0 %vm302_vm2, %v8488_v29 }
0x274f   :  { %11020 = vmatpush3.bf16.msra.mxu1 %v11461_v7 }
0x2751   :  { %11012 = vmatmul.mubr.msk.bf16.gmra.mxu0 %vm302_vm2, %v8489_v63 }
0x2752   :  { %11051 = vmatprep.mubr.msk.bf16.mxu0 %vm12216_vm1, %v17250_v9  ;;  %v11462_v9 = vld [vmem:[%s16863_s11 + $0x60] sm:$0xff]  }
0x2753   :  { %11021 = vmatprep.subr.bf16.mxu1 %v11462_v9 }
0x2754   :  { %11022 = vmatpush3.bf16.msra.mxu1 %v11462_v9 }
0x2755   :  { %11023 = vmatprep.subr.bf16.mxu1 %v11463_v37 }
0x2758   :  { %11024 = vmatpush3.bf16.msra.mxu1 %v11463_v37 }
0x2759   :  { %11052 = vmatmul.mubr.msk.bf16.vlgmr.msra.gmra.mxu0 %vm302_vm2, %v17254_v18  ;;  %11025 = vmatprep.subr.bf16.mxu1 %v11464_v25 }
0x275c   :  { %11026 = vmatpush3.bf16.msra.mxu1 %v11464_v25 }
0x275d   :  { %11027 = vmatprep.subr.bf16.mxu1 %v11465_v15 }
0x2760   :  { %11028 = vmatpush3.bf16.msra.mxu1 %v11465_v15 }
0x2761   :  { %11029 = vmatprep.subr.bf16.mxu1 %v11466_v41 }
0x2764   :  { %11030 = vmatpush3.bf16.msra.mxu1 %v11466_v41 }
0x27f9   :  { %v11001_v35 = vpop.f32.mrf.mxu0 }
0x27fa   :  { %v16365_v12 = vadd.f32 %v11001_v35, %v16362_v30 }
0x27fb   :  { %v8566_v43 = vpop.f32.mrf.mxu0 }
0x27fc   :  { %v8647_v21 = vmul.f32 0.044715, %v16365_v12  ;;  %v16369_v33 = vadd.f32 %v16362_v30, %v8566_v43 }
0x27fd   :  { %v11002_v5 = vpop.f32.mrf.mxu0 }
0x27fe   :  { %v8663_v52 = vmul.f32 %v8647_v21, %v16365_v12  ;;  %v8645_v59 = vmul.f32 0.044715, %v16369_v33  ;;  %v16374_v61 = vadd.f32 %v11002_v5, %v16362_v30 }
0x27ff   :  { %v8569_v3 = vpop.f32.mrf.mxu0 }
0x2800   :  { %v8679_v6 = vmul.f32 %v8663_v52, %v16365_v12  ;;  %v8661_v47 = vmul.f32 %v8645_v59, %v16369_v33  ;;  %v8648_v26 = vmul.f32 0.044715, %v16374_v61  ;;  %v16380_v32 = vadd.f32 %v16362_v30, %v8569_v3 }
0x2801   :  { %v11005_v2 = vpop.f32.mrf.mxu0 }
0x2802   :  { %v8695_v40 = vadd.f32 %v8679_v6, %v16365_v12  ;;  %v8677_v1 = vmul.f32 %v8661_v47, %v16369_v33  ;;  %v8664_v36 = vmul.f32 %v8648_v26, %v16374_v61  ;;  %v16386_v19 = vadd.f32 %v11005_v2, %v16362_v30 }
0x2803   :  { %v8646_v27 = vmul.f32 0.044715, %v16380_v32  ;;  %v8582_v62 = vpop.f32.mrf.mxu0 }
0x2804   :  { %v8711_v23 = vmul.f32 0.7978846, %v8695_v40  ;;  %v8680_v10 = vmul.f32 %v8664_v36, %v16374_v61  ;;  %v8651_v17 = vmul.f32 0.044715, %v16386_v19  ;;  %v16392_v48 = vadd.f32 %v16362_v30, %v8582_v62 }
0x2805   :  { %v8662_v22 = vmul.f32 %v8646_v27, %v16380_v32  ;;  %v11006_v24 = vpop.f32.mrf.mxu0  ;;  %v8693_v50 = vadd.f32 %v8677_v1, %v16369_v33 }
0x2806   :  { %v8696_v31 = vadd.f32 %v8680_v10, %v16374_v61  ;;  %v8667_v54 = vmul.f32 %v8651_v17, %v16386_v19  ;;  %v8649_v29 = vmul.f32 0.044715, %v16392_v48  ;;  %12149 = vtanh.f32 %v8711_v23 }
0x2807   :  { %v8678_v42 = vmul.f32 %v8662_v22, %v16380_v32  ;;  %v16401_v20 = vadd.f32 %v11006_v24, %v16362_v30  ;;  %v8585_v63 = vpop.f32.mrf.mxu0  ;;  %v8709_v18 = vmul.f32 0.7978846, %v8693_v50 }
0x2808   :  { %v8712_v4 = vmul.f32 0.7978846, %v8696_v31  ;;  %v8683_v8 = vmul.f32 %v8667_v54, %v16386_v19  ;;  %v8665_v7 = vmul.f32 %v8649_v29, %v16392_v48  ;;  %v16406_v9 = vadd.f32 %v16362_v30, %v8585_v63 }
0x2809   :  { %v8652_v37 = vmul.f32 0.044715, %v16401_v20  ;;  %v11009_v25 = vpop.f32.mrf.mxu0  ;;  %v8694_v15 = vadd.f32 %v8678_v42, %v16380_v32  ;;  %12151 = vtanh.f32 %v8709_v18 }
0x280a   :  { %12153 = vtanh.f32 %v8712_v4  ;;  %v8699_v41 = vadd.f32 %v8683_v8, %v16386_v19  ;;  %v8681_v35 = vmul.f32 %v8665_v7, %v16392_v48  ;;  %v8650_v43 = vmul.f32 0.044715, %v16406_v9 }
0x280b   :  { %v8668_v21 = vmul.f32 %v8652_v37, %v16401_v20  ;;  %v16415_v5 = vadd.f32 %v11009_v25, %v16362_v30  ;;  %v8598_v52 = vpop.f32.mrf.mxu0  ;;  %v8710_v59 = vmul.f32 0.7978846, %v8694_v15 }
0x280c   :  { %v8666_v3 = vmul.f32 %v8650_v43, %v16406_v9  ;;  %v16419_v6 = vadd.f32 %v16362_v30, %v8598_v52  ;;  %v8697_v47 = vadd.f32 %v8681_v35, %v16392_v48  ;;  %v8715_v1 = vmul.f32 0.7978846, %v8699_v41 }
0x280d   :  { %v8684_v26 = vmul.f32 %v8668_v21, %v16401_v20  ;;  %v8655_v2 = vmul.f32 0.044715, %v16415_v5  ;;  %v11010_v40 = vpop.f32.mrf.mxu0  ;;  %12155 = vtanh.f32 %v8710_v59 }
0x280e   :  { %v8682_v36 = vmul.f32 %v8666_v3, %v16406_v9  ;;  %v8653_v27 = vmul.f32 0.044715, %v16419_v6  ;;  %v16427_v62 = vadd.f32 %v11010_v40, %v16362_v30  ;;  %v8713_v22 = vmul.f32 0.7978846, %v8697_v47 }
0x280f   :  { %v8700_v23 = vadd.f32 %v8684_v26, %v16401_v20  ;;  %v8671_v10 = vmul.f32 %v8655_v2, %v16415_v5  ;;  %v8601_v17 = vpop.f32.mrf.mxu0  ;;  %v8631_v3 = vmul.f32 0.5, %v16365_v12 }
0x2810   :  { %v8656_v24 = vmul.f32 0.044715, %v16427_v62  ;;  %v16433_v50 = vadd.f32 %v16362_v30, %v8601_v17  ;;  %v8698_v31 = vadd.f32 %v8682_v36, %v16406_v9  ;;  %v8669_v29 = vmul.f32 %v8653_v27, %v16419_v6 }
0x2811   :  { %v8716_v54 = vmul.f32 0.7978846, %v8700_v23  ;;  %v11013_v42 = vpop.f32.mrf.mxu0  ;;  %12157 = vtanh.f32 %v8713_v22  ;;  %v8687_v8 = vmul.f32 %v8671_v10, %v16415_v5  ;;  %v8629_v10 = vmul.f32 0.5, %v16369_v33 }
0x2812   :  { %12159 = vtanh.f32 %v8715_v1  ;;  %v8672_v63 = vmul.f32 %v8656_v24, %v16427_v62  ;;  %v8654_v18 = vmul.f32 0.044715, %v16433_v50  ;;  %v16440_v4 = vadd.f32 %v11013_v42, %v16362_v30 }
0x2813   :  { %12161 = vtanh.f32 %v8716_v54  ;;  %v8614_v7 = vpop.f32.mrf.mxu0  ;;  %v8714_v37 = vmul.f32 0.7978846, %v8698_v31  ;;  %v12150_v25 = vpop.eup %12149  ;;  %v8685_v43 = vmul.f32 %v8669_v29, %v16419_v6  ;;  %v8703_v1 = vadd.f32 %v8687_v8, %v16415_v5 }
0x2814   :  { %v8688_v15 = vmul.f32 %v8672_v63, %v16427_v62  ;;  %v8670_v41 = vmul.f32 %v8654_v18, %v16433_v50  ;;  %v8659_v35 = vmul.f32 0.044715, %v16440_v4  ;;  %v16448_v21 = vadd.f32 %v16362_v30, %v8614_v7 }
0x2815   :  { %v11014_v52 = vpop.f32.mrf.mxu0  ;;  %12163 = vtanh.f32 %v8714_v37  ;;  %v8632_v31 = vmul.f32 0.5, %v16374_v61  ;;  %v8701_v63 = vadd.f32 %v8685_v43, %v16419_v6  ;;  %v8743_v8 = vadd.f32 1.0, %v12150_v25 }
0x2816   :  { %v12152_v59 = vpop.eup %12151  ;;  %v8704_v47 = vadd.f32 %v8688_v15, %v16427_v62  ;;  %v8686_v26 = vmul.f32 %v8670_v41, %v16433_v50  ;;  %v8675_v2 = vmul.f32 %v8659_v35, %v16440_v4  ;;  %v8657_v36 = vmul.f32 0.044715, %v16448_v21 }
0x2817   :  { %v12154_v40 = vpop.eup %12153  ;;  %v16457_v27 = vadd.f32 %v11014_v52, %v16362_v30  ;;  %v8617_v23 = vpop.f32.mrf.mxu0  ;;  %v8741_v24 = vadd.f32 1.0, %v12152_v59  ;;  %v8630_v61 = vmul.f32 0.5, %v16380_v32 }
0x2818   :  { %v8744_v17 = vadd.f32 1.0, %v12154_v40  ;;  %v8691_v12 = vmul.f32 %v8675_v2, %v16440_v4  ;;  %v16462_v22 = vadd.f32 %v16362_v30, %v8617_v23  ;;  %v8720_v54 = vmul.f32 0.7978846, %v8704_v47 }
0x2819   :  { %v8660_v29 = vmul.f32 0.044715, %v16457_v27  ;;  %v16466_v42 = vpop.f32.mrf.mxu0  ;;  %v8673_v33 = vmul.f32 %v8657_v36, %v16448_v21  ;;  %v8702_v37 = vadd.f32 %v8686_v26, %v16433_v50  ;;  %v8719_v30 = vmul.f32 0.7978846, %v8703_v1 }
0x281a   :  { %v12156_v18 = vpop.eup %12155  ;;  %v8658_v7 = vmul.f32 0.044715, %v16462_v22  ;;  %v8760_v52 = vmul.f32 %v8744_v17, %v8632_v31  ;;  %v8707_v59 = vadd.f32 %v8691_v12, %v16440_v4  ;;  %v8757_v47 = vmul.f32 %v8741_v24, %v8629_v10 }
0x281b   :  { %v8676_v15 = vmul.f32 %v8660_v29, %v16457_v27  ;;  %v11053_v41 = vpop.f32.mrf.mxu0  ;;  %v8742_v35 = vadd.f32 1.0, %v12156_v18  ;;  %12165 = vtanh.f32 %v8720_v54  ;;  %v8717_v36 = vmul.f32 0.7978846, %v8701_v63 }
0x281c   :  { %v8674_v43 = vmul.f32 %v8658_v7, %v16462_v22  ;;  %v8759_v1 = vmul.f32 %v8743_v8, %v8631_v3  ;;  %v8689_v23 = vmul.f32 %v8673_v33, %v16448_v21  ;;  %v8718_v32 = vmul.f32 0.7978846, %v8702_v37 }
0x281d   :  { %v8692_v25 = vmul.f32 %v8676_v15, %v16457_v27  ;;  %v9170_v2 = vpop.f32.mrf.mxu0  ;;  %v8758_v40 = vmul.f32 %v8742_v35, %v8630_v61  ;;  %12167 = vtanh.f32 %v8719_v30  ;;  %v8723_v54 = vmul.f32 0.7978846, %v8707_v59 }
0x281e   :  { %v12158_v26 = vpop.eup %12157  ;;  %v8690_v29 = vmul.f32 %v8674_v43, %v16462_v22  ;;  %v8792_v24 = vpack.c.bf16 %v8760_v52, %v8759_v1  ;;  %12169 = vtanh.f32 %v8717_v36  ;;  %v8636_v3 = vmul.f32 0.5, %v16401_v20 }
0x281f   :  { %v12160_v18 = vpop.eup %12159  ;;  %v8708_v17 = vadd.f32 %v8692_v25, %v16457_v27  ;;  %v11054_v12 = vpop.f32.mrf.mxu0  ;;  %v8791_v31 = vpack.c.bf16 %v8758_v40, %v8757_v47  ;;  %v8745_v63 = vadd.f32 1.0, %v12158_v26  ;;  %12171 = vtanh.f32 %v8718_v32 }
0x2820   :  { %v12162_v10 = vpop.eup %12161  ;;  %v8747_v15 = vadd.f32 1.0, %v12160_v18  ;;  %v8705_v37 = vadd.f32 %v8689_v23, %v16448_v21  ;;  %v8706_v30 = vadd.f32 %v8690_v29, %v16462_v22  ;;  %v8633_v41 = vmul.f32 0.5, %v16392_v48 }
0x2821   :  { %v8724_v7 = vmul.f32 0.7978846, %v8708_v17  ;;  %11031 = vmatprep.mubr.bf16.mxu1 %v8791_v31  ;;  %v8748_v8 = vadd.f32 1.0, %v12162_v10  ;;  %v8634_v61 = vmul.f32 0.5, %v16406_v9  ;;  %v8635_v52 = vmul.f32 0.5, %v16386_v19 }
0x2822   :  { %v12164_v33 = vpop.eup %12163  ;;  %11032 = vmatmul.mubr.bf16.vlgmr.msra.gmra.mxu1 %v8792_v24  ;;  %12173 = vtanh.f32 %v8723_v54  ;;  %v8721_v43 = vmul.f32 0.7978846, %v8705_v37  ;;  %v8722_v20 = vmul.f32 0.7978846, %v8706_v30  ;;  %v8761_v47 = vmul.f32 %v8745_v63, %v8633_v41 }
0x2823   :  { %v8746_v35 = vadd.f32 1.0, %v12164_v33  ;;  %v8764_v59 = vmul.f32 %v8748_v8, %v8636_v3  ;;  %12175 = vtanh.f32 %v8724_v7  ;;  %v8763_v2 = vmul.f32 %v8747_v15, %v8635_v52 }
0x2824   :  { %12177 = vtanh.f32 %v8721_v43  ;;  %v8640_v29 = vmul.f32 0.5, %v16427_v62  ;;  %v8637_v18 = vmul.f32 0.5, %v16419_v6  ;;  %v8638_v17 = vmul.f32 0.5, %v16433_v50 }
0x2825   :  { %v8762_v25 = vmul.f32 %v8746_v35, %v8634_v61  ;;  %12179 = vtanh.f32 %v8722_v20  ;;  %v8794_v36 = vpack.c.bf16 %v8764_v59, %v8763_v2  ;;  %v8639_v10 = vmul.f32 0.5, %v16415_v5 }
0x2826   :  { %v8641_v37 = vmul.f32 0.5, %v16448_v21  ;;  %v8642_v6 = vmul.f32 0.5, %v16462_v22  ;;  %v8644_v35 = vmul.f32 0.5, %v16457_v27  ;;  %v8643_v43 = vmul.f32 0.5, %v16440_v4  ;;  %v9906_v22 = vld [vmem:[%s16855_s14 + $0x10] ss:$0 sm:$0xff] }
0x2827   :  { %v8793_v40 = vpack.c.bf16 %v8762_v25, %v8761_v47 }
0x2828   :  { %v12166_v26 = vpop.eup %12165 }
0x2829   :  { %11035 = vmatprep.mubr.bf16.mxu1 %v8793_v40  ;;  %v8752_v1 = vadd.f32 1.0, %v12166_v26 }
0x282a   :  { %11036 = vmatmul.mubr.bf16.gmra.mxu1 %v8794_v36  ;;  %v12168_v48 = vpop.eup %12167 }
0x282b   :  { %v12170_v9 = vpop.eup %12169  ;;  %v8751_v32 = vadd.f32 1.0, %v12168_v48  ;;  %v8768_v24 = vmul.f32 %v8752_v1, %v8640_v29 }
0x282c   :  { %v8749_v23 = vadd.f32 1.0, %v12170_v9  ;;  %v12172_v19 = vpop.eup %12171 }
0x282d   :  { %v8750_v12 = vadd.f32 1.0, %v12172_v19  ;;  %v8767_v8 = vmul.f32 %v8751_v32, %v8639_v10 }
0x282e   :  { %v8765_v7 = vmul.f32 %v8749_v23, %v8637_v18 }
0x282f   :  { %v12174_v31 = vpop.eup %12173  ;;  %v8766_v63 = vmul.f32 %v8750_v12, %v8638_v17  ;;  %v8796_v30 = vpack.c.bf16 %v8768_v24, %v8767_v8 }
0x2830   :  { %v12176_v54 = vpop.eup %12175  ;;  %v8755_v52 = vadd.f32 1.0, %v12174_v31 }
0x2831   :  { %v12178_v3 = vpop.eup %12177  ;;  %v8795_v15 = vpack.c.bf16 %v8766_v63, %v8765_v7  ;;  %v8756_v50 = vadd.f32 1.0, %v12176_v54 }
0x2832   :  { %v12180_v33 = vpop.eup %12179  ;;  %v8753_v62 = vadd.f32 1.0, %v12178_v3  ;;  %v8771_v47 = vmul.f32 %v8755_v52, %v8643_v43 }
0x2833   :  { %v8754_v41 = vadd.f32 1.0, %v12180_v33  ;;  %11039 = vmatprep.mubr.bf16.mxu1 %v8795_v15  ;;  %v8772_v20 = vmul.f32 %v8756_v50, %v8644_v35 }
0x2834   :  { %11040 = vmatmul.mubr.bf16.gmra.mxu1 %v8796_v30  ;;  %v8769_v61 = vmul.f32 %v8753_v62, %v8641_v37 }
0x2835   :  { %v8770_v5 = vmul.f32 %v8754_v41, %v8642_v6  ;;  %v8798_v21 = vpack.c.bf16 %v8772_v20, %v8771_v47 }
0x2837   :  { %v8797_v59 = vpack.c.bf16 %v8770_v5, %v8769_v61 }
0x2839   :  { %11043 = vmatprep.mubr.bf16.mxu1 %v8797_v59 }
0x283c   :  { %11044 = vmatmul.mubr.bf16.gmra.mxu1 %v8798_v21 }
0x28e2   :  { %v11033_v25 = vpop.f32.mrf.mxu1 }
0x28e3   :  { %v8896_v26 = vadd.f32 %v11033_v25, %v9906_v22 }
0x28e4   :  { %v8887_v2 = vpop.f32.mrf.mxu1 }
0x28e5   :  { %v8888_v40 = vadd.f32 %v9906_v22, %v8887_v2 }
0x28e6   :  { %v11034_v36 = vpop.f32.mrf.mxu1 }
0x28e7   :  { %8966 = vrot.lane.b32.xlu1 %v8888_v40, %s12233_s1  ;;  %v8899_v1 = vadd.f32 %v11034_v36, %v9906_v22 }
0x28e8   :  { %v8890_v27 = vpop.f32.mrf.mxu1 }
0x28e9   :  { %v8891_v48 = vadd.f32 %v9906_v22, %v8890_v27 }
0x28ea   :  { %v11037_v9 = vpop.f32.mrf.mxu1 }
0x28eb   :  { %8968 = vrot.lane.b32.xlu0 %v8891_v48, %s12233_s1  ;;  %8970 = vrot.lane.b32.xlu1 %v8896_v26, %s12233_s1  ;;  %v8912_v32 = vadd.f32 %v11037_v9, %v9906_v22 }
0x28ec   :  { %v8903_v4 = vpop.f32.mrf.mxu1 }
0x28ed   :  { %v8904_v23 = vadd.f32 %v9906_v22, %v8903_v4 }
0x28ee   :  { %v11038_v19 = vpop.f32.mrf.mxu1 }
0x28ef   :  { %8972 = vrot.lane.b32.xlu0 %v8899_v1, %s12233_s1  ;;  %8974 = vrot.lane.b32.xlu1 %v8904_v23, %s12233_s1  ;;  %v8915_v17 = vadd.f32 %v11038_v19, %v9906_v22 }
0x28f0   :  { %v8906_v29 = vpop.f32.mrf.mxu1 }
0x28f1   :  { %v8907_v18 = vadd.f32 %v9906_v22, %v8906_v29 }
0x28f3   :  { %8976 = vrot.lane.b32.xlu0 %v8907_v18, %s12233_s1  ;;  %8978 = vrot.lane.b32.xlu1 %v8912_v32, %s12233_s1 }
0x28f4   :  { %v11041_v12 = vpop.f32.mrf.mxu1 }
0x28f5   :  { %v8928_v7 = vadd.f32 %v11041_v12, %v9906_v22 }
0x28f6   :  { %v8919_v31 = vpop.f32.mrf.mxu1 }
0x28f7   :  { %8980 = vrot.lane.b32.xlu0 %v8915_v17, %s12233_s1  ;;  %v8920_v10 = vadd.f32 %v9906_v22, %v8919_v31 }
0x28f8   :  { %v11042_v24 = vpop.f32.mrf.mxu1 }
0x28f9   :  { %8982 = vrot.lane.b32.xlu1 %v8920_v10, %s12233_s1  ;;  %v8931_v33 = vadd.f32 %v11042_v24, %v9906_v22 }
0x28fa   :  { %v8922_v54 = vpop.f32.mrf.mxu1 }
0x28fb   :  { %v8923_v63 = vadd.f32 %v9906_v22, %v8922_v54 }
0x28fc   :  { %v11045_v3 = vpop.f32.mrf.mxu1 }
0x28fd   :  { %8984 = vrot.lane.b32.xlu0 %v8923_v63, %s12233_s1  ;;  %8986 = vrot.lane.b32.xlu1 %v8928_v7, %s12233_s1  ;;  %v8944_v30 = vadd.f32 %v11045_v3, %v9906_v22 }
0x28fe   :  { %v8935_v8 = vpop.f32.mrf.mxu1 }
0x28ff   :  { %v8936_v15 = vadd.f32 %v9906_v22, %v8935_v8 }
0x2900   :  { %v11046_v37 = vpop.f32.mrf.mxu1 }
0x2901   :  { %8988 = vrot.lane.b32.xlu0 %v8931_v33, %s12233_s1  ;;  %8990 = vrot.lane.b32.xlu1 %v8936_v15, %s12233_s1  ;;  %v8947_v41 = vadd.f32 %v11046_v37, %v9906_v22 }
0x2902   :  { %v8938_v62 = vpop.f32.mrf.mxu1 }
0x2903   :  { %v8939_v6 = vadd.f32 %v9906_v22, %v8938_v62 }
0x2905   :  { %8992 = vrot.lane.b32.xlu0 %v8939_v6, %s12233_s1  ;;  %8994 = vrot.lane.b32.xlu1 %v8944_v30, %s12233_s1 }
0x2909   :  { %8996 = vrot.lane.b32.xlu0 %v8947_v41, %s12233_s1 }
0x2959   :  { %v8967_v50 = vpop.permute.xlu1 %8966 }
0x295a   :  { %v9014_v61 = vmul.f32 %v8967_v50, %v16292_v49 }
0x295c   :  { %9046 = vrot.lane.b32.xlu1 %v9014_v61, %s12219_s16 }
0x295d   :  { %v8969_v5 = vpop.permute.xlu0 %8968  ;;  %v8971_v35 = vpop.permute.xlu1 %8970 }
0x295e   :  { %v9015_v52 = vmul.f32 %v8969_v5, %v16292_v49  ;;  %v9016_v59 = vmul.f32 %v8971_v35, %v16292_v49 }
0x2960   :  { %9048 = vrot.lane.b32.xlu0 %v9015_v52, %s12219_s16  ;;  %9050 = vrot.lane.b32.xlu1 %v9016_v59, %s12219_s16 }
0x2961   :  { %v8973_v43 = vpop.permute.xlu0 %8972  ;;  %v8975_v20 = vpop.permute.xlu1 %8974 }
0x2962   :  { %v9017_v47 = vmul.f32 %v8973_v43, %v16292_v49  ;;  %v9018_v21 = vmul.f32 %v8975_v20, %v16292_v49 }
0x2964   :  { %9052 = vrot.lane.b32.xlu0 %v9017_v47, %s12219_s16  ;;  %9054 = vrot.lane.b32.xlu1 %v9018_v21, %s12219_s16 }
0x2965   :  { %v8977_v25 = vpop.permute.xlu0 %8976  ;;  %v8979_v22 = vpop.permute.xlu1 %8978 }
0x2966   :  { %v9019_v2 = vmul.f32 %v8977_v25, %v16292_v49  ;;  %v9020_v40 = vmul.f32 %v8979_v22, %v16292_v49 }
0x2968   :  { %9056 = vrot.lane.b32.xlu0 %v9019_v2, %s12219_s16  ;;  %9058 = vrot.lane.b32.xlu1 %v9020_v40, %s12219_s16 }
0x2969   :  { %v8981_v36 = vpop.permute.xlu0 %8980 }
0x296a   :  { %v9021_v27 = vmul.f32 %v8981_v36, %v16292_v49 }
0x296b   :  { %v8983_v26 = vpop.permute.xlu1 %8982 }
0x296c   :  { %9060 = vrot.lane.b32.xlu0 %v9021_v27, %s12219_s16  ;;  %v9022_v48 = vmul.f32 %v8983_v26, %v16305_v0 }
0x296e   :  { %9062 = vrot.lane.b32.xlu1 %v9022_v48, %s12219_s16 }
0x296f   :  { %v8985_v9 = vpop.permute.xlu0 %8984  ;;  %v8987_v4 = vpop.permute.xlu1 %8986 }
0x2970   :  { %v9023_v1 = vmul.f32 %v8985_v9, %v16305_v0  ;;  %v9024_v23 = vmul.f32 %v8987_v4, %v16305_v0 }
0x2972   :  { %9064 = vrot.lane.b32.xlu0 %v9023_v1, %s12219_s16  ;;  %9066 = vrot.lane.b32.xlu1 %v9024_v23, %s12219_s16 }
0x2973   :  { %v8989_v19 = vpop.permute.xlu0 %8988  ;;  %v8991_v29 = vpop.permute.xlu1 %8990 }
0x2974   :  { %v9025_v49 = vmul.f32 %v8989_v19, %v16305_v0  ;;  %v9026_v32 = vmul.f32 %v8991_v29, %v16305_v0 }
0x2976   :  { %9068 = vrot.lane.b32.xlu0 %v9025_v49, %s12219_s16  ;;  %9070 = vrot.lane.b32.xlu1 %v9026_v32, %s12219_s16 }
0x2977   :  { %v8993_v18 = vpop.permute.xlu0 %8992  ;;  %v8995_v17 = vpop.permute.xlu1 %8994 }
0x2978   :  { %v9027_v12 = vmul.f32 %v8993_v18, %v16305_v0  ;;  %v9028_v31 = vmul.f32 %v8995_v17, %v16305_v0 }
0x297a   :  { %9072 = vrot.lane.b32.xlu0 %v9027_v12, %s12219_s16  ;;  %9074 = vrot.lane.b32.xlu1 %v9028_v31, %s12219_s16 }
0x297b   :  { %v8997_v10 = vpop.permute.xlu0 %8996 }
0x297c   :  { %v9029_v24 = vmul.f32 %v8997_v10, %v16305_v0 }
0x297e   :  { %9076 = vrot.lane.b32.xlu0 %v9029_v24, %s12219_s16 }
0x29ce   :  { %v9047_v54 = vpop.permute.xlu1 %9046 }
0x29cf   :  { %v16546_v7 = vadd.f32 %v9047_v54, %v16105_v55 }
0x29d1   :  { %v9206_v63 = vsel %vm302_vm2, %v16546_v7, 0.0 }
0x29d2   :  { %v9049_v3 = vpop.permute.xlu0 %9048  ;;  %9207 = vadd.xlane.f32.xlu1 %v9206_v63  ;;  %v9051_v8 = vpop.permute.xlu1 %9050 }
0x29d3   :  { %v16551_v33 = vadd.f32 %v9049_v3, %v16102_v39  ;;  %v16554_v15 = vadd.f32 %v9051_v8, %v16108_v53 }
0x29d5   :  { %v9209_v0 = vsel %vm302_vm2, %v16551_v33, 0.0  ;;  %v9212_v39 = vsel %vm302_vm2, %v16554_v15, 0.0 }
0x29d6   :  { %9210 = vadd.xlane.f32.xlu0 %v9209_v0  ;;  %v9053_v37 = vpop.permute.xlu0 %9052  ;;  %v9055_v62 = vpop.permute.xlu1 %9054 }
0x29d7   :  { %v16559_v55 = vadd.f32 %v9053_v37, %v16113_v57  ;;  %v16562_v30 = vadd.f32 %v9055_v62, %v16118_v14 }
0x29d9   :  { %v9215_v6 = vsel %vm302_vm2, %v16559_v55, 0.0  ;;  %v9218_v14 = vsel %vm302_vm2, %v16562_v30, 0.0 }
0x29da   :  { %v9057_v53 = vpop.permute.xlu0 %9056  ;;  %9216 = vadd.xlane.f32.xlu1 %v9215_v6  ;;  %9213 = vadd.xlane.f32.xlu0 %v9212_v39  ;;  %v9059_v41 = vpop.permute.xlu1 %9058 }
0x29db   :  { %v16569_v50 = vadd.f32 %v9057_v53, %v16123_v28  ;;  %v16572_v61 = vadd.f32 %v9059_v41, %v16128_v58 }
0x29dd   :  { %v9221_v57 = vsel %vm302_vm2, %v16569_v50, 0.0  ;;  %v9224_v28 = vsel %vm302_vm2, %v16572_v61, 0.0 }
0x29de   :  { %v9061_v5 = vpop.permute.xlu0 %9060  ;;  %9222 = vadd.xlane.f32.xlu1 %v9221_v57  ;;  %9219 = vadd.xlane.f32.xlu0 %v9218_v14 }
0x29df   :  { %v16579_v35 = vadd.f32 %v9061_v5, %v16133_v16 }
0x29e0   :  { %v9063_v58 = vpop.permute.xlu1 %9062 }
0x29e1   :  { %v9227_v52 = vsel %vm302_vm2, %v16579_v35, 0.0  ;;  %v16586_v59 = vadd.f32 %v9063_v58, %v16142_v13 }
0x29e2   :  { %9228 = vadd.xlane.f32.xlu1 %v9227_v52  ;;  %9225 = vadd.xlane.f32.xlu0 %v9224_v28 }
0x29e3   :  { %v9230_v43 = vsel %vm302_vm2, %v16586_v59, 0.0 }
0x29e4   :  { %v9065_v20 = vpop.permute.xlu0 %9064  ;;  %v9067_v47 = vpop.permute.xlu1 %9066 }
0x29e5   :  { %v16591_v16 = vadd.f32 %v9065_v20, %v16147_v44  ;;  %v16594_v21 = vadd.f32 %v9067_v47, %v16150_v38 }
0x29e6   :  { %9231 = vadd.xlane.f32.xlu0 %v9230_v43 }
0x29e7   :  { %v9233_v25 = vsel %vm302_vm2, %v16591_v16, 0.0  ;;  %v9236_v22 = vsel %vm302_vm2, %v16594_v21, 0.0 }
0x29e8   :  { %v9069_v13 = vpop.permute.xlu0 %9068  ;;  %9234 = vadd.xlane.f32.xlu1 %v9233_v25  ;;  %v9071_v2 = vpop.permute.xlu1 %9070 }
0x29e9   :  { %v16601_v40 = vadd.f32 %v9069_v13, %v16157_v34  ;;  %v16604_v36 = vadd.f32 %v9071_v2, %v16160_v56 }
0x29ea   :  { %9237 = vadd.xlane.f32.xlu0 %v9236_v22 }
0x29eb   :  { %v9239_v44 = vsel %vm302_vm2, %v16601_v40, 0.0  ;;  %v9242_v38 = vsel %vm302_vm2, %v16604_v36, 0.0 }
0x29ec   :  { %v9073_v27 = vpop.permute.xlu0 %9072  ;;  %9240 = vadd.xlane.f32.xlu1 %v9239_v44  ;;  %v9075_v26 = vpop.permute.xlu1 %9074 }
0x29ed   :  { %v16611_v48 = vadd.f32 %v9073_v27, %v16167_v11  ;;  %v16614_v9 = vadd.f32 %v9075_v26, %v16170_v51 }
0x29ee   :  { %9243 = vadd.xlane.f32.xlu0 %v9242_v38 }
0x29ef   :  { %v9245_v34 = vsel %vm302_vm2, %v16611_v48, 0.0  ;;  %v9248_v56 = vsel %vm302_vm2, %v16614_v9, 0.0 }
0x29f0   :  { %v9077_v4 = vpop.permute.xlu0 %9076  ;;  %9246 = vadd.xlane.f32.xlu1 %v9245_v34 }
0x29f1   :  { %v16621_v1 = vadd.f32 %v9077_v4, %v16177_v46 }
0x29f2   :  { %9249 = vadd.xlane.f32.xlu0 %v9248_v56 }
0x29f3   :  { %v9251_v23 = vsel %vm302_vm2, %v16621_v1, 0.0 }
0x29f4   :  { %9252 = vadd.xlane.f32.xlu1 %v9251_v23 }
0x2a5b   :  { %v9208_v11 = vpop.xlane.xlu1 %9207 }
0x2a5c   :  { %v9254_v19 = vmul.f32 0.03125, %v9208_v11 }
0x2a5e   :  { %v16626_v51 = vsub.f32 %v16546_v7, %v9254_v19 }
0x2a5f   :  { %v9211_v29 = vpop.xlane.xlu0 %9210 }
0x2a60   :  { %v9255_v49 = vmul.f32 0.03125, %v9211_v29  ;;  %v9286_v32 = vmul.f32 %v16626_v51, %v16626_v51 }
0x2a62   :  { %v16631_v18 = vsub.f32 %v16551_v33, %v9255_v49  ;;  %v9302_v46 = vsel %vm302_vm2, %v9286_v32, 0.0 }
0x2a63   :  { %v9214_v17 = vpop.xlane.xlu0 %9213  ;;  %9303 = vadd.xlane.f32.xlu0 %v9302_v46  ;;  %v9217_v12 = vpop.xlane.xlu1 %9216 }
0x2a64   :  { %v9256_v31 = vmul.f32 0.03125, %v9214_v17  ;;  %v9257_v10 = vmul.f32 0.03125, %v9217_v12  ;;  %v9287_v24 = vmul.f32 %v16631_v18, %v16631_v18 }
0x2a66   :  { %v16637_v54 = vsub.f32 %v16554_v15, %v9256_v31  ;;  %v16640_v7 = vsub.f32 %v16559_v55, %v9257_v10  ;;  %v9305_v63 = vsel %vm302_vm2, %v9287_v24, 0.0 }
0x2a67   :  { %9306 = vadd.xlane.f32.xlu1 %v9305_v63  ;;  %v9220_v3 = vpop.xlane.xlu0 %9219  ;;  %v9223_v8 = vpop.xlane.xlu1 %9222 }
0x2a68   :  { %v9258_v33 = vmul.f32 0.03125, %v9220_v3  ;;  %v9259_v0 = vmul.f32 0.03125, %v9223_v8  ;;  %v9288_v37 = vmul.f32 %v16637_v54, %v16637_v54  ;;  %v9289_v62 = vmul.f32 %v16640_v7, %v16640_v7 }
0x2a6a   :  { %v16648_v6 = vsub.f32 %v16562_v30, %v9258_v33  ;;  %v16651_v15 = vsub.f32 %v16569_v50, %v9259_v0  ;;  %v9308_v55 = vsel %vm302_vm2, %v9288_v37, 0.0  ;;  %v9311_v39 = vsel %vm302_vm2, %v9289_v62, 0.0  ;;  %v9915_v37 = vld [vmem:[%s16855_s14 + $0x3] ss:$0 sm:$0xff] }
0x2a6b   :  { %v9226_v53 = vpop.xlane.xlu0 %9225  ;;  %9309 = vadd.xlane.f32.xlu0 %v9308_v55  ;;  %9312 = vadd.xlane.f32.xlu1 %v9311_v39  ;;  %v9229_v41 = vpop.xlane.xlu1 %9228 }
0x2a6c   :  { %v9260_v57 = vmul.f32 0.03125, %v9226_v53  ;;  %v9261_v14 = vmul.f32 0.03125, %v9229_v41  ;;  %v9290_v5 = vmul.f32 %v16648_v6, %v16648_v6  ;;  %v9291_v30 = vmul.f32 %v16651_v15, %v16651_v15 }
0x2a6e   :  { %v16660_v52 = vsub.f32 %v16572_v61, %v9260_v57  ;;  %v16663_v50 = vsub.f32 %v16579_v35, %v9261_v14  ;;  %v9314_v28 = vsel %vm302_vm2, %v9290_v5, 0.0  ;;  %v9317_v58 = vsel %vm302_vm2, %v9291_v30, 0.0 }
0x2a6f   :  { %9315 = vadd.xlane.f32.xlu0 %v9314_v28  ;;  %9318 = vadd.xlane.f32.xlu1 %v9317_v58  ;;  %v9232_v43 = vpop.xlane.xlu0 %9231 }
0x2a70   :  { %v9292_v20 = vmul.f32 %v16660_v52, %v16660_v52  ;;  %v9293_v47 = vmul.f32 %v16663_v50, %v16663_v50  ;;  %v9262_v25 = vmul.f32 0.03125, %v9232_v43  ;;  %v11467_v43 = vld [vmem:[%s16865_s13 + $0x8] sm:$0xff]  }
0x2a71   :  { %v9235_v35 = vpop.xlane.xlu1 %9234  ;;  %11055 = vmatprep.subr.bf16.mxu0 %v11467_v43 }
0x2a72   :  { %v9320_v61 = vsel %vm302_vm2, %v9292_v20, 0.0  ;;  %v9323_v22 = vsel %vm302_vm2, %v9293_v47, 0.0  ;;  %v16674_v44 = vsub.f32 %v16586_v59, %v9262_v25  ;;  %v9263_v38 = vmul.f32 0.03125, %v9235_v35  ;;  %11056 = vmatpush3.bf16.msra.mxu0 %v11467_v43 }
0x2a73   :  { %9321 = vadd.xlane.f32.xlu0 %v9320_v61  ;;  %9324 = vadd.xlane.f32.xlu1 %v9323_v22  ;;  %v9238_v13 = vpop.xlane.xlu0 %9237 }
0x2a74   :  { %v9264_v2 = vmul.f32 0.03125, %v9238_v13  ;;  %v16682_v23 = vsub.f32 %v16591_v16, %v9263_v38  ;;  %v9294_v11 = vmul.f32 %v16674_v44, %v16674_v44 }
0x2a75   :  { %v9241_v26 = vpop.xlane.xlu1 %9240 }
0x2a76   :  { %v16677_v27 = vsub.f32 %v16594_v21, %v9264_v2  ;;  %v9265_v56 = vmul.f32 0.03125, %v9241_v26  ;;  %v9326_v17 = vsel %vm302_vm2, %v9294_v11, 0.0  ;;  %v9295_v16 = vmul.f32 %v16682_v23, %v16682_v23 }
0x2a77   :  { %v9244_v34 = vpop.xlane.xlu0 %9243 }
0x2a78   :  { %v9296_v4 = vmul.f32 %v16677_v27, %v16677_v27  ;;  %v16687_v19 = vsub.f32 %v16601_v40, %v9265_v56  ;;  %v9266_v59 = vmul.f32 0.03125, %v9244_v34  ;;  %v9329_v8 = vsel %vm302_vm2, %v9295_v16, 0.0 }
0x2a79   :  { %v9247_v21 = vpop.xlane.xlu1 %9246 }
0x2a7a   :  { %v9332_v29 = vsel %vm302_vm2, %v9296_v4, 0.0  ;;  %v9297_v46 = vmul.f32 %v16687_v19, %v16687_v19  ;;  %v16696_v12 = vsub.f32 %v16604_v36, %v9266_v59  ;;  %v9267_v40 = vmul.f32 0.03125, %v9247_v21 }
0x2a7b   :  { %v9250_v49 = vpop.xlane.xlu0 %9249  ;;  %9333 = vadd.xlane.f32.xlu0 %v9332_v29 }
0x2a7c   :  { %v9268_v32 = vmul.f32 0.03125, %v9250_v49  ;;  %v9335_v10 = vsel %vm302_vm2, %v9297_v46, 0.0  ;;  %v16706_v33 = vsub.f32 %v16611_v48, %v9267_v40  ;;  %v9298_v0 = vmul.f32 %v16696_v12, %v16696_v12 }
0x2a7d   :  { %9336 = vadd.xlane.f32.xlu1 %v9335_v10  ;;  %v9253_v24 = vpop.xlane.xlu1 %9252  ;;  %v9168_v48 = vadd.f32 %v9915_v37, %v16466_v42 }
0x2a7e   :  { %v16699_v31 = vsub.f32 %v16614_v9, %v9268_v32  ;;  %v9269_v63 = vmul.f32 0.03125, %v9253_v24  ;;  %v9299_v39 = vmul.f32 %v16706_v33, %v16706_v33 }
0x2a7f   :  { %9327 = vadd.xlane.f32.xlu0 %v9326_v17  ;;  %v9180_v53 = vrot.slane %v9168_v48, %v17251_v60 }
0x2a80   :  { %v9300_v3 = vmul.f32 %v16699_v31, %v16699_v31  ;;  %v16709_v36 = vsub.f32 %v16621_v1, %v9269_v63  ;;  %v9338_v1 = vsel %vm302_vm2, %v9298_v0, 0.0  ;;  %v9341_v41 = vsel %vm302_vm2, %v9299_v39, 0.0 }
0x2a81   :  { %9330 = vadd.xlane.f32.xlu1 %v9329_v8  ;;  %v9181_v57 = vcombine.high %v9180_v53, %v9180_v53  ;;  %v9188_v5 = vrot.slane %v9180_v53, %v17251_v60 }
0x2a82   :  { %v9344_v9 = vsel %vm302_vm2, %v9300_v3, 0.0  ;;  %v9301_v62 = vmul.f32 %v16709_v36, %v16709_v36 }
0x2a83   :  { %9345 = vadd.xlane.f32.xlu0 %v9344_v9  ;;  %v9195_v14 = vrot.slane %v9181_v57, %v17251_v60  ;;  %v16732_v30 = vrot.slane %v9188_v5, %v17253_v45  ;;  %v11468_v60 = vld [vmem:[%s16865_s13] sm:$0xff]  }
0x2a84   :  { %v9347_v55 = vsel %vm302_vm2, %v9301_v62, 0.0  ;;  %11057 = vmatprep.subr.bf16.mxu0 %v11468_v60 }
0x2a85   :  { %9348 = vadd.xlane.f32.xlu1 %v9347_v55  ;;  %v16729_v42 = vrot.slane %v9195_v14, %v17253_v45  ;;  %v9414_v58 = vadd.f32 1.0, %v16732_v30  ;;  %11058 = vmatpush3.bf16.msra.mxu0 %v11468_v60 }
0x2a87   :  { %9339 = vadd.xlane.f32.xlu0 %v9338_v1  ;;  %v9415_v28 = vadd.f32 1.0, %v16729_v42 }
0x2a89   :  { %9342 = vadd.xlane.f32.xlu1 %v9341_v41 }
0x2a9a   :  { %9420 = vrot.lane.b32.xlu1 %v9415_v28, %s12219_s16 }
0x2a9d   :  { %9418 = vrot.lane.b32.xlu0 %v9414_v58, %s12219_s16 }
0x2aec   :  { %v9304_v45 = vpop.xlane.xlu0 %9303 }
0x2aed   :  { %v9350_v61 = vmul.f32 0.03125, %v9304_v45 }
0x2aef   :  { %v9366_v26 = vadd.f32 1e-06, %v9350_v61 }
0x2af0   :  { %v9307_v20 = vpop.xlane.xlu1 %9306 }
0x2af1   :  { %v9351_v38 = vmul.f32 0.03125, %v9307_v20  ;;  %12181 = vrsqrt.f32 %v9366_v26 }
0x2af3   :  { %v9367_v29 = vadd.f32 1e-06, %v9351_v38 }
0x2af4   :  { %v9310_v47 = vpop.xlane.xlu0 %9309  ;;  %v9313_v25 = vpop.xlane.xlu1 %9312 }
0x2af5   :  { %v9352_v35 = vmul.f32 0.03125, %v9310_v47  ;;  %v9353_v2 = vmul.f32 0.03125, %v9313_v25 }
0x2af7   :  { %v9368_v56 = vadd.f32 1e-06, %v9352_v35  ;;  %v9369_v11 = vadd.f32 1e-06, %v9353_v2 }
0x2af8   :  { %v9316_v22 = vpop.xlane.xlu0 %9315  ;;  %v9319_v13 = vpop.xlane.xlu1 %9318 }
0x2af9   :  { %v9354_v34 = vmul.f32 0.03125, %v9316_v22  ;;  %v9355_v4 = vmul.f32 0.03125, %v9319_v13  ;;  %12183 = vrsqrt.f32 %v9368_v56 }
0x2afa   :  { %12185 = vrsqrt.f32 %v9369_v11 }
0x2afb   :  { %v9370_v49 = vadd.f32 1e-06, %v9354_v34  ;;  %v9371_v32 = vadd.f32 1e-06, %v9355_v4  ;;  %12187 = vrsqrt.f32 %v9367_v29 }
0x2afc   :  { %v9322_v59 = vpop.xlane.xlu0 %9321  ;;  %v9325_v21 = vpop.xlane.xlu1 %9324 }
0x2afd   :  { %v9356_v46 = vmul.f32 0.03125, %v9322_v59  ;;  %v9357_v17 = vmul.f32 0.03125, %v9325_v21  ;;  %12189 = vrsqrt.f32 %v9370_v49 }
0x2afe   :  { %12191 = vrsqrt.f32 %v9371_v32  ;;  %v12182_v53 = vpop.eup %12181 }
0x2aff   :  { %v9372_v40 = vadd.f32 1e-06, %v9356_v46  ;;  %v9373_v10 = vadd.f32 1e-06, %v9357_v17  ;;  %v9398_v38 = vmul.f32 %v12182_v53, %v16626_v51 }
0x2b01   :  { %12193 = vrsqrt.f32 %v9372_v40 }
0x2b02   :  { %12195 = vrsqrt.f32 %v9373_v10 }
0x2b04   :  { %v9334_v16 = vpop.xlane.xlu0 %9333 }
0x2b05   :  { %v9360_v24 = vmul.f32 0.03125, %v9334_v16 }
0x2b06   :  { %v9337_v63 = vpop.xlane.xlu1 %9336  ;;  %v12184_v41 = vpop.eup %12183 }
0x2b07   :  { %v9361_v8 = vmul.f32 0.03125, %v9337_v63  ;;  %v9376_v0 = vadd.f32 1e-06, %v9360_v24  ;;  %v12186_v14 = vpop.eup %12185  ;;  %v9400_v25 = vmul.f32 %v12184_v41, %v16637_v54 }
0x2b08   :  { %v9328_v3 = vpop.xlane.xlu0 %9327  ;;  %v12188_v58 = vpop.eup %12187  ;;  %v9401_v61 = vmul.f32 %v12186_v14, %v16640_v7 }
0x2b09   :  { %v9358_v9 = vmul.f32 0.03125, %v9328_v3  ;;  %v9377_v62 = vadd.f32 1e-06, %v9361_v8  ;;  %v9399_v26 = vmul.f32 %v12188_v58, %v16631_v18 }
0x2b0a   :  { %v9331_v48 = vpop.xlane.xlu1 %9330  ;;  %v12190_v20 = vpop.eup %12189 }
0x2b0b   :  { %v9374_v37 = vadd.f32 1e-06, %v9358_v9  ;;  %v9359_v1 = vmul.f32 0.03125, %v9331_v48  ;;  %v12192_v47 = vpop.eup %12191  ;;  %v9402_v59 = vmul.f32 %v12190_v20, %v16648_v6 }
0x2b0c   :  { %v9346_v55 = vpop.xlane.xlu0 %9345  ;;  %v9403_v54 = vmul.f32 %v12192_v47, %v16651_v15 }
0x2b0d   :  { %v9364_v39 = vmul.f32 0.03125, %v9346_v55  ;;  %12197 = vrsqrt.f32 %v9374_v37  ;;  %v9375_v57 = vadd.f32 1e-06, %v9359_v1 }
0x2b0e   :  { %12199 = vrsqrt.f32 %v9376_v0  ;;  %v9349_v5 = vpop.xlane.xlu1 %9348  ;;  %v12194_v29 = vpop.eup %12193 }
0x2b0f   :  { %12201 = vrsqrt.f32 %v9377_v62  ;;  %v9380_v43 = vadd.f32 1e-06, %v9364_v39  ;;  %v9365_v60 = vmul.f32 0.03125, %v9349_v5  ;;  %v12196_v51 = vpop.eup %12195  ;;  %v9404_v10 = vmul.f32 %v12194_v29, %v16660_v52 }
0x2b10   :  { %v9340_v28 = vpop.xlane.xlu0 %9339  ;;  %12203 = vrsqrt.f32 %v9375_v57  ;;  %v9405_v24 = vmul.f32 %v12196_v51, %v16663_v50 }
0x2b11   :  { %v9362_v45 = vmul.f32 0.03125, %v9340_v28  ;;  %v9381_v22 = vadd.f32 1e-06, %v9365_v60  ;;  %12205 = vrsqrt.f32 %v9380_v43 }
0x2b12   :  { %v9343_v13 = vpop.xlane.xlu1 %9342 }
0x2b13   :  { %v9378_v35 = vadd.f32 1e-06, %v9362_v45  ;;  %v9363_v34 = vmul.f32 0.03125, %v9343_v13 }
0x2b14   :  { %v9419_v2 = vpop.permute.xlu0 %9418 }
0x2b15   :  { %v9426_v56 = vmul.f32 %v9419_v2, %v9400_v25  ;;  %v9427_v4 = vmul.f32 %v9419_v2, %v9401_v61  ;;  %12207 = vrsqrt.f32 %v9378_v35  ;;  %v9424_v11 = vmul.f32 %v9419_v2, %v9398_v38 }
0x2b16   :  { %12209 = vrsqrt.f32 %v9381_v22  ;;  %v9379_v7 = vadd.f32 1e-06, %v9363_v34  ;;  %v9425_v32 = vmul.f32 %v9419_v2, %v9399_v26  ;;  %v9428_v46 = vmul.f32 %v9419_v2, %v9402_v59  ;;  %v9421_v48 = vpop.permute.xlu1 %9420 }
0x2b17   :  { %v9442_v21 = vadd.f32 %v9426_v56, %v16732_v30  ;;  %v9443_v49 = vadd.f32 %v9427_v4, %v16732_v30  ;;  %v9440_v18 = vadd.f32 %v9424_v11, %v16732_v30  ;;  %v9429_v17 = vmul.f32 %v9419_v2, %v9403_v54  ;;  %v9919_v4 = vld [vmem:[%s16855_s14 + $0x4] ss:$0 sm:$0xff] }
0x2b18   :  { %12211 = vrsqrt.f32 %v9379_v7  ;;  %v9441_v16 = vadd.f32 %v9425_v32, %v16732_v30  ;;  %v9444_v6 = vadd.f32 %v9428_v46, %v16732_v30  ;;  %v9430_v37 = vmul.f32 %v9419_v2, %v9404_v10 }
0x2b19   :  { %v9445_v15 = vadd.f32 %v9429_v17, %v16732_v30  ;;  %v9462_v63 = vpack.c.bf16 %v9443_v49, %v9442_v21  ;;  %v9431_v62 = vmul.f32 %v9419_v2, %v9405_v24 }
0x2b1a   :  { %v12198_v40 = vpop.eup %12197  ;;  %v9461_v8 = vpack.c.bf16 %v9441_v16, %v9440_v18 }
0x2b1b   :  { %v12200_v3 = vpop.eup %12199  ;;  %v9406_v9 = vmul.f32 %v12198_v40, %v16674_v44  ;;  %v9463_v1 = vpack.c.bf16 %v9445_v15, %v9444_v6  ;;  %v9446_v44 = vadd.f32 %v9430_v37, %v16732_v30  ;;  %v9447_v41 = vadd.f32 %v9431_v62, %v16732_v30 }
0x2b1c   :  { %v12202_v0 = vpop.eup %12201  ;;  %11059 = vmatprep.mubr.msk.bf16.mxu0 %vm302_vm2, %v9461_v8  ;;  %v9408_v50 = vmul.f32 %v12200_v3, %v16677_v27 }
0x2b1d   :  { %v12204_v55 = vpop.eup %12203  ;;  %v9432_v39 = vmul.f32 %v9421_v48, %v9406_v9  ;;  %11060 = vmatmul.mubr.msk.bf16.vlgmr.msra.gmra.mxu0 %vm302_vm2, %v9462_v63  ;;  %v9409_v53 = vmul.f32 %v12202_v0, %v16687_v19  ;;  %v9464_v45 = vpack.c.bf16 %v9447_v41, %v9446_v44 }
0x2b1e   :  { %v9407_v52 = vmul.f32 %v12204_v55, %v16682_v23  ;;  %11063 = vmatprep.mubr.msk.bf16.mxu0 %vm302_vm2, %v9463_v1  ;;  %v12206_v14 = vpop.eup %12205  ;;  %v9434_v60 = vmul.f32 %v9421_v48, %v9408_v50 }
0x2b1f   :  { %v9448_v5 = vadd.f32 %v9432_v39, %v16729_v42  ;;  %v9435_v27 = vmul.f32 %v9421_v48, %v9409_v53  ;;  %v9412_v61 = vmul.f32 %v12206_v14, %v16699_v31 }
0x2b20   :  { %v9433_v57 = vmul.f32 %v9421_v48, %v9407_v52  ;;  %v9450_v25 = vadd.f32 %v9434_v60, %v16729_v42 }
0x2b21   :  { %v9451_v35 = vadd.f32 %v9435_v27, %v16729_v42  ;;  %v9438_v38 = vmul.f32 %v9421_v48, %v9412_v61 }
0x2b22   :  { %v12208_v28 = vpop.eup %12207  ;;  %v9449_v58 = vadd.f32 %v9433_v57, %v16729_v42 }
0x2b23   :  { %v12210_v43 = vpop.eup %12209  ;;  %v9410_v23 = vmul.f32 %v12208_v28, %v16696_v12  ;;  %v9466_v34 = vpack.c.bf16 %v9451_v35, %v9450_v25 }
0x2b24   :  { %v9465_v47 = vpack.c.bf16 %v9449_v58, %v9448_v5  ;;  %v9413_v22 = vmul.f32 %v12210_v43, %v16709_v36 }
0x2b25   :  { %v12212_v20 = vpop.eup %12211  ;;  %v9436_v19 = vmul.f32 %v9421_v48, %v9410_v23  ;;  %11064 = vmatmul.mubr.msk.bf16.gmra.mxu0 %vm302_vm2, %v9464_v45 }
0x2b26   :  { %v9411_v30 = vmul.f32 %v12212_v20, %v16706_v33  ;;  %11067 = vmatprep.mubr.msk.bf16.mxu0 %vm302_vm2, %v9465_v47  ;;  %v9439_v26 = vmul.f32 %v9421_v48, %v9413_v22  ;;  %v9454_v33 = vadd.f32 %v9438_v38, %v16729_v42 }
0x2b27   :  { %v9452_v13 = vadd.f32 %v9436_v19, %v16729_v42 }
0x2b28   :  { %v9437_v12 = vmul.f32 %v9421_v48, %v9411_v30  ;;  %v9455_v31 = vadd.f32 %v9439_v26, %v16729_v42 }
0x2b2a   :  { %v9453_v2 = vadd.f32 %v9437_v12, %v16729_v42  ;;  %v9468_v36 = vpack.c.bf16 %v9455_v31, %v9454_v33 }
0x2b2c   :  { %v9467_v56 = vpack.c.bf16 %v9453_v2, %v9452_v13 }
0x2b2d   :  { %11068 = vmatmul.mubr.msk.bf16.gmra.mxu0 %vm302_vm2, %v9466_v34 }
0x2b2e   :  { %11071 = vmatprep.mubr.msk.bf16.mxu0 %vm302_vm2, %v9467_v56 }
0x2b35   :  { %11072 = vmatmul.mubr.msk.bf16.gmra.mxu0 %vm302_vm2, %v9468_v36 }
0x2bdd   :  { %v11061_v11 = vpop.f32.mrf.mxu0 }
0x2bde   :  { %v9554_v59 = vadd.f32 %v11061_v11, %v9919_v4 }
0x2bdf   :  { %v9545_v54 = vpop.f32.mrf.mxu0 }
0x2be0   :  { %9610 = vst.msk [vmem:[%s16866_s15 + $0x10] sm:$0xff] %vm302_vm2, %v9554_v59  ;;  %v9546_v29 = vadd.f32 %v9919_v4, %v9545_v54 }
0x2be1   :  { %v11062_v7 = vpop.f32.mrf.mxu0 }
0x2be2   :  { %9608 = vst.msk [vmem:[%s16866_s15] sm:$0xff] %vm302_vm2, %v9546_v29  ;;  %v9557_v42 = vadd.f32 %v11062_v7, %v9919_v4 }
0x2be3   :  { %v9548_v21 = vpop.f32.mrf.mxu0 }
0x2be4   :  { %9611 = vst.msk [vmem:[%s16866_s15 + $0x18] sm:$0xff] %vm302_vm2, %v9557_v42  ;;  %v9549_v49 = vadd.f32 %v9919_v4, %v9548_v21 }
0x2be5   :  { %v11065_v51 = vpop.f32.mrf.mxu0 }
0x2be6   :  { %9609 = vst.msk [vmem:[%s16866_s15 + $0x8] sm:$0xff] %vm302_vm2, %v9549_v49  ;;  %v9570_v32 = vadd.f32 %v11065_v51, %v9919_v4 }
0x2be7   :  { %v9561_v18 = vpop.f32.mrf.mxu0 }
0x2be8   :  { %9614 = vst.msk [vmem:[%s16866_s15 + $0x30] sm:$0xff] %vm302_vm2, %v9570_v32  ;;  %v9562_v46 = vadd.f32 %v9919_v4, %v9561_v18 }
0x2be9   :  { %v11066_v17 = vpop.f32.mrf.mxu0 }
0x2bea   :  { %9612 = vst.msk [vmem:[%s16866_s15 + $0x20] sm:$0xff] %vm302_vm2, %v9562_v46  ;;  %v9573_v16 = vadd.f32 %v11066_v17, %v9919_v4 }
0x2beb   :  { %v9564_v6 = vpop.f32.mrf.mxu0 }
0x2bec   :  { %9615 = vst.msk [vmem:[%s16866_s15 + $0x38] sm:$0xff] %vm302_vm2, %v9573_v16  ;;  %v9565_v15 = vadd.f32 %v9919_v4, %v9564_v6 }
0x2bed   :  { %v11069_v40 = vpop.f32.mrf.mxu0 }
0x2bee   :  { %9613 = vst.msk [vmem:[%s16866_s15 + $0x28] sm:$0xff] %vm302_vm2, %v9565_v15  ;;  %v9586_v10 = vadd.f32 %v11069_v40, %v9919_v4 }
0x2bef   :  { %v9577_v24 = vpop.f32.mrf.mxu0 }
0x2bf0   :  { %9618 = vst.msk [vmem:[%s16866_s15 + $0x50] sm:$0xff] %vm302_vm2, %v9586_v10  ;;  %v9578_v63 = vadd.f32 %v9919_v4, %v9577_v24 }
0x2bf1   :  { %v11070_v3 = vpop.f32.mrf.mxu0 }
0x2bf2   :  { %9616 = vst.msk [vmem:[%s16866_s15 + $0x40] sm:$0xff] %vm302_vm2, %v9578_v63  ;;  %v9589_v8 = vadd.f32 %v11070_v3, %v9919_v4 }
0x2bf3   :  { %v9580_v9 = vpop.f32.mrf.mxu0 }
0x2bf4   :  { %9619 = vst.msk [vmem:[%s16866_s15 + $0x58] sm:$0xff] %vm302_vm2, %v9589_v8  ;;  %v9581_v0 = vadd.f32 %v9919_v4, %v9580_v9 }
0x2bf5   :  { %v11073_v37 = vpop.f32.mrf.mxu0 }
0x2bf6   :  { %9617 = vst.msk [vmem:[%s16866_s15 + $0x48] sm:$0xff] %vm302_vm2, %v9581_v0  ;;  %v9602_v62 = vadd.f32 %v11073_v37, %v9919_v4 }
0x2bf7   :  { %v9593_v48 = vpop.f32.mrf.mxu0 }
0x2bf8   :  { %9622 = vst.msk [vmem:[%s16866_s15 + $0x70] sm:$0xff] %vm302_vm2, %v9602_v62  ;;  %v9594_v55 = vadd.f32 %v9919_v4, %v9593_v48 }
0x2bf9   :  { %v11074_v1 = vpop.f32.mrf.mxu0 }
0x2bfa   :  { %9620 = vst.msk [vmem:[%s16866_s15 + $0x60] sm:$0xff] %vm302_vm2, %v9594_v55  ;;  %v9605_v39 = vadd.f32 %v11074_v1, %v9919_v4 }
0x2bfb   :  { %v9596_v52 = vpop.f32.mrf.mxu0 }
0x2bfc   :  { %9623 = vst.msk [vmem:[%s16866_s15 + $0x78] sm:$0xff] %vm302_vm2, %v9605_v39  ;;  %v9597_v50 = vadd.f32 %v9919_v4, %v9596_v52 }
0x2bfe   :  { %9621 = vst.msk [vmem:[%s16866_s15 + $0x68] sm:$0xff] %vm302_vm2, %v9597_v50 }

</bundles_post_ra>
